<compile_context>
chip_gen: v7x
topology: tpu7x:2x2x1
jax: 0.10.0
libtpu: 0.0.40
codegen_flags: <defaults>
</compile_context>

<pallas_src>
import functools

import jax
import jax.numpy as jnp
import numpy as np
from jax.experimental import pallas as pl
from jax.experimental.pallas import tpu as pltpu


# ----------------------------------------------------------------------------
# Bicubic upsample (matches torch.nn.functional.interpolate, mode='bicubic',
# align_corners=False, cubic coefficient A=-0.75, border index clamping),
# expressed as two dense interpolation matmuls:  y = Ah @ x @ Aw^T.
# Plain-JAX glue; the conv hot path lives in the Pallas kernels below.
# ----------------------------------------------------------------------------
def _bicubic_matrix(out_size, in_size):
    A = -0.75
    scale = in_size / out_size
    dst = jnp.arange(out_size, dtype=jnp.float32)
    src = (dst + 0.5) * scale - 0.5
    i0 = jnp.floor(src)
    t = src - i0
    i0 = i0.astype(jnp.int32)

    def cc1(x):  # |x| <= 1
        return ((A + 2.0) * x - (A + 3.0)) * x * x + 1.0

    def cc2(x):  # 1 < |x| < 2
        return ((A * x - 5.0 * A) * x + 8.0 * A) * x - 4.0 * A

    w = jnp.stack([cc2(t + 1.0), cc1(t), cc1(1.0 - t), cc2(2.0 - t)], axis=0)
    idx = jnp.clip(jnp.stack([i0 - 1, i0, i0 + 1, i0 + 2], axis=0), 0, in_size - 1)
    rows = jnp.arange(out_size, dtype=jnp.int32)
    m = jnp.zeros((out_size, in_size), jnp.float32)
    for k in range(4):
        m = m.at[rows, idx[k]].add(w[k])
    return m


def bicubic_upsample(x, scale):
    # x: (B, C, H, W)  ->  (B, C, H*scale, W*scale)
    _, _, H, W = x.shape
    Ah = _bicubic_matrix(H * scale, H)          # (Ho, H)
    Aw = _bicubic_matrix(W * scale, W)          # (Wo, W)
    y = jnp.einsum('oh,bchw->bcow', Ah, x)
    y = jnp.einsum('pw,bcow->bcop', Aw, y)
    return y


# ----------------------------------------------------------------------------
# Pallas conv2d (stride 1, 'same' zero padding) with fused bias + optional ReLU
# ----------------------------------------------------------------------------
def _pick_row_tile(h):
    for th in (16, 8):
        if h % th == 0:
            return th
    return h  # full-extent fallback (always a legal block)


def _make_conv_kernel(TH, W, KH, K, Cout, relu):
    M = TH * W

    def kernel(x_ref, w_ref, b_ref, o_ref):
        # x_ref: (Hp, W, KW*Cin)   kw-unfolded padded image (resident per batch)
        # w_ref: (KH, KW*Cin, Cout)   b_ref: (1, Cout)   o_ref: (TH, W, Cout)
        r0 = pl.multiple_of(pl.program_id(1) * TH, TH)
        # Bias-initialized f32 accumulator (hoisted broadcast, no extra add).
        acc = jnp.broadcast_to(b_ref[...], (M, Cout)).astype(jnp.float32)
        for kh in range(KH):
            rows = x_ref[pl.ds(r0 + kh, TH), :, :]          # (TH, W, KW*Cin)
            acc = acc + jnp.dot(rows.reshape(M, K), w_ref[kh],
                                preferred_element_type=jnp.float32)
        if relu:
            acc = jnp.maximum(acc, 0.0)
        o_ref[...] = acc.reshape(TH, W, Cout).astype(o_ref.dtype)

    return kernel


def conv2d_pallas(x, w, b, relu):
    # x: (B, H, W, Cin) NHWC;  w: (KH, KW, Cin, Cout) HWIO;  b: (Cout,)
    B, H, W, Cin = x.shape
    KH, KW, _, Cout = w.shape
    ph, pw = KH // 2, KW // 2
    K = KW * Cin

    # Zero-pad and unfold the KW taps into the channel axis (partial im2col,
    # done once per layer by XLA): xcol[b,hp,w,kw*Cin+c] = xpad[b,hp,w+kw,c].
    # Inside the kernel each kh tap is then a single aligned outer-dim slice
    # feeding one big MXU matmul with contraction K = KW*Cin.
    xp = jnp.pad(x, ((0, 0), (ph, ph), (pw, pw), (0, 0)))
    xcol = jnp.concatenate([xp[:, :, kw:kw + W, :] for kw in range(KW)], axis=-1)
    Hp = H + 2 * ph

    wr = w.reshape(KH, K, Cout)     # (kh, kw*Cin + c, cout) matches xcol layout
    b2 = b.reshape(1, Cout)
    TH = _pick_row_tile(H)

    flops = 2 * B * H * W * KH * KW * Cin * Cout
    bytes_accessed = 4 * (B * Hp * W * K + KH * K * Cout + Cout + B * H * W * Cout)

    kernel = _make_conv_kernel(TH, W, KH, K, Cout, relu)
    return pl.pallas_call(
        kernel,
        out_shape=jax.ShapeDtypeStruct((B, H, W, Cout), x.dtype),
        grid=(B, H // TH),
        in_specs=[
            pl.BlockSpec((None, Hp, W, K), lambda bi, r: (bi, 0, 0, 0)),
            pl.BlockSpec((KH, K, Cout), lambda bi, r: (0, 0, 0)),
            pl.BlockSpec((1, Cout), lambda bi, r: (0, 0)),
        ],
        out_specs=pl.BlockSpec((None, TH, W, Cout), lambda bi, r: (bi, r, 0, 0)),
        compiler_params=pltpu.CompilerParams(
            dimension_semantics=("parallel", "parallel"),
            vmem_limit_bytes=32 * 1024 * 1024),
        cost_estimate=pl.CostEstimate(flops=flops, transcendentals=0,
                                      bytes_accessed=bytes_accessed),
    )(xcol, wr, b2)


# ----------------------------------------------------------------------------
# SRCNN forward
# ----------------------------------------------------------------------------
@functools.partial(jax.jit, static_argnames=("scale",))
def srcnn_forward(x_nchw, params, scale=2):
    x = bicubic_upsample(x_nchw, scale)          # (B, C, H*s, W*s)
    x = jnp.transpose(x, (0, 2, 3, 1))           # -> NHWC
    x = conv2d_pallas(x, params["w1"], params["b1"], relu=True)
    x = conv2d_pallas(x, params["w2"], params["b2"], relu=True)
    x = conv2d_pallas(x, params["w3"], params["b3"], relu=False)
    return jnp.transpose(x, (0, 3, 1, 2))        # -> NCHW


# ----------------------------------------------------------------------------
# Pure-JAX reference (same bicubic, lax conv) for correctness check
# ----------------------------------------------------------------------------
def _conv_ref(x, w, b):
    y = jax.lax.conv_general_dilated(
        x, w, window_strides=(1, 1),
        padding=[(w.shape[0] // 2,) * 2, (w.shape[1] // 2,) * 2],
        dimension_numbers=("NHWC", "HWIO", "NHWC"))
    return y + b


def srcnn_forward_ref(x_nchw, params, scale=2):
    x = bicubic_upsample(x_nchw, scale)
    x = jnp.transpose(x, (0, 2, 3, 1))
    x = jax.nn.relu(_conv_ref(x, params["w1"], params["b1"]))
    x = jax.nn.relu(_conv_ref(x, params["w2"], params["b2"]))
    x = _conv_ref(x, params["w3"], params["b3"])
    return jnp.transpose(x, (0, 3, 1, 2))


def init_params(key, num_in_ch=3, num_out_ch=3, num_feats=32):
    ks = jax.random.split(key, 6)

    def w_init(k, kh, kw, cin, cout):
        fan_in = kh * kw * cin
        return jax.random.normal(k, (kh, kw, cin, cout), jnp.float32) / np.sqrt(fan_in)

    return {
        "w1": w_init(ks[0], 9, 9, num_in_ch, num_feats),
        "b1": 0.01 * jax.random.normal(ks[1], (num_feats,), jnp.float32),
        "w2": w_init(ks[2], 5, 5, num_feats, num_feats),
        "b2": 0.01 * jax.random.normal(ks[3], (num_feats,), jnp.float32),
        "w3": w_init(ks[4], 5, 5, num_feats, num_out_ch),
        "b3": 0.01 * jax.random.normal(ks[5], (num_out_ch,), jnp.float32),
    }


if __name__ == "__main__":
    key = jax.random.PRNGKey(0)
    k_params, k_x = jax.random.split(key)

    params = init_params(k_params, num_in_ch=3, num_out_ch=3, num_feats=32)
    x = jax.random.normal(k_x, (2, 3, 16, 16), jnp.float32)  # NCHW, like PyTorch

    out = jax.block_until_ready(srcnn_forward(x, params, scale=2))
    ref = jax.block_until_ready(srcnn_forward_ref(x, params, scale=2))

    assert out.shape == (2, 3, 32, 32), out.shape
    assert out.dtype == jnp.float32
    max_err = float(jnp.max(jnp.abs(out - ref)))
    assert max_err < 2e-2, f"max abs error {max_err}"

    print("KERNEL_OK")
</pallas_src>

<mosaic_0001>
module attributes {stable_mosaic.version = 11 : i64} {
  func.func private @main(%arg0: i32) attributes {dimension_semantics = [#tpu.dimension_semantics<core_parallel>], iteration_bounds = array<i64: 2>, tpu.core_type = #tpu.core_type<sc_scalar_subcore>, window_params = []} {
    return
  }
}

module attributes {stable_mosaic.version = 11 : i64} {
  func.func private @main(%arg0: i32) attributes {dimension_semantics = [#tpu.dimension_semantics<core_parallel>], iteration_bounds = array<i64: 2>, tpu.core_type = #tpu.core_type<sc_scalar_subcore>, window_params = []} {
    return
  }
}

module attributes {stable_mosaic.version = 11 : i64} {
  func.func @kernel(%arg0: i32, %arg1: i32, %arg2: memref<1x40x32x27xf32, #tpu.memory_space<vmem>>, %arg3: memref<9x27x32xf32, #tpu.memory_space<vmem>>, %arg4: memref<1x32xf32, #tpu.memory_space<vmem>>, %arg5: memref<1x16x32x32xf32, #tpu.memory_space<vmem>>) attributes {dimension_semantics = [#tpu.dimension_semantics<parallel>, #tpu.dimension_semantics<parallel>], iteration_bounds = array<i64: 2, 2>, scalar_prefetch = 0 : i64, scratch_operands = 0 : i64, tpu.core_type = #tpu.core_type<tc>, window_params = [{transform_indices = @transform_0, window_bounds = array<i64: 1, 40, 32, 27>}, {pipeline_mode = #tpu.pipeline_mode<synchronous>, transform_indices = @transform_1, window_bounds = array<i64: 9, 27, 32>}, {pipeline_mode = #tpu.pipeline_mode<synchronous>, transform_indices = @transform_2, window_bounds = array<i64: 1, 32>}, {transform_indices = @transform_3, window_bounds = array<i64: 1, 16, 32, 32>}]} {
    %c16_i32 = arith.constant 16 : i32
    %0 = arith.muli %arg1, %c16_i32 : i32
    %1 = tpu.assume_multiple %0, 16 : i32
    %c0 = arith.constant 0 : index
    %c0_0 = arith.constant 0 : index
    %2 = vector.load %arg4[%c0, %c0_0] : memref<1x32xf32, #tpu.memory_space<vmem>>, vector<1x32xf32>
    %3 = vector.shape_cast %2 : vector<1x32xf32> to vector<1x32xf32>
    %4 = vector.broadcast %3 : vector<1x32xf32> to vector<512x32xf32>
    %c0_i32 = arith.constant 0 : i32
    %5 = arith.addi %1, %c0_i32 : i32
    %c0_1 = arith.constant 0 : index
    %6 = arith.index_cast %5 : i32 to index
    %c0_2 = arith.constant 0 : index
    %c0_3 = arith.constant 0 : index
    %7 = vector.load %arg2[%c0_1, %6, %c0_2, %c0_3] : memref<1x40x32x27xf32, #tpu.memory_space<vmem>>, vector<1x16x32x27xf32>
    %8 = vector.shape_cast %7 : vector<1x16x32x27xf32> to vector<16x32x27xf32>
    %9 = vector.shape_cast %8 : vector<16x32x27xf32> to vector<512x27xf32>
    %c0_4 = arith.constant 0 : index
    %c0_5 = arith.constant 0 : index
    %c0_6 = arith.constant 0 : index
    %10 = vector.load %arg3[%c0_4, %c0_5, %c0_6] : memref<9x27x32xf32, #tpu.memory_space<vmem>>, vector<1x27x32xf32>
    %11 = vector.shape_cast %10 : vector<1x27x32xf32> to vector<27x32xf32>
    %cst = arith.constant dense<0.000000e+00> : vector<512x32xf32>
    %12 = tpu.matmul %9, %11, %cst {dimension_numbers = #tpu.dot_dimension_numbers<[1], [0], [0], [1], [0, 0, 1, 1], [], []>} : vector<512x27xf32>, vector<27x32xf32>, vector<512x32xf32> -> vector<512x32xf32>
    %13 = arith.addf %4, %12 : vector<512x32xf32>
    %c1_i32 = arith.constant 1 : i32
    %14 = arith.addi %1, %c1_i32 : i32
    %c0_7 = arith.constant 0 : index
    %15 = arith.index_cast %14 : i32 to index
    %c0_8 = arith.constant 0 : index
    %c0_9 = arith.constant 0 : index
    %16 = vector.load %arg2[%c0_7, %15, %c0_8, %c0_9] : memref<1x40x32x27xf32, #tpu.memory_space<vmem>>, vector<1x16x32x27xf32>
    %17 = vector.shape_cast %16 : vector<1x16x32x27xf32> to vector<16x32x27xf32>
    %18 = vector.shape_cast %17 : vector<16x32x27xf32> to vector<512x27xf32>
    %c1 = arith.constant 1 : index
    %c0_10 = arith.constant 0 : index
    %c0_11 = arith.constant 0 : index
    %19 = vector.load %arg3[%c1, %c0_10, %c0_11] : memref<9x27x32xf32, #tpu.memory_space<vmem>>, vector<1x27x32xf32>
    %20 = vector.shape_cast %19 : vector<1x27x32xf32> to vector<27x32xf32>
    %cst_12 = arith.constant dense<0.000000e+00> : vector<512x32xf32>
    %21 = tpu.matmul %18, %20, %cst_12 {dimension_numbers = #tpu.dot_dimension_numbers<[1], [0], [0], [1], [0, 0, 1, 1], [], []>} : vector<512x27xf32>, vector<27x32xf32>, vector<512x32xf32> -> vector<512x32xf32>
    %22 = arith.addf %13, %21 : vector<512x32xf32>
    %c2_i32 = arith.constant 2 : i32
    %23 = arith.addi %1, %c2_i32 : i32
    %c0_13 = arith.constant 0 : index
    %24 = arith.index_cast %23 : i32 to index
    %c0_14 = arith.constant 0 : index
    %c0_15 = arith.constant 0 : index
    %25 = vector.load %arg2[%c0_13, %24, %c0_14, %c0_15] : memref<1x40x32x27xf32, #tpu.memory_space<vmem>>, vector<1x16x32x27xf32>
    %26 = vector.shape_cast %25 : vector<1x16x32x27xf32> to vector<16x32x27xf32>
    %27 = vector.shape_cast %26 : vector<16x32x27xf32> to vector<512x27xf32>
    %c2 = arith.constant 2 : index
    %c0_16 = arith.constant 0 : index
    %c0_17 = arith.constant 0 : index
    %28 = vector.load %arg3[%c2, %c0_16, %c0_17] : memref<9x27x32xf32, #tpu.memory_space<vmem>>, vector<1x27x32xf32>
    %29 = vector.shape_cast %28 : vector<1x27x32xf32> to vector<27x32xf32>
    %cst_18 = arith.constant dense<0.000000e+00> : vector<512x32xf32>
    %30 = tpu.matmul %27, %29, %cst_18 {dimension_numbers = #tpu.dot_dimension_numbers<[1], [0], [0], [1], [0, 0, 1, 1], [], []>} : vector<512x27xf32>, vector<27x32xf32>, vector<512x32xf32> -> vector<512x32xf32>
    %31 = arith.addf %22, %30 : vector<512x32xf32>
    %c3_i32 = arith.constant 3 : i32
    %32 = arith.addi %1, %c3_i32 : i32
    %c0_19 = arith.constant 0 : index
    %33 = arith.index_cast %32 : i32 to index
    %c0_20 = arith.constant 0 : index
    %c0_21 = arith.constant 0 : index
    %34 = vector.load %arg2[%c0_19, %33, %c0_20, %c0_21] : memref<1x40x32x27xf32, #tpu.memory_space<vmem>>, vector<1x16x32x27xf32>
    %35 = vector.shape_cast %34 : vector<1x16x32x27xf32> to vector<16x32x27xf32>
    %36 = vector.shape_cast %35 : vector<16x32x27xf32> to vector<512x27xf32>
    %c3 = arith.constant 3 : index
    %c0_22 = arith.constant 0 : index
    %c0_23 = arith.constant 0 : index
    %37 = vector.load %arg3[%c3, %c0_22, %c0_23] : memref<9x27x32xf32, #tpu.memory_space<vmem>>, vector<1x27x32xf32>
    %38 = vector.shape_cast %37 : vector<1x27x32xf32> to vector<27x32xf32>
    %cst_24 = arith.constant dense<0.000000e+00> : vector<512x32xf32>
    %39 = tpu.matmul %36, %38, %cst_24 {dimension_numbers = #tpu.dot_dimension_numbers<[1], [0], [0], [1], [0, 0, 1, 1], [], []>} : vector<512x27xf32>, vector<27x32xf32>, vector<512x32xf32> -> vector<512x32xf32>
    %40 = arith.addf %31, %39 : vector<512x32xf32>
    %c4_i32 = arith.constant 4 : i32
    %41 = arith.addi %1, %c4_i32 : i32
    %c0_25 = arith.constant 0 : index
    %42 = arith.index_cast %41 : i32 to index
    %c0_26 = arith.constant 0 : index
    %c0_27 = arith.constant 0 : index
    %43 = vector.load %arg2[%c0_25, %42, %c0_26, %c0_27] : memref<1x40x32x27xf32, #tpu.memory_space<vmem>>, vector<1x16x32x27xf32>
    %44 = vector.shape_cast %43 : vector<1x16x32x27xf32> to vector<16x32x27xf32>
    %45 = vector.shape_cast %44 : vector<16x32x27xf32> to vector<512x27xf32>
    %c4 = arith.constant 4 : index
    %c0_28 = arith.constant 0 : index
    %c0_29 = arith.constant 0 : index
    %46 = vector.load %arg3[%c4, %c0_28, %c0_29] : memref<9x27x32xf32, #tpu.memory_space<vmem>>, vector<1x27x32xf32>
    %47 = vector.shape_cast %46 : vector<1x27x32xf32> to vector<27x32xf32>
    %cst_30 = arith.constant dense<0.000000e+00> : vector<512x32xf32>
    %48 = tpu.matmul %45, %47, %cst_30 {dimension_numbers = #tpu.dot_dimension_numbers<[1], [0], [0], [1], [0, 0, 1, 1], [], []>} : vector<512x27xf32>, vector<27x32xf32>, vector<512x32xf32> -> vector<512x32xf32>
    %49 = arith.addf %40, %48 : vector<512x32xf32>
    %c5_i32 = arith.constant 5 : i32
    %50 = arith.addi %1, %c5_i32 : i32
    %c0_31 = arith.constant 0 : index
    %51 = arith.index_cast %50 : i32 to index
    %c0_32 = arith.constant 0 : index
    %c0_33 = arith.constant 0 : index
    %52 = vector.load %arg2[%c0_31, %51, %c0_32, %c0_33] : memref<1x40x32x27xf32, #tpu.memory_space<vmem>>, vector<1x16x32x27xf32>
    %53 = vector.shape_cast %52 : vector<1x16x32x27xf32> to vector<16x32x27xf32>
    %54 = vector.shape_cast %53 : vector<16x32x27xf32> to vector<512x27xf32>
    %c5 = arith.constant 5 : index
    %c0_34 = arith.constant 0 : index
    %c0_35 = arith.constant 0 : index
    %55 = vector.load %arg3[%c5, %c0_34, %c0_35] : memref<9x27x32xf32, #tpu.memory_space<vmem>>, vector<1x27x32xf32>
    %56 = vector.shape_cast %55 : vector<1x27x32xf32> to vector<27x32xf32>
    %cst_36 = arith.constant dense<0.000000e+00> : vector<512x32xf32>
    %57 = tpu.matmul %54, %56, %cst_36 {dimension_numbers = #tpu.dot_dimension_numbers<[1], [0], [0], [1], [0, 0, 1, 1], [], []>} : vector<512x27xf32>, vector<27x32xf32>, vector<512x32xf32> -> vector<512x32xf32>
    %58 = arith.addf %49, %57 : vector<512x32xf32>
    %c6_i32 = arith.constant 6 : i32
    %59 = arith.addi %1, %c6_i32 : i32
    %c0_37 = arith.constant 0 : index
    %60 = arith.index_cast %59 : i32 to index
    %c0_38 = arith.constant 0 : index
    %c0_39 = arith.constant 0 : index
    %61 = vector.load %arg2[%c0_37, %60, %c0_38, %c0_39] : memref<1x40x32x27xf32, #tpu.memory_space<vmem>>, vector<1x16x32x27xf32>
    %62 = vector.shape_cast %61 : vector<1x16x32x27xf32> to vector<16x32x27xf32>
    %63 = vector.shape_cast %62 : vector<16x32x27xf32> to vector<512x27xf32>
    %c6 = arith.constant 6 : index
    %c0_40 = arith.constant 0 : index
    %c0_41 = arith.constant 0 : index
    %64 = vector.load %arg3[%c6, %c0_40, %c0_41] : memref<9x27x32xf32, #tpu.memory_space<vmem>>, vector<1x27x32xf32>
    %65 = vector.shape_cast %64 : vector<1x27x32xf32> to vector<27x32xf32>
    %cst_42 = arith.constant dense<0.000000e+00> : vector<512x32xf32>
    %66 = tpu.matmul %63, %65, %cst_42 {dimension_numbers = #tpu.dot_dimension_numbers<[1], [0], [0], [1], [0, 0, 1, 1], [], []>} : vector<512x27xf32>, vector<27x32xf32>, vector<512x32xf32> -> vector<512x32xf32>
    %67 = arith.addf %58, %66 : vector<512x32xf32>
    %c7_i32 = arith.constant 7 : i32
    %68 = arith.addi %1, %c7_i32 : i32
    %c0_43 = arith.constant 0 : index
    %69 = arith.index_cast %68 : i32 to index
    %c0_44 = arith.constant 0 : index
    %c0_45 = arith.constant 0 : index
    %70 = vector.load %arg2[%c0_43, %69, %c0_44, %c0_45] : memref<1x40x32x27xf32, #tpu.memory_space<vmem>>, vector<1x16x32x27xf32>
    %71 = vector.shape_cast %70 : vector<1x16x32x27xf32> to vector<16x32x27xf32>
    %72 = vector.shape_cast %71 : vector<16x32x27xf32> to vector<512x27xf32>
    %c7 = arith.constant 7 : index
    %c0_46 = arith.constant 0 : index
    %c0_47 = arith.constant 0 : index
    %73 = vector.load %arg3[%c7, %c0_46, %c0_47] : memref<9x27x32xf32, #tpu.memory_space<vmem>>, vector<1x27x32xf32>
    %74 = vector.shape_cast %73 : vector<1x27x32xf32> to vector<27x32xf32>
    %cst_48 = arith.constant dense<0.000000e+00> : vector<512x32xf32>
    %75 = tpu.matmul %72, %74, %cst_48 {dimension_numbers = #tpu.dot_dimension_numbers<[1], [0], [0], [1], [0, 0, 1, 1], [], []>} : vector<512x27xf32>, vector<27x32xf32>, vector<512x32xf32> -> vector<512x32xf32>
    %76 = arith.addf %67, %75 : vector<512x32xf32>
    %c8_i32 = arith.constant 8 : i32
    %77 = arith.addi %1, %c8_i32 : i32
    %c0_49 = arith.constant 0 : index
    %78 = arith.index_cast %77 : i32 to index
    %c0_50 = arith.constant 0 : index
    %c0_51 = arith.constant 0 : index
    %79 = vector.load %arg2[%c0_49, %78, %c0_50, %c0_51] : memref<1x40x32x27xf32, #tpu.memory_space<vmem>>, vector<1x16x32x27xf32>
    %80 = vector.shape_cast %79 : vector<1x16x32x27xf32> to vector<16x32x27xf32>
    %81 = vector.shape_cast %80 : vector<16x32x27xf32> to vector<512x27xf32>
    %c8 = arith.constant 8 : index
    %c0_52 = arith.constant 0 : index
    %c0_53 = arith.constant 0 : index
    %82 = vector.load %arg3[%c8, %c0_52, %c0_53] : memref<9x27x32xf32, #tpu.memory_space<vmem>>, vector<1x27x32xf32>
    %83 = vector.shape_cast %82 : vector<1x27x32xf32> to vector<27x32xf32>
    %cst_54 = arith.constant dense<0.000000e+00> : vector<512x32xf32>
    %84 = tpu.matmul %81, %83, %cst_54 {dimension_numbers = #tpu.dot_dimension_numbers<[1], [0], [0], [1], [0, 0, 1, 1], [], []>} : vector<512x27xf32>, vector<27x32xf32>, vector<512x32xf32> -> vector<512x32xf32>
    %85 = arith.addf %76, %84 : vector<512x32xf32>
    %cst_55 = arith.constant 0.000000e+00 : f32
    %86 = vector.broadcast %cst_55 : f32 to vector<512x32xf32>
    %87 = arith.maximumf %85, %86 : vector<512x32xf32>
    %88 = vector.shape_cast %87 : vector<512x32xf32> to vector<16x32x32xf32>
    %c0_56 = arith.constant 0 : index
    %c0_57 = arith.constant 0 : index
    %c0_58 = arith.constant 0 : index
    %c0_59 = arith.constant 0 : index
    %89 = vector.load %arg5[%c0_56, %c0_57, %c0_58, %c0_59] : memref<1x16x32x32xf32, #tpu.memory_space<vmem>>, vector<1x16x32x32xf32>
    %90 = vector.shape_cast %89 : vector<1x16x32x32xf32> to vector<16x32x32xf32>
    %91 = vector.shape_cast %88 : vector<16x32x32xf32> to vector<1x16x32x32xf32>
    tpu.vector_store %arg5[%c0_56, %c0_57, %c0_58, %c0_59], %91 {strides = array<i32>} : memref<1x16x32x32xf32, #tpu.memory_space<vmem>>, vector<1x16x32x32xf32>,
    return
  }
  func.func @transform_0(%arg0: i32, %arg1: i32) -> (i32, i32, i32, i32) {
    %c0_i32 = arith.constant 0 : i32
    %c0_i32_0 = arith.constant 0 : i32
    %c0_i32_1 = arith.constant 0 : i32
    %c0_i32_2 = arith.constant 0 : i32
    return %arg0, %c0_i32, %c0_i32_0, %c0_i32_1 : i32, i32, i32, i32
  }
  func.func @transform_1(%arg0: i32, %arg1: i32) -> (i32, i32, i32) {
    %c0_i32 = arith.constant 0 : i32
    %c0_i32_0 = arith.constant 0 : i32
    %c0_i32_1 = arith.constant 0 : i32
    %c0_i32_2 = arith.constant 0 : i32
    return %c0_i32, %c0_i32_0, %c0_i32_1 : i32, i32, i32
  }
  func.func @transform_2(%arg0: i32, %arg1: i32) -> (i32, i32) {
    %c0_i32 = arith.constant 0 : i32
    %c0_i32_0 = arith.constant 0 : i32
    %c0_i32_1 = arith.constant 0 : i32
    return %c0_i32, %c0_i32_0 : i32, i32
  }
  func.func @transform_3(%arg0: i32, %arg1: i32) -> (i32, i32, i32, i32) {
    %c0_i32 = arith.constant 0 : i32
    %c0_i32_0 = arith.constant 0 : i32
    %c0_i32_1 = arith.constant 0 : i32
    return %arg0, %arg1, %c0_i32, %c0_i32_0 : i32, i32, i32, i32
  }
}

module attributes {stable_mosaic.version = 11 : i64} {
  func.func @kernel(%arg0: i32, %arg1: i32, %arg2: memref<1x36x32x160xf32, #tpu.memory_space<vmem>>, %arg3: memref<5x160x32xf32, #tpu.memory_space<vmem>>, %arg4: memref<1x32xf32, #tpu.memory_space<vmem>>, %arg5: memref<1x16x32x32xf32, #tpu.memory_space<vmem>>) attributes {dimension_semantics = [#tpu.dimension_semantics<parallel>, #tpu.dimension_semantics<parallel>], iteration_bounds = array<i64: 2, 2>, scalar_prefetch = 0 : i64, scratch_operands = 0 : i64, tpu.core_type = #tpu.core_type<tc>, window_params = [{transform_indices = @transform_0, window_bounds = array<i64: 1, 36, 32, 160>}, {pipeline_mode = #tpu.pipeline_mode<synchronous>, transform_indices = @transform_1, window_bounds = array<i64: 5, 160, 32>}, {pipeline_mode = #tpu.pipeline_mode<synchronous>, transform_indices = @transform_2, window_bounds = array<i64: 1, 32>}, {transform_indices = @transform_3, window_bounds = array<i64: 1, 16, 32, 32>}]} {
    %c16_i32 = arith.constant 16 : i32
    %0 = arith.muli %arg1, %c16_i32 : i32
    %1 = tpu.assume_multiple %0, 16 : i32
    %c0 = arith.constant 0 : index
    %c0_0 = arith.constant 0 : index
    %2 = vector.load %arg4[%c0, %c0_0] : memref<1x32xf32, #tpu.memory_space<vmem>>, vector<1x32xf32>
    %3 = vector.shape_cast %2 : vector<1x32xf32> to vector<1x32xf32>
    %4 = vector.broadcast %3 : vector<1x32xf32> to vector<512x32xf32>
    %c0_i32 = arith.constant 0 : i32
    %5 = arith.addi %1, %c0_i32 : i32
    %c0_1 = arith.constant 0 : index
    %6 = arith.index_cast %5 : i32 to index
    %c0_2 = arith.constant 0 : index
    %c0_3 = arith.constant 0 : index
    %7 = vector.load %arg2[%c0_1, %6, %c0_2, %c0_3] : memref<1x36x32x160xf32, #tpu.memory_space<vmem>>, vector<1x16x32x160xf32>
    %8 = vector.shape_cast %7 : vector<1x16x32x160xf32> to vector<16x32x160xf32>
    %9 = vector.shape_cast %8 : vector<16x32x160xf32> to vector<512x160xf32>
    %c0_4 = arith.constant 0 : index
    %c0_5 = arith.constant 0 : index
    %c0_6 = arith.constant 0 : index
    %10 = vector.load %arg3[%c0_4, %c0_5, %c0_6] : memref<5x160x32xf32, #tpu.memory_space<vmem>>, vector<1x160x32xf32>
    %11 = vector.shape_cast %10 : vector<1x160x32xf32> to vector<160x32xf32>
    %cst = arith.constant dense<0.000000e+00> : vector<512x32xf32>
    %12 = tpu.matmul %9, %11, %cst {dimension_numbers = #tpu.dot_dimension_numbers<[1], [0], [0], [1], [0, 0, 1, 1], [], []>} : vector<512x160xf32>, vector<160x32xf32>, vector<512x32xf32> -> vector<512x32xf32>
    %13 = arith.addf %4, %12 : vector<512x32xf32>
    %c1_i32 = arith.constant 1 : i32
    %14 = arith.addi %1, %c1_i32 : i32
    %c0_7 = arith.constant 0 : index
    %15 = arith.index_cast %14 : i32 to index
    %c0_8 = arith.constant 0 : index
    %c0_9 = arith.constant 0 : index
    %16 = vector.load %arg2[%c0_7, %15, %c0_8, %c0_9] : memref<1x36x32x160xf32, #tpu.memory_space<vmem>>, vector<1x16x32x160xf32>
    %17 = vector.shape_cast %16 : vector<1x16x32x160xf32> to vector<16x32x160xf32>
    %18 = vector.shape_cast %17 : vector<16x32x160xf32> to vector<512x160xf32>
    %c1 = arith.constant 1 : index
    %c0_10 = arith.constant 0 : index
    %c0_11 = arith.constant 0 : index
    %19 = vector.load %arg3[%c1, %c0_10, %c0_11] : memref<5x160x32xf32, #tpu.memory_space<vmem>>, vector<1x160x32xf32>
    %20 = vector.shape_cast %19 : vector<1x160x32xf32> to vector<160x32xf32>
    %cst_12 = arith.constant dense<0.000000e+00> : vector<512x32xf32>
    %21 = tpu.matmul %18, %20, %cst_12 {dimension_numbers = #tpu.dot_dimension_numbers<[1], [0], [0], [1], [0, 0, 1, 1], [], []>} : vector<512x160xf32>, vector<160x32xf32>, vector<512x32xf32> -> vector<512x32xf32>
    %22 = arith.addf %13, %21 : vector<512x32xf32>
    %c2_i32 = arith.constant 2 : i32
    %23 = arith.addi %1, %c2_i32 : i32
    %c0_13 = arith.constant 0 : index
    %24 = arith.index_cast %23 : i32 to index
    %c0_14 = arith.constant 0 : index
    %c0_15 = arith.constant 0 : index
    %25 = vector.load %arg2[%c0_13, %24, %c0_14, %c0_15] : memref<1x36x32x160xf32, #tpu.memory_space<vmem>>, vector<1x16x32x160xf32>
    %26 = vector.shape_cast %25 : vector<1x16x32x160xf32> to vector<16x32x160xf32>
    %27 = vector.shape_cast %26 : vector<16x32x160xf32> to vector<512x160xf32>
    %c2 = arith.constant 2 : index
    %c0_16 = arith.constant 0 : index
    %c0_17 = arith.constant 0 : index
    %28 = vector.load %arg3[%c2, %c0_16, %c0_17] : memref<5x160x32xf32, #tpu.memory_space<vmem>>, vector<1x160x32xf32>
    %29 = vector.shape_cast %28 : vector<1x160x32xf32> to vector<160x32xf32>
    %cst_18 = arith.constant dense<0.000000e+00> : vector<512x32xf32>
    %30 = tpu.matmul %27, %29, %cst_18 {dimension_numbers = #tpu.dot_dimension_numbers<[1], [0], [0], [1], [0, 0, 1, 1], [], []>} : vector<512x160xf32>, vector<160x32xf32>, vector<512x32xf32> -> vector<512x32xf32>
    %31 = arith.addf %22, %30 : vector<512x32xf32>
    %c3_i32 = arith.constant 3 : i32
    %32 = arith.addi %1, %c3_i32 : i32
    %c0_19 = arith.constant 0 : index
    %33 = arith.index_cast %32 : i32 to index
    %c0_20 = arith.constant 0 : index
    %c0_21 = arith.constant 0 : index
    %34 = vector.load %arg2[%c0_19, %33, %c0_20, %c0_21] : memref<1x36x32x160xf32, #tpu.memory_space<vmem>>, vector<1x16x32x160xf32>
    %35 = vector.shape_cast %34 : vector<1x16x32x160xf32> to vector<16x32x160xf32>
    %36 = vector.shape_cast %35 : vector<16x32x160xf32> to vector<512x160xf32>
    %c3 = arith.constant 3 : index
    %c0_22 = arith.constant 0 : index
    %c0_23 = arith.constant 0 : index
    %37 = vector.load %arg3[%c3, %c0_22, %c0_23] : memref<5x160x32xf32, #tpu.memory_space<vmem>>, vector<1x160x32xf32>
    %38 = vector.shape_cast %37 : vector<1x160x32xf32> to vector<160x32xf32>
    %cst_24 = arith.constant dense<0.000000e+00> : vector<512x32xf32>
    %39 = tpu.matmul %36, %38, %cst_24 {dimension_numbers = #tpu.dot_dimension_numbers<[1], [0], [0], [1], [0, 0, 1, 1], [], []>} : vector<512x160xf32>, vector<160x32xf32>, vector<512x32xf32> -> vector<512x32xf32>
    %40 = arith.addf %31, %39 : vector<512x32xf32>
    %c4_i32 = arith.constant 4 : i32
    %41 = arith.addi %1, %c4_i32 : i32
    %c0_25 = arith.constant 0 : index
    %42 = arith.index_cast %41 : i32 to index
    %c0_26 = arith.constant 0 : index
    %c0_27 = arith.constant 0 : index
    %43 = vector.load %arg2[%c0_25, %42, %c0_26, %c0_27] : memref<1x36x32x160xf32, #tpu.memory_space<vmem>>, vector<1x16x32x160xf32>
    %44 = vector.shape_cast %43 : vector<1x16x32x160xf32> to vector<16x32x160xf32>
    %45 = vector.shape_cast %44 : vector<16x32x160xf32> to vector<512x160xf32>
    %c4 = arith.constant 4 : index
    %c0_28 = arith.constant 0 : index
    %c0_29 = arith.constant 0 : index
    %46 = vector.load %arg3[%c4, %c0_28, %c0_29] : memref<5x160x32xf32, #tpu.memory_space<vmem>>, vector<1x160x32xf32>
    %47 = vector.shape_cast %46 : vector<1x160x32xf32> to vector<160x32xf32>
    %cst_30 = arith.constant dense<0.000000e+00> : vector<512x32xf32>
    %48 = tpu.matmul %45, %47, %cst_30 {dimension_numbers = #tpu.dot_dimension_numbers<[1], [0], [0], [1], [0, 0, 1, 1], [], []>} : vector<512x160xf32>, vector<160x32xf32>, vector<512x32xf32> -> vector<512x32xf32>
    %49 = arith.addf %40, %48 : vector<512x32xf32>
    %cst_31 = arith.constant 0.000000e+00 : f32
    %50 = vector.broadcast %cst_31 : f32 to vector<512x32xf32>
    %51 = arith.maximumf %49, %50 : vector<512x32xf32>
    %52 = vector.shape_cast %51 : vector<512x32xf32> to vector<16x32x32xf32>
    %c0_32 = arith.constant 0 : index
    %c0_33 = arith.constant 0 : index
    %c0_34 = arith.constant 0 : index
    %c0_35 = arith.constant 0 : index
    %53 = vector.load %arg5[%c0_32, %c0_33, %c0_34, %c0_35] : memref<1x16x32x32xf32, #tpu.memory_space<vmem>>, vector<1x16x32x32xf32>
    %54 = vector.shape_cast %53 : vector<1x16x32x32xf32> to vector<16x32x32xf32>
    %55 = vector.shape_cast %52 : vector<16x32x32xf32> to vector<1x16x32x32xf32>
    tpu.vector_store %arg5[%c0_32, %c0_33, %c0_34, %c0_35], %55 {strides = array<i32>} : memref<1x16x32x32xf32, #tpu.memory_space<vmem>>, vector<1x16x32x32xf32>,
    return
  }
  func.func @transform_0(%arg0: i32, %arg1: i32) -> (i32, i32, i32, i32) {
    %c0_i32 = arith.constant 0 : i32
    %c0_i32_0 = arith.constant 0 : i32
    %c0_i32_1 = arith.constant 0 : i32
    %c0_i32_2 = arith.constant 0 : i32
    return %arg0, %c0_i32, %c0_i32_0, %c0_i32_1 : i32, i32, i32, i32
  }
  func.func @transform_1(%arg0: i32, %arg1: i32) -> (i32, i32, i32) {
    %c0_i32 = arith.constant 0 : i32
    %c0_i32_0 = arith.constant 0 : i32
    %c0_i32_1 = arith.constant 0 : i32
    %c0_i32_2 = arith.constant 0 : i32
    return %c0_i32, %c0_i32_0, %c0_i32_1 : i32, i32, i32
  }
  func.func @transform_2(%arg0: i32, %arg1: i32) -> (i32, i32) {
    %c0_i32 = arith.constant 0 : i32
    %c0_i32_0 = arith.constant 0 : i32
    %c0_i32_1 = arith.constant 0 : i32
    return %c0_i32, %c0_i32_0 : i32, i32
  }
  func.func @transform_3(%arg0: i32, %arg1: i32) -> (i32, i32, i32, i32) {
    %c0_i32 = arith.constant 0 : i32
    %c0_i32_0 = arith.constant 0 : i32
    %c0_i32_1 = arith.constant 0 : i32
    return %arg0, %arg1, %c0_i32, %c0_i32_0 : i32, i32, i32, i32
  }
}

module attributes {stable_mosaic.version = 11 : i64} {
  func.func @kernel(%arg0: i32, %arg1: i32, %arg2: memref<1x36x32x160xf32, #tpu.memory_space<vmem>>, %arg3: memref<5x160x3xf32, #tpu.memory_space<vmem>>, %arg4: memref<1x3xf32, #tpu.memory_space<vmem>>, %arg5: memref<1x16x32x3xf32, #tpu.memory_space<vmem>>) attributes {dimension_semantics = [#tpu.dimension_semantics<parallel>, #tpu.dimension_semantics<parallel>], iteration_bounds = array<i64: 2, 2>, scalar_prefetch = 0 : i64, scratch_operands = 0 : i64, tpu.core_type = #tpu.core_type<tc>, window_params = [{transform_indices = @transform_0, window_bounds = array<i64: 1, 36, 32, 160>}, {pipeline_mode = #tpu.pipeline_mode<synchronous>, transform_indices = @transform_1, window_bounds = array<i64: 5, 160, 3>}, {pipeline_mode = #tpu.pipeline_mode<synchronous>, transform_indices = @transform_2, window_bounds = array<i64: 1, 3>}, {transform_indices = @transform_3, window_bounds = array<i64: 1, 16, 32, 3>}]} {
    %c16_i32 = arith.constant 16 : i32
    %0 = arith.muli %arg1, %c16_i32 : i32
    %1 = tpu.assume_multiple %0, 16 : i32
    %c0 = arith.constant 0 : index
    %c0_0 = arith.constant 0 : index
    %2 = vector.load %arg4[%c0, %c0_0] : memref<1x3xf32, #tpu.memory_space<vmem>>, vector<1x3xf32>
    %3 = vector.shape_cast %2 : vector<1x3xf32> to vector<1x3xf32>
    %4 = vector.broadcast %3 : vector<1x3xf32> to vector<512x3xf32>
    %c0_i32 = arith.constant 0 : i32
    %5 = arith.addi %1, %c0_i32 : i32
    %c0_1 = arith.constant 0 : index
    %6 = arith.index_cast %5 : i32 to index
    %c0_2 = arith.constant 0 : index
    %c0_3 = arith.constant 0 : index
    %7 = vector.load %arg2[%c0_1, %6, %c0_2, %c0_3] : memref<1x36x32x160xf32, #tpu.memory_space<vmem>>, vector<1x16x32x160xf32>
    %8 = vector.shape_cast %7 : vector<1x16x32x160xf32> to vector<16x32x160xf32>
    %9 = vector.shape_cast %8 : vector<16x32x160xf32> to vector<512x160xf32>
    %c0_4 = arith.constant 0 : index
    %c0_5 = arith.constant 0 : index
    %c0_6 = arith.constant 0 : index
    %10 = vector.load %arg3[%c0_4, %c0_5, %c0_6] : memref<5x160x3xf32, #tpu.memory_space<vmem>>, vector<1x160x3xf32>
    %11 = vector.shape_cast %10 : vector<1x160x3xf32> to vector<160x3xf32>
    %cst = arith.constant dense<0.000000e+00> : vector<512x3xf32>
    %12 = tpu.matmul %9, %11, %cst {dimension_numbers = #tpu.dot_dimension_numbers<[1], [0], [0], [1], [0, 0, 1, 1], [], []>} : vector<512x160xf32>, vector<160x3xf32>, vector<512x3xf32> -> vector<512x3xf32>
    %13 = arith.addf %4, %12 : vector<512x3xf32>
    %c1_i32 = arith.constant 1 : i32
    %14 = arith.addi %1, %c1_i32 : i32
    %c0_7 = arith.constant 0 : index
    %15 = arith.index_cast %14 : i32 to index
    %c0_8 = arith.constant 0 : index
    %c0_9 = arith.constant 0 : index
    %16 = vector.load %arg2[%c0_7, %15, %c0_8, %c0_9] : memref<1x36x32x160xf32, #tpu.memory_space<vmem>>, vector<1x16x32x160xf32>
    %17 = vector.shape_cast %16 : vector<1x16x32x160xf32> to vector<16x32x160xf32>
    %18 = vector.shape_cast %17 : vector<16x32x160xf32> to vector<512x160xf32>
    %c1 = arith.constant 1 : index
    %c0_10 = arith.constant 0 : index
    %c0_11 = arith.constant 0 : index
    %19 = vector.load %arg3[%c1, %c0_10, %c0_11] : memref<5x160x3xf32, #tpu.memory_space<vmem>>, vector<1x160x3xf32>
    %20 = vector.shape_cast %19 : vector<1x160x3xf32> to vector<160x3xf32>
    %cst_12 = arith.constant dense<0.000000e+00> : vector<512x3xf32>
    %21 = tpu.matmul %18, %20, %cst_12 {dimension_numbers = #tpu.dot_dimension_numbers<[1], [0], [0], [1], [0, 0, 1, 1], [], []>} : vector<512x160xf32>, vector<160x3xf32>, vector<512x3xf32> -> vector<512x3xf32>
    %22 = arith.addf %13, %21 : vector<512x3xf32>
    %c2_i32 = arith.constant 2 : i32
    %23 = arith.addi %1, %c2_i32 : i32
    %c0_13 = arith.constant 0 : index
    %24 = arith.index_cast %23 : i32 to index
    %c0_14 = arith.constant 0 : index
    %c0_15 = arith.constant 0 : index
    %25 = vector.load %arg2[%c0_13, %24, %c0_14, %c0_15] : memref<1x36x32x160xf32, #tpu.memory_space<vmem>>, vector<1x16x32x160xf32>
    %26 = vector.shape_cast %25 : vector<1x16x32x160xf32> to vector<16x32x160xf32>
    %27 = vector.shape_cast %26 : vector<16x32x160xf32> to vector<512x160xf32>
    %c2 = arith.constant 2 : index
    %c0_16 = arith.constant 0 : index
    %c0_17 = arith.constant 0 : index
    %28 = vector.load %arg3[%c2, %c0_16, %c0_17] : memref<5x160x3xf32, #tpu.memory_space<vmem>>, vector<1x160x3xf32>
    %29 = vector.shape_cast %28 : vector<1x160x3xf32> to vector<160x3xf32>
    %cst_18 = arith.constant dense<0.000000e+00> : vector<512x3xf32>
    %30 = tpu.matmul %27, %29, %cst_18 {dimension_numbers = #tpu.dot_dimension_numbers<[1], [0], [0], [1], [0, 0, 1, 1], [], []>} : vector<512x160xf32>, vector<160x3xf32>, vector<512x3xf32> -> vector<512x3xf32>
    %31 = arith.addf %22, %30 : vector<512x3xf32>
    %c3_i32 = arith.constant 3 : i32
    %32 = arith.addi %1, %c3_i32 : i32
    %c0_19 = arith.constant 0 : index
    %33 = arith.index_cast %32 : i32 to index
    %c0_20 = arith.constant 0 : index
    %c0_21 = arith.constant 0 : index
    %34 = vector.load %arg2[%c0_19, %33, %c0_20, %c0_21] : memref<1x36x32x160xf32, #tpu.memory_space<vmem>>, vector<1x16x32x160xf32>
    %35 = vector.shape_cast %34 : vector<1x16x32x160xf32> to vector<16x32x160xf32>
    %36 = vector.shape_cast %35 : vector<16x32x160xf32> to vector<512x160xf32>
    %c3 = arith.constant 3 : index
    %c0_22 = arith.constant 0 : index
    %c0_23 = arith.constant 0 : index
    %37 = vector.load %arg3[%c3, %c0_22, %c0_23] : memref<5x160x3xf32, #tpu.memory_space<vmem>>, vector<1x160x3xf32>
    %38 = vector.shape_cast %37 : vector<1x160x3xf32> to vector<160x3xf32>
    %cst_24 = arith.constant dense<0.000000e+00> : vector<512x3xf32>
    %39 = tpu.matmul %36, %38, %cst_24 {dimension_numbers = #tpu.dot_dimension_numbers<[1], [0], [0], [1], [0, 0, 1, 1], [], []>} : vector<512x160xf32>, vector<160x3xf32>, vector<512x3xf32> -> vector<512x3xf32>
    %40 = arith.addf %31, %39 : vector<512x3xf32>
    %c4_i32 = arith.constant 4 : i32
    %41 = arith.addi %1, %c4_i32 : i32
    %c0_25 = arith.constant 0 : index
    %42 = arith.index_cast %41 : i32 to index
    %c0_26 = arith.constant 0 : index
    %c0_27 = arith.constant 0 : index
    %43 = vector.load %arg2[%c0_25, %42, %c0_26, %c0_27] : memref<1x36x32x160xf32, #tpu.memory_space<vmem>>, vector<1x16x32x160xf32>
    %44 = vector.shape_cast %43 : vector<1x16x32x160xf32> to vector<16x32x160xf32>
    %45 = vector.shape_cast %44 : vector<16x32x160xf32> to vector<512x160xf32>
    %c4 = arith.constant 4 : index
    %c0_28 = arith.constant 0 : index
    %c0_29 = arith.constant 0 : index
    %46 = vector.load %arg3[%c4, %c0_28, %c0_29] : memref<5x160x3xf32, #tpu.memory_space<vmem>>, vector<1x160x3xf32>
    %47 = vector.shape_cast %46 : vector<1x160x3xf32> to vector<160x3xf32>
    %cst_30 = arith.constant dense<0.000000e+00> : vector<512x3xf32>
    %48 = tpu.matmul %45, %47, %cst_30 {dimension_numbers = #tpu.dot_dimension_numbers<[1], [0], [0], [1], [0, 0, 1, 1], [], []>} : vector<512x160xf32>, vector<160x3xf32>, vector<512x3xf32> -> vector<512x3xf32>
    %49 = arith.addf %40, %48 : vector<512x3xf32>
    %50 = vector.shape_cast %49 : vector<512x3xf32> to vector<16x32x3xf32>
    %c0_31 = arith.constant 0 : index
    %c0_32 = arith.constant 0 : index
    %c0_33 = arith.constant 0 : index
    %c0_34 = arith.constant 0 : index
    %51 = vector.load %arg5[%c0_31, %c0_32, %c0_33, %c0_34] : memref<1x16x32x3xf32, #tpu.memory_space<vmem>>, vector<1x16x32x3xf32>
    %52 = vector.shape_cast %51 : vector<1x16x32x3xf32> to vector<16x32x3xf32>
    %53 = vector.shape_cast %50 : vector<16x32x3xf32> to vector<1x16x32x3xf32>
    tpu.vector_store %arg5[%c0_31, %c0_32, %c0_33, %c0_34], %53 {strides = array<i32>} : memref<1x16x32x3xf32, #tpu.memory_space<vmem>>, vector<1x16x32x3xf32>,
    return
  }
  func.func @transform_0(%arg0: i32, %arg1: i32) -> (i32, i32, i32, i32) {
    %c0_i32 = arith.constant 0 : i32
    %c0_i32_0 = arith.constant 0 : i32
    %c0_i32_1 = arith.constant 0 : i32
    %c0_i32_2 = arith.constant 0 : i32
    return %arg0, %c0_i32, %c0_i32_0, %c0_i32_1 : i32, i32, i32, i32
  }
  func.func @transform_1(%arg0: i32, %arg1: i32) -> (i32, i32, i32) {
    %c0_i32 = arith.constant 0 : i32
    %c0_i32_0 = arith.constant 0 : i32
    %c0_i32_1 = arith.constant 0 : i32
    %c0_i32_2 = arith.constant 0 : i32
    return %c0_i32, %c0_i32_0, %c0_i32_1 : i32, i32, i32
  }
  func.func @transform_2(%arg0: i32, %arg1: i32) -> (i32, i32) {
    %c0_i32 = arith.constant 0 : i32
    %c0_i32_0 = arith.constant 0 : i32
    %c0_i32_1 = arith.constant 0 : i32
    return %c0_i32, %c0_i32_0 : i32, i32
  }
  func.func @transform_3(%arg0: i32, %arg1: i32) -> (i32, i32, i32, i32) {
    %c0_i32 = arith.constant 0 : i32
    %c0_i32_0 = arith.constant 0 : i32
    %c0_i32_1 = arith.constant 0 : i32
    return %arg0, %arg1, %c0_i32, %c0_i32_0 : i32, i32, i32, i32
  }
}

</mosaic_0001>

<bundles_post_ra>
// kernel: srcnn_forward.3
= control target key start
LH: loop header
LB: loop body
LE: loop exit
PB: predicated region body
PF: predicated region fallthrough
CT: control target
= control target key end

     0   :  { %s10391_s12 = smov 0   ;;  %s10393_s13 = smov 0   ;;  %s12546_s0 = inlined_call_operand.vmem [shape: f32[2,40,32,27], index: 0, kind: input, shape index: {}]   ;;  %s12547_s1 = inlined_call_operand.vmem [shape: f32[9,27,32], index: 1, kind: input, shape index: {}]   ;;  %s12548_s2 = inlined_call_operand.vmem [shape: f32[1,32], index: 2, kind: input, shape index: {}]   ;;  %s12549_s3 = inlined_call_operand.vmem [shape: f32[2,32,32,32], index: 3, kind: output, shape index: {}]  }
   0x1   :  { %s10395_s14 = smov 0   ;;  %s10397_s15 = smov 0  }
   0x2   :  { %s10399_s16 = smov 0  }
   0x3 LB: > { %s22_s17 = sadd.s32 1, %s10360_s14  ;;  %s25_s18 = sadd.s32 1, %s10364_s15  ;;  %s10368_s16 = sphi %s10399_s16, %s13_s16   ;;  %s10364_s15 = sphi %s10397_s15, %s12587_s15   ;;  %s10360_s14 = sphi %s10395_s14, %s12586_s14   ;;  %s10356_s13 = sphi %s10393_s13, %s12585_s13   ;;  %s10352_s12 = sphi %s10391_s12, %s12584_s12  }
   0x4   : > { %p23_p0 = scmp.ge.s32.totalorder %s22_s17, 2  ;;  %p6905_p1 = scmp.ge.s32.totalorder %s10368_s16, 1 }
   0x5   : > { %p151_p2 = scmp.lt.s32.totalorder %s10368_s16, 5 }
   0x6   : > { %s12589_s17 = smov (%p23_p0, %s22_s17), 0  ;;  %s12591_s18 = smov (!%p23_p0, %s25_s18), %s10364_s15 }
   0x7   : > { %p152_p3 = pnand %p6905_p1, %p151_p2  ;;  %p27_p4 = scmp.ge.s32.totalorder %s12591_s18, 2 }
   0x9   : > { %s12593_s18 = smov (%p27_p4, %s12591_s18), 0  ;;  %155 = sbr.rel (%p152_p3) target bundleno = 819 (0x333), region = 32 }
  0x10   : > { %v270_v0 = vld [vmem:[%s12547_s1] sm:$0xff]  ;;  %v271_v1 = vld [vmem:[%s12547_s1 + $0x8] sm:$0xff]  ;;  %vm467_vm0 = vcmask 1042432   ;;  %p180_p5 = scmp.lt.s32.totalorder %s10356_s13, 1  ;;  %v272_v5 = vld [vmem:[%s12547_s1 + $0x10] sm:$0xff]  ;;  %vm10370_vm1 = vmmov 1  }
  0x11   : > { %v7450_v2 = vld [vmem:[%s12547_s1 + $0x80] sm:$0xff]  ;;  %v9618_v3 = vpack.c.bf16 %v271_v1, %v270_v0  ;;  %v7451_v4 = vld [vmem:[%s12547_s1 + $0x88] sm:$0xff]  ;;  %v273_v6 = vld [vmem:[%s12547_s1 + $0x18] sm:$0x7]  ;;  %s8061_s20 = sshll.u32 %s10352_s12, 9  ;;  %vm274_vm3 = vcmask 220160  }
  0x12   : > { %v10444_v7 = vpack.c.bf16 %v7451_v4, %v7450_v2  ;;  %v9622_v8 = vpack.c.bf16 %v273_v6, %v272_v5  ;;  %vm10446_vm2 = vmpackc.low %vm467_vm0, %vm10370_vm1  ;;  %v7452_v10 = vld [vmem:[%s12547_s1 + $0x90] sm:$0xff]  ;;  %v7453_v11 = vld [vmem:[%s12547_s1 + $0x98] sm:$0x7]  ;;  %s12595_s13 = smov (!%p180_p5, %s10356_s13), 1  ;;  %vm6712_vm4 = vcmask 261120  }
  0x13   : > { %9619 = vmatprep.subr.bf16.mxu1 %v9618_v3  ;;  %v10459_v12 = vpack.c.bf16 %v7453_v11, %v7452_v10  ;;  %v7045_v13 = vld [vmem:[%s12547_s1 + $0x20] sm:$0xff]  ;;  %v7046_v14 = vld [vmem:[%s12547_s1 + $0x28] sm:$0xff]  ;;  %s10288_s19 = smul.u32 1280, %s12595_s13  ;;  %v7587_v18 = vld [vmem:[%s12547_s1 + $0xb0] sm:$0xff] }
  0x14   : > { %12566 = vst [vmem:[#allocation2_spill] sm:$0xff] %v10444_v7  ;;  %9659 = vmatprep.subr.bf16.mxu0 %v10444_v7  ;;  %9621 = vmatpush3.bf16.msra.mxu1 %v9618_v3  ;;  %v7585_v15 = vld [vmem:[%s12547_s1 + $0xa0] sm:$0xff]  ;;  %v7586_v16 = vld [vmem:[%s12547_s1 + $0xa8] sm:$0xff]  ;;  %v9628_v17 = vpack.c.bf16 %v7046_v14, %v7045_v13  ;;  %v7588_v20 = vld [vmem:[%s12547_s1 + $0xb8] sm:$0x7] }
  0x15   : > { %12569 = vst [vmem:[#allocation3_spill] sm:$0xff] %v10459_v12  ;;  %9661 = vmatpush3.bf16.msra.mxu0 %v10444_v7  ;;  %9624 = vmatprep.subr.msk.bf16.mxu1 %vm10446_vm2, %v9622_v8  ;;  %s184_s27 = scalar_lea.vmem %s12546_s0, %s10288_s19  ;;  %v9668_v19 = vpack.c.bf16 %v7586_v16, %v7585_v15  ;;  %v7047_v21 = vld [vmem:[%s12547_s1 + $0x30] sm:$0xff]  ;;  %v7048_v22 = vld [vmem:[%s12547_s1 + $0x38] sm:$0x7]  ;;  %v9672_v30 = vpack.c.bf16 %v7588_v20, %v7587_v18  ;;  %v7720_v32 = vld [vmem:[%s12547_s1 + $0xc0] sm:$0xff] }
  0x16   : > { %9664 = vmatprep.subr.msk.bf16.mxu0 %vm10446_vm2, %v10459_v12  ;;  %s10488_s30 = scalar_lea.vmem %s184_s27, %s8061_s20  ;;  %v9632_v29 = vpack.c.bf16 %v7048_v22, %v7047_v21  ;;  %v7721_v33 = vld [vmem:[%s12547_s1 + $0xc8] sm:$0xff]  ;;  %v7180_v53 = vld [vmem:[%s12547_s1 + $0x40] sm:$0xff]  ;;  %v7722_v18 = vld [vmem:[%s12547_s1 + $0xd0] sm:$0xff]  ;;  %s6909_s20 = sshll.u32 %s12595_s13, 7 }
  0x17   : > { %v206_v23 = vld [vmem:[%s10488_s30] sm:$0xff]  ;;  %v207_v25 = vld [vmem:[%s10488_s30 + $0x8] sm:$0xff]  ;;  %v208_v27 = vld [vmem:[%s10488_s30 + $0x10] sm:$0xff]  ;;  %v10546_v37 = vpack.c.bf16 %v7721_v33, %v7720_v32 }
  0x18   : > { %9627 = vmatpush3.bf16.msk.msra.mxu1 %vm10446_vm2, %v9622_v8  ;;  %v10503_v24 = vld [vmem:[%s10488_s30 + $0x80] sm:$0xff]  ;;  %8690 = vmatprep.mubr.msk.f32.mxu1 %vm274_vm3, %v206_v23  ;;  %v10511_v26 = vld [vmem:[%s10488_s30 + $0x88] sm:$0xff]  ;;  %v10517_v28 = vld [vmem:[%s10488_s30 + $0x90] sm:$0xff] }
  0x19   : > { %9667 = vmatpush3.bf16.msk.msra.mxu0 %vm10446_vm2, %v10459_v12  ;;  %9106 = vmatprep.mubr.msk.f32.mxu0 %vm274_vm3, %v10503_v24  ;;  %v209_v31 = vld [vmem:[%s10488_s30 + $0x18] sm:$0xff]  ;;  %v10536_v35 = vld [vmem:[%s10488_s30 + $0x20] sm:$0xff]  ;;  %v10553_v38 = vld [vmem:[%s10488_s30 + $0x28] sm:$0xff] }
  0x1a   : > { %9629 = vmatprep.subr.bf16.mxu1 %v9628_v17  ;;  %9669 = vmatprep.subr.bf16.mxu0 %v9668_v19  ;;  %v10533_v34 = vld [vmem:[%s10488_s30 + $0x98] sm:$0xff]  ;;  %v10539_v36 = vld [vmem:[%s10488_s30 + $0xa0] sm:$0xff]  ;;  %v10558_v39 = vld [vmem:[%s10488_s30 + $0xa8] sm:$0xff] }
  0x1b   : > { %8691 = vmatmul.mubr.msk.f32.vlgmr.msra.gmra.mrb[0].mxu1 %vm274_vm3, %v207_v25  ;;  %v10561_v40 = vld [vmem:[%s10488_s30 + $0x30] sm:$0xff]  ;;  %v10578_v42 = vld [vmem:[%s10488_s30 + $0x38] sm:$0xff]  ;;  %v10586_v44 = vld [vmem:[%s10488_s30 + $0x40] sm:$0xff] }
  0x1c   : > { %9107 = vmatmul.mubr.msk.f32.vlgmr.msra.gmra.mrb[0].mxu0 %vm274_vm3, %v10511_v26  ;;  %9631 = vmatpush3.bf16.msra.mxu1 %v9628_v17  ;;  %v10566_v41 = vld [vmem:[%s10488_s30 + $0xb0] sm:$0xff]  ;;  %v10583_v43 = vld [vmem:[%s10488_s30 + $0xb8] sm:$0xff]  ;;  %v10589_v45 = vld [vmem:[%s10488_s30 + $0xc0] sm:$0xff] }
  0x1d   : > { %8693 = vmatprep.mubr.msk.f32.mxu1 %vm274_vm3, %v208_v27  ;;  %9109 = vmatprep.mubr.msk.f32.mxu0 %vm274_vm3, %v10517_v28  ;;  %v10598_v46 = vld [vmem:[%s10488_s30 + $0x48] sm:$0xff]  ;;  %v10606_v48 = vld [vmem:[%s10488_s30 + $0x50] sm:$0xff]  ;;  %v10618_v50 = vld [vmem:[%s10488_s30 + $0x58] sm:$0xff] }
  0x1e   : > { %9671 = vmatpush3.bf16.msra.mxu0 %v9668_v19  ;;  %9634 = vmatprep.subr.msk.bf16.mxu1 %vm10446_vm2, %v9632_v29  ;;  %v10603_v47 = vld [vmem:[%s10488_s30 + $0xc8] sm:$0xff]  ;;  %v10609_v49 = vld [vmem:[%s10488_s30 + $0xd0] sm:$0xff]  ;;  %v10621_v51 = vld [vmem:[%s10488_s30 + $0xd8] sm:$0xff] }
  0x1f   : > { %8694 = vmatmul.mubr.msk.f32.gmra.mrb[2].mxu1 %vm274_vm3, %v209_v31  ;;  %9674 = vmatprep.subr.msk.bf16.mxu0 %vm10446_vm2, %v9672_v30  ;;  %v10626_v52 = vld [vmem:[%s10488_s30 + $0x60] sm:$0xff]  ;;  %v7181_v54 = vld [vmem:[%s12547_s1 + $0x48] sm:$0xff]  ;;  %v10654_v59 = vld [vmem:[%s10488_s30 + $0x70] sm:$0xff] }
  0x20   : > { %9110 = vmatmul.mubr.msk.f32.gmra.mrb[2].mxu0 %vm274_vm3, %v10533_v34  ;;  %8696 = vmatprep.mubr.msk.f32.mxu1 %vm274_vm3, %v10536_v35  ;;  %v10635_v55 = vld [vmem:[%s10488_s30 + $0xe0] sm:$0xff]  ;;  %v10637_v56 = vpack.c.bf16 %v7181_v54, %v7180_v53  ;;  %v10646_v57 = vld [vmem:[%s10488_s30 + $0x68] sm:$0xff]  ;;  %v10658_v60 = vld [vmem:[%s10488_s30 + $0xf0] sm:$0xff] }
  0x21   : > { %9112 = vmatprep.mubr.msk.f32.mxu0 %vm274_vm3, %v10539_v36  ;;  %9637 = vmatpush3.bf16.msk.msra.mxu1 %vm10446_vm2, %v9632_v29  ;;  %v10651_v58 = vld [vmem:[%s10488_s30 + $0xe8] sm:$0xff]  ;;  %v10667_v61 = vld [vmem:[%s10488_s30 + $0x78] sm:$0xff]  ;;  %v10675_v63 = vld [vmem:[%s10488_s30 + $0x100] sm:$0xff] }
  0x22   : > { %9677 = vmatpush3.bf16.msk.msra.mxu0 %vm10446_vm2, %v9672_v30  ;;  %9639 = vmatprep.subr.bf16.mxu1 %v10637_v56  ;;  %v10672_v62 = vld [vmem:[%s10488_s30 + $0xf8] sm:$0xff]  ;;  %v10686_v0 = vld [vmem:[%s10488_s30 + $0x108] sm:$0xff]  ;;  %v10689_v1 = vld [vmem:[%s10488_s30 + $0x110] sm:$0xff] }
  0x23   : > { %8697 = vmatmul.mubr.msk.f32.gmra.mrb[4].mxu1 %vm274_vm3, %v10553_v38  ;;  %9679 = vmatprep.subr.bf16.mxu0 %v10546_v37  ;;  %v10700_v2 = vld [vmem:[%s10488_s30 + $0x118] sm:$0xff]  ;;  %v10703_v3 = vld [vmem:[%s10488_s30 + $0x120] sm:$0xff]  ;;  %v10714_v4 = vld [vmem:[%s10488_s30 + $0x128] sm:$0xff] }
  0x24   : > { %9113 = vmatmul.mubr.msk.f32.gmra.mrb[4].mxu0 %vm274_vm3, %v10558_v39  ;;  %8699 = vmatprep.mubr.msk.f32.mxu1 %vm274_vm3, %v10561_v40  ;;  %v10717_v5 = vld [vmem:[%s10488_s30 + $0x130] sm:$0xff]  ;;  %v10728_v6 = vld [vmem:[%s10488_s30 + $0x138] sm:$0xff]  ;;  %v10731_v8 = vld [vmem:[%s10488_s30 + $0x140] sm:$0xff] }
  0x25   : > { %9115 = vmatprep.mubr.msk.f32.mxu0 %vm274_vm3, %v10566_v41  ;;  %v10742_v10 = vld [vmem:[%s10488_s30 + $0x148] sm:$0xff]  ;;  %v10745_v11 = vld [vmem:[%s10488_s30 + $0x150] sm:$0xff]  ;;  %v10756_v13 = vld [vmem:[%s10488_s30 + $0x158] sm:$0xff] }
  0x26   : > { %v10759_v14 = vld [vmem:[%s10488_s30 + $0x160] sm:$0xff]  ;;  %v10770_v15 = vld [vmem:[%s10488_s30 + $0x168] sm:$0xff]  ;;  %v10773_v16 = vld [vmem:[%s10488_s30 + $0x170] sm:$0xff] }
  0x27   : > { %8700 = vmatmul.mubr.msk.f32.gmra.mrb[6].mxu1 %vm274_vm3, %v10578_v42  ;;  %v10784_v17 = vld [vmem:[%s10488_s30 + $0x178] sm:$0xff]  ;;  %v7855_v21 = vld [vmem:[%s12547_s1 + $0xe0] sm:$0xff]  ;;  %v7856_v22 = vld [vmem:[%s12547_s1 + $0xe8] sm:$0xff] }
  0x28   : > { %9116 = vmatmul.mubr.msk.f32.gmra.mrb[6].mxu0 %vm274_vm3, %v10583_v43  ;;  %8702 = vmatprep.mubr.msk.f32.mxu1 %vm274_vm3, %v10586_v44  ;;  %12570 = vst [vmem:[#allocation4_spill] sm:$0xff] %v10784_v17  ;;  %v7723_v19 = vld [vmem:[%s12547_s1 + $0xd8] sm:$0x7]  ;;  %v10817_v23 = vpack.c.bf16 %v7856_v22, %v7855_v21  ;;  %v10871_v25 = vld [vmem:[%s10488_s30 + $0x180] sm:$0xff]  ;;  %v10880_v27 = vld [vmem:[%s10488_s30 + $0x188] sm:$0xff] }
  0x29   : > { %9118 = vmatprep.mubr.msk.f32.mxu0 %vm274_vm3, %v10589_v45  ;;  %v9682_v20 = vpack.c.bf16 %v7723_v19, %v7722_v18  ;;  %12571 = vst [vmem:[#allocation5_spill] sm:$0xff] %v10871_v25  ;;  %12572 = vst [vmem:[#allocation6_spill] sm:$0xff] %v10880_v27  ;;  %v10885_v29 = vld [vmem:[%s10488_s30 + $0x190] sm:$0xff]  ;;  %v10894_v30 = vld [vmem:[%s10488_s30 + $0x198] sm:$0xff] }
  0x2a   : > { %12573 = vst [vmem:[#allocation7_spill] sm:$0xff] %v10885_v29  ;;  %v10899_v31 = vld [vmem:[%s10488_s30 + $0x1a0] sm:$0xff]  ;;  %v10908_v32 = vld [vmem:[%s10488_s30 + $0x1a8] sm:$0xff]  ;;  %v10913_v33 = vld [vmem:[%s10488_s30 + $0x1b0] sm:$0xff] }
  0x2b   : > { %8703 = vmatmul.mubr.msk.f32.gmra.mrb[8].mxu1 %vm274_vm3, %v10598_v46  ;;  %v10927_v53 = vld [vmem:[%s10488_s30 + $0x1c0] sm:$0xff]  ;;  %v10936_v54 = vld [vmem:[%s10488_s30 + $0x1c8] sm:$0xff]  ;;  %v10941_v18 = vld [vmem:[%s10488_s30 + $0x1d0] sm:$0xff] }
  0x2c   : > { %9119 = vmatmul.mubr.msk.f32.gmra.mrb[8].mxu0 %vm274_vm3, %v10603_v47  ;;  %8705 = vmatprep.mubr.msk.f32.mxu1 %vm274_vm3, %v10606_v48  ;;  %v10950_v19 = vld [vmem:[%s10488_s30 + $0x1d8] sm:$0xff]  ;;  %v10964_v21 = vld [vmem:[%s10488_s30 + $0x1e8] sm:$0xff]  ;;  %v10969_v22 = vld [vmem:[%s10488_s30 + $0x1f0] sm:$0xff] }
  0x2d   : > { %9121 = vmatprep.mubr.msk.f32.mxu0 %vm274_vm3, %v10609_v49  ;;  %v10978_v12 = vld [vmem:[%s10488_s30 + $0x1f8] sm:$0xff]  ;;  %v7182_v7 = vld [vmem:[%s12547_s1 + $0x50] sm:$0xff]  ;;  %v11837_v9 = vld [vmem:[%s10488_s30 + $0x220] sm:$0xff] }
  0x2f   : > { %8706 = vmatmul.mubr.msk.f32.gmra.mrb[10].mxu1 %vm274_vm3, %v10618_v50 }
  0x30   : > { %9122 = vmatmul.mubr.msk.f32.gmra.mrb[10].mxu0 %vm274_vm3, %v10621_v51  ;;  %8708 = vmatprep.mubr.msk.f32.mxu1 %vm274_vm3, %v10626_v52 }
  0x31   : > { %9124 = vmatprep.mubr.msk.f32.mxu0 %vm274_vm3, %v10635_v55 }
  0x33   : > { %8709 = vmatmul.mubr.msk.f32.gmra.mrb[12].mxu1 %vm274_vm3, %v10646_v57 }
  0x34   : > { %9125 = vmatmul.mubr.msk.f32.gmra.mrb[12].mxu0 %vm274_vm3, %v10651_v58  ;;  %8711 = vmatprep.mubr.msk.f32.mxu1 %vm274_vm3, %v10654_v59 }
  0x35   : > { %9127 = vmatprep.mubr.msk.f32.mxu0 %vm274_vm3, %v10658_v60 }
  0x37   : > { %8712 = vmatmul.mubr.msk.f32.gmra.mrb[14].mxu1 %vm274_vm3, %v10667_v61 }
  0x38   : > { %9128 = vmatmul.mubr.msk.f32.gmra.mrb[14].mxu0 %vm274_vm3, %v10672_v62  ;;  %8714 = vmatprep.mubr.msk.f32.mxu1 %vm274_vm3, %v10503_v24 }
  0x39   : > { %9130 = vmatprep.mubr.msk.f32.mxu0 %vm274_vm3, %v10675_v63 }
  0x3b   : > { %8715 = vmatmul.mubr.msk.f32.gmra.mrb[16].mxu1 %vm274_vm3, %v10511_v26 }
  0x3c   : > { %9131 = vmatmul.mubr.msk.f32.gmra.mrb[16].mxu0 %vm274_vm3, %v10686_v0  ;;  %8717 = vmatprep.mubr.msk.f32.mxu1 %vm274_vm3, %v10517_v28 }
  0x3d   : > { %9133 = vmatprep.mubr.msk.f32.mxu0 %vm274_vm3, %v10689_v1 }
  0x3f   : > { %8718 = vmatmul.mubr.msk.f32.gmra.mrb[18].mxu1 %vm274_vm3, %v10533_v34 }
  0x40   : > { %9134 = vmatmul.mubr.msk.f32.gmra.mrb[18].mxu0 %vm274_vm3, %v10700_v2  ;;  %8720 = vmatprep.mubr.msk.f32.mxu1 %vm274_vm3, %v10539_v36 }
  0x41   : > { %9136 = vmatprep.mubr.msk.f32.mxu0 %vm274_vm3, %v10703_v3 }
  0x43   : > { %8721 = vmatmul.mubr.msk.f32.gmra.mrb[20].mxu1 %vm274_vm3, %v10558_v39 }
  0x44   : > { %9137 = vmatmul.mubr.msk.f32.gmra.mrb[20].mxu0 %vm274_vm3, %v10714_v4  ;;  %8723 = vmatprep.mubr.msk.f32.mxu1 %vm274_vm3, %v10566_v41 }
  0x45   : > { %9139 = vmatprep.mubr.msk.f32.mxu0 %vm274_vm3, %v10717_v5 }
  0x47   : > { %8724 = vmatmul.mubr.msk.f32.gmra.mrb[22].mxu1 %vm274_vm3, %v10583_v43 }
  0x48   : > { %9140 = vmatmul.mubr.msk.f32.gmra.mrb[22].mxu0 %vm274_vm3, %v10728_v6  ;;  %8726 = vmatprep.mubr.msk.f32.mxu1 %vm274_vm3, %v10589_v45 }
  0x49   : > { %9142 = vmatprep.mubr.msk.f32.mxu0 %vm274_vm3, %v10731_v8 }
  0x4b   : > { %8727 = vmatmul.mubr.msk.f32.gmra.mrb[24].mxu1 %vm274_vm3, %v10603_v47 }
  0x4c   : > { %9143 = vmatmul.mubr.msk.f32.gmra.mrb[24].mxu0 %vm274_vm3, %v10742_v10  ;;  %8729 = vmatprep.mubr.msk.f32.mxu1 %vm274_vm3, %v10609_v49 }
  0x4d   : > { %9145 = vmatprep.mubr.msk.f32.mxu0 %vm274_vm3, %v10745_v11 }
  0x4f   : > { %8730 = vmatmul.mubr.msk.f32.gmra.mrb[26].mxu1 %vm274_vm3, %v10621_v51 }
  0x50   : > { %9146 = vmatmul.mubr.msk.f32.gmra.mrb[26].mxu0 %vm274_vm3, %v10756_v13  ;;  %8732 = vmatprep.mubr.msk.f32.mxu1 %vm274_vm3, %v10635_v55 }
  0x51   : > { %9148 = vmatprep.mubr.msk.f32.mxu0 %vm274_vm3, %v10759_v14 }
  0x53   : > { %8733 = vmatmul.mubr.msk.f32.gmra.mrb[28].mxu1 %vm274_vm3, %v10651_v58 }
  0x54   : > { %9149 = vmatmul.mubr.msk.f32.gmra.mrb[28].mxu0 %vm274_vm3, %v10770_v15  ;;  %8735 = vmatprep.mubr.msk.f32.mxu1 %vm274_vm3, %v10658_v60 }
  0x55   : > { %9151 = vmatprep.mubr.msk.f32.mxu0 %vm274_vm3, %v10773_v16 }
  0x57   : > { %8736 = vmatmul.mubr.msk.f32.gmra.mrb[30].mxu1 %vm274_vm3, %v10672_v62 }
  0x58   : > { %9152 = vmatmul.mubr.msk.f32.gmra.mrb[30].mxu0 %vm274_vm3, %v10784_v17  ;;  %8738 = vmatprep.mubr.msk.f32.mxu1 %vm274_vm3, %v10675_v63 }
  0x59   : > { %9210 = vmatprep.mubr.msk.f32.mxu0 %vm274_vm3, %v10539_v36 }
  0x5b   : > { %8739 = vmatmul.mubr.msk.f32.gmra.mrb[32].mxu1 %vm274_vm3, %v10686_v0 }
  0x5c   : > { %9211 = vmatmul.mubr.msk.f32.vlgmr.msra.gmra.mrb[0].mxu0 %vm274_vm3, %v10558_v39  ;;  %8741 = vmatprep.mubr.msk.f32.mxu1 %vm274_vm3, %v10689_v1 }
  0x5d   : > { %9213 = vmatprep.mubr.msk.f32.mxu0 %vm274_vm3, %v10566_v41  ;;  %9681 = vmatpush3.bf16.msra.mxu0 %v10546_v37  ;;  %v10922_v37 = vld [vmem:[%s10488_s30 + $0x1b8] sm:$0xff] }
  0x5e   : > { %9684 = vmatprep.subr.msk.bf16.mxu0 %vm10446_vm2, %v9682_v20 }
  0x5f   : > { %8742 = vmatmul.mubr.msk.f32.gmra.mrb[34].mxu1 %vm274_vm3, %v10700_v2 }
  0x60   : > { %9214 = vmatmul.mubr.msk.f32.gmra.mrb[2].mxu0 %vm274_vm3, %v10583_v43  ;;  %8744 = vmatprep.mubr.msk.f32.mxu1 %vm274_vm3, %v10703_v3 }
  0x61   : > { %9216 = vmatprep.mubr.msk.f32.mxu0 %vm274_vm3, %v10589_v45  ;;  %9687 = vmatpush3.bf16.msk.msra.mxu0 %vm10446_vm2, %v9682_v20  ;;  %v10955_v20 = vld [vmem:[%s10488_s30 + $0x1e0] sm:$0xff] }
  0x62   : > { %9689 = vmatprep.subr.bf16.mxu0 %v10817_v23 }
  0x63   : > { %8745 = vmatmul.mubr.msk.f32.gmra.mrb[36].mxu1 %vm274_vm3, %v10714_v4 }
  0x64   : > { %9217 = vmatmul.mubr.msk.f32.gmra.mrb[4].mxu0 %vm274_vm3, %v10603_v47  ;;  %8747 = vmatprep.mubr.msk.f32.mxu1 %vm274_vm3, %v10717_v5 }
  0x65   : > { %9219 = vmatprep.mubr.msk.f32.mxu0 %vm274_vm3, %v10609_v49 }
  0x67   : > { %8748 = vmatmul.mubr.msk.f32.gmra.mrb[38].mxu1 %vm274_vm3, %v10728_v6 }
  0x68   : > { %9220 = vmatmul.mubr.msk.f32.gmra.mrb[6].mxu0 %vm274_vm3, %v10621_v51  ;;  %8750 = vmatprep.mubr.msk.f32.mxu1 %vm274_vm3, %v10731_v8 }
  0x69   : > { %9222 = vmatprep.mubr.msk.f32.mxu0 %vm274_vm3, %v10635_v55 }
  0x6b   : > { %8751 = vmatmul.mubr.msk.f32.gmra.mrb[40].mxu1 %vm274_vm3, %v10742_v10 }
  0x6c   : > { %9223 = vmatmul.mubr.msk.f32.gmra.mrb[8].mxu0 %vm274_vm3, %v10651_v58  ;;  %8753 = vmatprep.mubr.msk.f32.mxu1 %vm274_vm3, %v10745_v11 }
  0x6d   : > { %9225 = vmatprep.mubr.msk.f32.mxu0 %vm274_vm3, %v10658_v60 }
  0x6f   : > { %8754 = vmatmul.mubr.msk.f32.gmra.mrb[42].mxu1 %vm274_vm3, %v10756_v13 }
  0x70   : > { %9226 = vmatmul.mubr.msk.f32.gmra.mrb[10].mxu0 %vm274_vm3, %v10672_v62  ;;  %8756 = vmatprep.mubr.msk.f32.mxu1 %vm274_vm3, %v10759_v14 }
  0x71   : > { %9228 = vmatprep.mubr.msk.f32.mxu0 %vm274_vm3, %v10675_v63 }
  0x73   : > { %8757 = vmatmul.mubr.msk.f32.gmra.mrb[44].mxu1 %vm274_vm3, %v10770_v15 }
  0x74   : > { %9229 = vmatmul.mubr.msk.f32.gmra.mrb[12].mxu0 %vm274_vm3, %v10686_v0  ;;  %8759 = vmatprep.mubr.msk.f32.mxu1 %vm274_vm3, %v10773_v16 }
  0x75   : > { %9231 = vmatprep.mubr.msk.f32.mxu0 %vm274_vm3, %v10689_v1 }
  0x77   : > { %8760 = vmatmul.mubr.msk.f32.gmra.mrb[46].mxu1 %vm274_vm3, %v10784_v17 }
  0x78   : > { %9232 = vmatmul.mubr.msk.f32.gmra.mrb[14].mxu0 %vm274_vm3, %v10700_v2  ;;  %8762 = vmatprep.mubr.msk.f32.mxu1 %vm274_vm3, %v10871_v25 }
  0x79   : > { %9234 = vmatprep.mubr.msk.f32.mxu0 %vm274_vm3, %v10703_v3 }
  0x7b   : > { %8763 = vmatmul.mubr.msk.f32.gmra.mrb[48].mxu1 %vm274_vm3, %v10880_v27 }
  0x7c   : > { %9235 = vmatmul.mubr.msk.f32.gmra.mrb[16].mxu0 %vm274_vm3, %v10714_v4  ;;  %8765 = vmatprep.mubr.msk.f32.mxu1 %vm274_vm3, %v10885_v29 }
  0x7d   : > { %9237 = vmatprep.mubr.msk.f32.mxu0 %vm274_vm3, %v10717_v5 }
  0x7f   : > { %8766 = vmatmul.mubr.msk.f32.gmra.mrb[50].mxu1 %vm274_vm3, %v10894_v30 }
  0x80   : > { %9238 = vmatmul.mubr.msk.f32.gmra.mrb[18].mxu0 %vm274_vm3, %v10728_v6  ;;  %8768 = vmatprep.mubr.msk.f32.mxu1 %vm274_vm3, %v10899_v31 }
  0x81   : > { %9240 = vmatprep.mubr.msk.f32.mxu0 %vm274_vm3, %v10731_v8 }
  0x83   : > { %8769 = vmatmul.mubr.msk.f32.gmra.mrb[52].mxu1 %vm274_vm3, %v10908_v32 }
  0x84   : > { %9241 = vmatmul.mubr.msk.f32.gmra.mrb[20].mxu0 %vm274_vm3, %v10742_v10  ;;  %8771 = vmatprep.mubr.msk.f32.mxu1 %vm274_vm3, %v10913_v33 }
  0x85   : > { %9243 = vmatprep.mubr.msk.f32.mxu0 %vm274_vm3, %v10745_v11 }
  0x87   : > { %8772 = vmatmul.mubr.msk.f32.gmra.mrb[54].mxu1 %vm274_vm3, %v10922_v37 }
  0x88   : > { %9244 = vmatmul.mubr.msk.f32.gmra.mrb[22].mxu0 %vm274_vm3, %v10756_v13  ;;  %8774 = vmatprep.mubr.msk.f32.mxu1 %vm274_vm3, %v10927_v53 }
  0x89   : > { %9246 = vmatprep.mubr.msk.f32.mxu0 %vm274_vm3, %v10759_v14 }
  0x8b   : > { %8775 = vmatmul.mubr.msk.f32.gmra.mrb[56].mxu1 %vm274_vm3, %v10936_v54 }
  0x8c   : > { %9247 = vmatmul.mubr.msk.f32.gmra.mrb[24].mxu0 %vm274_vm3, %v10770_v15  ;;  %8777 = vmatprep.mubr.msk.f32.mxu1 %vm274_vm3, %v10941_v18 }
  0x8d   : > { %9249 = vmatprep.mubr.msk.f32.mxu0 %vm274_vm3, %v10773_v16 }
  0x8f   : > { %8778 = vmatmul.mubr.msk.f32.gmra.mrb[58].mxu1 %vm274_vm3, %v10950_v19 }
  0x90   : > { %9250 = vmatmul.mubr.msk.f32.gmra.mrb[26].mxu0 %vm274_vm3, %v10784_v17  ;;  %8780 = vmatprep.mubr.msk.f32.mxu1 %vm274_vm3, %v10955_v20  ;;  %v7316_v17 = vld [vmem:[%s12547_s1 + $0x68] sm:$0xff] }
  0x91   : > { %9252 = vmatprep.mubr.msk.f32.mxu0 %vm274_vm3, %v10871_v25  ;;  %v7183_v25 = vld [vmem:[%s12547_s1 + $0x58] sm:$0x7] }
  0x93   : > { %8781 = vmatmul.mubr.msk.f32.gmra.mrb[60].mxu1 %vm274_vm3, %v10964_v21 }
  0x94   : > { %9253 = vmatmul.mubr.msk.f32.gmra.mrb[28].mxu0 %vm274_vm3, %v10880_v27  ;;  %8783 = vmatprep.mubr.msk.f32.mxu1 %vm274_vm3, %v10969_v22  ;;  %v7315_v27 = vld [vmem:[%s12547_s1 + $0x60] sm:$0xff] }
  0x95   : > { %9255 = vmatprep.mubr.msk.f32.mxu0 %vm274_vm3, %v10885_v29  ;;  %v9642_v29 = vpack.c.bf16 %v7183_v25, %v7182_v7  ;;  %v11013_v7 = vpack.c.bf16 %v7316_v17, %v7315_v27  ;;  %v7858_v17 = vld [vmem:[%s12547_s1 + $0xf8] sm:$0x7]  ;;  %v7990_v27 = vld [vmem:[%s12547_s1 + $0x100] sm:$0xff] }
  0x97   : > { %8784 = vmatmul.mubr.msk.f32.gmra.mrb[62].mxu1 %vm274_vm3, %v10978_v12 }
  0x98   : > { %9256 = vmatmul.mubr.msk.f32.gmra.mrb[30].mxu0 %vm274_vm3, %v10894_v30  ;;  %8794 = vmatprep.mubr.msk.f32.mxu1 %vm274_vm3, %v10536_v35  ;;  %v11051_v35 = vld [vmem:[%s10488_s30 + $0x200] sm:$0xff] }
  0x99   : > { %9258 = vmatprep.mubr.msk.f32.mxu0 %vm274_vm3, %v10899_v31 }
  0x9b   : > { %8795 = vmatmul.mubr.msk.f32.vlgmr.msra.gmra.mrb[0].mxu1 %vm274_vm3, %v10553_v38  ;;  %v11062_v38 = vld [vmem:[%s10488_s30 + $0x208] sm:$0xff] }
  0x9c   : > { %9259 = vmatmul.mubr.msk.f32.gmra.mrb[32].mxu0 %vm274_vm3, %v10908_v32  ;;  %9641 = vmatpush3.bf16.msra.mxu1 %v10637_v56  ;;  %v11174_v56 = vld [vmem:[%s10488_s30 + $0x288] sm:$0xff] }
  0x9d   : > { %8797 = vmatprep.mubr.msk.f32.mxu1 %vm274_vm3, %v10561_v40  ;;  %9261 = vmatprep.mubr.msk.f32.mxu0 %vm274_vm3, %v10913_v33  ;;  %v11065_v40 = vld [vmem:[%s10488_s30 + $0x210] sm:$0xff] }
  0x9e   : > { %9644 = vmatprep.subr.msk.bf16.mxu1 %vm10446_vm2, %v9642_v29 }
  0x9f   : > { %8798 = vmatmul.mubr.msk.f32.gmra.mrb[2].mxu1 %vm274_vm3, %v10578_v42  ;;  %v11079_v42 = vld [vmem:[%s10488_s30 + $0x220] sm:$0xff] }
  0xa0   : > { %9262 = vmatmul.mubr.msk.f32.gmra.mrb[34].mxu0 %vm274_vm3, %v10922_v37  ;;  %8800 = vmatprep.mubr.msk.f32.mxu1 %vm274_vm3, %v10586_v44  ;;  %v11135_v44 = vld [vmem:[%s10488_s30 + $0x260] sm:$0xff] }
  0xa1   : > { %9264 = vmatprep.mubr.msk.f32.mxu0 %vm274_vm3, %v10927_v53  ;;  %9647 = vmatpush3.bf16.msk.msra.mxu1 %vm10446_vm2, %v9642_v29  ;;  %v7991_v29 = vld [vmem:[%s12547_s1 + $0x108] sm:$0xff] }
  0xa2   : > { %9649 = vmatprep.subr.bf16.mxu1 %v11013_v7 }
  0xa3   : > { %8801 = vmatmul.mubr.msk.f32.gmra.mrb[4].mxu1 %vm274_vm3, %v10598_v46  ;;  %v11146_v46 = vld [vmem:[%s10488_s30 + $0x268] sm:$0xff] }
  0xa4   : > { %9265 = vmatmul.mubr.msk.f32.gmra.mrb[36].mxu0 %vm274_vm3, %v10936_v54  ;;  %8803 = vmatprep.mubr.msk.f32.mxu1 %vm274_vm3, %v10606_v48  ;;  %v11149_v48 = vld [vmem:[%s10488_s30 + $0x270] sm:$0xff] }
  0xa5   : > { %9267 = vmatprep.mubr.msk.f32.mxu0 %vm274_vm3, %v10941_v18 }
  0xa7   : > { %8804 = vmatmul.mubr.msk.f32.gmra.mrb[6].mxu1 %vm274_vm3, %v10618_v50  ;;  %v11160_v50 = vld [vmem:[%s10488_s30 + $0x278] sm:$0xff] }
  0xa8   : > { %9268 = vmatmul.mubr.msk.f32.gmra.mrb[38].mxu0 %vm274_vm3, %v10950_v19  ;;  %8806 = vmatprep.mubr.msk.f32.mxu1 %vm274_vm3, %v10626_v52  ;;  %v11163_v52 = vld [vmem:[%s10488_s30 + $0x280] sm:$0xff] }
  0xa9   : > { %9270 = vmatprep.mubr.msk.f32.mxu0 %vm274_vm3, %v10955_v20 }
  0xab   : > { %8807 = vmatmul.mubr.msk.f32.gmra.mrb[8].mxu1 %vm274_vm3, %v10646_v57  ;;  %v11177_v57 = vld [vmem:[%s10488_s30 + $0x290] sm:$0xff] }
  0xac   : > { %9271 = vmatmul.mubr.msk.f32.gmra.mrb[40].mxu0 %vm274_vm3, %v10964_v21  ;;  %8809 = vmatprep.mubr.msk.f32.mxu1 %vm274_vm3, %v10654_v59  ;;  %v11188_v59 = vld [vmem:[%s10488_s30 + $0x298] sm:$0xff] }
  0xad   : > { %9273 = vmatprep.mubr.msk.f32.mxu0 %vm274_vm3, %v10969_v22 }
  0xaf   : > { %8810 = vmatmul.mubr.msk.f32.gmra.mrb[10].mxu1 %vm274_vm3, %v10667_v61  ;;  %v7857_v61 = vld [vmem:[%s12547_s1 + $0xf0] sm:$0xff] }
  0xb0   : > { %9274 = vmatmul.mubr.msk.f32.gmra.mrb[42].mxu0 %vm274_vm3, %v10978_v12  ;;  %8812 = vmatprep.mubr.msk.f32.mxu1 %vm274_vm3, %v10503_v24  ;;  %v11076_v24 = vld [vmem:[%s10488_s30 + $0x218] sm:$0xff]  ;;  %v9692_v25 = vpack.c.bf16 %v7858_v17, %v7857_v61 }
  0xb1   : > { %9276 = vmatprep.mubr.msk.f32.mxu0 %vm274_vm3, %v11051_v35  ;;  %v11604_v17 = vld [vmem:[%s10488_s30 + $0x158] sm:$0xff] }
  0xb3   : > { %8813 = vmatmul.mubr.msk.f32.gmra.mrb[12].mxu1 %vm274_vm3, %v10511_v26  ;;  %v11090_v26 = vld [vmem:[%s10488_s30 + $0x228] sm:$0xff] }
  0xb4   : > { %9277 = vmatmul.mubr.msk.f32.gmra.mrb[44].mxu0 %vm274_vm3, %v11062_v38  ;;  %8815 = vmatprep.mubr.msk.f32.mxu1 %vm274_vm3, %v10517_v28  ;;  %v11093_v28 = vld [vmem:[%s10488_s30 + $0x230] sm:$0xff] }
  0xb5   : > { %9279 = vmatprep.mubr.msk.f32.mxu0 %vm274_vm3, %v11065_v40 }
  0xb7   : > { %8816 = vmatmul.mubr.msk.f32.gmra.mrb[14].mxu1 %vm274_vm3, %v10533_v34  ;;  %v11104_v34 = vld [vmem:[%s10488_s30 + $0x238] sm:$0xff] }
  0xb8   : > { %9280 = vmatmul.mubr.msk.f32.gmra.mrb[46].mxu0 %vm274_vm3, %v11076_v24  ;;  %8818 = vmatprep.mubr.msk.f32.mxu1 %vm274_vm3, %v10539_v36  ;;  %v11107_v36 = vld [vmem:[%s10488_s30 + $0x240] sm:$0xff] }
  0xb9   : > { %9282 = vmatprep.mubr.msk.f32.mxu0 %vm274_vm3, %v11079_v42 }
  0xbb   : > { %8819 = vmatmul.mubr.msk.f32.gmra.mrb[16].mxu1 %vm274_vm3, %v10558_v39  ;;  %v11118_v39 = vld [vmem:[%s10488_s30 + $0x248] sm:$0xff] }
  0xbc   : > { %9283 = vmatmul.mubr.msk.f32.gmra.mrb[48].mxu0 %vm274_vm3, %v11090_v26  ;;  %8821 = vmatprep.mubr.msk.f32.mxu1 %vm274_vm3, %v10566_v41  ;;  %v11121_v41 = vld [vmem:[%s10488_s30 + $0x250] sm:$0xff] }
  0xbd   : > { %9285 = vmatprep.mubr.msk.f32.mxu0 %vm274_vm3, %v11093_v28 }
  0xbf   : > { %8822 = vmatmul.mubr.msk.f32.gmra.mrb[18].mxu1 %vm274_vm3, %v10583_v43  ;;  %v11132_v43 = vld [vmem:[%s10488_s30 + $0x258] sm:$0xff] }
  0xc0   : > { %9286 = vmatmul.mubr.msk.f32.gmra.mrb[50].mxu0 %vm274_vm3, %v11104_v34  ;;  %8824 = vmatprep.mubr.msk.f32.mxu1 %vm274_vm3, %v10589_v45 }
  0xc1   : > { %9288 = vmatprep.mubr.msk.f32.mxu0 %vm274_vm3, %v11107_v36 }
  0xc3   : > { %8825 = vmatmul.mubr.msk.f32.gmra.mrb[20].mxu1 %vm274_vm3, %v10603_v47 }
  0xc4   : > { %9289 = vmatmul.mubr.msk.f32.gmra.mrb[52].mxu0 %vm274_vm3, %v11118_v39  ;;  %8827 = vmatprep.mubr.msk.f32.mxu1 %vm274_vm3, %v10609_v49 }
  0xc5   : > { %9291 = vmatprep.mubr.msk.f32.mxu0 %vm274_vm3, %v11121_v41 }
  0xc7   : > { %8828 = vmatmul.mubr.msk.f32.gmra.mrb[22].mxu1 %vm274_vm3, %v10621_v51 }
  0xc8   : > { %9292 = vmatmul.mubr.msk.f32.gmra.mrb[54].mxu0 %vm274_vm3, %v11132_v43  ;;  %8830 = vmatprep.mubr.msk.f32.mxu1 %vm274_vm3, %v10635_v55 }
  0xc9   : > { %9294 = vmatprep.mubr.msk.f32.mxu0 %vm274_vm3, %v11135_v44 }
  0xcb   : > { %8831 = vmatmul.mubr.msk.f32.gmra.mrb[24].mxu1 %vm274_vm3, %v10651_v58 }
  0xcc   : > { %9295 = vmatmul.mubr.msk.f32.gmra.mrb[56].mxu0 %vm274_vm3, %v11146_v46  ;;  %8833 = vmatprep.mubr.msk.f32.mxu1 %vm274_vm3, %v10658_v60 }
  0xcd   : > { %9297 = vmatprep.mubr.msk.f32.mxu0 %vm274_vm3, %v11149_v48 }
  0xcf   : > { %8834 = vmatmul.mubr.msk.f32.gmra.mrb[26].mxu1 %vm274_vm3, %v10672_v62 }
  0xd0   : > { %9298 = vmatmul.mubr.msk.f32.gmra.mrb[58].mxu0 %vm274_vm3, %v11160_v50  ;;  %8836 = vmatprep.mubr.msk.f32.mxu1 %vm274_vm3, %v10675_v63 }
  0xd1   : > { %9300 = vmatprep.mubr.msk.f32.mxu0 %vm274_vm3, %v11163_v52 }
  0xd3   : > { %8837 = vmatmul.mubr.msk.f32.gmra.mrb[28].mxu1 %vm274_vm3, %v10686_v0 }
  0xd4   : > { %9301 = vmatmul.mubr.msk.f32.gmra.mrb[60].mxu0 %vm274_vm3, %v11174_v56  ;;  %8839 = vmatprep.mubr.msk.f32.mxu1 %vm274_vm3, %v10689_v1 }
  0xd5   : > { %9303 = vmatprep.mubr.msk.f32.mxu0 %vm274_vm3, %v11177_v57 }
  0xd7   : > { %8840 = vmatmul.mubr.msk.f32.gmra.mrb[30].mxu1 %vm274_vm3, %v10700_v2 }
  0xd8   : > { %9304 = vmatmul.mubr.msk.f32.gmra.mrb[62].mxu0 %vm274_vm3, %v11188_v59  ;;  %8842 = vmatprep.mubr.msk.f32.mxu1 %vm274_vm3, %v10703_v3 }
  0xd9   : > { %9314 = vmatprep.mubr.msk.f32.mxu0 %vm274_vm3, %v10589_v45  ;;  %v11221_v45 = vpack.c.bf16 %v7991_v29, %v7990_v27  ;;  %v11621_v27 = vld [vmem:[%s10488_s30 + $0x168] sm:$0xff]  ;;  %v11626_v29 = vld [vmem:[%s10488_s30 + $0x170] sm:$0xff] }
  0xdb   : > { %8843 = vmatmul.mubr.msk.f32.gmra.mrb[32].mxu1 %vm274_vm3, %v10714_v4 }
  0xdc   : > { %9315 = vmatmul.mubr.msk.f32.vlgmr.msra.gmra.mrb[0].mxu0 %vm274_vm3, %v10603_v47  ;;  %8845 = vmatprep.mubr.msk.f32.mxu1 %vm274_vm3, %v10717_v5  ;;  %v12574_v47 = vld [vmem:[#allocation4_spill] sm:$0xff] }
  0xdd   : > { %9317 = vmatprep.mubr.msk.f32.mxu0 %vm274_vm3, %v10609_v49  ;;  %9691 = vmatpush3.bf16.msra.mxu0 %v10817_v23  ;;  %v12575_v49 = vld [vmem:[#allocation5_spill] sm:$0xff]  ;;  %12579 = vst [vmem:[#allocation4_spill] sm:$0xff] %v11621_v27 }
  0xde   : > { %9694 = vmatprep.subr.msk.bf16.mxu0 %vm10446_vm2, %v9692_v25  ;;  %v11446_v23 = vld [vmem:[%s10488_s30 + $0xb8] sm:$0xff] }
  0xdf   : > { %8846 = vmatmul.mubr.msk.f32.gmra.mrb[34].mxu1 %vm274_vm3, %v10728_v6 }
  0xe0   : > { %9318 = vmatmul.mubr.msk.f32.gmra.mrb[2].mxu0 %vm274_vm3, %v10621_v51  ;;  %8848 = vmatprep.mubr.msk.f32.mxu1 %vm274_vm3, %v10731_v8  ;;  %v12576_v51 = vld [vmem:[#allocation6_spill] sm:$0xff] }
  0xe1   : > { %9320 = vmatprep.mubr.msk.f32.mxu0 %vm274_vm3, %v10635_v55  ;;  %9697 = vmatpush3.bf16.msk.msra.mxu0 %vm10446_vm2, %v9692_v25  ;;  %v12577_v55 = vld [vmem:[#allocation7_spill] sm:$0xff]  ;;  %v11610_v25 = vld [vmem:[%s10488_s30 + $0x160] sm:$0xff] }
  0xe2   : > { %9699 = vmatprep.subr.bf16.mxu0 %v11221_v45 }
  0xe3   : > { %8849 = vmatmul.mubr.msk.f32.gmra.mrb[36].mxu1 %vm274_vm3, %v10742_v10 }
  0xe4   : > { %9321 = vmatmul.mubr.msk.f32.gmra.mrb[4].mxu0 %vm274_vm3, %v10651_v58  ;;  %8851 = vmatprep.mubr.msk.f32.mxu1 %vm274_vm3, %v10745_v11  ;;  %v7116_v58 = vld [vmem:[%s10488_s30 + $0x40] sm:$0xff] }
  0xe5   : > { %9323 = vmatprep.mubr.msk.f32.mxu0 %vm274_vm3, %v10658_v60  ;;  %v7317_v60 = vld [vmem:[%s12547_s1 + $0x70] sm:$0xff] }
  0xe7   : > { %8852 = vmatmul.mubr.msk.f32.gmra.mrb[38].mxu1 %vm274_vm3, %v10756_v13 }
  0xe8   : > { %9324 = vmatmul.mubr.msk.f32.gmra.mrb[6].mxu0 %vm274_vm3, %v10672_v62  ;;  %8854 = vmatprep.mubr.msk.f32.mxu1 %vm274_vm3, %v10759_v14  ;;  %v7318_v62 = vld [vmem:[%s12547_s1 + $0x78] sm:$0x7] }
  0xe9   : > { %9326 = vmatprep.mubr.msk.f32.mxu0 %vm274_vm3, %v10675_v63  ;;  %v7117_v63 = vld [vmem:[%s10488_s30 + $0x48] sm:$0xff] }
  0xeb   : > { %8855 = vmatmul.mubr.msk.f32.gmra.mrb[40].mxu1 %vm274_vm3, %v10770_v15 }
  0xec   : > { %9327 = vmatmul.mubr.msk.f32.gmra.mrb[8].mxu0 %vm274_vm3, %v10686_v0  ;;  %8857 = vmatprep.mubr.msk.f32.mxu1 %vm274_vm3, %v10773_v16  ;;  %v7118_v0 = vld [vmem:[%s10488_s30 + $0x50] sm:$0xff] }
  0xed   : > { %9329 = vmatprep.mubr.msk.f32.mxu0 %vm274_vm3, %v10689_v1  ;;  %v9652_v1 = vpack.c.bf16 %v7318_v62, %v7317_v60  ;;  %v11679_v60 = vld [vmem:[%s10488_s30 + $0x1a8] sm:$0xff]  ;;  %v11684_v62 = vld [vmem:[%s10488_s30 + $0x1b0] sm:$0xff] }
  0xef   : > { %8858 = vmatmul.mubr.msk.f32.gmra.mrb[42].mxu1 %vm274_vm3, %v12574_v47 }
  0xf0   : > { %9330 = vmatmul.mubr.msk.f32.gmra.mrb[10].mxu0 %vm274_vm3, %v10700_v2  ;;  %8860 = vmatprep.mubr.msk.f32.mxu1 %vm274_vm3, %v12575_v49  ;;  %v7119_v2 = vld [vmem:[%s10488_s30 + $0x58] sm:$0xff] }
  0xf1   : > { %9332 = vmatprep.mubr.msk.f32.mxu0 %vm274_vm3, %v10703_v3  ;;  %v11363_v3 = vld [vmem:[%s10488_s30 + $0x60] sm:$0xff] }
  0xf3   : > { %8861 = vmatmul.mubr.msk.f32.gmra.mrb[44].mxu1 %vm274_vm3, %v12576_v51 }
  0xf4   : > { %9333 = vmatmul.mubr.msk.f32.gmra.mrb[12].mxu0 %vm274_vm3, %v10714_v4  ;;  %8863 = vmatprep.mubr.msk.f32.mxu1 %vm274_vm3, %v12577_v55  ;;  %v11373_v4 = vld [vmem:[%s10488_s30 + $0x68] sm:$0xff] }
  0xf5   : > { %9335 = vmatprep.mubr.msk.f32.mxu0 %vm274_vm3, %v10717_v5  ;;  %v11378_v5 = vld [vmem:[%s10488_s30 + $0x70] sm:$0xff] }
  0xf7   : > { %8864 = vmatmul.mubr.msk.f32.gmra.mrb[46].mxu1 %vm274_vm3, %v10894_v30 }
  0xf8   : > { %9336 = vmatmul.mubr.msk.f32.gmra.mrb[14].mxu0 %vm274_vm3, %v10728_v6  ;;  %8866 = vmatprep.mubr.msk.f32.mxu1 %vm274_vm3, %v10899_v31  ;;  %v12578_v6 = vld [vmem:[#allocation2_spill] sm:$0xff] }
  0xf9   : > { %9338 = vmatprep.mubr.msk.f32.mxu0 %vm274_vm3, %v10731_v8  ;;  %v11390_v8 = vld [vmem:[%s10488_s30 + $0x78] sm:$0xff] }
  0xfb   : > { %8867 = vmatmul.mubr.msk.f32.gmra.mrb[48].mxu1 %vm274_vm3, %v10908_v32 }
  0xfc   : > { %9339 = vmatmul.mubr.msk.f32.gmra.mrb[16].mxu0 %vm274_vm3, %v10742_v10  ;;  %8869 = vmatprep.mubr.msk.f32.mxu1 %vm274_vm3, %v10913_v33  ;;  %v11395_v10 = vld [vmem:[%s10488_s30 + $0x80] sm:$0xff] }
  0xfd   : > { %9341 = vmatprep.mubr.msk.f32.mxu0 %vm274_vm3, %v10745_v11  ;;  %v11404_v11 = vld [vmem:[%s10488_s30 + $0x88] sm:$0xff] }
  0xff   : > { %8870 = vmatmul.mubr.msk.f32.gmra.mrb[50].mxu1 %vm274_vm3, %v10922_v37 }
 0x100   : > { %9342 = vmatmul.mubr.msk.f32.gmra.mrb[18].mxu0 %vm274_vm3, %v10756_v13  ;;  %8872 = vmatprep.mubr.msk.f32.mxu1 %vm274_vm3, %v10927_v53  ;;  %v11409_v13 = vld [vmem:[%s10488_s30 + $0x90] sm:$0xff] }
 0x101   : > { %9344 = vmatprep.mubr.msk.f32.mxu0 %vm274_vm3, %v10759_v14  ;;  %v11423_v14 = vld [vmem:[%s10488_s30 + $0xa0] sm:$0xff] }
 0x103   : > { %8873 = vmatmul.mubr.msk.f32.gmra.mrb[52].mxu1 %vm274_vm3, %v10936_v54 }
 0x104   : > { %9345 = vmatmul.mubr.msk.f32.gmra.mrb[20].mxu0 %vm274_vm3, %v10770_v15  ;;  %8875 = vmatprep.mubr.msk.f32.mxu1 %vm274_vm3, %v10941_v18  ;;  %v11432_v15 = vld [vmem:[%s10488_s30 + $0xa8] sm:$0xff] }
 0x105   : > { %9347 = vmatprep.mubr.msk.f32.mxu0 %vm274_vm3, %v10773_v16  ;;  %v11437_v16 = vld [vmem:[%s10488_s30 + $0xb0] sm:$0xff] }
 0x107   : > { %8876 = vmatmul.mubr.msk.f32.gmra.mrb[54].mxu1 %vm274_vm3, %v10950_v19 }
 0x108   : > { %9348 = vmatmul.mubr.msk.f32.gmra.mrb[22].mxu0 %vm274_vm3, %v12574_v47  ;;  %8878 = vmatprep.mubr.msk.f32.mxu1 %vm274_vm3, %v10955_v20  ;;  %v11642_v47 = vld [vmem:[%s10488_s30 + $0x180] sm:$0xff] }
 0x109   : > { %9350 = vmatprep.mubr.msk.f32.mxu0 %vm274_vm3, %v12575_v49  ;;  %v11651_v49 = vld [vmem:[%s10488_s30 + $0x188] sm:$0xff] }
 0x10b   : > { %8879 = vmatmul.mubr.msk.f32.gmra.mrb[56].mxu1 %vm274_vm3, %v10964_v21 }
 0x10c   : > { %9351 = vmatmul.mubr.msk.f32.gmra.mrb[24].mxu0 %vm274_vm3, %v12576_v51  ;;  %8881 = vmatprep.mubr.msk.f32.mxu1 %vm274_vm3, %v10969_v22  ;;  %v11656_v51 = vld [vmem:[%s10488_s30 + $0x190] sm:$0xff] }
 0x10d   : > { %9353 = vmatprep.mubr.msk.f32.mxu0 %vm274_vm3, %v12577_v55  ;;  %v11665_v55 = vld [vmem:[%s10488_s30 + $0x198] sm:$0xff] }
 0x10f   : > { %8882 = vmatmul.mubr.msk.f32.gmra.mrb[58].mxu1 %vm274_vm3, %v10978_v12 }
 0x110   : > { %9354 = vmatmul.mubr.msk.f32.gmra.mrb[26].mxu0 %vm274_vm3, %v10894_v30  ;;  %8884 = vmatprep.mubr.msk.f32.mxu1 %vm274_vm3, %v11051_v35  ;;  %v11451_v30 = vld [vmem:[%s10488_s30 + $0xc0] sm:$0xff] }
 0x111   : > { %9356 = vmatprep.mubr.msk.f32.mxu0 %vm274_vm3, %v10899_v31  ;;  %v11460_v31 = vld [vmem:[%s10488_s30 + $0xc8] sm:$0xff] }
 0x113   : > { %8885 = vmatmul.mubr.msk.f32.gmra.mrb[60].mxu1 %vm274_vm3, %v11062_v38 }
 0x114   : > { %9357 = vmatmul.mubr.msk.f32.gmra.mrb[28].mxu0 %vm274_vm3, %v10908_v32  ;;  %8887 = vmatprep.mubr.msk.f32.mxu1 %vm274_vm3, %v11065_v40  ;;  %v11465_v32 = vld [vmem:[%s10488_s30 + $0xd0] sm:$0xff] }
 0x115   : > { %9359 = vmatprep.mubr.msk.f32.mxu0 %vm274_vm3, %v10913_v33  ;;  %v11474_v33 = vld [vmem:[%s10488_s30 + $0xd8] sm:$0xff] }
 0x117   : > { %8888 = vmatmul.mubr.msk.f32.gmra.mrb[62].mxu1 %vm274_vm3, %v11076_v24 }
 0x118   : > { %9360 = vmatmul.mubr.msk.f32.gmra.mrb[30].mxu0 %vm274_vm3, %v10922_v37  ;;  %8898 = vmatprep.mubr.msk.f32.mxu1 %vm274_vm3, %v7116_v58  ;;  %v11479_v37 = vld [vmem:[%s10488_s30 + $0xe0] sm:$0xff] }
 0x119   : > { %9362 = vmatprep.mubr.msk.f32.mxu0 %vm274_vm3, %v10927_v53  ;;  %v11488_v53 = vld [vmem:[%s10488_s30 + $0xe8] sm:$0xff]  ;;  %v11670_v58 = vld [vmem:[%s10488_s30 + $0x1a0] sm:$0xff] }
 0x11b   : > { %8899 = vmatmul.mubr.msk.f32.vlgmr.msra.gmra.mrb[0].mxu1 %vm274_vm3, %v7117_v63  ;;  %v11693_v63 = vld [vmem:[%s10488_s30 + $0x1b8] sm:$0xff] }
 0x11c   : > { %9363 = vmatmul.mubr.msk.f32.gmra.mrb[32].mxu0 %vm274_vm3, %v10936_v54  ;;  %9651 = vmatpush3.bf16.msra.mxu1 %v11013_v7  ;;  %v11493_v54 = vld [vmem:[%s10488_s30 + $0xf0] sm:$0xff]  ;;  %v11535_v7 = vld [vmem:[%s10488_s30 + $0x120] sm:$0xff] }
 0x11d   : > { %8901 = vmatprep.mubr.msk.f32.mxu1 %vm274_vm3, %v7118_v0  ;;  %9365 = vmatprep.mubr.msk.f32.mxu0 %vm274_vm3, %v10941_v18  ;;  %v11502_v18 = vld [vmem:[%s10488_s30 + $0xf8] sm:$0xff]  ;;  %v11698_v0 = vld [vmem:[%s10488_s30 + $0x1c0] sm:$0xff] }
 0x11e   : > { %9654 = vmatprep.subr.msk.bf16.mxu1 %vm10446_vm2, %v9652_v1 }
 0x11f   : > { %8902 = vmatmul.mubr.msk.f32.gmra.mrb[2].mxu1 %vm274_vm3, %v7119_v2  ;;  %v11712_v2 = vld [vmem:[%s10488_s30 + $0x1d0] sm:$0xff] }
 0x120   : > { %9366 = vmatmul.mubr.msk.f32.gmra.mrb[34].mxu0 %vm274_vm3, %v10950_v19  ;;  %8904 = vmatprep.mubr.msk.f32.mxu1 %vm274_vm3, %v11363_v3  ;;  %v11507_v19 = vld [vmem:[%s10488_s30 + $0x100] sm:$0xff] }
 0x121   : > { %9368 = vmatprep.mubr.msk.f32.mxu0 %vm274_vm3, %v10955_v20  ;;  %9657 = vmatpush3.bf16.msk.msra.mxu1 %vm10446_vm2, %v9652_v1  ;;  %v11516_v20 = vld [vmem:[%s10488_s30 + $0x108] sm:$0xff] }
 0x122   : > { %9708 = vmatprep.subr.bf16.mxu1 %v12578_v6  ;;  %v11707_v1 = vld [vmem:[%s10488_s30 + $0x1c8] sm:$0xff] }
 0x123   : > { %8905 = vmatmul.mubr.msk.f32.gmra.mrb[4].mxu1 %vm274_vm3, %v11373_v4 }
 0x124   : > { %9369 = vmatmul.mubr.msk.f32.gmra.mrb[36].mxu0 %vm274_vm3, %v10964_v21  ;;  %8907 = vmatprep.mubr.msk.f32.mxu1 %vm274_vm3, %v11378_v5  ;;  %v11521_v21 = vld [vmem:[%s10488_s30 + $0x110] sm:$0xff] }
 0x125   : > { %9371 = vmatprep.mubr.msk.f32.mxu0 %vm274_vm3, %v10969_v22  ;;  %v11530_v22 = vld [vmem:[%s10488_s30 + $0x118] sm:$0xff] }
 0x127   : > { %8908 = vmatmul.mubr.msk.f32.gmra.mrb[6].mxu1 %vm274_vm3, %v11390_v8 }
 0x128   : > { %9372 = vmatmul.mubr.msk.f32.gmra.mrb[38].mxu0 %vm274_vm3, %v10978_v12  ;;  %8910 = vmatprep.mubr.msk.f32.mxu1 %vm274_vm3, %v11395_v10  ;;  %v11418_v12 = vld [vmem:[%s10488_s30 + $0x98] sm:$0xff] }
 0x129   : > { %9374 = vmatprep.mubr.msk.f32.mxu0 %vm274_vm3, %v11051_v35 }
 0x12b   : > { %8911 = vmatmul.mubr.msk.f32.gmra.mrb[8].mxu1 %vm274_vm3, %v11404_v11 }
 0x12c   : > { %9375 = vmatmul.mubr.msk.f32.gmra.mrb[40].mxu0 %vm274_vm3, %v11062_v38  ;;  %8913 = vmatprep.mubr.msk.f32.mxu1 %vm274_vm3, %v11409_v13 }
 0x12d   : > { %9377 = vmatprep.mubr.msk.f32.mxu0 %vm274_vm3, %v11065_v40 }
 0x12f   : > { %8914 = vmatmul.mubr.msk.f32.gmra.mrb[10].mxu1 %vm274_vm3, %v11418_v12 }
 0x130   : > { %9378 = vmatmul.mubr.msk.f32.gmra.mrb[42].mxu0 %vm274_vm3, %v11076_v24  ;;  %8916 = vmatprep.mubr.msk.f32.mxu1 %vm274_vm3, %v11423_v14 }
 0x131   : > { %9380 = vmatprep.mubr.msk.f32.mxu0 %vm274_vm3, %v11079_v42 }
 0x133   : > { %8917 = vmatmul.mubr.msk.f32.gmra.mrb[12].mxu1 %vm274_vm3, %v11432_v15 }
 0x134   : > { %9381 = vmatmul.mubr.msk.f32.gmra.mrb[44].mxu0 %vm274_vm3, %v11090_v26  ;;  %8919 = vmatprep.mubr.msk.f32.mxu1 %vm274_vm3, %v11437_v16 }
 0x135   : > { %9383 = vmatprep.mubr.msk.f32.mxu0 %vm274_vm3, %v11093_v28 }
 0x137   : > { %8920 = vmatmul.mubr.msk.f32.gmra.mrb[14].mxu1 %vm274_vm3, %v11446_v23 }
 0x138   : > { %9384 = vmatmul.mubr.msk.f32.gmra.mrb[46].mxu0 %vm274_vm3, %v11104_v34  ;;  %8922 = vmatprep.mubr.msk.f32.mxu1 %vm274_vm3, %v11451_v30 }
 0x139   : > { %9386 = vmatprep.mubr.msk.f32.mxu0 %vm274_vm3, %v11107_v36  ;;  %v11538_v36 = vld [vmem:[%s10488_s30 + $0x2a0] sm:$0xff] }
 0x13b   : > { %8923 = vmatmul.mubr.msk.f32.gmra.mrb[16].mxu1 %vm274_vm3, %v11460_v31 }
 0x13c   : > { %9387 = vmatmul.mubr.msk.f32.gmra.mrb[48].mxu0 %vm274_vm3, %v11118_v39  ;;  %8925 = vmatprep.mubr.msk.f32.mxu1 %vm274_vm3, %v11465_v32  ;;  %v11547_v39 = vld [vmem:[%s10488_s30 + $0x128] sm:$0xff] }
 0x13d   : > { %9389 = vmatprep.mubr.msk.f32.mxu0 %vm274_vm3, %v11121_v41  ;;  %v11552_v41 = vld [vmem:[%s10488_s30 + $0x2a8] sm:$0xff] }
 0x13f   : > { %8926 = vmatmul.mubr.msk.f32.gmra.mrb[18].mxu1 %vm274_vm3, %v11474_v33 }
 0x140   : > { %9390 = vmatmul.mubr.msk.f32.gmra.mrb[50].mxu0 %vm274_vm3, %v11132_v43  ;;  %8928 = vmatprep.mubr.msk.f32.mxu1 %vm274_vm3, %v11479_v37  ;;  %v11555_v43 = vld [vmem:[%s10488_s30 + $0x130] sm:$0xff] }
 0x141   : > { %9392 = vmatprep.mubr.msk.f32.mxu0 %vm274_vm3, %v11135_v44  ;;  %v11558_v44 = vld [vmem:[%s10488_s30 + $0x2b0] sm:$0xff] }
 0x143   : > { %8929 = vmatmul.mubr.msk.f32.gmra.mrb[20].mxu1 %vm274_vm3, %v11488_v53 }
 0x144   : > { %9393 = vmatmul.mubr.msk.f32.gmra.mrb[52].mxu0 %vm274_vm3, %v11146_v46  ;;  %8931 = vmatprep.mubr.msk.f32.mxu1 %vm274_vm3, %v11493_v54  ;;  %v11567_v46 = vld [vmem:[%s10488_s30 + $0x138] sm:$0xff] }
 0x145   : > { %9395 = vmatprep.mubr.msk.f32.mxu0 %vm274_vm3, %v11149_v48  ;;  %v11572_v48 = vld [vmem:[%s10488_s30 + $0x2b8] sm:$0xff] }
 0x147   : > { %8932 = vmatmul.mubr.msk.f32.gmra.mrb[22].mxu1 %vm274_vm3, %v11502_v18 }
 0x148   : > { %9396 = vmatmul.mubr.msk.f32.gmra.mrb[54].mxu0 %vm274_vm3, %v11160_v50  ;;  %8934 = vmatprep.mubr.msk.f32.mxu1 %vm274_vm3, %v11507_v19  ;;  %v11575_v50 = vld [vmem:[%s10488_s30 + $0x140] sm:$0xff] }
 0x149   : > { %9398 = vmatprep.mubr.msk.f32.mxu0 %vm274_vm3, %v11163_v52  ;;  %v7992_v52 = vld [vmem:[%s12547_s1 + $0x110] sm:$0xff] }
 0x14b   : > { %8935 = vmatmul.mubr.msk.f32.gmra.mrb[24].mxu1 %vm274_vm3, %v11516_v20 }
 0x14c   : > { %9399 = vmatmul.mubr.msk.f32.gmra.mrb[56].mxu0 %vm274_vm3, %v11174_v56  ;;  %8937 = vmatprep.mubr.msk.f32.mxu1 %vm274_vm3, %v11521_v21  ;;  %v7993_v56 = vld [vmem:[%s12547_s1 + $0x118] sm:$0x7] }
 0x14d   : > { %9401 = vmatprep.mubr.msk.f32.mxu0 %vm274_vm3, %v11177_v57  ;;  %v11590_v57 = vld [vmem:[%s10488_s30 + $0x148] sm:$0xff]  ;;  %v9702_v61 = vpack.c.bf16 %v7993_v56, %v7992_v52  ;;  %v11721_v52 = vld [vmem:[%s10488_s30 + $0x1d8] sm:$0xff]  ;;  %v11726_v56 = vld [vmem:[%s10488_s30 + $0x1e0] sm:$0xff] }
 0x14f   : > { %8938 = vmatmul.mubr.msk.f32.gmra.mrb[26].mxu1 %vm274_vm3, %v11530_v22 }
 0x150   : > { %9402 = vmatmul.mubr.msk.f32.gmra.mrb[58].mxu0 %vm274_vm3, %v11188_v59  ;;  %8940 = vmatprep.mubr.msk.f32.mxu1 %vm274_vm3, %v11535_v7  ;;  %v11595_v59 = vld [vmem:[%s10488_s30 + $0x150] sm:$0xff] }
 0x151   : > { %9404 = vmatprep.mubr.msk.f32.mxu0 %vm274_vm3, %v11538_v36 }
 0x153   : > { %8941 = vmatmul.mubr.msk.f32.gmra.mrb[28].mxu1 %vm274_vm3, %v11547_v39 }
 0x154   : > { %9405 = vmatmul.mubr.msk.f32.gmra.mrb[60].mxu0 %vm274_vm3, %v11552_v41  ;;  %8943 = vmatprep.mubr.msk.f32.mxu1 %vm274_vm3, %v11555_v43 }
 0x155   : > { %9407 = vmatprep.mubr.msk.f32.mxu0 %vm274_vm3, %v11558_v44 }
 0x157   : > { %8944 = vmatmul.mubr.msk.f32.gmra.mrb[30].mxu1 %vm274_vm3, %v11567_v46 }
 0x158   : > { %9408 = vmatmul.mubr.msk.f32.gmra.mrb[62].mxu0 %vm274_vm3, %v11572_v48  ;;  %8946 = vmatprep.mubr.msk.f32.mxu1 %vm274_vm3, %v11575_v50 }
 0x159   : > { %9418 = vmatprep.mubr.msk.f32.mxu0 %vm274_vm3, %v11479_v37 }
 0x15b   : > { %8947 = vmatmul.mubr.msk.f32.gmra.mrb[32].mxu1 %vm274_vm3, %v11590_v57 }
 0x15c   : > { %9419 = vmatmul.mubr.msk.f32.vlgmr.msra.gmra.mrb[0].mxu0 %vm274_vm3, %v11488_v53  ;;  %8949 = vmatprep.mubr.msk.f32.mxu1 %vm274_vm3, %v11595_v59 }
 0x15d   : > { %9421 = vmatprep.mubr.msk.f32.mxu0 %vm274_vm3, %v11493_v54  ;;  %9701 = vmatpush3.bf16.msra.mxu0 %v11221_v45  ;;  %v11637_v45 = vld [vmem:[%s10488_s30 + $0x178] sm:$0xff] }
 0x15e   : > { %9704 = vmatprep.subr.msk.bf16.mxu0 %vm10446_vm2, %v9702_v61  ;;  %12580 = vst [vmem:[#allocation5_spill] sm:$0xff] %v11637_v45 }
 0x15f   : > { %8950 = vmatmul.mubr.msk.f32.gmra.mrb[34].mxu1 %vm274_vm3, %v11604_v17 }
 0x160   : > { %9422 = vmatmul.mubr.msk.f32.gmra.mrb[2].mxu0 %vm274_vm3, %v11502_v18  ;;  %8952 = vmatprep.mubr.msk.f32.mxu1 %vm274_vm3, %v11610_v25 }
 0x161   : > { %9424 = vmatprep.mubr.msk.f32.mxu0 %vm274_vm3, %v11507_v19  ;;  %9707 = vmatpush3.bf16.msk.msra.mxu0 %vm10446_vm2, %v9702_v61  ;;  %v11735_v61 = vld [vmem:[%s10488_s30 + $0x1e8] sm:$0xff] }
 0x163   : > { %8953 = vmatmul.mubr.msk.f32.gmra.mrb[36].mxu1 %vm274_vm3, %v11621_v27 }
 0x164   : > { %9425 = vmatmul.mubr.msk.f32.gmra.mrb[4].mxu0 %vm274_vm3, %v11516_v20  ;;  %8955 = vmatprep.mubr.msk.f32.mxu1 %vm274_vm3, %v11626_v29 }
 0x165   : > { %9427 = vmatprep.mubr.msk.f32.mxu0 %vm274_vm3, %v11521_v21 }
 0x167   : > { %8956 = vmatmul.mubr.msk.f32.gmra.mrb[38].mxu1 %vm274_vm3, %v11637_v45 }
 0x168   : > { %9428 = vmatmul.mubr.msk.f32.gmra.mrb[6].mxu0 %vm274_vm3, %v11530_v22  ;;  %8958 = vmatprep.mubr.msk.f32.mxu1 %vm274_vm3, %v11642_v47 }
 0x169   : > { %9430 = vmatprep.mubr.msk.f32.mxu0 %vm274_vm3, %v11535_v7 }
 0x16b   : > { %8959 = vmatmul.mubr.msk.f32.gmra.mrb[40].mxu1 %vm274_vm3, %v11651_v49 }
 0x16c   : > { %9431 = vmatmul.mubr.msk.f32.gmra.mrb[8].mxu0 %vm274_vm3, %v11547_v39  ;;  %8961 = vmatprep.mubr.msk.f32.mxu1 %vm274_vm3, %v11656_v51 }
 0x16d   : > { %9433 = vmatprep.mubr.msk.f32.mxu0 %vm274_vm3, %v11555_v43 }
 0x16f   : > { %8962 = vmatmul.mubr.msk.f32.gmra.mrb[42].mxu1 %vm274_vm3, %v11665_v55 }
 0x170   : > { %9434 = vmatmul.mubr.msk.f32.gmra.mrb[10].mxu0 %vm274_vm3, %v11567_v46  ;;  %8964 = vmatprep.mubr.msk.f32.mxu1 %vm274_vm3, %v11670_v58 }
 0x171   : > { %9436 = vmatprep.mubr.msk.f32.mxu0 %vm274_vm3, %v11575_v50 }
 0x173   : > { %8965 = vmatmul.mubr.msk.f32.gmra.mrb[44].mxu1 %vm274_vm3, %v11679_v60 }
 0x174   : > { %9437 = vmatmul.mubr.msk.f32.gmra.mrb[12].mxu0 %vm274_vm3, %v11590_v57  ;;  %8967 = vmatprep.mubr.msk.f32.mxu1 %vm274_vm3, %v11684_v62 }
 0x175   : > { %9439 = vmatprep.mubr.msk.f32.mxu0 %vm274_vm3, %v11595_v59 }
 0x177   : > { %8968 = vmatmul.mubr.msk.f32.gmra.mrb[46].mxu1 %vm274_vm3, %v11693_v63 }
 0x178   : > { %9440 = vmatmul.mubr.msk.f32.gmra.mrb[14].mxu0 %vm274_vm3, %v11604_v17  ;;  %8970 = vmatprep.mubr.msk.f32.mxu1 %vm274_vm3, %v11698_v0 }
 0x179   : > { %9442 = vmatprep.mubr.msk.f32.mxu0 %vm274_vm3, %v11610_v25 }
 0x17b   : > { %8971 = vmatmul.mubr.msk.f32.gmra.mrb[48].mxu1 %vm274_vm3, %v11707_v1 }
 0x17c   : > { %9443 = vmatmul.mubr.msk.f32.gmra.mrb[16].mxu0 %vm274_vm3, %v11621_v27  ;;  %8973 = vmatprep.mubr.msk.f32.mxu1 %vm274_vm3, %v11712_v2  ;;  %v11740_v27 = vld [vmem:[%s10488_s30 + $0x1f0] sm:$0xff] }
 0x17d   : > { %9445 = vmatprep.mubr.msk.f32.mxu0 %vm274_vm3, %v11626_v29 }
 0x17f   : > { %8974 = vmatmul.mubr.msk.f32.gmra.mrb[50].mxu1 %vm274_vm3, %v11721_v52 }
 0x180   : > { %9446 = vmatmul.mubr.msk.f32.gmra.mrb[18].mxu0 %vm274_vm3, %v11637_v45  ;;  %8976 = vmatprep.mubr.msk.f32.mxu1 %vm274_vm3, %v11726_v56  ;;  %v11749_v45 = vld [vmem:[%s10488_s30 + $0x1f8] sm:$0xff] }
 0x181   : > { %9448 = vmatprep.mubr.msk.f32.mxu0 %vm274_vm3, %v11642_v47 }
 0x183   : > { %8977 = vmatmul.mubr.msk.f32.gmra.mrb[52].mxu1 %vm274_vm3, %v11735_v61 }
 0x184   : > { %9449 = vmatmul.mubr.msk.f32.gmra.mrb[20].mxu0 %vm274_vm3, %v11651_v49  ;;  %8979 = vmatprep.mubr.msk.f32.mxu1 %vm274_vm3, %v11740_v27 }
 0x185   : > { %9451 = vmatprep.mubr.msk.f32.mxu0 %vm274_vm3, %v11656_v51 }
 0x187   : > { %8980 = vmatmul.mubr.msk.f32.gmra.mrb[54].mxu1 %vm274_vm3, %v11749_v45 }
 0x188   : > { %9452 = vmatmul.mubr.msk.f32.gmra.mrb[22].mxu0 %vm274_vm3, %v11665_v55  ;;  %8982 = vmatprep.mubr.msk.f32.mxu1 %vm274_vm3, %v11051_v35  ;;  %v11803_v35 = vld [vmem:[%s10488_s30 + $0x200] sm:$0xff] }
 0x189   : > { %9454 = vmatprep.mubr.msk.f32.mxu0 %vm274_vm3, %v11670_v58 }
 0x18b   : > { %8983 = vmatmul.mubr.msk.f32.gmra.mrb[56].mxu1 %vm274_vm3, %v11062_v38  ;;  %v12581_v38 = vld [vmem:[#allocation3_spill] sm:$0xff] }
 0x18c   : > { %9455 = vmatmul.mubr.msk.f32.gmra.mrb[24].mxu0 %vm274_vm3, %v11679_v60  ;;  %8985 = vmatprep.mubr.msk.f32.mxu1 %vm274_vm3, %v11065_v40  ;;  %v11817_v40 = vld [vmem:[%s10488_s30 + $0x208] sm:$0xff] }
 0x18d   : > { %9457 = vmatprep.mubr.msk.f32.mxu0 %vm274_vm3, %v11684_v62 }
 0x18f   : > { %8986 = vmatmul.mubr.msk.f32.gmra.mrb[58].mxu1 %vm274_vm3, %v11076_v24  ;;  %v11823_v24 = vld [vmem:[%s10488_s30 + $0x210] sm:$0xff] }
 0x190   : > { %9458 = vmatmul.mubr.msk.f32.gmra.mrb[26].mxu0 %vm274_vm3, %v11693_v63  ;;  %8988 = vmatprep.mubr.msk.f32.mxu1 %vm274_vm3, %v11079_v42  ;;  %v11834_v42 = vld [vmem:[%s10488_s30 + $0x218] sm:$0xff] }
 0x191   : > { %9460 = vmatprep.mubr.msk.f32.mxu0 %vm274_vm3, %v11698_v0 }
 0x193   : > { %8989 = vmatmul.mubr.msk.f32.gmra.mrb[60].mxu1 %vm274_vm3, %v11090_v26  ;;  %v11848_v26 = vld [vmem:[%s10488_s30 + $0x228] sm:$0xff] }
 0x194   : > { %9461 = vmatmul.mubr.msk.f32.gmra.mrb[28].mxu0 %vm274_vm3, %v11707_v1  ;;  %8991 = vmatprep.mubr.msk.f32.mxu1 %vm274_vm3, %v11093_v28  ;;  %v11851_v28 = vld [vmem:[%s10488_s30 + $0x230] sm:$0xff] }
 0x195   : > { %9463 = vmatprep.mubr.msk.f32.mxu0 %vm274_vm3, %v11712_v2 }
 0x197   : > { %8992 = vmatmul.mubr.msk.f32.gmra.mrb[62].mxu1 %vm274_vm3, %v11104_v34  ;;  %v11862_v34 = vld [vmem:[%s10488_s30 + $0x238] sm:$0xff] }
 0x198   : > { %9464 = vmatmul.mubr.msk.f32.gmra.mrb[30].mxu0 %vm274_vm3, %v11721_v52  ;;  %9002 = vmatprep.mubr.msk.f32.mxu1 %vm274_vm3, %v11363_v3  ;;  %v11865_v3 = vld [vmem:[%s10488_s30 + $0x240] sm:$0xff] }
 0x199   : > { %9466 = vmatprep.mubr.msk.f32.mxu0 %vm274_vm3, %v11726_v56 }
 0x19b   : > { %9003 = vmatmul.mubr.msk.f32.vlgmr.msra.gmra.mrb[0].mxu1 %vm274_vm3, %v11373_v4  ;;  %v11876_v4 = vld [vmem:[%s10488_s30 + $0x248] sm:$0xff] }
 0x19c   : > { %9467 = vmatmul.mubr.msk.f32.gmra.mrb[32].mxu0 %vm274_vm3, %v11735_v61  ;;  %9710 = vmatpush3.bf16.msra.mxu1 %v12578_v6  ;;  %v11890_v6 = vld [vmem:[%s10488_s30 + $0x258] sm:$0xff] }
 0x19d   : > { %9005 = vmatprep.mubr.msk.f32.mxu1 %vm274_vm3, %v11378_v5  ;;  %9469 = vmatprep.mubr.msk.f32.mxu0 %vm274_vm3, %v11740_v27  ;;  %v11879_v5 = vld [vmem:[%s10488_s30 + $0x250] sm:$0xff] }
 0x19e   : > { %9709 = vmatprep.subr.msk.bf16.mxu1 %vm10446_vm2, %v12581_v38 }
 0x19f   : > { %9006 = vmatmul.mubr.msk.f32.gmra.mrb[2].mxu1 %vm274_vm3, %v11390_v8  ;;  %v11893_v8 = vld [vmem:[%s10488_s30 + $0x260] sm:$0xff] }
 0x1a0   : > { %9470 = vmatmul.mubr.msk.f32.gmra.mrb[34].mxu0 %vm274_vm3, %v11749_v45  ;;  %9008 = vmatprep.mubr.msk.f32.mxu1 %vm274_vm3, %v11395_v10  ;;  %v11904_v10 = vld [vmem:[%s10488_s30 + $0x268] sm:$0xff] }
 0x1a1   : > { %9472 = vmatprep.mubr.msk.f32.mxu0 %vm274_vm3, %v11803_v35  ;;  %9711 = vmatpush3.bf16.msk.msra.mxu1 %vm10446_vm2, %v12581_v38 }
 0x1a3   : > { %9009 = vmatmul.mubr.msk.f32.gmra.mrb[4].mxu1 %vm274_vm3, %v11404_v11  ;;  %v11907_v11 = vld [vmem:[%s10488_s30 + $0x270] sm:$0xff] }
 0x1a4   : > { %9473 = vmatmul.mubr.msk.f32.gmra.mrb[36].mxu0 %vm274_vm3, %v11817_v40  ;;  %9011 = vmatprep.mubr.msk.f32.mxu1 %vm274_vm3, %v11409_v13  ;;  %v11918_v13 = vld [vmem:[%s10488_s30 + $0x278] sm:$0xff] }
 0x1a5   : > { %9475 = vmatprep.mubr.msk.f32.mxu0 %vm274_vm3, %v11823_v24 }
 0x1a7   : > { %9012 = vmatmul.mubr.msk.f32.gmra.mrb[6].mxu1 %vm274_vm3, %v11418_v12  ;;  %v11921_v12 = vld [vmem:[%s10488_s30 + $0x280] sm:$0xff] }
 0x1a8   : > { %9476 = vmatmul.mubr.msk.f32.gmra.mrb[38].mxu0 %vm274_vm3, %v11834_v42  ;;  %9014 = vmatprep.mubr.msk.f32.mxu1 %vm274_vm3, %v11423_v14  ;;  %v11932_v14 = vld [vmem:[%s10488_s30 + $0x288] sm:$0xff] }
 0x1a9   : > { %9478 = vmatprep.mubr.msk.f32.mxu0 %vm274_vm3, %v11837_v9 }
 0x1ab   : > { %9015 = vmatmul.mubr.msk.f32.gmra.mrb[8].mxu1 %vm274_vm3, %v11432_v15  ;;  %v11935_v15 = vld [vmem:[%s10488_s30 + $0x290] sm:$0xff] }
 0x1ac   : > { %9479 = vmatmul.mubr.msk.f32.gmra.mrb[40].mxu0 %vm274_vm3, %v11848_v26  ;;  %9017 = vmatprep.mubr.msk.f32.mxu1 %vm274_vm3, %v11437_v16  ;;  %v11946_v16 = vld [vmem:[%s10488_s30 + $0x298] sm:$0xff] }
 0x1ad   : > { %9481 = vmatprep.mubr.msk.f32.mxu0 %vm274_vm3, %v11851_v28 }
 0x1af   : > { %9018 = vmatmul.mubr.msk.f32.gmra.mrb[10].mxu1 %vm274_vm3, %v11446_v23  ;;  %v11965_v23 = vld [vmem:[%s10488_s30 + $0x2c0] sm:$0xff] }
 0x1b0   : > { %9482 = vmatmul.mubr.msk.f32.gmra.mrb[42].mxu0 %vm274_vm3, %v11862_v34  ;;  %9020 = vmatprep.mubr.msk.f32.mxu1 %vm274_vm3, %v11451_v30  ;;  %v11976_v30 = vld [vmem:[%s10488_s30 + $0x2c8] sm:$0xff] }
 0x1b1   : > { %9484 = vmatprep.mubr.msk.f32.mxu0 %vm274_vm3, %v11865_v3 }
 0x1b3   : > { %9021 = vmatmul.mubr.msk.f32.gmra.mrb[12].mxu1 %vm274_vm3, %v11460_v31  ;;  %v11979_v31 = vld [vmem:[%s10488_s30 + $0x2d0] sm:$0xff] }
 0x1b4   : > { %9485 = vmatmul.mubr.msk.f32.gmra.mrb[44].mxu0 %vm274_vm3, %v11876_v4  ;;  %9023 = vmatprep.mubr.msk.f32.mxu1 %vm274_vm3, %v11465_v32  ;;  %v11990_v32 = vld [vmem:[%s10488_s30 + $0x2d8] sm:$0xff] }
 0x1b5   : > { %9487 = vmatprep.mubr.msk.f32.mxu0 %vm274_vm3, %v11879_v5 }
 0x1b7   : > { %9024 = vmatmul.mubr.msk.f32.gmra.mrb[14].mxu1 %vm274_vm3, %v11474_v33  ;;  %v12582_v33 = vld [vmem:[#allocation4_spill] sm:$0xff] }
 0x1b8   : > { %9488 = vmatmul.mubr.msk.f32.gmra.mrb[46].mxu0 %vm274_vm3, %v11890_v6  ;;  %9026 = vmatprep.mubr.msk.f32.mxu1 %vm274_vm3, %v11479_v37  ;;  %v12583_v37 = vld [vmem:[#allocation5_spill] sm:$0xff] }
 0x1b9   : > { %9490 = vmatprep.mubr.msk.f32.mxu0 %vm274_vm3, %v11893_v8 }
 0x1bb   : > { %9027 = vmatmul.mubr.msk.f32.gmra.mrb[16].mxu1 %vm274_vm3, %v11488_v53  ;;  %v7986_v53 = vld [vmem:[%s10488_s30 + $0x2e0] sm:$0xff] }
 0x1bc   : > { %9491 = vmatmul.mubr.msk.f32.gmra.mrb[48].mxu0 %vm274_vm3, %v11904_v10  ;;  %9029 = vmatprep.mubr.msk.f32.mxu1 %vm274_vm3, %v11493_v54  ;;  %v7987_v54 = vld [vmem:[%s10488_s30 + $0x2e8] sm:$0xff] }
 0x1bd   : > { %9493 = vmatprep.mubr.msk.f32.mxu0 %vm274_vm3, %v11907_v11 }
 0x1bf   : > { %9030 = vmatmul.mubr.msk.f32.gmra.mrb[18].mxu1 %vm274_vm3, %v11502_v18  ;;  %v7988_v18 = vld [vmem:[%s10488_s30 + $0x2f0] sm:$0xff] }
 0x1c0   : > { %9494 = vmatmul.mubr.msk.f32.gmra.mrb[50].mxu0 %vm274_vm3, %v11918_v13  ;;  %9032 = vmatprep.mubr.msk.f32.mxu1 %vm274_vm3, %v11507_v19 }
 0x1c1   : > { %9496 = vmatprep.mubr.msk.f32.mxu0 %vm274_vm3, %v11921_v12 }
 0x1c3   : > { %9033 = vmatmul.mubr.msk.f32.gmra.mrb[20].mxu1 %vm274_vm3, %v11516_v20 }
 0x1c4   : > { %9497 = vmatmul.mubr.msk.f32.gmra.mrb[52].mxu0 %vm274_vm3, %v11932_v14  ;;  %9035 = vmatprep.mubr.msk.f32.mxu1 %vm274_vm3, %v11521_v21 }
 0x1c5   : > { %9499 = vmatprep.mubr.msk.f32.mxu0 %vm274_vm3, %v11935_v15 }
 0x1c7   : > { %9036 = vmatmul.mubr.msk.f32.gmra.mrb[22].mxu1 %vm274_vm3, %v11530_v22 }
 0x1c8   : > { %9500 = vmatmul.mubr.msk.f32.gmra.mrb[54].mxu0 %vm274_vm3, %v11946_v16  ;;  %9038 = vmatprep.mubr.msk.f32.mxu1 %vm274_vm3, %v11535_v7 }
 0x1c9   : > { %9502 = vmatprep.mubr.msk.f32.mxu0 %vm274_vm3, %v11538_v36 }
 0x1cb   : > { %9039 = vmatmul.mubr.msk.f32.gmra.mrb[24].mxu1 %vm274_vm3, %v11547_v39 }
 0x1cc   : > { %9503 = vmatmul.mubr.msk.f32.gmra.mrb[56].mxu0 %vm274_vm3, %v11552_v41  ;;  %9041 = vmatprep.mubr.msk.f32.mxu1 %vm274_vm3, %v11555_v43 }
 0x1cd   : > { %9505 = vmatprep.mubr.msk.f32.mxu0 %vm274_vm3, %v11558_v44 }
 0x1cf   : > { %9042 = vmatmul.mubr.msk.f32.gmra.mrb[26].mxu1 %vm274_vm3, %v11567_v46 }
 0x1d0   : > { %9506 = vmatmul.mubr.msk.f32.gmra.mrb[58].mxu0 %vm274_vm3, %v11572_v48  ;;  %9044 = vmatprep.mubr.msk.f32.mxu1 %vm274_vm3, %v11575_v50 }
 0x1d1   : > { %9508 = vmatprep.mubr.msk.f32.mxu0 %vm274_vm3, %v11965_v23 }
 0x1d3   : > { %9045 = vmatmul.mubr.msk.f32.gmra.mrb[28].mxu1 %vm274_vm3, %v11590_v57 }
 0x1d4   : > { %9509 = vmatmul.mubr.msk.f32.gmra.mrb[60].mxu0 %vm274_vm3, %v11976_v30  ;;  %9047 = vmatprep.mubr.msk.f32.mxu1 %vm274_vm3, %v11595_v59 }
 0x1d5   : > { %9511 = vmatprep.mubr.msk.f32.mxu0 %vm274_vm3, %v11979_v31 }
 0x1d7   : > { %9048 = vmatmul.mubr.msk.f32.gmra.mrb[30].mxu1 %vm274_vm3, %v11604_v17 }
 0x1d8   : > { %9512 = vmatmul.mubr.msk.f32.gmra.mrb[62].mxu0 %vm274_vm3, %v11990_v32  ;;  %9050 = vmatprep.mubr.msk.f32.mxu1 %vm274_vm3, %v11610_v25 }
 0x1d9   : > { %9522 = vmatprep.mubr.msk.f32.mxu0 %vm274_vm3, %v11507_v19  ;;  %v7989_v19 = vld [vmem:[%s10488_s30 + $0x2f8] sm:$0xff]  ;;  %s6907_s30 = sshll.u32 %s10352_s12, 4 }
 0x1da   : > { %p188_p6 = scmp.lt.s32.totalorder %s6907_s30, 31 }
 0x1db   : > { %9051 = vmatmul.mubr.msk.f32.gmra.mrb[32].mxu1 %vm274_vm3, %v12582_v33 }
 0x1dc   : > { %9523 = vmatmul.mubr.msk.f32.vlgmr.msra.gmra.mrb[0].mxu0 %vm274_vm3, %v11516_v20  ;;  %9053 = vmatprep.mubr.msk.f32.mxu1 %vm274_vm3, %v11626_v29  ;;  %s12597_s30 = smov (!%p188_p6, %s6907_s30), 31 }
 0x1dd   : > { %9525 = vmatprep.mubr.msk.f32.mxu0 %vm274_vm3, %v11521_v21  ;;  %s6908_s19 = sshll.u32 %s12597_s30, 2 }
 0x1de   : > { %s192_s22 = sadd.s32 %s6909_s20, %s6908_s19 }
 0x1df   : > { %9054 = vmatmul.mubr.msk.f32.gmra.mrb[34].mxu1 %vm274_vm3, %v12583_v37  ;;  %s6910_s23 = sshll.u32 %s192_s22, 3 }
 0x1e0   : > { %9526 = vmatmul.mubr.msk.f32.gmra.mrb[2].mxu0 %vm274_vm3, %v11530_v22  ;;  %9056 = vmatprep.mubr.msk.f32.mxu1 %vm274_vm3, %v11642_v47  ;;  %s12314_s25 = scalar_lea.vmem %s12549_s3, %s6910_s23 }
 0x1e1   : > { %9528 = vmatprep.mubr.msk.f32.mxu0 %vm274_vm3, %v11535_v7 }
 0x1e3   : > { %9057 = vmatmul.mubr.msk.f32.gmra.mrb[36].mxu1 %vm274_vm3, %v11651_v49 }
 0x1e4   : > { %9529 = vmatmul.mubr.msk.f32.gmra.mrb[4].mxu0 %vm274_vm3, %v11547_v39  ;;  %9059 = vmatprep.mubr.msk.f32.mxu1 %vm274_vm3, %v11656_v51 }
 0x1e5   : > { %9531 = vmatprep.mubr.msk.f32.mxu0 %vm274_vm3, %v11555_v43 }
 0x1e7   : > { %9060 = vmatmul.mubr.msk.f32.gmra.mrb[38].mxu1 %vm274_vm3, %v11665_v55 }
 0x1e8   : > { %9532 = vmatmul.mubr.msk.f32.gmra.mrb[6].mxu0 %vm274_vm3, %v11567_v46  ;;  %9062 = vmatprep.mubr.msk.f32.mxu1 %vm274_vm3, %v11670_v58 }
 0x1e9   : > { %9534 = vmatprep.mubr.msk.f32.mxu0 %vm274_vm3, %v11575_v50 }
 0x1eb   : > { %9063 = vmatmul.mubr.msk.f32.gmra.mrb[40].mxu1 %vm274_vm3, %v11679_v60 }
 0x1ec   : > { %9535 = vmatmul.mubr.msk.f32.gmra.mrb[8].mxu0 %vm274_vm3, %v11590_v57  ;;  %9065 = vmatprep.mubr.msk.f32.mxu1 %vm274_vm3, %v11684_v62 }
 0x1ed   : > { %9537 = vmatprep.mubr.msk.f32.mxu0 %vm274_vm3, %v11595_v59 }
 0x1ef   : > { %9066 = vmatmul.mubr.msk.f32.gmra.mrb[42].mxu1 %vm274_vm3, %v11693_v63 }
 0x1f0   : > { %9538 = vmatmul.mubr.msk.f32.gmra.mrb[10].mxu0 %vm274_vm3, %v11604_v17  ;;  %9068 = vmatprep.mubr.msk.f32.mxu1 %vm274_vm3, %v11698_v0 }
 0x1f1   : > { %9540 = vmatprep.mubr.msk.f32.mxu0 %vm274_vm3, %v11610_v25 }
 0x1f3   : > { %9069 = vmatmul.mubr.msk.f32.gmra.mrb[44].mxu1 %vm274_vm3, %v11707_v1 }
 0x1f4   : > { %9541 = vmatmul.mubr.msk.f32.gmra.mrb[12].mxu0 %vm274_vm3, %v12582_v33  ;;  %9071 = vmatprep.mubr.msk.f32.mxu1 %vm274_vm3, %v11712_v2 }
 0x1f5   : > { %9543 = vmatprep.mubr.msk.f32.mxu0 %vm274_vm3, %v11626_v29 }
 0x1f7   : > { %9072 = vmatmul.mubr.msk.f32.gmra.mrb[46].mxu1 %vm274_vm3, %v11721_v52 }
 0x1f8   : > { %9544 = vmatmul.mubr.msk.f32.gmra.mrb[14].mxu0 %vm274_vm3, %v12583_v37  ;;  %9074 = vmatprep.mubr.msk.f32.mxu1 %vm274_vm3, %v11726_v56 }
 0x1f9   : > { %9546 = vmatprep.mubr.msk.f32.mxu0 %vm274_vm3, %v11642_v47 }
 0x1fb   : > { %9075 = vmatmul.mubr.msk.f32.gmra.mrb[48].mxu1 %vm274_vm3, %v11735_v61 }
 0x1fc   : > { %9547 = vmatmul.mubr.msk.f32.gmra.mrb[16].mxu0 %vm274_vm3, %v11651_v49  ;;  %9077 = vmatprep.mubr.msk.f32.mxu1 %vm274_vm3, %v11740_v27 }
 0x1fd   : > { %9549 = vmatprep.mubr.msk.f32.mxu0 %vm274_vm3, %v11656_v51 }
 0x1ff   : > { %9078 = vmatmul.mubr.msk.f32.gmra.mrb[50].mxu1 %vm274_vm3, %v11749_v45 }
 0x200   : > { %9550 = vmatmul.mubr.msk.f32.gmra.mrb[18].mxu0 %vm274_vm3, %v11665_v55  ;;  %9080 = vmatprep.mubr.msk.f32.mxu1 %vm274_vm3, %v11803_v35 }
 0x201   : > { %9552 = vmatprep.mubr.msk.f32.mxu0 %vm274_vm3, %v11670_v58 }
 0x203   : > { %9081 = vmatmul.mubr.msk.f32.gmra.mrb[52].mxu1 %vm274_vm3, %v11817_v40 }
 0x204   : > { %9553 = vmatmul.mubr.msk.f32.gmra.mrb[20].mxu0 %vm274_vm3, %v11679_v60  ;;  %9083 = vmatprep.mubr.msk.f32.mxu1 %vm274_vm3, %v11823_v24 }
 0x205   : > { %9555 = vmatprep.mubr.msk.f32.mxu0 %vm274_vm3, %v11684_v62 }
 0x207   : > { %9084 = vmatmul.mubr.msk.f32.gmra.mrb[54].mxu1 %vm274_vm3, %v11834_v42 }
 0x208   : > { %9556 = vmatmul.mubr.msk.f32.gmra.mrb[22].mxu0 %vm274_vm3, %v11693_v63  ;;  %9086 = vmatprep.mubr.msk.f32.mxu1 %vm274_vm3, %v11837_v9 }
 0x209   : > { %9558 = vmatprep.mubr.msk.f32.mxu0 %vm274_vm3, %v11698_v0 }
 0x20b   : > { %9087 = vmatmul.mubr.msk.f32.gmra.mrb[56].mxu1 %vm274_vm3, %v11848_v26 }
 0x20c   : > { %9559 = vmatmul.mubr.msk.f32.gmra.mrb[24].mxu0 %vm274_vm3, %v11707_v1  ;;  %9089 = vmatprep.mubr.msk.f32.mxu1 %vm274_vm3, %v11851_v28 }
 0x20d   : > { %9561 = vmatprep.mubr.msk.f32.mxu0 %vm274_vm3, %v11712_v2 }
 0x20f   : > { %9090 = vmatmul.mubr.msk.f32.gmra.mrb[58].mxu1 %vm274_vm3, %v11862_v34 }
 0x210   : > { %9562 = vmatmul.mubr.msk.f32.gmra.mrb[26].mxu0 %vm274_vm3, %v11721_v52  ;;  %9092 = vmatprep.mubr.msk.f32.mxu1 %vm274_vm3, %v11865_v3 }
 0x211   : > { %9564 = vmatprep.mubr.msk.f32.mxu0 %vm274_vm3, %v11726_v56 }
 0x213   : > { %9093 = vmatmul.mubr.msk.f32.gmra.mrb[60].mxu1 %vm274_vm3, %v11876_v4 }
 0x214   : > { %9565 = vmatmul.mubr.msk.f32.gmra.mrb[28].mxu0 %vm274_vm3, %v11735_v61  ;;  %9095 = vmatprep.mubr.msk.f32.mxu1 %vm274_vm3, %v11879_v5 }
 0x215   : > { %9567 = vmatprep.mubr.msk.f32.mxu0 %vm274_vm3, %v11740_v27 }
 0x217   : > { %9096 = vmatmul.mubr.msk.f32.gmra.mrb[62].mxu1 %vm274_vm3, %v11890_v6 }
 0x218   : > { %9568 = vmatmul.mubr.msk.f32.gmra.mrb[30].mxu0 %vm274_vm3, %v11749_v45  ;;  %9154 = vmatprep.mubr.msk.f32.mxu1 %vm274_vm3, %v11642_v47 }
 0x219   : > { %9570 = vmatprep.mubr.msk.f32.mxu0 %vm274_vm3, %v11803_v35 }
 0x21b   : > { %9155 = vmatmul.mubr.msk.f32.vlgmr.msra.gmra.mrb[32].mxu1 %vm274_vm3, %v11651_v49 }
 0x21c   : > { %9571 = vmatmul.mubr.msk.f32.gmra.mrb[32].mxu0 %vm274_vm3, %v11817_v40  ;;  %9157 = vmatprep.mubr.msk.f32.mxu1 %vm274_vm3, %v11656_v51 }
 0x21d   : > { %9573 = vmatprep.mubr.msk.f32.mxu0 %vm274_vm3, %v11823_v24 }
 0x21f   : > { %9158 = vmatmul.mubr.msk.f32.gmra.mrb[34].mxu1 %vm274_vm3, %v11665_v55 }
 0x220   : > { %9574 = vmatmul.mubr.msk.f32.gmra.mrb[34].mxu0 %vm274_vm3, %v11834_v42  ;;  %9160 = vmatprep.mubr.msk.f32.mxu1 %vm274_vm3, %v11670_v58 }
 0x221   : > { %9576 = vmatprep.mubr.msk.f32.mxu0 %vm274_vm3, %v11837_v9 }
 0x223   : > { %9161 = vmatmul.mubr.msk.f32.gmra.mrb[36].mxu1 %vm274_vm3, %v11679_v60 }
 0x224   : > { %9577 = vmatmul.mubr.msk.f32.gmra.mrb[36].mxu0 %vm274_vm3, %v11848_v26  ;;  %9163 = vmatprep.mubr.msk.f32.mxu1 %vm274_vm3, %v11684_v62 }
 0x225   : > { %9579 = vmatprep.mubr.msk.f32.mxu0 %vm274_vm3, %v11851_v28 }
 0x227   : > { %9164 = vmatmul.mubr.msk.f32.gmra.mrb[38].mxu1 %vm274_vm3, %v11693_v63 }
 0x228   : > { %9580 = vmatmul.mubr.msk.f32.gmra.mrb[38].mxu0 %vm274_vm3, %v11862_v34  ;;  %9166 = vmatprep.mubr.msk.f32.mxu1 %vm274_vm3, %v11698_v0 }
 0x229   : > { %9582 = vmatprep.mubr.msk.f32.mxu0 %vm274_vm3, %v11865_v3 }
 0x22b   : > { %9167 = vmatmul.mubr.msk.f32.gmra.mrb[40].mxu1 %vm274_vm3, %v11707_v1 }
 0x22c   : > { %9583 = vmatmul.mubr.msk.f32.gmra.mrb[40].mxu0 %vm274_vm3, %v11876_v4  ;;  %9169 = vmatprep.mubr.msk.f32.mxu1 %vm274_vm3, %v11712_v2 }
 0x22d   : > { %9585 = vmatprep.mubr.msk.f32.mxu0 %vm274_vm3, %v11879_v5 }
 0x22f   : > { %9170 = vmatmul.mubr.msk.f32.gmra.mrb[42].mxu1 %vm274_vm3, %v11721_v52 }
 0x230   : > { %9586 = vmatmul.mubr.msk.f32.gmra.mrb[42].mxu0 %vm274_vm3, %v11890_v6  ;;  %9172 = vmatprep.mubr.msk.f32.mxu1 %vm274_vm3, %v11726_v56  ;;  %v12305_v56 = vld [vmem:[%s12548_s2] ss:$0 sm:$0xff] }
 0x231   : > { %9588 = vmatprep.mubr.msk.f32.mxu0 %vm274_vm3, %v11893_v8 }
 0x233   : > { %9173 = vmatmul.mubr.msk.f32.gmra.mrb[44].mxu1 %vm274_vm3, %v11735_v61 }
 0x234   : > { %9589 = vmatmul.mubr.msk.f32.gmra.mrb[44].mxu0 %vm274_vm3, %v11904_v10  ;;  %9175 = vmatprep.mubr.msk.f32.mxu1 %vm274_vm3, %v11740_v27 }
 0x235   : > { %9591 = vmatprep.mubr.msk.f32.mxu0 %vm274_vm3, %v11907_v11 }
 0x237   : > { %9176 = vmatmul.mubr.msk.f32.gmra.mrb[46].mxu1 %vm274_vm3, %v11749_v45 }
 0x238   : > { %9592 = vmatmul.mubr.msk.f32.gmra.mrb[46].mxu0 %vm274_vm3, %v11918_v13  ;;  %9178 = vmatprep.mubr.msk.f32.mxu1 %vm274_vm3, %v11803_v35 }
 0x239   : > { %9594 = vmatprep.mubr.msk.f32.mxu0 %vm274_vm3, %v11921_v12 }
 0x23b   : > { %9179 = vmatmul.mubr.msk.f32.gmra.mrb[48].mxu1 %vm274_vm3, %v11817_v40 }
 0x23c   : > { %9595 = vmatmul.mubr.msk.f32.gmra.mrb[48].mxu0 %vm274_vm3, %v11932_v14  ;;  %9181 = vmatprep.mubr.msk.f32.mxu1 %vm274_vm3, %v11823_v24 }
 0x23d   : > { %9597 = vmatprep.mubr.msk.f32.mxu0 %vm274_vm3, %v11935_v15 }
 0x23f   : > { %9182 = vmatmul.mubr.msk.f32.gmra.mrb[50].mxu1 %vm274_vm3, %v11834_v42 }
 0x240   : > { %9598 = vmatmul.mubr.msk.f32.gmra.mrb[50].mxu0 %vm274_vm3, %v11946_v16  ;;  %9184 = vmatprep.mubr.msk.f32.mxu1 %vm274_vm3, %v11837_v9 }
 0x241   : > { %9600 = vmatprep.mubr.msk.f32.mxu0 %vm274_vm3, %v11538_v36 }
 0x243   : > { %9185 = vmatmul.mubr.msk.f32.gmra.mrb[52].mxu1 %vm274_vm3, %v11848_v26 }
 0x244   : > { %9601 = vmatmul.mubr.msk.f32.gmra.mrb[52].mxu0 %vm274_vm3, %v11552_v41  ;;  %9187 = vmatprep.mubr.msk.f32.mxu1 %vm274_vm3, %v11851_v28 }
 0x245   : > { %9603 = vmatprep.mubr.msk.f32.mxu0 %vm274_vm3, %v11558_v44 }
 0x247   : > { %9188 = vmatmul.mubr.msk.f32.gmra.mrb[54].mxu1 %vm274_vm3, %v11862_v34 }
 0x248   : > { %9604 = vmatmul.mubr.msk.f32.gmra.mrb[54].mxu0 %vm274_vm3, %v11572_v48  ;;  %9190 = vmatprep.mubr.msk.f32.mxu1 %vm274_vm3, %v11865_v3 }
 0x249   : > { %9606 = vmatprep.mubr.msk.f32.mxu0 %vm274_vm3, %v11965_v23 }
 0x24b   : > { %9191 = vmatmul.mubr.msk.f32.gmra.mrb[56].mxu1 %vm274_vm3, %v11876_v4 }
 0x24c   : > { %9607 = vmatmul.mubr.msk.f32.gmra.mrb[56].mxu0 %vm274_vm3, %v11976_v30  ;;  %9193 = vmatprep.mubr.msk.f32.mxu1 %vm274_vm3, %v11879_v5 }
 0x24d   : > { %9609 = vmatprep.mubr.msk.f32.mxu0 %vm274_vm3, %v11979_v31 }
 0x24f   : > { %9194 = vmatmul.mubr.msk.f32.gmra.mrb[58].mxu1 %vm274_vm3, %v11890_v6 }
 0x250   : > { %9610 = vmatmul.mubr.msk.f32.gmra.mrb[58].mxu0 %vm274_vm3, %v11990_v32  ;;  %9196 = vmatprep.mubr.msk.f32.mxu1 %vm274_vm3, %v11893_v8 }
 0x251   : > { %9612 = vmatprep.mubr.msk.f32.mxu0 %vm274_vm3, %v7986_v53 }
 0x253   : > { %9197 = vmatmul.mubr.msk.f32.gmra.mrb[60].mxu1 %vm274_vm3, %v11904_v10 }
 0x254   : > { %9613 = vmatmul.mubr.msk.f32.gmra.mrb[60].mxu0 %vm274_vm3, %v7987_v54  ;;  %9199 = vmatprep.mubr.msk.f32.mxu1 %vm274_vm3, %v11907_v11 }
 0x255   : > { %9615 = vmatprep.mubr.msk.f32.mxu0 %vm274_vm3, %v7988_v18 }
 0x257   : > { %9200 = vmatmul.mubr.msk.f32.gmra.mrb[62].mxu1 %vm274_vm3, %v11918_v13 }
 0x258   : > { %9616 = vmatmul.mubr.msk.f32.gmra.mrb[62].mxu0 %vm274_vm3, %v7989_v19 }
 0x26e   : > { %v9004_v20 = vpop.f32.mrb[0].mxu1 }
 0x26f   : > { %v2685_v21 = vpop.f32.mrb[1].mxu1  ;;  %v9712_v35 = vadd.f32 %v9004_v20, %v12305_v56 }
 0x270   : > { %v9714_v38 = vadd.f32 %v12305_v56, %v2685_v21 }
 0x272   : > { %v9007_v22 = vpop.f32.mrb[2].mxu1 }
 0x273   : > { %v2695_v7 = vpop.f32.mrb[3].mxu1  ;;  %v9716_v26 = vadd.f32 %v9007_v22, %v12305_v56 }
 0x274   : > { %v9718_v34 = vadd.f32 %v12305_v56, %v2695_v7 }
 0x276   : > { %v9010_v36 = vpop.f32.mrb[4].mxu1 }
 0x277   : > { %v2705_v39 = vpop.f32.mrb[5].mxu1  ;;  %v9720_v10 = vadd.f32 %v9010_v36, %v12305_v56 }
 0x278   : > { %v9722_v13 = vadd.f32 %v12305_v56, %v2705_v39 }
 0x27a   : > { %v9013_v41 = vpop.f32.mrb[6].mxu1 }
 0x27b   : > { %v12252_v43 = vpop.f32.mrb[7].mxu1  ;;  %v9724_v30 = vadd.f32 %v9013_v41, %v12305_v56 }
 0x27c   : > { %v9726_v32 = vadd.f32 %v12305_v56, %v12252_v43 }
 0x27e   : > { %v12254_v44 = vpop.f32.mrb[8].mxu1 }
 0x27f   : > { %v12256_v46 = vpop.f32.mrb[9].mxu1  ;;  %v9728_v19 = vadd.f32 %v12254_v44, %v12305_v56 }
 0x280   : > { %v9730_v21 = vadd.f32 %v12305_v56, %v12256_v46 }
 0x282   : > { %v12258_v48 = vpop.f32.mrb[10].mxu1 }
 0x283   : > { %v12260_v50 = vpop.f32.mrb[11].mxu1  ;;  %v9732_v43 = vadd.f32 %v12258_v48, %v12305_v56 }
 0x284   : > { %v9734_v44 = vadd.f32 %v12305_v56, %v12260_v50 }
 0x286   : > { %v12262_v57 = vpop.f32.mrb[12].mxu1 }
 0x287   : > { %v12264_v59 = vpop.f32.mrb[13].mxu1 }
 0x288   : > { %v9738_v48 = vadd.f32 %v12305_v56, %v12264_v59 }
 0x28a   : > { %v12266_v17 = vpop.f32.mrb[14].mxu1 }
 0x28b   : > { %v12268_v25 = vpop.f32.mrb[15].mxu1 }
 0x28e   : > { %v12270_v27 = vpop.f32.mrb[16].mxu1 }
 0x28f   : > { %v12272_v29 = vpop.f32.mrb[17].mxu1 }
 0x292   : > { %v12274_v45 = vpop.f32.mrb[18].mxu1 }
 0x293   : > { %v12276_v47 = vpop.f32.mrb[19].mxu1 }
 0x296   : > { %v12278_v49 = vpop.f32.mrb[20].mxu1 }
 0x297   : > { %v12280_v51 = vpop.f32.mrb[21].mxu1 }
 0x29a   : > { %v12282_v55 = vpop.f32.mrb[22].mxu1 }
 0x29b   : > { %v12284_v58 = vpop.f32.mrb[23].mxu1 }
 0x29e   : > { %v12287_v60 = vpop.f32.mrb[24].mxu1 }
 0x29f   : > { %v12289_v62 = vpop.f32.mrb[25].mxu1 }
 0x2a2   : > { %v12291_v63 = vpop.f32.mrb[26].mxu1 }
 0x2a3   : > { %v12293_v0 = vpop.f32.mrb[27].mxu1 }
 0x2a6   : > { %v12295_v1 = vpop.f32.mrb[28].mxu1 }
 0x2a7   : > { %v12297_v2 = vpop.f32.mrb[29].mxu1 }
 0x2aa   : > { %v12300_v52 = vpop.f32.mrb[30].mxu1 }
 0x2ab   : > { %v12307_v61 = vpop.f32.mrb[31].mxu1 }
 0x2af   : > { %v9524_v40 = vpop.f32.mrb[0].mxu0 }
 0x2b0   : > { %v9713_v24 = vadd.f32 %v9712_v35, %v9524_v40  ;;  %v6265_v42 = vpop.f32.mrb[1].mxu0 }
 0x2b1   : > { %v9715_v9 = vadd.f32 %v9714_v38, %v6265_v42 }
 0x2b2   : > { %v6649_v28 = vmax.f32 %v9713_v24, 0.0 }
 0x2b3   : > { %v6648_v3 = vmax.f32 %v9715_v9, 0.0  ;;  %v9527_v4 = vpop.f32.mrb[2].mxu0  ;;  %v9736_v9 = vadd.f32 %v12262_v57, %v12305_v56  ;;  %v9742_v57 = vadd.f32 %v12305_v56, %v12268_v25 }
 0x2b4   : > { %6714 = vst.msk [vmem:[%s12314_s25 + $0x8] sm:$0xff] %vm6712_vm4, %v6649_v28  ;;  %v9717_v5 = vadd.f32 %v9716_v26, %v9527_v4  ;;  %v6275_v6 = vpop.f32.mrb[3].mxu0 }
 0x2b5   : > { %6713 = vst.msk [vmem:[%s12314_s25] sm:$0xff] %vm6712_vm4, %v6648_v3  ;;  %v9719_v8 = vadd.f32 %v9718_v34, %v6275_v6 }
 0x2b6   : > { %v6651_v11 = vmax.f32 %v9717_v5, 0.0  ;;  %v9740_v5 = vadd.f32 %v12266_v17, %v12305_v56  ;;  %v9746_v17 = vadd.f32 %v12305_v56, %v12272_v29 }
 0x2b7   : > { %v6650_v12 = vmax.f32 %v9719_v8, 0.0  ;;  %v9530_v14 = vpop.f32.mrb[4].mxu0 }
 0x2b8   : > { %6716 = vst.msk [vmem:[%s12314_s25 + $0x18] sm:$0xff] %vm6712_vm4, %v6651_v11  ;;  %v9721_v15 = vadd.f32 %v9720_v10, %v9530_v14  ;;  %v6285_v16 = vpop.f32.mrb[5].mxu0 }
 0x2b9   : > { %6715 = vst.msk [vmem:[%s12314_s25 + $0x10] sm:$0xff] %vm6712_vm4, %v6650_v12  ;;  %v9723_v23 = vadd.f32 %v9722_v13, %v6285_v16  ;;  %v9744_v12 = vadd.f32 %v12270_v27, %v12305_v56  ;;  %v9750_v27 = vadd.f32 %v12305_v56, %v12276_v47 }
 0x2ba   : > { %v6653_v31 = vmax.f32 %v9721_v15, 0.0 }
 0x2bb   : > { %v6652_v33 = vmax.f32 %v9723_v23, 0.0  ;;  %v9533_v37 = vpop.f32.mrb[6].mxu0 }
 0x2bc   : > { %6718 = vst.msk [vmem:[%s12314_s25 + $0x28] sm:$0xff] %vm6712_vm4, %v6653_v31  ;;  %v9725_v53 = vadd.f32 %v9724_v30, %v9533_v37  ;;  %v6295_v54 = vpop.f32.mrb[7].mxu0  ;;  %v9748_v31 = vadd.f32 %v12274_v45, %v12305_v56  ;;  %v9754_v45 = vadd.f32 %v12305_v56, %v12280_v51 }
 0x2bd   : > { %6717 = vst.msk [vmem:[%s12314_s25 + $0x20] sm:$0xff] %vm6712_vm4, %v6652_v33  ;;  %v9727_v18 = vadd.f32 %v9726_v32, %v6295_v54 }
 0x2be   : > { %v6655_v20 = vmax.f32 %v9725_v53, 0.0 }
 0x2bf   : > { %v6654_v22 = vmax.f32 %v9727_v18, 0.0  ;;  %v9536_v7 = vpop.f32.mrb[8].mxu0  ;;  %v9752_v18 = vadd.f32 %v12278_v49, %v12305_v56  ;;  %v9758_v49 = vadd.f32 %v12305_v56, %v12284_v58 }
 0x2c0   : > { %6720 = vst.msk [vmem:[%s12314_s25 + $0x38] sm:$0xff] %vm6712_vm4, %v6655_v20  ;;  %v9729_v36 = vadd.f32 %v9728_v19, %v9536_v7  ;;  %v6305_v39 = vpop.f32.mrb[9].mxu0 }
 0x2c1   : > { %6719 = vst.msk [vmem:[%s12314_s25 + $0x30] sm:$0xff] %vm6712_vm4, %v6654_v22  ;;  %v9731_v41 = vadd.f32 %v9730_v21, %v6305_v39 }
 0x2c2   : > { %v6657_v35 = vmax.f32 %v9729_v36, 0.0  ;;  %v9756_v36 = vadd.f32 %v12282_v55, %v12305_v56  ;;  %v9762_v55 = vadd.f32 %v12305_v56, %v12289_v62 }
 0x2c3   : > { %v6656_v46 = vmax.f32 %v9731_v41, 0.0  ;;  %v9539_v38 = vpop.f32.mrb[10].mxu0 }
 0x2c4   : > { %6722 = vst.msk [vmem:[%s12314_s25 + $0x48] sm:$0xff] %vm6712_vm4, %v6657_v35  ;;  %v9733_v40 = vadd.f32 %v9732_v43, %v9539_v38  ;;  %v6315_v24 = vpop.f32.mrb[11].mxu0 }
 0x2c5   : > { %6721 = vst.msk [vmem:[%s12314_s25 + $0x40] sm:$0xff] %vm6712_vm4, %v6656_v46  ;;  %v9735_v42 = vadd.f32 %v9734_v44, %v6315_v24  ;;  %v9760_v46 = vadd.f32 %v12287_v60, %v12305_v56  ;;  %v9766_v60 = vadd.f32 %v12305_v56, %v12293_v0 }
 0x2c6   : > { %v6659_v26 = vmax.f32 %v9733_v40, 0.0 }
 0x2c7   : > { %v6658_v50 = vmax.f32 %v9735_v42, 0.0  ;;  %v9542_v28 = vpop.f32.mrb[12].mxu0 }
 0x2c8   : > { %6724 = vst.msk [vmem:[%s12314_s25 + $0x58] sm:$0xff] %vm6712_vm4, %v6659_v26  ;;  %v9737_v34 = vadd.f32 %v9736_v9, %v9542_v28  ;;  %v6325_v3 = vpop.f32.mrb[13].mxu0  ;;  %v9764_v26 = vadd.f32 %v12291_v63, %v12305_v56  ;;  %v9770_v63 = vadd.f32 %v12305_v56, %v12297_v2 }
 0x2c9   : > { %6723 = vst.msk [vmem:[%s12314_s25 + $0x50] sm:$0xff] %vm6712_vm4, %v6658_v50  ;;  %v9739_v4 = vadd.f32 %v9738_v48, %v6325_v3 }
 0x2ca   : > { %v6661_v6 = vmax.f32 %v9737_v34, 0.0 }
 0x2cb   : > { %v6660_v59 = vmax.f32 %v9739_v4, 0.0  ;;  %v9545_v8 = vpop.f32.mrb[14].mxu0  ;;  %v9768_v4 = vadd.f32 %v12295_v1, %v12305_v56  ;;  %v9774_v1 = vadd.f32 %v12305_v56, %v12307_v61 }
 0x2cc   : > { %6726 = vst.msk [vmem:[%s12314_s25 + $0x68] sm:$0xff] %vm6712_vm4, %v6661_v6  ;;  %v9741_v10 = vadd.f32 %v9740_v5, %v9545_v8  ;;  %v6335_v11 = vpop.f32.mrb[15].mxu0 }
 0x2cd   : > { %6725 = vst.msk [vmem:[%s12314_s25 + $0x60] sm:$0xff] %vm6712_vm4, %v6660_v59  ;;  %v9743_v13 = vadd.f32 %v9742_v57, %v6335_v11 }
 0x2ce   : > { %v6663_v14 = vmax.f32 %v9741_v10, 0.0  ;;  %v9772_v10 = vadd.f32 %v12300_v52, %v12305_v56 }
 0x2cf   : > { %v6662_v25 = vmax.f32 %v9743_v13, 0.0  ;;  %v9548_v15 = vpop.f32.mrb[16].mxu0 }
 0x2d0   : > { %6728 = vst.msk [vmem:[%s12314_s25 + $0x78] sm:$0xff] %vm6712_vm4, %v6663_v14  ;;  %v9745_v16 = vadd.f32 %v9744_v12, %v9548_v15  ;;  %v6345_v23 = vpop.f32.mrb[17].mxu0 }
 0x2d1   : > { %6727 = vst.msk [vmem:[%s12314_s25 + $0x70] sm:$0xff] %vm6712_vm4, %v6662_v25  ;;  %v9747_v30 = vadd.f32 %v9746_v17, %v6345_v23 }
 0x2d2   : > { %v6665_v32 = vmax.f32 %v9745_v16, 0.0 }
 0x2d3   : > { %v6664_v29 = vmax.f32 %v9747_v30, 0.0  ;;  %v9551_v33 = vpop.f32.mrb[18].mxu0 }
 0x2d4   : > { %6730 = vst.msk [vmem:[%s12314_s25 + $0x88] sm:$0xff] %vm6712_vm4, %v6665_v32  ;;  %v9749_v37 = vadd.f32 %v9748_v31, %v9551_v33  ;;  %v6355_v53 = vpop.f32.mrb[19].mxu0 }
 0x2d5   : > { %6729 = vst.msk [vmem:[%s12314_s25 + $0x80] sm:$0xff] %vm6712_vm4, %v6664_v29  ;;  %v9751_v54 = vadd.f32 %v9750_v27, %v6355_v53 }
 0x2d6   : > { %v6667_v19 = vmax.f32 %v9749_v37, 0.0 }
 0x2d7   : > { %v6666_v47 = vmax.f32 %v9751_v54, 0.0  ;;  %v9554_v20 = vpop.f32.mrb[20].mxu0 }
 0x2d8   : > { %6732 = vst.msk [vmem:[%s12314_s25 + $0x98] sm:$0xff] %vm6712_vm4, %v6667_v19  ;;  %v9753_v21 = vadd.f32 %v9752_v18, %v9554_v20  ;;  %v6365_v22 = vpop.f32.mrb[21].mxu0 }
 0x2d9   : > { %6731 = vst.msk [vmem:[%s12314_s25 + $0x90] sm:$0xff] %vm6712_vm4, %v6666_v47  ;;  %v9755_v7 = vadd.f32 %v9754_v45, %v6365_v22 }
 0x2da   : > { %v6669_v39 = vmax.f32 %v9753_v21, 0.0 }
 0x2db   : > { %v6668_v51 = vmax.f32 %v9755_v7, 0.0  ;;  %v9557_v41 = vpop.f32.mrb[22].mxu0 }
 0x2dc   : > { %6734 = vst.msk [vmem:[%s12314_s25 + $0xa8] sm:$0xff] %vm6712_vm4, %v6669_v39  ;;  %v9757_v43 = vadd.f32 %v9756_v36, %v9557_v41  ;;  %v6375_v35 = vpop.f32.mrb[23].mxu0 }
 0x2dd   : > { %6733 = vst.msk [vmem:[%s12314_s25 + $0xa0] sm:$0xff] %vm6712_vm4, %v6668_v51  ;;  %v9759_v44 = vadd.f32 %v9758_v49, %v6375_v35 }
 0x2de   : > { %v6671_v38 = vmax.f32 %v9757_v43, 0.0 }
 0x2df   : > { %v6670_v58 = vmax.f32 %v9759_v44, 0.0  ;;  %v9560_v40 = vpop.f32.mrb[24].mxu0 }
 0x2e0   : > { %6736 = vst.msk [vmem:[%s12314_s25 + $0xb8] sm:$0xff] %vm6712_vm4, %v6671_v38  ;;  %v9761_v24 = vadd.f32 %v9760_v46, %v9560_v40  ;;  %v6385_v42 = vpop.f32.mrb[25].mxu0 }
 0x2e1   : > { %6735 = vst.msk [vmem:[%s12314_s25 + $0xb0] sm:$0xff] %vm6712_vm4, %v6670_v58  ;;  %v9763_v9 = vadd.f32 %v9762_v55, %v6385_v42 }
 0x2e2   : > { %v6673_v48 = vmax.f32 %v9761_v24, 0.0 }
 0x2e3   : > { %v6672_v62 = vmax.f32 %v9763_v9, 0.0  ;;  %v9563_v50 = vpop.f32.mrb[26].mxu0 }
 0x2e4   : > { %6738 = vst.msk [vmem:[%s12314_s25 + $0xc8] sm:$0xff] %vm6712_vm4, %v6673_v48  ;;  %v9765_v28 = vadd.f32 %v9764_v26, %v9563_v50  ;;  %v6395_v34 = vpop.f32.mrb[27].mxu0 }
 0x2e5   : > { %6737 = vst.msk [vmem:[%s12314_s25 + $0xc0] sm:$0xff] %vm6712_vm4, %v6672_v62  ;;  %v9767_v3 = vadd.f32 %v9766_v60, %v6395_v34 }
 0x2e6   : > { %v6675_v5 = vmax.f32 %v9765_v28, 0.0 }
 0x2e7   : > { %v6674_v0 = vmax.f32 %v9767_v3, 0.0  ;;  %v9566_v6 = vpop.f32.mrb[28].mxu0 }
 0x2e8   : > { %6740 = vst.msk [vmem:[%s12314_s25 + $0xd8] sm:$0xff] %vm6712_vm4, %v6675_v5  ;;  %v9769_v57 = vadd.f32 %v9768_v4, %v9566_v6  ;;  %v6405_v59 = vpop.f32.mrb[29].mxu0 }
 0x2e9   : > { %6739 = vst.msk [vmem:[%s12314_s25 + $0xd0] sm:$0xff] %vm6712_vm4, %v6674_v0  ;;  %v9771_v8 = vadd.f32 %v9770_v63, %v6405_v59 }
 0x2ea   : > { %v6677_v11 = vmax.f32 %v9769_v57, 0.0 }
 0x2eb   : > { %v6676_v13 = vmax.f32 %v9771_v8, 0.0  ;;  %v9569_v2 = vpop.f32.mrb[30].mxu0 }
 0x2ec   : > { %6742 = vst.msk [vmem:[%s12314_s25 + $0xe8] sm:$0xff] %vm6712_vm4, %v6677_v11  ;;  %v9773_v12 = vadd.f32 %v9772_v10, %v9569_v2  ;;  %v6415_v14 = vpop.f32.mrb[31].mxu0 }
 0x2ed   : > { %6741 = vst.msk [vmem:[%s12314_s25 + $0xe0] sm:$0xff] %vm6712_vm4, %v6676_v13  ;;  %v9775_v17 = vadd.f32 %v9774_v1, %v6415_v14 }
 0x2ee   : > { %v6679_v25 = vmax.f32 %v9773_v12, 0.0  ;;  %v9156_v15 = vpop.f32.mrb[32].mxu1 }
 0x2ef   : > { %v6678_v16 = vmax.f32 %v9775_v17, 0.0  ;;  %v9776_v52 = vadd.f32 %v9156_v15, %v12305_v56  ;;  %v9572_v23 = vpop.f32.mrb[32].mxu0  ;;  %v3561_v30 = vpop.f32.mrb[33].mxu1 }
 0x2f0   : > { %6744 = vst.msk [vmem:[%s12314_s25 + $0xf8] sm:$0xff] %vm6712_vm4, %v6679_v25  ;;  %v9778_v61 = vadd.f32 %v12305_v56, %v3561_v30  ;;  %v6425_v31 = vpop.f32.mrb[33].mxu0 }
 0x2f1   : > { %6743 = vst.msk [vmem:[%s12314_s25 + $0xf0] sm:$0xff] %vm6712_vm4, %v6678_v16  ;;  %v9777_v32 = vadd.f32 %v9776_v52, %v9572_v23 }
 0x2f2   : > { %v9779_v27 = vadd.f32 %v9778_v61, %v6425_v31  ;;  %v9159_v29 = vpop.f32.mrb[34].mxu1 }
 0x2f3   : > { %v6681_v33 = vmax.f32 %v9777_v32, 0.0  ;;  %v9780_v37 = vadd.f32 %v9159_v29, %v12305_v56  ;;  %v9575_v53 = vpop.f32.mrb[34].mxu0  ;;  %v3571_v54 = vpop.f32.mrb[35].mxu1 }
 0x2f4   : > { %v6680_v18 = vmax.f32 %v9779_v27, 0.0  ;;  %v9782_v19 = vadd.f32 %v12305_v56, %v3571_v54  ;;  %v6435_v45 = vpop.f32.mrb[35].mxu0 }
 0x2f5   : > { %6746 = vst.msk [vmem:[%s12314_s25 + $0x108] sm:$0xff] %vm6712_vm4, %v6681_v33  ;;  %v9781_v47 = vadd.f32 %v9780_v37, %v9575_v53 }
 0x2f6   : > { %6745 = vst.msk [vmem:[%s12314_s25 + $0x100] sm:$0xff] %vm6712_vm4, %v6680_v18  ;;  %v9783_v20 = vadd.f32 %v9782_v19, %v6435_v45  ;;  %v9162_v21 = vpop.f32.mrb[36].mxu1 }
 0x2f7   : > { %v6683_v22 = vmax.f32 %v9781_v47, 0.0  ;;  %v9784_v7 = vadd.f32 %v9162_v21, %v12305_v56  ;;  %v9578_v36 = vpop.f32.mrb[36].mxu0  ;;  %v3581_v39 = vpop.f32.mrb[37].mxu1 }
 0x2f8   : > { %v6682_v49 = vmax.f32 %v9783_v20, 0.0  ;;  %v9786_v51 = vadd.f32 %v12305_v56, %v3581_v39  ;;  %v6445_v41 = vpop.f32.mrb[37].mxu0 }
 0x2f9   : > { %6748 = vst.msk [vmem:[%s12314_s25 + $0x118] sm:$0xff] %vm6712_vm4, %v6683_v22  ;;  %v9785_v43 = vadd.f32 %v9784_v7, %v9578_v36 }
 0x2fa   : > { %6747 = vst.msk [vmem:[%s12314_s25 + $0x110] sm:$0xff] %vm6712_vm4, %v6682_v49  ;;  %v9787_v35 = vadd.f32 %v9786_v51, %v6445_v41  ;;  %v9165_v44 = vpop.f32.mrb[38].mxu1 }
 0x2fb   : > { %v6685_v46 = vmax.f32 %v9785_v43, 0.0  ;;  %v9788_v38 = vadd.f32 %v9165_v44, %v12305_v56  ;;  %v9581_v55 = vpop.f32.mrb[38].mxu0  ;;  %v3591_v58 = vpop.f32.mrb[39].mxu1 }
 0x2fc   : > { %v6684_v40 = vmax.f32 %v9787_v35, 0.0  ;;  %v9790_v24 = vadd.f32 %v12305_v56, %v3591_v58  ;;  %v6455_v42 = vpop.f32.mrb[39].mxu0 }
 0x2fd   : > { %6750 = vst.msk [vmem:[%s12314_s25 + $0x128] sm:$0xff] %vm6712_vm4, %v6685_v46  ;;  %v9789_v9 = vadd.f32 %v9788_v38, %v9581_v55 }
 0x2fe   : > { %6749 = vst.msk [vmem:[%s12314_s25 + $0x120] sm:$0xff] %vm6712_vm4, %v6684_v40  ;;  %v9791_v26 = vadd.f32 %v9790_v24, %v6455_v42  ;;  %v9168_v48 = vpop.f32.mrb[40].mxu1 }
 0x2ff   : > { %v6687_v60 = vmax.f32 %v9789_v9, 0.0  ;;  %v9792_v62 = vadd.f32 %v9168_v48, %v12305_v56  ;;  %v9584_v50 = vpop.f32.mrb[40].mxu0  ;;  %v3601_v28 = vpop.f32.mrb[41].mxu1 }
 0x300   : > { %v6686_v34 = vmax.f32 %v9791_v26, 0.0  ;;  %v9794_v3 = vadd.f32 %v12305_v56, %v3601_v28  ;;  %v6465_v4 = vpop.f32.mrb[41].mxu0 }
 0x301   : > { %6752 = vst.msk [vmem:[%s12314_s25 + $0x138] sm:$0xff] %vm6712_vm4, %v6687_v60  ;;  %v9793_v5 = vadd.f32 %v9792_v62, %v9584_v50 }
 0x302   : > { %6751 = vst.msk [vmem:[%s12314_s25 + $0x130] sm:$0xff] %vm6712_vm4, %v6686_v34  ;;  %v9795_v63 = vadd.f32 %v9794_v3, %v6465_v4  ;;  %v9171_v0 = vpop.f32.mrb[42].mxu1 }
 0x303   : > { %v6689_v6 = vmax.f32 %v9793_v5, 0.0  ;;  %v9796_v57 = vadd.f32 %v9171_v0, %v12305_v56  ;;  %v9587_v59 = vpop.f32.mrb[42].mxu0  ;;  %v3611_v8 = vpop.f32.mrb[43].mxu1 }
 0x304   : > { %v6688_v10 = vmax.f32 %v9795_v63, 0.0  ;;  %v9798_v11 = vadd.f32 %v12305_v56, %v3611_v8  ;;  %v6475_v1 = vpop.f32.mrb[43].mxu0 }
 0x305   : > { %6754 = vst.msk [vmem:[%s12314_s25 + $0x148] sm:$0xff] %vm6712_vm4, %v6689_v6  ;;  %v9797_v13 = vadd.f32 %v9796_v57, %v9587_v59 }
 0x306   : > { %6753 = vst.msk [vmem:[%s12314_s25 + $0x140] sm:$0xff] %vm6712_vm4, %v6688_v10  ;;  %v9799_v2 = vadd.f32 %v9798_v11, %v6475_v1  ;;  %v9174_v12 = vpop.f32.mrb[44].mxu1 }
 0x307   : > { %v6691_v14 = vmax.f32 %v9797_v13, 0.0  ;;  %v9800_v17 = vadd.f32 %v9174_v12, %v12305_v56  ;;  %v9590_v25 = vpop.f32.mrb[44].mxu0  ;;  %v3621_v15 = vpop.f32.mrb[45].mxu1 }
 0x308   : > { %v6690_v16 = vmax.f32 %v9799_v2, 0.0  ;;  %v9802_v52 = vadd.f32 %v12305_v56, %v3621_v15  ;;  %v6485_v23 = vpop.f32.mrb[45].mxu0 }
 0x309   : > { %6756 = vst.msk [vmem:[%s12314_s25 + $0x158] sm:$0xff] %vm6712_vm4, %v6691_v14  ;;  %v9801_v30 = vadd.f32 %v9800_v17, %v9590_v25 }
 0x30a   : > { %6755 = vst.msk [vmem:[%s12314_s25 + $0x150] sm:$0xff] %vm6712_vm4, %v6690_v16  ;;  %v9803_v61 = vadd.f32 %v9802_v52, %v6485_v23  ;;  %v9177_v31 = vpop.f32.mrb[46].mxu1 }
 0x30b   : > { %v6693_v32 = vmax.f32 %v9801_v30, 0.0  ;;  %v9804_v27 = vadd.f32 %v9177_v31, %v12305_v56  ;;  %v9593_v29 = vpop.f32.mrb[46].mxu0  ;;  %v3631_v33 = vpop.f32.mrb[47].mxu1 }
 0x30c   : > { %v6692_v37 = vmax.f32 %v9803_v61, 0.0  ;;  %v9806_v53 = vadd.f32 %v12305_v56, %v3631_v33  ;;  %v6495_v54 = vpop.f32.mrb[47].mxu0 }
 0x30d   : > { %6758 = vst.msk [vmem:[%s12314_s25 + $0x168] sm:$0xff] %vm6712_vm4, %v6693_v32  ;;  %v9805_v18 = vadd.f32 %v9804_v27, %v9593_v29 }
 0x30e   : > { %6757 = vst.msk [vmem:[%s12314_s25 + $0x160] sm:$0xff] %vm6712_vm4, %v6692_v37  ;;  %v9807_v19 = vadd.f32 %v9806_v53, %v6495_v54  ;;  %v9180_v45 = vpop.f32.mrb[48].mxu1 }
 0x30f   : > { %v6695_v47 = vmax.f32 %v9805_v18, 0.0  ;;  %v9808_v20 = vadd.f32 %v9180_v45, %v12305_v56  ;;  %v9596_v21 = vpop.f32.mrb[48].mxu0  ;;  %v3641_v22 = vpop.f32.mrb[49].mxu1 }
 0x310   : > { %v6694_v7 = vmax.f32 %v9807_v19, 0.0  ;;  %v9810_v36 = vadd.f32 %v12305_v56, %v3641_v22  ;;  %v6505_v39 = vpop.f32.mrb[49].mxu0 }
 0x311   : > { %6760 = vst.msk [vmem:[%s12314_s25 + $0x178] sm:$0xff] %vm6712_vm4, %v6695_v47  ;;  %v9809_v49 = vadd.f32 %v9808_v20, %v9596_v21 }
 0x312   : > { %6759 = vst.msk [vmem:[%s12314_s25 + $0x170] sm:$0xff] %vm6712_vm4, %v6694_v7  ;;  %v9811_v51 = vadd.f32 %v9810_v36, %v6505_v39  ;;  %v9183_v41 = vpop.f32.mrb[50].mxu1 }
 0x313   : > { %v6697_v43 = vmax.f32 %v9809_v49, 0.0  ;;  %v9812_v35 = vadd.f32 %v9183_v41, %v12305_v56  ;;  %v9599_v44 = vpop.f32.mrb[50].mxu0  ;;  %v3651_v46 = vpop.f32.mrb[51].mxu1 }
 0x314   : > { %v6696_v38 = vmax.f32 %v9811_v51, 0.0  ;;  %v9814_v55 = vadd.f32 %v12305_v56, %v3651_v46  ;;  %v6515_v58 = vpop.f32.mrb[51].mxu0 }
 0x315   : > { %6762 = vst.msk [vmem:[%s12314_s25 + $0x188] sm:$0xff] %vm6712_vm4, %v6697_v43  ;;  %v9813_v40 = vadd.f32 %v9812_v35, %v9599_v44 }
 0x316   : > { %6761 = vst.msk [vmem:[%s12314_s25 + $0x180] sm:$0xff] %vm6712_vm4, %v6696_v38  ;;  %v9815_v24 = vadd.f32 %v9814_v55, %v6515_v58  ;;  %v9186_v42 = vpop.f32.mrb[52].mxu1 }
 0x317   : > { %v6699_v9 = vmax.f32 %v9813_v40, 0.0  ;;  %v9816_v26 = vadd.f32 %v9186_v42, %v12305_v56  ;;  %v9602_v48 = vpop.f32.mrb[52].mxu0  ;;  %v3661_v60 = vpop.f32.mrb[53].mxu1 }
 0x318   : > { %v6698_v62 = vmax.f32 %v9815_v24, 0.0  ;;  %v9818_v50 = vadd.f32 %v12305_v56, %v3661_v60  ;;  %v6525_v28 = vpop.f32.mrb[53].mxu0 }
 0x319   : > { %6764 = vst.msk [vmem:[%s12314_s25 + $0x198] sm:$0xff] %vm6712_vm4, %v6699_v9  ;;  %v9817_v34 = vadd.f32 %v9816_v26, %v9602_v48 }
 0x31a   : > { %6763 = vst.msk [vmem:[%s12314_s25 + $0x190] sm:$0xff] %vm6712_vm4, %v6698_v62  ;;  %v9819_v3 = vadd.f32 %v9818_v50, %v6525_v28  ;;  %v9189_v4 = vpop.f32.mrb[54].mxu1 }
 0x31b   : > { %v6701_v5 = vmax.f32 %v9817_v34, 0.0  ;;  %v9820_v63 = vadd.f32 %v9189_v4, %v12305_v56  ;;  %v9605_v0 = vpop.f32.mrb[54].mxu0  ;;  %v3671_v6 = vpop.f32.mrb[55].mxu1 }
 0x31c   : > { %v6700_v57 = vmax.f32 %v9819_v3, 0.0  ;;  %v9822_v59 = vadd.f32 %v12305_v56, %v3671_v6  ;;  %v6535_v8 = vpop.f32.mrb[55].mxu0 }
 0x31d   : > { %6766 = vst.msk [vmem:[%s12314_s25 + $0x1a8] sm:$0xff] %vm6712_vm4, %v6701_v5  ;;  %v9821_v10 = vadd.f32 %v9820_v63, %v9605_v0 }
 0x31e   : > { %6765 = vst.msk [vmem:[%s12314_s25 + $0x1a0] sm:$0xff] %vm6712_vm4, %v6700_v57  ;;  %v9823_v11 = vadd.f32 %v9822_v59, %v6535_v8  ;;  %v9192_v1 = vpop.f32.mrb[56].mxu1 }
 0x31f   : > { %v6703_v13 = vmax.f32 %v9821_v10, 0.0  ;;  %v9824_v2 = vadd.f32 %v9192_v1, %v12305_v56  ;;  %v9608_v12 = vpop.f32.mrb[56].mxu0  ;;  %v3681_v14 = vpop.f32.mrb[57].mxu1 }
 0x320   : > { %v6702_v17 = vmax.f32 %v9823_v11, 0.0  ;;  %v9826_v25 = vadd.f32 %v12305_v56, %v3681_v14  ;;  %v6545_v15 = vpop.f32.mrb[57].mxu0 }
 0x321   : > { %6768 = vst.msk [vmem:[%s12314_s25 + $0x1b8] sm:$0xff] %vm6712_vm4, %v6703_v13  ;;  %v9825_v16 = vadd.f32 %v9824_v2, %v9608_v12 }
 0x322   : > { %6767 = vst.msk [vmem:[%s12314_s25 + $0x1b0] sm:$0xff] %vm6712_vm4, %v6702_v17  ;;  %v9827_v52 = vadd.f32 %v9826_v25, %v6545_v15  ;;  %v9195_v23 = vpop.f32.mrb[58].mxu1 }
 0x323   : > { %v6705_v30 = vmax.f32 %v9825_v16, 0.0  ;;  %v9828_v61 = vadd.f32 %v9195_v23, %v12305_v56  ;;  %v9611_v31 = vpop.f32.mrb[58].mxu0  ;;  %v3691_v32 = vpop.f32.mrb[59].mxu1 }
 0x324   : > { %v6704_v27 = vmax.f32 %v9827_v52, 0.0  ;;  %v9830_v29 = vadd.f32 %v12305_v56, %v3691_v32  ;;  %v6555_v33 = vpop.f32.mrb[59].mxu0 }
 0x325   : > { %6770 = vst.msk [vmem:[%s12314_s25 + $0x1c8] sm:$0xff] %vm6712_vm4, %v6705_v30  ;;  %v9829_v37 = vadd.f32 %v9828_v61, %v9611_v31 }
 0x326   : > { %6769 = vst.msk [vmem:[%s12314_s25 + $0x1c0] sm:$0xff] %vm6712_vm4, %v6704_v27  ;;  %v9831_v53 = vadd.f32 %v9830_v29, %v6555_v33  ;;  %v9198_v54 = vpop.f32.mrb[60].mxu1 }
 0x327   : > { %v6707_v18 = vmax.f32 %v9829_v37, 0.0  ;;  %v9832_v19 = vadd.f32 %v9198_v54, %v12305_v56  ;;  %v9614_v45 = vpop.f32.mrb[60].mxu0  ;;  %v3701_v47 = vpop.f32.mrb[61].mxu1 }
 0x328   : > { %v6706_v20 = vmax.f32 %v9831_v53, 0.0  ;;  %v9834_v21 = vadd.f32 %v12305_v56, %v3701_v47  ;;  %v6565_v22 = vpop.f32.mrb[61].mxu0 }
 0x329   : > { %6772 = vst.msk [vmem:[%s12314_s25 + $0x1d8] sm:$0xff] %vm6712_vm4, %v6707_v18  ;;  %v9833_v7 = vadd.f32 %v9832_v19, %v9614_v45 }
 0x32a   : > { %6771 = vst.msk [vmem:[%s12314_s25 + $0x1d0] sm:$0xff] %vm6712_vm4, %v6706_v20  ;;  %v9835_v36 = vadd.f32 %v9834_v21, %v6565_v22  ;;  %v9201_v39 = vpop.f32.mrb[62].mxu1 }
 0x32b   : > { %v6709_v49 = vmax.f32 %v9833_v7, 0.0  ;;  %v9836_v51 = vadd.f32 %v9201_v39, %v12305_v56  ;;  %v9617_v41 = vpop.f32.mrb[62].mxu0  ;;  %v3711_v43 = vpop.f32.mrb[63].mxu1 }
 0x32c   : > { %v6708_v35 = vmax.f32 %v9835_v36, 0.0  ;;  %v9838_v44 = vadd.f32 %v12305_v56, %v3711_v43  ;;  %v6575_v46 = vpop.f32.mrb[63].mxu0 }
 0x32d   : > { %6774 = vst.msk [vmem:[%s12314_s25 + $0x1e8] sm:$0xff] %vm6712_vm4, %v6709_v49  ;;  %v9837_v38 = vadd.f32 %v9836_v51, %v9617_v41 }
 0x32e   : > { %6773 = vst.msk [vmem:[%s12314_s25 + $0x1e0] sm:$0xff] %vm6712_vm4, %v6708_v35  ;;  %v9839_v55 = vadd.f32 %v9838_v44, %v6575_v46 }
 0x32f   : > { %v6711_v58 = vmax.f32 %v9837_v38, 0.0 }
 0x330   : > { %v6710_v40 = vmax.f32 %v9839_v55, 0.0 }
 0x331   : > { %6776 = vst.msk [vmem:[%s12314_s25 + $0x1f8] sm:$0xff] %vm6712_vm4, %v6711_v58 }
 0x332   : > { %6775 = vst.msk [vmem:[%s12314_s25 + $0x1f0] sm:$0xff] %vm6712_vm4, %v6710_v40 }
 0x333 PF: > { %s13_s16 = sadd.s32 1, %s10368_s16   ;;  %s12584_s12 = smov %s10360_s14 }
 0x334   : > { %p10_p7 = scmp.ge.s32.totalorder %s13_s16, 6   ;;  %s12585_s13 = smov %s10364_s15 }
 0x335   : > { %s12586_s14 = smov %s12589_s17  ;;  %s12587_s15 = smov %s12593_s18 }
 0x336   :  { %12 = sbr.rel (!%p10_p7) target bundleno = 3 (0x3), region = 79 }

// kernel: srcnn_forward.4
= control target key start
LH: loop header
LB: loop body
LE: loop exit
PB: predicated region body
PF: predicated region fallthrough
CT: control target
= control target key end

     0   :  { %s6137_s12 = smov 0   ;;  %s6139_s13 = smov 0   ;;  %s8551_s0 = inlined_call_operand.vmem [shape: f32[2,36,32,160], index: 0, kind: input, shape index: {}]   ;;  %s8552_s1 = inlined_call_operand.vmem [shape: f32[5,160,32], index: 1, kind: input, shape index: {}]   ;;  %s8553_s2 = inlined_call_operand.vmem [shape: f32[1,32], index: 2, kind: input, shape index: {}]   ;;  %s8554_s3 = inlined_call_operand.vmem [shape: f32[2,32,32,32], index: 3, kind: output, shape index: {}]  }
   0x1   :  { %s6141_s14 = smov 0   ;;  %s6143_s15 = smov 0  }
   0x2   :  { %s6145_s16 = smov 0  }
   0x3 LB: > { %s22_s17 = sadd.s32 1, %s6106_s14  ;;  %s25_s18 = sadd.s32 1, %s6110_s15  ;;  %s6114_s16 = sphi %s6145_s16, %s13_s16   ;;  %s6110_s15 = sphi %s6143_s15, %s8591_s15   ;;  %s6106_s14 = sphi %s6141_s14, %s8590_s14   ;;  %s6102_s13 = sphi %s6139_s13, %s8589_s13   ;;  %s6098_s12 = sphi %s6137_s12, %s8588_s12  }
   0x4   : > { %p23_p0 = scmp.ge.s32.totalorder %s22_s17, 2  ;;  %p4413_p1 = scmp.ge.s32.totalorder %s6114_s16, 1 }
   0x5   : > { %p151_p2 = scmp.lt.s32.totalorder %s6114_s16, 5 }
   0x6   : > { %s8593_s17 = smov (%p23_p0, %s22_s17), 0  ;;  %s8595_s18 = smov (!%p23_p0, %s25_s18), %s6110_s15 }
   0x7   : > { %p152_p3 = pnand %p4413_p1, %p151_p2  ;;  %p27_p4 = scmp.ge.s32.totalorder %s8595_s18, 2 }
   0x9   : > { %s8597_s18 = smov (%p27_p4, %s8595_s18), 0  ;;  %155 = sbr.rel (%p152_p3) target bundleno = 913 (0x391), region = 32 }
  0x10   : > { %v335_v0 = vld [vmem:[%s8552_s1] sm:$0xff]  ;;  %v336_v1 = vld [vmem:[%s8552_s1 + $0x8] sm:$0xff]  ;;  %p180_p5 = scmp.lt.s32.totalorder %s6102_s13, 1  ;;  %v8555_v3 = vmov 0.0|0.0   ;;  %v337_v6 = vld [vmem:[%s8552_s1 + $0x10] sm:$0xff]  ;;  %s5346_s27 = sshll.u32 %s6098_s12, 10 }
  0x11   : > { %v4831_v2 = vld [vmem:[%s8552_s1 + $0x140] sm:$0xff]  ;;  %5351 = vmatprep.subr.bf16.mxu1 %v8555_v3  ;;  %5411 = vmatprep.subr.bf16.mxu0 %v8555_v3  ;;  %v5352_v4 = vpack.c.bf16 %v336_v1, %v335_v0  ;;  %v4832_v5 = vld [vmem:[%s8552_s1 + $0x148] sm:$0xff]  ;;  %v338_v7 = vld [vmem:[%s8552_s1 + $0x18] sm:$0xff]  ;;  %vm355_vm0 = vcmask 261120   ;;  %s4415_s6 = sshll.u32 %s6098_s12, 4 }
  0x12   : > { %v6189_v8 = vpack.c.bf16 %v4832_v5, %v4831_v2  ;;  %v4833_v9 = vld [vmem:[%s8552_s1 + $0x150] sm:$0xff]  ;;  %v4834_v10 = vld [vmem:[%s8552_s1 + $0x158] sm:$0xff]  ;;  %s8599_s13 = smov (!%p180_p5, %s6102_s13), 1  ;;  %v5355_v11 = vpack.c.bf16 %v338_v7, %v337_v6  ;;  %v339_v13 = vld [vmem:[%s8552_s1 + $0x20] sm:$0xff]  ;;  %p188_p6 = scmp.lt.s32.totalorder %s4415_s6, 31 }
  0x13   : > { %5353 = vmatpush1.bf16.msra.mxu1 %v5352_v4  ;;  %v6201_v12 = vpack.c.bf16 %v4834_v10, %v4833_v9  ;;  %v340_v14 = vld [vmem:[%s8552_s1 + $0x28] sm:$0xff]  ;;  %s6033_s19 = smul.u32 2304, %s8599_s13  ;;  %v4835_v15 = vld [vmem:[%s8552_s1 + $0x160] sm:$0xff]  ;;  %v341_v19 = vld [vmem:[%s8552_s1 + $0x30] sm:$0xff]  ;;  %s4417_s7 = sshll.u32 %s8599_s13, 7 }
  0x14   : > { %5413 = vmatpush1.bf16.msra.mxu0 %v6189_v8  ;;  %5354 = vmatprep.subr.bf16.mxu1 %v8555_v3  ;;  %v4836_v16 = vld [vmem:[%s8552_s1 + $0x168] sm:$0xff]  ;;  %v5358_v17 = vpack.c.bf16 %v340_v14, %v339_v13  ;;  %v342_v20 = vld [vmem:[%s8552_s1 + $0x38] sm:$0xff]  ;;  %v4837_v21 = vld [vmem:[%s8552_s1 + $0x170] sm:$0xff]  ;;  %s8601_s6 = smov (!%p188_p6, %s4415_s6), 31 }
  0x15   : > { %5414 = vmatprep.subr.bf16.mxu0 %v8555_v3  ;;  %s184_s26 = scalar_lea.vmem %s8551_s0, %s6033_s19  ;;  %v6223_v18 = vpack.c.bf16 %v4836_v16, %v4835_v15  ;;  %v4838_v22 = vld [vmem:[%s8552_s1 + $0x178] sm:$0xff]  ;;  %v5361_v23 = vpack.c.bf16 %v342_v20, %v341_v19  ;;  %v343_v25 = vld [vmem:[%s8552_s1 + $0x40] sm:$0xff]  ;;  %v344_v26 = vld [vmem:[%s8552_s1 + $0x48] sm:$0xff]  ;;  %s4416_s12 = sshll.u32 %s8601_s6, 2 }
  0x16   : > { %s6238_s9 = scalar_lea.vmem %s184_s26, %s5346_s27  ;;  %v6242_v24 = vpack.c.bf16 %v4838_v22, %v4837_v21  ;;  %v4839_v27 = vld [vmem:[%s8552_s1 + $0x180] sm:$0xff]  ;;  %v4840_v28 = vld [vmem:[%s8552_s1 + $0x188] sm:$0xff]  ;;  %v5364_v31 = vpack.c.bf16 %v344_v26, %v343_v25  ;;  %v345_v33 = vld [vmem:[%s8552_s1 + $0x50] sm:$0xff]  ;;  %s192_s11 = sadd.s32 %s4417_s7, %s4416_s12 }
  0x17   : > { %5356 = vmatpush1.bf16.msra.mxu1 %v5355_v11  ;;  %8565 = vst [vmem:[#allocation2_spill] sm:$0xff] %v6223_v18  ;;  %v208_v29 = vld [vmem:[%s6238_s9 + $0x8] sm:$0xff]  ;;  %v6266_v32 = vpack.c.bf16 %v4840_v28, %v4839_v27  ;;  %v346_v34 = vld [vmem:[%s8552_s1 + $0x58] sm:$0xff]  ;;  %v4841_v35 = vld [vmem:[%s8552_s1 + $0x190] sm:$0xff]  ;;  %s4418_s13 = sshll.u32 %s192_s11, 3 }
  0x18   : > { %5416 = vmatpush1.bf16.msra.mxu0 %v6201_v12  ;;  %5357 = vmatprep.subr.bf16.mxu1 %v8555_v3  ;;  %8566 = vst [vmem:[#allocation3_spill] sm:$0xff] %v6242_v24  ;;  %v6259_v30 = vld [vmem:[%s6238_s9 + $0x88] sm:$0xff]  ;;  %v4842_v36 = vld [vmem:[%s8552_s1 + $0x198] sm:$0xff]  ;;  %v5367_v37 = vpack.c.bf16 %v346_v34, %v345_v33  ;;  %v347_v39 = vld [vmem:[%s8552_s1 + $0x60] sm:$0xff]  ;;  %s8243_s21 = scalar_lea.vmem %s8554_s3, %s4418_s13 }
  0x19   : > { %5417 = vmatprep.subr.bf16.mxu0 %v8555_v3  ;;  %4423 = vmatprep.mubr.msk.f32.mxu1 %vm355_vm0, %v208_v29  ;;  %8567 = vst [vmem:[#allocation4_spill] sm:$0xff] %v6266_v32  ;;  %v6283_v38 = vpack.c.bf16 %v4842_v36, %v4841_v35  ;;  %v348_v40 = vld [vmem:[%s8552_s1 + $0x68] sm:$0xff]  ;;  %v4843_v41 = vld [vmem:[%s8552_s1 + $0x1a0] sm:$0xff]  ;;  %v349_v45 = vld [vmem:[%s8552_s1 + $0x70] sm:$0xff] }
  0x1a   : > { %4851 = vmatprep.mubr.msk.f32.mxu0 %vm355_vm0, %v6259_v30  ;;  %v4844_v42 = vld [vmem:[%s8552_s1 + $0x1a8] sm:$0xff]  ;;  %v5370_v43 = vpack.c.bf16 %v348_v40, %v347_v39  ;;  %v350_v46 = vld [vmem:[%s8552_s1 + $0x78] sm:$0xff]  ;;  %v4845_v47 = vld [vmem:[%s8552_s1 + $0x1b0] sm:$0xff] }
  0x1b   : > { %5359 = vmatpush1.bf16.msra.mxu1 %v5358_v17  ;;  %8568 = vst [vmem:[#allocation5_spill] sm:$0xff] %v6283_v38  ;;  %v6300_v44 = vpack.c.bf16 %v4844_v42, %v4843_v41  ;;  %v4846_v48 = vld [vmem:[%s8552_s1 + $0x1b8] sm:$0xff]  ;;  %v5373_v49 = vpack.c.bf16 %v350_v46, %v349_v45  ;;  %v351_v51 = vld [vmem:[%s8552_s1 + $0x80] sm:$0xff]  ;;  %v352_v52 = vld [vmem:[%s8552_s1 + $0x88] sm:$0xff] }
  0x1c   : > { %5419 = vmatpush1.bf16.msra.mxu0 %v6223_v18  ;;  %5360 = vmatprep.subr.bf16.mxu1 %v8555_v3  ;;  %v6317_v50 = vpack.c.bf16 %v4846_v48, %v4845_v47  ;;  %v4847_v53 = vld [vmem:[%s8552_s1 + $0x1c0] sm:$0xff]  ;;  %v4848_v54 = vld [vmem:[%s8552_s1 + $0x1c8] sm:$0xff]  ;;  %v5376_v55 = vpack.c.bf16 %v352_v52, %v351_v51  ;;  %v353_v57 = vld [vmem:[%s8552_s1 + $0x90] sm:$0xff] }
  0x1d   : > { %5420 = vmatprep.subr.bf16.mxu0 %v8555_v3  ;;  %8569 = vst [vmem:[#allocation6_spill] sm:$0xff] %v6300_v44  ;;  %v6334_v56 = vpack.c.bf16 %v4848_v54, %v4847_v53  ;;  %v354_v58 = vld [vmem:[%s8552_s1 + $0x98] sm:$0xff]  ;;  %v4849_v59 = vld [vmem:[%s8552_s1 + $0x1d0] sm:$0xff]  ;;  %v4617_v63 = vld [vmem:[%s8552_s1 + $0xa0] sm:$0xff] }
  0x1e   : > { %8570 = vst [vmem:[#allocation7_spill] sm:$0xff] %v6317_v50  ;;  %v4850_v60 = vld [vmem:[%s8552_s1 + $0x1d8] sm:$0xff]  ;;  %v5379_v61 = vpack.c.bf16 %v354_v58, %v353_v57  ;;  %v4618_v0 = vld [vmem:[%s8552_s1 + $0xa8] sm:$0xff]  ;;  %v5045_v1 = vld [vmem:[%s8552_s1 + $0x1e0] sm:$0xff] }
  0x1f   : > { %5362 = vmatpush1.bf16.msra.mxu1 %v5361_v23  ;;  %8571 = vst [vmem:[#allocation8_spill] sm:$0xff] %v6334_v56  ;;  %v6351_v62 = vpack.c.bf16 %v4850_v60, %v4849_v59  ;;  %v5046_v2 = vld [vmem:[%s8552_s1 + $0x1e8] sm:$0xff]  ;;  %v207_v4 = vld [vmem:[%s6238_s9] sm:$0xff]  ;;  %v5382_v5 = vpack.c.bf16 %v4618_v0, %v4617_v63  ;;  %v210_v7 = vld [vmem:[%s6238_s9 + $0x18] sm:$0xff] }
  0x20   : > { %5422 = vmatpush1.bf16.msra.mxu0 %v6242_v24  ;;  %5363 = vmatprep.subr.bf16.mxu1 %v8555_v3  ;;  %v6370_v6 = vld [vmem:[%s6238_s9 + $0x80] sm:$0xff]  ;;  %v6375_v9 = vld [vmem:[%s6238_s9 + $0x98] sm:$0xff]  ;;  %v5442_v10 = vpack.c.bf16 %v5046_v2, %v5045_v1  ;;  %v4619_v11 = vld [vmem:[%s8552_s1 + $0xb0] sm:$0xff] }
  0x21   : > { %5423 = vmatprep.subr.bf16.mxu0 %v8555_v3  ;;  %8572 = vst [vmem:[#allocation9_spill] sm:$0xff] %v6351_v62  ;;  %v4620_v13 = vld [vmem:[%s8552_s1 + $0xb8] sm:$0xff]  ;;  %v5047_v14 = vld [vmem:[%s8552_s1 + $0x1f0] sm:$0xff]  ;;  %v212_v19 = vld [vmem:[%s6238_s9 + $0x28] sm:$0xff] }
  0x22   : > { %v5048_v15 = vld [vmem:[%s8552_s1 + $0x1f8] sm:$0xff]  ;;  %v209_v16 = vld [vmem:[%s6238_s9 + $0x10] sm:$0xff]  ;;  %v5385_v20 = vpack.c.bf16 %v4620_v13, %v4619_v11  ;;  %v6399_v21 = vld [vmem:[%s6238_s9 + $0xa8] sm:$0xff] }
  0x23   : > { %5365 = vmatpush1.bf16.msra.mxu1 %v5364_v31  ;;  %v6395_v17 = vld [vmem:[%s6238_s9 + $0x90] sm:$0xff]  ;;  %v5445_v22 = vpack.c.bf16 %v5048_v15, %v5047_v14  ;;  %v4621_v23 = vld [vmem:[%s8552_s1 + $0xc0] sm:$0xff]  ;;  %v4622_v25 = vld [vmem:[%s8552_s1 + $0xc8] sm:$0xff] }
  0x24   : > { %5425 = vmatpush1.bf16.msra.mxu0 %v6266_v32  ;;  %5366 = vmatprep.subr.bf16.mxu1 %v8555_v3  ;;  %v5049_v26 = vld [vmem:[%s8552_s1 + $0x200] sm:$0xff]  ;;  %v5050_v27 = vld [vmem:[%s8552_s1 + $0x208] sm:$0xff]  ;;  %v214_v31 = vld [vmem:[%s6238_s9 + $0x38] sm:$0xff]  ;;  %v5388_v33 = vpack.c.bf16 %v4622_v25, %v4621_v23 }
  0x25   : > { %5426 = vmatprep.subr.bf16.mxu0 %v8555_v3  ;;  %v211_v28 = vld [vmem:[%s6238_s9 + $0x20] sm:$0xff]  ;;  %v6425_v34 = vld [vmem:[%s6238_s9 + $0xb8] sm:$0xff]  ;;  %v5448_v35 = vpack.c.bf16 %v5050_v27, %v5049_v26  ;;  %v4623_v36 = vld [vmem:[%s8552_s1 + $0xd0] sm:$0xff] }
  0x26   : > { %v6421_v29 = vld [vmem:[%s6238_s9 + $0xa0] sm:$0xff]  ;;  %v5051_v39 = vld [vmem:[%s8552_s1 + $0x210] sm:$0xff]  ;;  %v5052_v40 = vld [vmem:[%s8552_s1 + $0x218] sm:$0xff] }
  0x27   : > { %5368 = vmatpush1.bf16.msra.mxu1 %v5367_v37  ;;  %v4624_v37 = vld [vmem:[%s8552_s1 + $0xd8] sm:$0xff]  ;;  %v213_v41 = vld [vmem:[%s6238_s9 + $0x30] sm:$0xff]  ;;  %v6451_v46 = vld [vmem:[%s6238_s9 + $0xc8] sm:$0xff]  ;;  %v5451_v47 = vpack.c.bf16 %v5052_v40, %v5051_v39 }
  0x28   : > { %5428 = vmatpush1.bf16.msra.mxu0 %v6283_v38  ;;  %5369 = vmatprep.subr.bf16.mxu1 %v8555_v3  ;;  %v6447_v42 = vld [vmem:[%s6238_s9 + $0xb0] sm:$0xff]  ;;  %v5391_v45 = vpack.c.bf16 %v4624_v37, %v4623_v36  ;;  %v4625_v48 = vld [vmem:[%s8552_s1 + $0xe0] sm:$0xff]  ;;  %v5054_v52 = vld [vmem:[%s8552_s1 + $0x228] sm:$0xff] }
  0x29   : > { %5429 = vmatprep.subr.bf16.mxu0 %v8555_v3  ;;  %v5053_v51 = vld [vmem:[%s8552_s1 + $0x220] sm:$0xff]  ;;  %v6477_v58 = vld [vmem:[%s6238_s9 + $0xd8] sm:$0xff]  ;;  %v4627_v60 = vld [vmem:[%s8552_s1 + $0xf0] sm:$0xff] }
  0x2a   : > { %v215_v53 = vld [vmem:[%s6238_s9 + $0x40] sm:$0xff]  ;;  %v5454_v59 = vpack.c.bf16 %v5054_v52, %v5053_v51  ;;  %v5055_v63 = vld [vmem:[%s8552_s1 + $0x230] sm:$0xff]  ;;  %v5056_v0 = vld [vmem:[%s8552_s1 + $0x238] sm:$0xff] }
  0x2b   : > { %5371 = vmatpush1.bf16.msra.mxu1 %v5370_v43  ;;  %v216_v43 = vld [vmem:[%s6238_s9 + $0x48] sm:$0xff]  ;;  %v6473_v54 = vld [vmem:[%s6238_s9 + $0xc0] sm:$0xff]  ;;  %v217_v1 = vld [vmem:[%s6238_s9 + $0x50] sm:$0xff] }
  0x2c   : > { %5431 = vmatpush1.bf16.msra.mxu0 %v6300_v44  ;;  %5372 = vmatprep.subr.bf16.mxu1 %v8555_v3  ;;  %v6499_v2 = vld [vmem:[%s6238_s9 + $0xd0] sm:$0xff]  ;;  %v5057_v11 = vld [vmem:[%s8552_s1 + $0x240] sm:$0xff]  ;;  %v5058_v13 = vld [vmem:[%s8552_s1 + $0x248] sm:$0xff] }
  0x2d   : > { %5432 = vmatprep.subr.bf16.mxu0 %v8555_v3  ;;  %v219_v14 = vld [vmem:[%s6238_s9 + $0x60] sm:$0xff]  ;;  %v5060_v23 = vld [vmem:[%s8552_s1 + $0x258] sm:$0xff]  ;;  %v221_v25 = vld [vmem:[%s6238_s9 + $0x70] sm:$0xff] }
  0x2e   : > { %v6519_v15 = vld [vmem:[%s6238_s9 + $0xe0] sm:$0xff]  ;;  %v4630_v27 = vld [vmem:[%s8552_s1 + $0x108] sm:$0xff]  ;;  %v6566_v40 = vld [vmem:[%s6238_s9 + $0x118] sm:$0xff] }
  0x2f   : > { %5374 = vmatpush1.bf16.msra.mxu1 %v5373_v49  ;;  %v4626_v49 = vld [vmem:[%s8552_s1 + $0xe8] sm:$0xff]  ;;  %v4629_v26 = vld [vmem:[%s8552_s1 + $0x100] sm:$0xff]  ;;  %v4631_v51 = vld [vmem:[%s8552_s1 + $0x110] sm:$0xff] }
  0x30   : > { %5434 = vmatpush1.bf16.msra.mxu0 %v6317_v50  ;;  %5375 = vmatprep.subr.bf16.mxu1 %v8555_v3  ;;  %v5394_v57 = vpack.c.bf16 %v4626_v49, %v4625_v48  ;;  %v5061_v36 = vld [vmem:[%s8552_s1 + $0x260] sm:$0xff]  ;;  %v5062_v37 = vld [vmem:[%s8552_s1 + $0x268] sm:$0xff]  ;;  %v6599_v48 = vld [vmem:[%s6238_s9 + $0x138] sm:$0xff] }
  0x31   : > { %5435 = vmatprep.subr.bf16.mxu0 %v8555_v3  ;;  %v6563_v39 = vld [vmem:[%s6238_s9 + $0x100] sm:$0xff]  ;;  %v6636_v49 = vld [vmem:[%s6238_s9 + $0x168] sm:$0xff]  ;;  %v4632_v52 = vld [vmem:[%s8552_s1 + $0x118] sm:$0xff] }
  0x32   : > { %v5259_v50 = vld [vmem:[%s8552_s1 + $0x280] sm:$0xff]  ;;  %v5260_v44 = vld [vmem:[%s8552_s1 + $0x288] sm:$0xff]  ;;  %v5261_v32 = vld [vmem:[%s8552_s1 + $0x290] sm:$0xff] }
  0x33   : > { %5377 = vmatpush1.bf16.msra.mxu1 %v5376_v55  ;;  %v218_v55 = vld [vmem:[%s6238_s9 + $0x58] sm:$0xff]  ;;  %v5472_v38 = vpack.c.bf16 %v5260_v44, %v5259_v50  ;;  %v8573_v50 = vmov 0.0|0.0   ;;  %v5264_v18 = vld [vmem:[%s8552_s1 + $0x2a8] sm:$0xff] }
  0x34   : > { %5437 = vmatpush1.bf16.msra.mxu0 %v6334_v56  ;;  %5378 = vmatprep.subr.bf16.mxu1 %v8555_v3  ;;  %v6870_v56 = vld [vmem:[%s6238_s9 + $0x270] sm:$0xff]  ;;  %v5262_v24 = vld [vmem:[%s8552_s1 + $0x298] sm:$0xff] }
  0x35   : > { %5438 = vmatprep.subr.bf16.mxu0 %v8555_v3  ;;  %v5475_v44 = vpack.c.bf16 %v5262_v24, %v5261_v32  ;;  %v5265_v32 = vld [vmem:[%s8552_s1 + $0x2b0] sm:$0xff] }
  0x37   : > { %5380 = vmatpush1.bf16.msra.mxu1 %v5379_v61  ;;  %v4628_v61 = vld [vmem:[%s8552_s1 + $0xf8] sm:$0xff] }
  0x38   : > { %5440 = vmatpush1.bf16.msra.mxu0 %v6351_v62  ;;  %5381 = vmatprep.subr.bf16.mxu1 %v8555_v3  ;;  %v6861_v62 = vld [vmem:[%s6238_s9 + $0x278] sm:$0xff] }
  0x39   : > { %5441 = vmatprep.subr.bf16.mxu0 %v8555_v3 }
  0x3a   : > { %613 = vmatmul.mubr.f32.vlgmr.msra.gmra.mrb[0].mxu1 %v207_v4  ;;  %v220_v4 = vld [vmem:[%s6238_s9 + $0x68] sm:$0xff] }
  0x3b   : > { %2201 = vmatmul.mubr.f32.vlgmr.msra.gmra.mrb[0].mxu0 %v6370_v6  ;;  %5383 = vmatpush1.bf16.msra.mxu1 %v5382_v5  ;;  %v5397_v5 = vpack.c.bf16 %v4628_v61, %v4627_v60  ;;  %v6666_v60 = vld [vmem:[%s6238_s9 + $0x188] sm:$0xff]  ;;  %v6676_v61 = vld [vmem:[%s6238_s9 + $0x180] sm:$0xff] }
  0x3c   : > { %4424 = vmatprep.mubr.msk.f32.mxu1 %vm355_vm0, %v210_v7  ;;  %4852 = vmatprep.mubr.msk.f32.mxu0 %vm355_vm0, %v6375_v9  ;;  %v6503_v7 = vld [vmem:[%s6238_s9 + $0xe8] sm:$0xff] }
  0x3d   : > { %5443 = vmatpush1.bf16.msra.mxu0 %v5442_v10  ;;  %5384 = vmatprep.subr.bf16.mxu1 %v8555_v3  ;;  %v5457_v10 = vpack.c.bf16 %v5056_v0, %v5055_v63  ;;  %v6679_v63 = vld [vmem:[%s6238_s9 + $0x198] sm:$0xff]  ;;  %v6688_v0 = vld [vmem:[%s6238_s9 + $0x190] sm:$0xff] }
  0x3e   : > { %618 = vmatmul.mubr.f32.gmra.mrb[2].mxu1 %v209_v16  ;;  %5444 = vmatprep.subr.bf16.mxu0 %v8555_v3  ;;  %v222_v16 = vld [vmem:[%s6238_s9 + $0x78] sm:$0xff] }
  0x3f   : > { %2206 = vmatmul.mubr.f32.gmra.mrb[2].mxu0 %v6395_v17  ;;  %4425 = vmatprep.mubr.msk.f32.mxu1 %vm355_vm0, %v212_v19  ;;  %v6523_v19 = vld [vmem:[%s6238_s9 + $0xf8] sm:$0xff] }
  0x40   : > { %4853 = vmatprep.mubr.msk.f32.mxu0 %vm355_vm0, %v6399_v21  ;;  %5386 = vmatpush1.bf16.msra.mxu1 %v5385_v20  ;;  %v5460_v20 = vpack.c.bf16 %v5058_v13, %v5057_v11  ;;  %v6715_v11 = vld [vmem:[%s6238_s9 + $0x1c8] sm:$0xff]  ;;  %v4633_v13 = vld [vmem:[%s8552_s1 + $0x120] sm:$0xff] }
  0x41   : > { %5446 = vmatpush1.bf16.msra.mxu0 %v5445_v22  ;;  %5387 = vmatprep.subr.bf16.mxu1 %v8555_v3  ;;  %v5059_v22 = vld [vmem:[%s8552_s1 + $0x250] sm:$0xff] }
  0x42   : > { %623 = vmatmul.mubr.f32.gmra.mrb[4].mxu1 %v211_v28  ;;  %5447 = vmatprep.subr.bf16.mxu0 %v8555_v3  ;;  %v6545_v28 = vld [vmem:[%s6238_s9 + $0xf0] sm:$0xff] }
  0x43   : > { %2211 = vmatmul.mubr.f32.gmra.mrb[4].mxu0 %v6421_v29  ;;  %4426 = vmatprep.mubr.msk.f32.mxu1 %vm355_vm0, %v214_v31  ;;  %v5400_v31 = vpack.c.bf16 %v4630_v27, %v4629_v26  ;;  %v6755_v26 = vld [vmem:[%s6238_s9 + $0x1e0] sm:$0xff]  ;;  %v6758_v27 = vld [vmem:[%s6238_s9 + $0x1f8] sm:$0xff] }
  0x44   : > { %4854 = vmatprep.mubr.msk.f32.mxu0 %vm355_vm0, %v6425_v34  ;;  %5389 = vmatpush1.bf16.msra.mxu1 %v5388_v33  ;;  %v6548_v33 = vld [vmem:[%s6238_s9 + $0x108] sm:$0xff] }
  0x45   : > { %5449 = vmatpush1.bf16.msra.mxu0 %v5448_v35  ;;  %5390 = vmatprep.subr.bf16.mxu1 %v8555_v3  ;;  %v5463_v35 = vpack.c.bf16 %v5060_v23, %v5059_v22  ;;  %v6733_v22 = vld [vmem:[%s6238_s9 + $0x1d8] sm:$0xff]  ;;  %v6742_v23 = vld [vmem:[%s6238_s9 + $0x1d0] sm:$0xff] }
  0x46   : > { %628 = vmatmul.mubr.f32.gmra.mrb[6].mxu1 %v213_v41  ;;  %5450 = vmatprep.subr.bf16.mxu0 %v8555_v3  ;;  %v5466_v41 = vpack.c.bf16 %v5062_v37, %v5061_v36  ;;  %v6779_v36 = vld [vmem:[%s6238_s9 + $0x200] sm:$0xff]  ;;  %v6782_v37 = vld [vmem:[%s6238_s9 + $0x218] sm:$0xff] }
  0x47   : > { %2216 = vmatmul.mubr.f32.gmra.mrb[6].mxu0 %v6447_v42  ;;  %4427 = vmatprep.mubr.msk.f32.mxu1 %vm355_vm0, %v216_v43  ;;  %v5064_v43 = vld [vmem:[%s8552_s1 + $0x278] sm:$0xff] }
  0x48   : > { %4855 = vmatprep.mubr.msk.f32.mxu0 %vm355_vm0, %v6451_v46  ;;  %5392 = vmatpush1.bf16.msra.mxu1 %v5391_v45  ;;  %v6586_v45 = vld [vmem:[%s6238_s9 + $0x128] sm:$0xff] }
  0x49   : > { %5452 = vmatpush1.bf16.msra.mxu0 %v5451_v47  ;;  %5393 = vmatprep.subr.bf16.mxu1 %v8555_v3 }
  0x4a   : > { %633 = vmatmul.mubr.f32.gmra.mrb[8].mxu1 %v215_v53  ;;  %5453 = vmatprep.subr.bf16.mxu0 %v8555_v3  ;;  %v6651_v53 = vld [vmem:[%s6238_s9 + $0x160] sm:$0xff] }
  0x4b   : > { %2221 = vmatmul.mubr.f32.gmra.mrb[8].mxu0 %v6473_v54  ;;  %4428 = vmatprep.mubr.msk.f32.mxu1 %vm355_vm0, %v218_v55  ;;  %v5403_v55 = vpack.c.bf16 %v4632_v52, %v4631_v51  ;;  %v4635_v51 = vld [vmem:[%s8552_s1 + $0x130] sm:$0xff]  ;;  %v4636_v52 = vld [vmem:[%s8552_s1 + $0x138] sm:$0xff] }
  0x4c   : > { %4856 = vmatprep.mubr.msk.f32.mxu0 %vm355_vm0, %v6477_v58  ;;  %5395 = vmatpush1.bf16.msra.mxu1 %v5394_v57  ;;  %v6654_v57 = vld [vmem:[%s6238_s9 + $0x178] sm:$0xff] }
  0x4d   : > { %5455 = vmatpush1.bf16.msra.mxu0 %v5454_v59  ;;  %5396 = vmatprep.subr.bf16.mxu1 %v8555_v3  ;;  %v6663_v59 = vld [vmem:[%s6238_s9 + $0x170] sm:$0xff] }
  0x4e   : > { %638 = vmatmul.mubr.f32.gmra.mrb[10].mxu1 %v217_v1  ;;  %5456 = vmatprep.subr.bf16.mxu0 %v8555_v3  ;;  %v6691_v1 = vld [vmem:[%s6238_s9 + $0x1a8] sm:$0xff] }
  0x4f   : > { %2226 = vmatmul.mubr.f32.gmra.mrb[10].mxu0 %v6499_v2  ;;  %4429 = vmatprep.mubr.msk.f32.mxu1 %vm355_vm0, %v220_v4  ;;  %v6700_v4 = vld [vmem:[%s6238_s9 + $0x1a0] sm:$0xff] }
  0x50   : > { %4857 = vmatprep.mubr.msk.f32.mxu0 %vm355_vm0, %v6503_v7  ;;  %5398 = vmatpush1.bf16.msra.mxu1 %v5397_v5  ;;  %v6703_v5 = vld [vmem:[%s6238_s9 + $0x1b8] sm:$0xff] }
  0x51   : > { %5458 = vmatpush1.bf16.msra.mxu0 %v5457_v10  ;;  %5399 = vmatprep.subr.bf16.mxu1 %v8555_v3  ;;  %v6712_v10 = vld [vmem:[%s6238_s9 + $0x1b0] sm:$0xff] }
  0x52   : > { %643 = vmatmul.mubr.f32.gmra.mrb[12].mxu1 %v219_v14  ;;  %5459 = vmatprep.subr.bf16.mxu0 %v8555_v3  ;;  %v4634_v14 = vld [vmem:[%s8552_s1 + $0x128] sm:$0xff] }
  0x53   : > { %2231 = vmatmul.mubr.f32.gmra.mrb[12].mxu0 %v6519_v15  ;;  %4430 = vmatprep.mubr.msk.f32.mxu1 %vm355_vm0, %v222_v16  ;;  %v6730_v16 = vld [vmem:[%s6238_s9 + $0x1c0] sm:$0xff] }
  0x54   : > { %4858 = vmatprep.mubr.msk.f32.mxu0 %vm355_vm0, %v6523_v19  ;;  %5401 = vmatpush1.bf16.msra.mxu1 %v5400_v31  ;;  %v6767_v31 = vld [vmem:[%s6238_s9 + $0x1f0] sm:$0xff] }
  0x55   : > { %5461 = vmatpush1.bf16.msra.mxu0 %v5460_v20  ;;  %5402 = vmatprep.subr.bf16.mxu1 %v8555_v3  ;;  %v5406_v20 = vpack.c.bf16 %v4634_v14, %v4633_v13  ;;  %v6821_v13 = vld [vmem:[%s6238_s9 + $0x230] sm:$0xff]  ;;  %v6824_v14 = vld [vmem:[%s6238_s9 + $0x248] sm:$0xff] }
  0x56   : > { %648 = vmatmul.mubr.f32.gmra.mrb[14].mxu1 %v221_v25  ;;  %5462 = vmatprep.subr.bf16.mxu0 %v8555_v3  ;;  %v6745_v25 = vld [vmem:[%s6238_s9 + $0x1e8] sm:$0xff] }
  0x57   : > { %2236 = vmatmul.mubr.f32.gmra.mrb[14].mxu0 %v6545_v28  ;;  %4431 = vmatprep.mubr.msk.f32.mxu1 %vm355_vm0, %v6259_v30  ;;  %v5063_v30 = vld [vmem:[%s8552_s1 + $0x270] sm:$0xff] }
  0x58   : > { %4859 = vmatprep.mubr.msk.f32.mxu0 %vm355_vm0, %v6548_v33  ;;  %v5469_v47 = vpack.c.bf16 %v5064_v43, %v5063_v30  ;;  %5404 = vmatpush1.bf16.msra.mxu1 %v5403_v55  ;;  %v6794_v30 = vld [vmem:[%s6238_s9 + $0x228] sm:$0xff]  ;;  %v6803_v43 = vld [vmem:[%s6238_s9 + $0x220] sm:$0xff]  ;;  %v5409_v55 = vpack.c.bf16 %v4636_v52, %v4635_v51  ;;  %v6837_v51 = vld [vmem:[%s6238_s9 + $0x258] sm:$0xff] }
  0x59   : > { %5464 = vmatpush1.bf16.msra.mxu0 %v5463_v35  ;;  %5405 = vmatprep.subr.bf16.mxu1 %v8555_v3  ;;  %v6770_v35 = vld [vmem:[%s6238_s9 + $0x208] sm:$0xff]  ;;  %v6846_v52 = vld [vmem:[%s6238_s9 + $0x250] sm:$0xff] }
  0x5a   : > { %653 = vmatmul.mubr.f32.gmra.mrb[16].mxu1 %v6370_v6  ;;  %5465 = vmatprep.subr.bf16.mxu0 %v8555_v3  ;;  %v6583_v6 = vld [vmem:[%s6238_s9 + $0x110] sm:$0xff] }
  0x5b   : > { %2241 = vmatmul.mubr.f32.gmra.mrb[16].mxu0 %v6563_v39  ;;  %4432 = vmatprep.mubr.msk.f32.mxu1 %vm355_vm0, %v6375_v9  ;;  %v6596_v9 = vld [vmem:[%s6238_s9 + $0x120] sm:$0xff] }
  0x5c   : > { %4860 = vmatprep.mubr.msk.f32.mxu0 %vm355_vm0, %v6566_v40  ;;  %5407 = vmatpush1.bf16.msra.mxu1 %v5406_v20  ;;  %v6834_v20 = vld [vmem:[%s6238_s9 + $0x240] sm:$0xff] }
  0x5d   : > { %5467 = vmatpush1.bf16.msra.mxu0 %v5466_v41  ;;  %5408 = vmatprep.subr.bf16.mxu1 %v8555_v3  ;;  %v6791_v41 = vld [vmem:[%s6238_s9 + $0x210] sm:$0xff] }
  0x5e   : > { %658 = vmatmul.mubr.f32.gmra.mrb[18].mxu1 %v6395_v17  ;;  %5468 = vmatprep.subr.bf16.mxu0 %v8555_v3  ;;  %v6609_v17 = vld [vmem:[%s6238_s9 + $0x130] sm:$0xff] }
  0x5f   : > { %2246 = vmatmul.mubr.f32.gmra.mrb[18].mxu0 %v6583_v6  ;;  %4433 = vmatprep.mubr.msk.f32.mxu1 %vm355_vm0, %v6399_v21  ;;  %v6612_v21 = vld [vmem:[%s6238_s9 + $0x148] sm:$0xff] }
  0x60   : > { %4861 = vmatprep.mubr.msk.f32.mxu0 %vm355_vm0, %v6586_v45  ;;  %5410 = vmatpush1.bf16.msra.mxu1 %v5409_v55  ;;  %v6849_v55 = vld [vmem:[%s6238_s9 + $0x268] sm:$0xff] }
  0x61   : > { %5470 = vmatpush1.bf16.msra.mxu0 %v5469_v47  ;;  %v6806_v47 = vld [vmem:[%s6238_s9 + $0x238] sm:$0xff]  ;;  %5501 = vmatprep.subr.bf16.mxu1 %v8555_v3 }
  0x62   : > { %663 = vmatmul.mubr.f32.gmra.mrb[20].mxu1 %v6421_v29  ;;  %5471 = vmatprep.subr.bf16.mxu0 %v8555_v3  ;;  %v6621_v29 = vld [vmem:[%s6238_s9 + $0x140] sm:$0xff] }
  0x63   : > { %2251 = vmatmul.mubr.f32.gmra.mrb[20].mxu0 %v6596_v9  ;;  %4434 = vmatprep.mubr.msk.f32.mxu1 %vm355_vm0, %v6425_v34  ;;  %v6624_v34 = vld [vmem:[%s6238_s9 + $0x158] sm:$0xff]  ;;  %v6858_v3 = vld [vmem:[%s6238_s9 + $0x260] sm:$0xff] }
  0x64   : > { %4862 = vmatprep.mubr.msk.f32.mxu0 %vm355_vm0, %v6599_v48 }
  0x66   : > { %668 = vmatmul.mubr.f32.gmra.mrb[22].mxu1 %v6447_v42  ;;  %v6633_v42 = vld [vmem:[%s6238_s9 + $0x150] sm:$0xff] }
  0x67   : > { %2256 = vmatmul.mubr.f32.gmra.mrb[22].mxu0 %v6609_v17  ;;  %4435 = vmatprep.mubr.msk.f32.mxu1 %vm355_vm0, %v6451_v46 }
  0x68   : > { %4863 = vmatprep.mubr.msk.f32.mxu0 %vm355_vm0, %v6612_v21 }
  0x6a   : > { %673 = vmatmul.mubr.f32.gmra.mrb[24].mxu1 %v6473_v54 }
  0x6b   : > { %2261 = vmatmul.mubr.f32.gmra.mrb[24].mxu0 %v6621_v29  ;;  %4436 = vmatprep.mubr.msk.f32.mxu1 %vm355_vm0, %v6477_v58 }
  0x6c   : > { %4864 = vmatprep.mubr.msk.f32.mxu0 %vm355_vm0, %v6624_v34 }
  0x6e   : > { %678 = vmatmul.mubr.f32.gmra.mrb[26].mxu1 %v6499_v2 }
  0x6f   : > { %2266 = vmatmul.mubr.f32.gmra.mrb[26].mxu0 %v6633_v42  ;;  %4437 = vmatprep.mubr.msk.f32.mxu1 %vm355_vm0, %v6503_v7 }
  0x70   : > { %4865 = vmatprep.mubr.msk.f32.mxu0 %vm355_vm0, %v6636_v49 }
  0x72   : > { %683 = vmatmul.mubr.f32.gmra.mrb[28].mxu1 %v6519_v15 }
  0x73   : > { %2271 = vmatmul.mubr.f32.gmra.mrb[28].mxu0 %v6651_v53  ;;  %4438 = vmatprep.mubr.msk.f32.mxu1 %vm355_vm0, %v6523_v19 }
  0x74   : > { %4866 = vmatprep.mubr.msk.f32.mxu0 %vm355_vm0, %v6654_v57 }
  0x76   : > { %688 = vmatmul.mubr.f32.gmra.mrb[30].mxu1 %v6545_v28 }
  0x77   : > { %2276 = vmatmul.mubr.f32.gmra.mrb[30].mxu0 %v6663_v59  ;;  %4439 = vmatprep.mubr.msk.f32.mxu1 %vm355_vm0, %v6548_v33 }
  0x78   : > { %4867 = vmatprep.mubr.msk.f32.mxu0 %vm355_vm0, %v6666_v60 }
  0x7a   : > { %693 = vmatmul.mubr.f32.gmra.mrb[32].mxu1 %v6563_v39 }
  0x7b   : > { %2281 = vmatmul.mubr.f32.gmra.mrb[32].mxu0 %v6676_v61  ;;  %4440 = vmatprep.mubr.msk.f32.mxu1 %vm355_vm0, %v6566_v40 }
  0x7c   : > { %4868 = vmatprep.mubr.msk.f32.mxu0 %vm355_vm0, %v6679_v63 }
  0x7e   : > { %698 = vmatmul.mubr.f32.gmra.mrb[34].mxu1 %v6583_v6 }
  0x7f   : > { %2286 = vmatmul.mubr.f32.gmra.mrb[34].mxu0 %v6688_v0  ;;  %4441 = vmatprep.mubr.msk.f32.mxu1 %vm355_vm0, %v6586_v45 }
  0x80   : > { %4869 = vmatprep.mubr.msk.f32.mxu0 %vm355_vm0, %v6691_v1 }
  0x82   : > { %703 = vmatmul.mubr.f32.gmra.mrb[36].mxu1 %v6596_v9 }
  0x83   : > { %2291 = vmatmul.mubr.f32.gmra.mrb[36].mxu0 %v6700_v4  ;;  %4442 = vmatprep.mubr.msk.f32.mxu1 %vm355_vm0, %v6599_v48 }
  0x84   : > { %4870 = vmatprep.mubr.msk.f32.mxu0 %vm355_vm0, %v6703_v5 }
  0x86   : > { %708 = vmatmul.mubr.f32.gmra.mrb[38].mxu1 %v6609_v17 }
  0x87   : > { %2296 = vmatmul.mubr.f32.gmra.mrb[38].mxu0 %v6712_v10  ;;  %4443 = vmatprep.mubr.msk.f32.mxu1 %vm355_vm0, %v6612_v21 }
  0x88   : > { %4871 = vmatprep.mubr.msk.f32.mxu0 %vm355_vm0, %v6715_v11 }
  0x8a   : > { %713 = vmatmul.mubr.f32.gmra.mrb[40].mxu1 %v6621_v29 }
  0x8b   : > { %2301 = vmatmul.mubr.f32.gmra.mrb[40].mxu0 %v6730_v16  ;;  %4444 = vmatprep.mubr.msk.f32.mxu1 %vm355_vm0, %v6624_v34 }
  0x8c   : > { %4872 = vmatprep.mubr.msk.f32.mxu0 %vm355_vm0, %v6733_v22 }
  0x8e   : > { %718 = vmatmul.mubr.f32.gmra.mrb[42].mxu1 %v6633_v42 }
  0x8f   : > { %2306 = vmatmul.mubr.f32.gmra.mrb[42].mxu0 %v6742_v23  ;;  %4445 = vmatprep.mubr.msk.f32.mxu1 %vm355_vm0, %v6636_v49 }
  0x90   : > { %4873 = vmatprep.mubr.msk.f32.mxu0 %vm355_vm0, %v6745_v25 }
  0x92   : > { %723 = vmatmul.mubr.f32.gmra.mrb[44].mxu1 %v6651_v53 }
  0x93   : > { %2311 = vmatmul.mubr.f32.gmra.mrb[44].mxu0 %v6755_v26  ;;  %4446 = vmatprep.mubr.msk.f32.mxu1 %vm355_vm0, %v6654_v57 }
  0x94   : > { %4874 = vmatprep.mubr.msk.f32.mxu0 %vm355_vm0, %v6758_v27 }
  0x96   : > { %728 = vmatmul.mubr.f32.gmra.mrb[46].mxu1 %v6663_v59 }
  0x97   : > { %2316 = vmatmul.mubr.f32.gmra.mrb[46].mxu0 %v6767_v31  ;;  %4447 = vmatprep.mubr.msk.f32.mxu1 %vm355_vm0, %v6666_v60 }
  0x98   : > { %4875 = vmatprep.mubr.msk.f32.mxu0 %vm355_vm0, %v6770_v35 }
  0x9a   : > { %733 = vmatmul.mubr.f32.gmra.mrb[48].mxu1 %v6676_v61 }
  0x9b   : > { %2321 = vmatmul.mubr.f32.gmra.mrb[48].mxu0 %v6779_v36  ;;  %4448 = vmatprep.mubr.msk.f32.mxu1 %vm355_vm0, %v6679_v63 }
  0x9c   : > { %4876 = vmatprep.mubr.msk.f32.mxu0 %vm355_vm0, %v6782_v37 }
  0x9e   : > { %738 = vmatmul.mubr.f32.gmra.mrb[50].mxu1 %v6688_v0 }
  0x9f   : > { %2326 = vmatmul.mubr.f32.gmra.mrb[50].mxu0 %v6791_v41  ;;  %4449 = vmatprep.mubr.msk.f32.mxu1 %vm355_vm0, %v6691_v1 }
  0xa0   : > { %4877 = vmatprep.mubr.msk.f32.mxu0 %vm355_vm0, %v6794_v30 }
  0xa2   : > { %743 = vmatmul.mubr.f32.gmra.mrb[52].mxu1 %v6700_v4 }
  0xa3   : > { %2331 = vmatmul.mubr.f32.gmra.mrb[52].mxu0 %v6803_v43  ;;  %4450 = vmatprep.mubr.msk.f32.mxu1 %vm355_vm0, %v6703_v5 }
  0xa4   : > { %4878 = vmatprep.mubr.msk.f32.mxu0 %vm355_vm0, %v6806_v47 }
  0xa6   : > { %748 = vmatmul.mubr.f32.gmra.mrb[54].mxu1 %v6712_v10 }
  0xa7   : > { %2336 = vmatmul.mubr.f32.gmra.mrb[54].mxu0 %v6821_v13  ;;  %4451 = vmatprep.mubr.msk.f32.mxu1 %vm355_vm0, %v6715_v11 }
  0xa8   : > { %4879 = vmatprep.mubr.msk.f32.mxu0 %vm355_vm0, %v6824_v14 }
  0xaa   : > { %753 = vmatmul.mubr.f32.gmra.mrb[56].mxu1 %v6730_v16 }
  0xab   : > { %2341 = vmatmul.mubr.f32.gmra.mrb[56].mxu0 %v6834_v20  ;;  %4452 = vmatprep.mubr.msk.f32.mxu1 %vm355_vm0, %v6733_v22 }
  0xac   : > { %4880 = vmatprep.mubr.msk.f32.mxu0 %vm355_vm0, %v6837_v51 }
  0xae   : > { %758 = vmatmul.mubr.f32.gmra.mrb[58].mxu1 %v6742_v23 }
  0xaf   : > { %2346 = vmatmul.mubr.f32.gmra.mrb[58].mxu0 %v6846_v52  ;;  %4453 = vmatprep.mubr.msk.f32.mxu1 %vm355_vm0, %v6745_v25 }
  0xb0   : > { %4881 = vmatprep.mubr.msk.f32.mxu0 %vm355_vm0, %v6849_v55 }
  0xb2   : > { %763 = vmatmul.mubr.f32.gmra.mrb[60].mxu1 %v6755_v26 }
  0xb3   : > { %2351 = vmatmul.mubr.f32.gmra.mrb[60].mxu0 %v6858_v3  ;;  %4454 = vmatprep.mubr.msk.f32.mxu1 %vm355_vm0, %v6758_v27 }
  0xb4   : > { %4882 = vmatprep.mubr.msk.f32.mxu0 %vm355_vm0, %v6861_v62 }
  0xb6   : > { %768 = vmatmul.mubr.f32.gmra.mrb[62].mxu1 %v6767_v31 }
  0xb7   : > { %2356 = vmatmul.mubr.f32.gmra.mrb[62].mxu0 %v6870_v56  ;;  %4455 = vmatprep.mubr.msk.f32.mxu1 %vm355_vm0, %v6770_v35 }
  0xb8   : > { %5065 = vmatprep.mubr.msk.f32.mxu0 %vm355_vm0, %v6451_v46  ;;  %v5263_v46 = vld [vmem:[%s8552_s1 + $0x2a0] sm:$0xff] }
  0xb9   : > { %v5478_v24 = vpack.c.bf16 %v5264_v18, %v5263_v46  ;;  %v7097_v46 = vld [vmem:[%s6238_s9 + $0x328] sm:$0xff] }
  0xba   : > { %773 = vmatmul.mubr.f32.gmra.mrb[64].mxu1 %v6779_v36 }
  0xbb   : > { %2995 = vmatmul.mubr.f32.vlgmr.msra.gmra.mrb[0].mxu0 %v6473_v54  ;;  %4456 = vmatprep.mubr.msk.f32.mxu1 %vm355_vm0, %v6782_v37  ;;  %v5267_v54 = vld [vmem:[%s8552_s1 + $0x2c0] sm:$0xff] }
  0xbc   : > { %5066 = vmatprep.mubr.msk.f32.mxu0 %vm355_vm0, %v6477_v58  ;;  %5473 = vmatpush1.bf16.msra.mxu0 %v5472_v38  ;;  %v5266_v38 = vld [vmem:[%s8552_s1 + $0x2b8] sm:$0xff]  ;;  %v5268_v58 = vld [vmem:[%s8552_s1 + $0x2c8] sm:$0xff] }
  0xbd   : > { %5474 = vmatprep.subr.bf16.mxu0 %v8573_v50  ;;  %v5481_v18 = vpack.c.bf16 %v5266_v38, %v5265_v32  ;;  %v7158_v32 = vld [vmem:[%s6238_s9 + $0x360] sm:$0xff]  ;;  %v7176_v38 = vld [vmem:[%s6238_s9 + $0x388] sm:$0xff] }
  0xbe   : > { %778 = vmatmul.mubr.f32.gmra.mrb[66].mxu1 %v6791_v41 }
  0xbf   : > { %3000 = vmatmul.mubr.f32.gmra.mrb[2].mxu0 %v6499_v2  ;;  %4457 = vmatprep.mubr.msk.f32.mxu1 %vm355_vm0, %v6794_v30  ;;  %v5484_v2 = vpack.c.bf16 %v5268_v58, %v5267_v54  ;;  %v7237_v54 = vld [vmem:[%s6238_s9 + $0x3c0] sm:$0xff]  ;;  %v7242_v58 = vld [vmem:[%s6238_s9 + $0x3d8] sm:$0xff] }
  0xc0   : > { %5067 = vmatprep.mubr.msk.f32.mxu0 %vm355_vm0, %v6503_v7  ;;  %5476 = vmatpush1.bf16.msra.mxu0 %v5475_v44  ;;  %v5269_v7 = vld [vmem:[%s8552_s1 + $0x2d0] sm:$0xff]  ;;  %v7072_v44 = vld [vmem:[%s6238_s9 + $0x308] sm:$0xff] }
  0xc1   : > { %5477 = vmatprep.subr.bf16.mxu0 %v8573_v50 }
  0xc2   : > { %783 = vmatmul.mubr.f32.gmra.mrb[68].mxu1 %v6803_v43 }
  0xc3   : > { %3005 = vmatmul.mubr.f32.gmra.mrb[4].mxu0 %v6519_v15  ;;  %4458 = vmatprep.mubr.msk.f32.mxu1 %vm355_vm0, %v6806_v47  ;;  %v5270_v15 = vld [vmem:[%s8552_s1 + $0x2d8] sm:$0xff] }
  0xc4   : > { %5068 = vmatprep.mubr.msk.f32.mxu0 %vm355_vm0, %v6523_v19  ;;  %5479 = vmatpush1.bf16.msra.mxu0 %v5478_v24  ;;  %v5487_v19 = vpack.c.bf16 %v5270_v15, %v5269_v7  ;;  %v7151_v24 = vld [vmem:[%s6238_s9 + $0x368] sm:$0xff]  ;;  %v7266_v7 = vld [vmem:[%s6238_s9 + $0x3f8] sm:$0xff]  ;;  %v7273_v15 = vld [vmem:[%s6238_s9 + $0x3f0] sm:$0xff] }
  0xc5   : > { %5480 = vmatprep.subr.bf16.mxu0 %v8573_v50 }
  0xc6   : > { %788 = vmatmul.mubr.f32.gmra.mrb[70].mxu1 %v6821_v13 }
  0xc7   : > { %3010 = vmatmul.mubr.f32.gmra.mrb[6].mxu0 %v6545_v28  ;;  %4459 = vmatprep.mubr.msk.f32.mxu1 %vm355_vm0, %v6824_v14  ;;  %v6963_v28 = vld [vmem:[%s6238_s9 + $0x288] sm:$0xff] }
  0xc8   : > { %5069 = vmatprep.mubr.msk.f32.mxu0 %vm355_vm0, %v6548_v33  ;;  %5482 = vmatpush1.bf16.msra.mxu0 %v5481_v18  ;;  %v6970_v33 = vld [vmem:[%s6238_s9 + $0x280] sm:$0xff]  ;;  %v7230_v18 = vld [vmem:[%s6238_s9 + $0x3c8] sm:$0xff] }
  0xc9   : > { %5483 = vmatprep.subr.bf16.mxu0 %v8573_v50 }
  0xca   : > { %793 = vmatmul.mubr.f32.gmra.mrb[72].mxu1 %v6834_v20 }
  0xcb   : > { %3015 = vmatmul.mubr.f32.gmra.mrb[8].mxu0 %v6563_v39  ;;  %4460 = vmatprep.mubr.msk.f32.mxu1 %vm355_vm0, %v6837_v51  ;;  %v5271_v39 = vld [vmem:[%s8552_s1 + $0x2e0] sm:$0xff] }
  0xcc   : > { %5070 = vmatprep.mubr.msk.f32.mxu0 %vm355_vm0, %v6566_v40  ;;  %5485 = vmatpush1.bf16.msra.mxu0 %v5484_v2  ;;  %v5272_v40 = vld [vmem:[%s8552_s1 + $0x2e8] sm:$0xff]  ;;  %v7261_v2 = vld [vmem:[%s6238_s9 + $0x3e0] sm:$0xff] }
  0xcd   : > { %5486 = vmatprep.subr.bf16.mxu0 %v8573_v50 }
  0xce   : > { %798 = vmatmul.mubr.f32.gmra.mrb[74].mxu1 %v6846_v52 }
  0xcf   : > { %3020 = vmatmul.mubr.f32.gmra.mrb[10].mxu0 %v6583_v6  ;;  %4461 = vmatprep.mubr.msk.f32.mxu1 %vm355_vm0, %v6849_v55  ;;  %v6981_v6 = vld [vmem:[%s6238_s9 + $0x298] sm:$0xff] }
  0xd0   : > { %5071 = vmatprep.mubr.msk.f32.mxu0 %vm355_vm0, %v6586_v45  ;;  %5488 = vmatpush1.bf16.msra.mxu0 %v5487_v19  ;;  %v5490_v45 = vpack.c.bf16 %v5272_v40, %v5271_v39  ;;  %v4490_v19 = vld [vmem:[%s6238_s9 + $0x48] sm:$0xff]  ;;  %v4491_v39 = vld [vmem:[%s6238_s9 + $0x50] sm:$0xff] }
  0xd1   : > { %5489 = vmatprep.subr.bf16.mxu0 %v8573_v50  ;;  %v4494_v40 = vld [vmem:[%s6238_s9 + $0x68] sm:$0xff] }
  0xd2   : > { %803 = vmatmul.mubr.f32.gmra.mrb[76].mxu1 %v6858_v3 }
  0xd3   : > { %3025 = vmatmul.mubr.f32.gmra.mrb[12].mxu0 %v6596_v9  ;;  %4462 = vmatprep.mubr.msk.f32.mxu1 %vm355_vm0, %v6861_v62  ;;  %v6988_v9 = vld [vmem:[%s6238_s9 + $0x290] sm:$0xff] }
  0xd4   : > { %5072 = vmatprep.mubr.msk.f32.mxu0 %vm355_vm0, %v6599_v48  ;;  %5491 = vmatpush1.bf16.msra.mxu0 %v5490_v45  ;;  %v6993_v48 = vld [vmem:[%s6238_s9 + $0x2a8] sm:$0xff]  ;;  %v4495_v45 = vld [vmem:[%s6238_s9 + $0x70] sm:$0xff] }
  0xd5   : > { %5492 = vmatprep.subr.bf16.mxu0 %v8573_v50 }
  0xd6   : > { %808 = vmatmul.mubr.f32.gmra.mrb[78].mxu1 %v6870_v56 }
  0xd7   : > { %3030 = vmatmul.mubr.f32.gmra.mrb[14].mxu0 %v6609_v17  ;;  %4463 = vmatprep.mubr.msk.f32.mxu1 %vm355_vm0, %v6963_v28  ;;  %v7001_v17 = vld [vmem:[%s6238_s9 + $0x2a0] sm:$0xff] }
  0xd8   : > { %5073 = vmatprep.mubr.msk.f32.mxu0 %vm355_vm0, %v6612_v21  ;;  %v7006_v21 = vld [vmem:[%s6238_s9 + $0x2b8] sm:$0xff] }
  0xda   : > { %813 = vmatmul.mubr.f32.gmra.mrb[80].mxu1 %v6970_v33 }
  0xdb   : > { %3035 = vmatmul.mubr.f32.gmra.mrb[16].mxu0 %v6621_v29  ;;  %4464 = vmatprep.mubr.msk.f32.mxu1 %vm355_vm0, %v6981_v6  ;;  %v7013_v29 = vld [vmem:[%s6238_s9 + $0x2b0] sm:$0xff] }
  0xdc   : > { %5074 = vmatprep.mubr.msk.f32.mxu0 %vm355_vm0, %v6624_v34  ;;  %v7018_v34 = vld [vmem:[%s6238_s9 + $0x2c8] sm:$0xff] }
  0xde   : > { %818 = vmatmul.mubr.f32.gmra.mrb[82].mxu1 %v6988_v9 }
  0xdf   : > { %3040 = vmatmul.mubr.f32.gmra.mrb[18].mxu0 %v6633_v42  ;;  %4465 = vmatprep.mubr.msk.f32.mxu1 %vm355_vm0, %v6993_v48  ;;  %v7025_v42 = vld [vmem:[%s6238_s9 + $0x2c0] sm:$0xff] }
  0xe0   : > { %5075 = vmatprep.mubr.msk.f32.mxu0 %vm355_vm0, %v6636_v49  ;;  %v7030_v49 = vld [vmem:[%s6238_s9 + $0x2d8] sm:$0xff] }
  0xe2   : > { %823 = vmatmul.mubr.f32.gmra.mrb[84].mxu1 %v7001_v17 }
  0xe3   : > { %3045 = vmatmul.mubr.f32.gmra.mrb[20].mxu0 %v6651_v53  ;;  %4466 = vmatprep.mubr.msk.f32.mxu1 %vm355_vm0, %v7006_v21  ;;  %v7037_v53 = vld [vmem:[%s6238_s9 + $0x2d0] sm:$0xff] }
  0xe4   : > { %5076 = vmatprep.mubr.msk.f32.mxu0 %vm355_vm0, %v6654_v57  ;;  %v7042_v57 = vld [vmem:[%s6238_s9 + $0x2e8] sm:$0xff] }
  0xe6   : > { %828 = vmatmul.mubr.f32.gmra.mrb[86].mxu1 %v7013_v29 }
  0xe7   : > { %3050 = vmatmul.mubr.f32.gmra.mrb[22].mxu0 %v6663_v59  ;;  %4467 = vmatprep.mubr.msk.f32.mxu1 %vm355_vm0, %v7018_v34  ;;  %v7049_v59 = vld [vmem:[%s6238_s9 + $0x2e0] sm:$0xff] }
  0xe8   : > { %5077 = vmatprep.mubr.msk.f32.mxu0 %vm355_vm0, %v6666_v60  ;;  %v7054_v60 = vld [vmem:[%s6238_s9 + $0x2f8] sm:$0xff] }
  0xea   : > { %833 = vmatmul.mubr.f32.gmra.mrb[88].mxu1 %v7025_v42 }
  0xeb   : > { %3055 = vmatmul.mubr.f32.gmra.mrb[24].mxu0 %v6676_v61  ;;  %4468 = vmatprep.mubr.msk.f32.mxu1 %vm355_vm0, %v7030_v49  ;;  %v5273_v61 = vld [vmem:[%s8552_s1 + $0x2f0] sm:$0xff] }
  0xec   : > { %5078 = vmatprep.mubr.msk.f32.mxu0 %vm355_vm0, %v6679_v63  ;;  %v5274_v63 = vld [vmem:[%s8552_s1 + $0x2f8] sm:$0xff] }
  0xee   : > { %838 = vmatmul.mubr.f32.gmra.mrb[90].mxu1 %v7037_v53 }
  0xef   : > { %3060 = vmatmul.mubr.f32.gmra.mrb[26].mxu0 %v6688_v0  ;;  %4469 = vmatprep.mubr.msk.f32.mxu1 %vm355_vm0, %v7042_v57  ;;  %v5493_v0 = vpack.c.bf16 %v5274_v63, %v5273_v61  ;;  %v8578_v61 = vld [vmem:[#allocation6_spill] sm:$0xff] }
  0xf0   : > { %5079 = vmatprep.mubr.msk.f32.mxu0 %vm355_vm0, %v6691_v1  ;;  %v7067_v1 = vld [vmem:[%s6238_s9 + $0x2f0] sm:$0xff]  ;;  %v4505_v63 = vld [vmem:[%s6238_s9 + $0xc0] sm:$0xff] }
  0xf1   : > { %5494 = vmatpush1.bf16.msra.mxu0 %v5493_v0  ;;  %v4508_v0 = vld [vmem:[%s6238_s9 + $0xd8] sm:$0xff] }
  0xf2   : > { %843 = vmatmul.mubr.f32.gmra.mrb[92].mxu1 %v7049_v59  ;;  %5495 = vmatprep.subr.bf16.mxu0 %v8573_v50 }
  0xf3   : > { %3065 = vmatmul.mubr.f32.gmra.mrb[28].mxu0 %v6700_v4  ;;  %4470 = vmatprep.mubr.msk.f32.mxu1 %vm355_vm0, %v7054_v60  ;;  %v7080_v4 = vld [vmem:[%s6238_s9 + $0x300] sm:$0xff] }
  0xf4   : > { %5080 = vmatprep.mubr.msk.f32.mxu0 %vm355_vm0, %v6703_v5  ;;  %v7085_v5 = vld [vmem:[%s6238_s9 + $0x318] sm:$0xff] }
  0xf6   : > { %848 = vmatmul.mubr.f32.gmra.mrb[94].mxu1 %v7067_v1 }
  0xf7   : > { %3070 = vmatmul.mubr.f32.gmra.mrb[30].mxu0 %v6712_v10  ;;  %4471 = vmatprep.mubr.msk.f32.mxu1 %vm355_vm0, %v7072_v44  ;;  %v7092_v10 = vld [vmem:[%s6238_s9 + $0x310] sm:$0xff] }
  0xf8   : > { %5081 = vmatprep.mubr.msk.f32.mxu0 %vm355_vm0, %v6715_v11  ;;  %v7104_v11 = vld [vmem:[%s6238_s9 + $0x320] sm:$0xff] }
  0xfa   : > { %853 = vmatmul.mubr.f32.gmra.mrb[96].mxu1 %v7080_v4 }
  0xfb   : > { %3075 = vmatmul.mubr.f32.gmra.mrb[32].mxu0 %v6730_v16  ;;  %4472 = vmatprep.mubr.msk.f32.mxu1 %vm355_vm0, %v7085_v5  ;;  %v7109_v16 = vld [vmem:[%s6238_s9 + $0x338] sm:$0xff] }
  0xfc   : > { %5082 = vmatprep.mubr.msk.f32.mxu0 %vm355_vm0, %v6733_v22  ;;  %v7116_v22 = vld [vmem:[%s6238_s9 + $0x330] sm:$0xff] }
  0xfe   : > { %858 = vmatmul.mubr.f32.gmra.mrb[98].mxu1 %v7092_v10 }
  0xff   : > { %3080 = vmatmul.mubr.f32.gmra.mrb[34].mxu0 %v6742_v23  ;;  %4473 = vmatprep.mubr.msk.f32.mxu1 %vm355_vm0, %v7097_v46  ;;  %v7121_v23 = vld [vmem:[%s6238_s9 + $0x348] sm:$0xff] }
 0x100   : > { %5083 = vmatprep.mubr.msk.f32.mxu0 %vm355_vm0, %v6745_v25  ;;  %v7128_v25 = vld [vmem:[%s6238_s9 + $0x340] sm:$0xff] }
 0x102   : > { %863 = vmatmul.mubr.f32.gmra.mrb[100].mxu1 %v7104_v11 }
 0x103   : > { %3085 = vmatmul.mubr.f32.gmra.mrb[36].mxu0 %v6755_v26  ;;  %4474 = vmatprep.mubr.msk.f32.mxu1 %vm355_vm0, %v7109_v16  ;;  %v7133_v26 = vld [vmem:[%s6238_s9 + $0x358] sm:$0xff] }
 0x104   : > { %5084 = vmatprep.mubr.msk.f32.mxu0 %vm355_vm0, %v6758_v27  ;;  %v7140_v27 = vld [vmem:[%s6238_s9 + $0x350] sm:$0xff] }
 0x106   : > { %868 = vmatmul.mubr.f32.gmra.mrb[102].mxu1 %v7116_v22 }
 0x107   : > { %3090 = vmatmul.mubr.f32.gmra.mrb[38].mxu0 %v6767_v31  ;;  %4475 = vmatprep.mubr.msk.f32.mxu1 %vm355_vm0, %v7121_v23  ;;  %v5275_v31 = vld [vmem:[%s8552_s1 + $0x300] sm:$0xff] }
 0x108   : > { %5085 = vmatprep.mubr.msk.f32.mxu0 %vm355_vm0, %v6770_v35  ;;  %v5276_v35 = vld [vmem:[%s8552_s1 + $0x308] sm:$0xff] }
 0x10a   : > { %873 = vmatmul.mubr.f32.gmra.mrb[104].mxu1 %v7128_v25 }
 0x10b   : > { %3095 = vmatmul.mubr.f32.gmra.mrb[40].mxu0 %v6779_v36  ;;  %4476 = vmatprep.mubr.msk.f32.mxu1 %vm355_vm0, %v7133_v26  ;;  %v5496_v36 = vpack.c.bf16 %v5276_v35, %v5275_v31  ;;  %v7405_v31 = vld [vmem:[%s6238_s9 + $0x138] sm:$0xff]  ;;  %v7412_v35 = vld [vmem:[%s6238_s9 + $0x130] sm:$0xff] }
 0x10c   : > { %5086 = vmatprep.mubr.msk.f32.mxu0 %vm355_vm0, %v6782_v37  ;;  %v7163_v37 = vld [vmem:[%s6238_s9 + $0x378] sm:$0xff] }
 0x10d   : > { %5497 = vmatpush1.bf16.msra.mxu0 %v5496_v36  ;;  %v7424_v36 = vld [vmem:[%s6238_s9 + $0x140] sm:$0xff] }
 0x10e   : > { %878 = vmatmul.mubr.f32.gmra.mrb[106].mxu1 %v7140_v27  ;;  %5498 = vmatprep.subr.bf16.mxu0 %v8573_v50 }
 0x10f   : > { %3100 = vmatmul.mubr.f32.gmra.mrb[42].mxu0 %v6791_v41  ;;  %4477 = vmatprep.mubr.msk.f32.mxu1 %vm355_vm0, %v7151_v24  ;;  %v7171_v41 = vld [vmem:[%s6238_s9 + $0x370] sm:$0xff] }
 0x110   : > { %5087 = vmatprep.mubr.msk.f32.mxu0 %vm355_vm0, %v6794_v30  ;;  %v7183_v30 = vld [vmem:[%s6238_s9 + $0x380] sm:$0xff] }
 0x112   : > { %883 = vmatmul.mubr.f32.gmra.mrb[108].mxu1 %v7158_v32 }
 0x113   : > { %3105 = vmatmul.mubr.f32.gmra.mrb[44].mxu0 %v6803_v43  ;;  %4478 = vmatprep.mubr.msk.f32.mxu1 %vm355_vm0, %v7163_v37  ;;  %v7188_v43 = vld [vmem:[%s6238_s9 + $0x398] sm:$0xff] }
 0x114   : > { %5088 = vmatprep.mubr.msk.f32.mxu0 %vm355_vm0, %v6806_v47  ;;  %v7195_v47 = vld [vmem:[%s6238_s9 + $0x390] sm:$0xff] }
 0x116   : > { %888 = vmatmul.mubr.f32.gmra.mrb[110].mxu1 %v7171_v41 }
 0x117   : > { %3110 = vmatmul.mubr.f32.gmra.mrb[46].mxu0 %v6821_v13  ;;  %4479 = vmatprep.mubr.msk.f32.mxu1 %vm355_vm0, %v7176_v38  ;;  %v7200_v13 = vld [vmem:[%s6238_s9 + $0x3a8] sm:$0xff] }
 0x118   : > { %5089 = vmatprep.mubr.msk.f32.mxu0 %vm355_vm0, %v6824_v14  ;;  %v7207_v14 = vld [vmem:[%s6238_s9 + $0x3a0] sm:$0xff] }
 0x11a   : > { %893 = vmatmul.mubr.f32.gmra.mrb[112].mxu1 %v7183_v30 }
 0x11b   : > { %3115 = vmatmul.mubr.f32.gmra.mrb[48].mxu0 %v6834_v20  ;;  %4480 = vmatprep.mubr.msk.f32.mxu1 %vm355_vm0, %v7188_v43  ;;  %v7212_v20 = vld [vmem:[%s6238_s9 + $0x3b8] sm:$0xff] }
 0x11c   : > { %5090 = vmatprep.mubr.msk.f32.mxu0 %vm355_vm0, %v6837_v51  ;;  %v7219_v51 = vld [vmem:[%s6238_s9 + $0x3b0] sm:$0xff] }
 0x11e   : > { %898 = vmatmul.mubr.f32.gmra.mrb[114].mxu1 %v7195_v47 }
 0x11f   : > { %3120 = vmatmul.mubr.f32.gmra.mrb[50].mxu0 %v6846_v52  ;;  %4481 = vmatprep.mubr.msk.f32.mxu1 %vm355_vm0, %v7200_v13  ;;  %v5277_v52 = vld [vmem:[%s8552_s1 + $0x310] sm:$0xff] }
 0x120   : > { %5091 = vmatprep.mubr.msk.f32.mxu0 %vm355_vm0, %v6849_v55  ;;  %v5278_v55 = vld [vmem:[%s8552_s1 + $0x318] sm:$0xff] }
 0x122   : > { %903 = vmatmul.mubr.f32.gmra.mrb[116].mxu1 %v7207_v14 }
 0x123   : > { %3125 = vmatmul.mubr.f32.gmra.mrb[52].mxu0 %v6858_v3  ;;  %4482 = vmatprep.mubr.msk.f32.mxu1 %vm355_vm0, %v7212_v20  ;;  %v5499_v3 = vpack.c.bf16 %v5278_v55, %v5277_v52  ;;  %v7486_v52 = vld [vmem:[%s6238_s9 + $0x418] sm:$0xff]  ;;  %v7493_v55 = vld [vmem:[%s6238_s9 + $0x190] sm:$0xff] }
 0x124   : > { %5092 = vmatprep.mubr.msk.f32.mxu0 %vm355_vm0, %v6861_v62  ;;  %v7254_v62 = vld [vmem:[%s6238_s9 + $0x3e8] sm:$0xff] }
 0x125   : > { %5500 = vmatpush1.bf16.msra.mxu0 %v5499_v3  ;;  %v7501_v3 = vld [vmem:[%s6238_s9 + $0x1a8] sm:$0xff] }
 0x126   : > { %908 = vmatmul.mubr.f32.gmra.mrb[118].mxu1 %v7219_v51 }
 0x127   : > { %3130 = vmatmul.mubr.f32.gmra.mrb[54].mxu0 %v6870_v56  ;;  %4483 = vmatprep.mubr.msk.f32.mxu1 %vm355_vm0, %v7230_v18  ;;  %v7249_v56 = vld [vmem:[%s6238_s9 + $0x3d0] sm:$0xff] }
 0x128   : > { %5093 = vmatprep.mubr.msk.f32.mxu0 %vm355_vm0, %v6963_v28  ;;  %v4489_v28 = vld [vmem:[%s6238_s9 + $0x40] sm:$0xff] }
 0x12a   : > { %913 = vmatmul.mubr.f32.gmra.mrb[120].mxu1 %v7237_v54 }
 0x12b   : > { %3135 = vmatmul.mubr.f32.gmra.mrb[56].mxu0 %v6970_v33  ;;  %4484 = vmatprep.mubr.msk.f32.mxu1 %vm355_vm0, %v7242_v58  ;;  %v4492_v33 = vld [vmem:[%s6238_s9 + $0x58] sm:$0xff] }
 0x12c   : > { %5094 = vmatprep.mubr.msk.f32.mxu0 %vm355_vm0, %v6981_v6  ;;  %v4493_v6 = vld [vmem:[%s6238_s9 + $0x60] sm:$0xff] }
 0x12e   : > { %918 = vmatmul.mubr.f32.gmra.mrb[122].mxu1 %v7249_v56 }
 0x12f   : > { %3140 = vmatmul.mubr.f32.gmra.mrb[58].mxu0 %v6988_v9  ;;  %4485 = vmatprep.mubr.msk.f32.mxu1 %vm355_vm0, %v7254_v62  ;;  %v4498_v9 = vld [vmem:[%s6238_s9 + $0x88] sm:$0xff] }
 0x130   : > { %5095 = vmatprep.mubr.msk.f32.mxu0 %vm355_vm0, %v6993_v48  ;;  %v8574_v48 = vld [vmem:[#allocation2_spill] sm:$0xff] }
 0x132   : > { %923 = vmatmul.mubr.f32.gmra.mrb[124].mxu1 %v7261_v2 }
 0x133   : > { %3145 = vmatmul.mubr.f32.gmra.mrb[60].mxu0 %v7001_v17  ;;  %4486 = vmatprep.mubr.msk.f32.mxu1 %vm355_vm0, %v7266_v7  ;;  %v4500_v17 = vld [vmem:[%s6238_s9 + $0x98] sm:$0xff] }
 0x134   : > { %5096 = vmatprep.mubr.msk.f32.mxu0 %vm355_vm0, %v7006_v21  ;;  %v8575_v21 = vld [vmem:[#allocation3_spill] sm:$0xff] }
 0x136   : > { %928 = vmatmul.mubr.f32.gmra.mrb[126].mxu1 %v7273_v15 }
 0x137   : > { %3150 = vmatmul.mubr.f32.gmra.mrb[62].mxu0 %v7013_v29  ;;  %4637 = vmatprep.mubr.msk.f32.mxu1 %vm355_vm0, %v4490_v19  ;;  %v4499_v29 = vld [vmem:[%s6238_s9 + $0x90] sm:$0xff]  ;;  %v7537_v19 = vld [vmem:[%s6238_s9 + $0x1c8] sm:$0xff] }
 0x138   : > { %5097 = vmatprep.mubr.msk.f32.mxu0 %vm355_vm0, %v7018_v34  ;;  %v4502_v34 = vld [vmem:[%s6238_s9 + $0xa8] sm:$0xff] }
 0x13a   : > { %1407 = vmatmul.mubr.f32.vlgmr.msra.gmra.mrb[0].mxu1 %v4489_v28  ;;  %v5030_v28 = vld [vmem:[%s6238_s9 + $0x448] sm:$0xff] }
 0x13b   : > { %3155 = vmatmul.mubr.f32.gmra.mrb[64].mxu0 %v7025_v42  ;;  %5511 = vmatpush1.bf16.msra.mxu1 %v6189_v8  ;;  %v4496_v8 = vld [vmem:[%s6238_s9 + $0x78] sm:$0xff]  ;;  %v8576_v42 = vld [vmem:[#allocation4_spill] sm:$0xff] }
 0x13c   : > { %4638 = vmatprep.mubr.msk.f32.mxu1 %vm355_vm0, %v4492_v33  ;;  %5098 = vmatprep.mubr.msk.f32.mxu0 %vm355_vm0, %v7030_v49  ;;  %v4501_v49 = vld [vmem:[%s6238_s9 + $0xa0] sm:$0xff] }
 0x13d   : > { %5502 = vmatprep.subr.bf16.mxu1 %v8573_v50  ;;  %v7545_v33 = vld [vmem:[%s6238_s9 + $0x1c0] sm:$0xff] }
 0x13e   : > { %1412 = vmatmul.mubr.f32.gmra.mrb[2].mxu1 %v4491_v39  ;;  %v5029_v39 = vld [vmem:[%s6238_s9 + $0x440] sm:$0xff] }
 0x13f   : > { %3160 = vmatmul.mubr.f32.gmra.mrb[66].mxu0 %v7037_v53  ;;  %4639 = vmatprep.mubr.msk.f32.mxu1 %vm355_vm0, %v4494_v40  ;;  %v4504_v53 = vld [vmem:[%s6238_s9 + $0xb8] sm:$0xff] }
 0x140   : > { %5099 = vmatprep.mubr.msk.f32.mxu0 %vm355_vm0, %v7042_v57  ;;  %5512 = vmatpush1.bf16.msra.mxu1 %v6201_v12  ;;  %v4497_v12 = vld [vmem:[%s6238_s9 + $0x80] sm:$0xff]  ;;  %v8577_v57 = vld [vmem:[#allocation5_spill] sm:$0xff] }
 0x141   : > { %5503 = vmatprep.subr.bf16.mxu1 %v8573_v50  ;;  %v7550_v40 = vld [vmem:[%s6238_s9 + $0x1d8] sm:$0xff] }
 0x142   : > { %1417 = vmatmul.mubr.f32.gmra.mrb[4].mxu1 %v4493_v6  ;;  %v5032_v6 = vld [vmem:[%s6238_s9 + $0x458] sm:$0xff] }
 0x143   : > { %3165 = vmatmul.mubr.f32.gmra.mrb[68].mxu0 %v7049_v59  ;;  %4640 = vmatprep.mubr.msk.f32.mxu1 %vm355_vm0, %v4496_v8  ;;  %v4503_v59 = vld [vmem:[%s6238_s9 + $0xb0] sm:$0xff] }
 0x144   : > { %5100 = vmatprep.mubr.msk.f32.mxu0 %vm355_vm0, %v7054_v60  ;;  %5513 = vmatpush1.bf16.msra.mxu1 %v8574_v48  ;;  %v4506_v60 = vld [vmem:[%s6238_s9 + $0xc8] sm:$0xff]  ;;  %v7557_v8 = vld [vmem:[%s6238_s9 + $0x1d0] sm:$0xff] }
 0x145   : > { %5504 = vmatprep.subr.bf16.mxu1 %v8573_v50  ;;  %v5034_v48 = vld [vmem:[%s6238_s9 + $0x468] sm:$0xff] }
 0x146   : > { %1422 = vmatmul.mubr.f32.gmra.mrb[6].mxu1 %v4495_v45  ;;  %v5031_v45 = vld [vmem:[%s6238_s9 + $0x450] sm:$0xff] }
 0x147   : > { %3170 = vmatmul.mubr.f32.gmra.mrb[70].mxu0 %v7067_v1  ;;  %4641 = vmatprep.mubr.msk.f32.mxu1 %vm355_vm0, %v4498_v9  ;;  %v8579_v1 = vld [vmem:[#allocation7_spill] sm:$0xff] }
 0x148   : > { %5101 = vmatprep.mubr.msk.f32.mxu0 %vm355_vm0, %v7072_v44  ;;  %5514 = vmatpush1.bf16.msra.mxu1 %v8575_v21  ;;  %v4507_v44 = vld [vmem:[%s6238_s9 + $0xd0] sm:$0xff]  ;;  %v7562_v9 = vld [vmem:[%s6238_s9 + $0x1e8] sm:$0xff]  ;;  %v7574_v21 = vld [vmem:[%s6238_s9 + $0x1f8] sm:$0xff] }
 0x149   : > { %5505 = vmatprep.subr.bf16.mxu1 %v8573_v50 }
 0x14a   : > { %1427 = vmatmul.mubr.f32.gmra.mrb[8].mxu1 %v4497_v12  ;;  %v7569_v12 = vld [vmem:[%s6238_s9 + $0x1e0] sm:$0xff] }
 0x14b   : > { %3175 = vmatmul.mubr.f32.gmra.mrb[72].mxu0 %v7080_v4  ;;  %4642 = vmatprep.mubr.msk.f32.mxu1 %vm355_vm0, %v4500_v17  ;;  %v4510_v4 = vld [vmem:[%s6238_s9 + $0xe8] sm:$0xff]  ;;  %v5033_v17 = vld [vmem:[%s6238_s9 + $0x460] sm:$0xff] }
 0x14c   : > { %5102 = vmatprep.mubr.msk.f32.mxu0 %vm355_vm0, %v7085_v5  ;;  %5515 = vmatpush1.bf16.msra.mxu1 %v8576_v42  ;;  %v8580_v5 = vld [vmem:[#allocation8_spill] sm:$0xff] }
 0x14d   : > { %5506 = vmatprep.subr.bf16.mxu1 %v8573_v50  ;;  %v5035_v42 = vld [vmem:[%s6238_s9 + $0x470] sm:$0xff] }
 0x14e   : > { %1432 = vmatmul.mubr.f32.gmra.mrb[10].mxu1 %v4499_v29  ;;  %v5036_v29 = vld [vmem:[%s6238_s9 + $0x478] sm:$0xff] }
 0x14f   : > { %3180 = vmatmul.mubr.f32.gmra.mrb[74].mxu0 %v7092_v10  ;;  %4643 = vmatprep.mubr.msk.f32.mxu1 %vm355_vm0, %v4502_v34  ;;  %v4509_v10 = vld [vmem:[%s6238_s9 + $0xe0] sm:$0xff]  ;;  %v7581_v34 = vld [vmem:[%s6238_s9 + $0x1f0] sm:$0xff] }
 0x150   : > { %5103 = vmatprep.mubr.msk.f32.mxu0 %vm355_vm0, %v7097_v46  ;;  %5516 = vmatpush1.bf16.msra.mxu1 %v8577_v57  ;;  %v4512_v46 = vld [vmem:[%s6238_s9 + $0xf8] sm:$0xff]  ;;  %v7593_v57 = vld [vmem:[%s6238_s9 + $0x200] sm:$0xff] }
 0x151   : > { %5507 = vmatprep.subr.bf16.mxu1 %v8573_v50 }
 0x152   : > { %1437 = vmatmul.mubr.f32.gmra.mrb[12].mxu1 %v4501_v49  ;;  %v7586_v49 = vld [vmem:[%s6238_s9 + $0x208] sm:$0xff] }
 0x153   : > { %3185 = vmatmul.mubr.f32.gmra.mrb[76].mxu0 %v7104_v11  ;;  %4644 = vmatprep.mubr.msk.f32.mxu1 %vm355_vm0, %v4504_v53  ;;  %v8581_v11 = vld [vmem:[#allocation9_spill] sm:$0xff]  ;;  %v5038_v53 = vld [vmem:[%s6238_s9 + $0x488] sm:$0xff] }
 0x154   : > { %5104 = vmatprep.mubr.msk.f32.mxu0 %vm355_vm0, %v7109_v16  ;;  %5517 = vmatpush1.bf16.msra.mxu1 %v8578_v61  ;;  %v7370_v16 = vld [vmem:[%s6238_s9 + $0x108] sm:$0xff]  ;;  %v5040_v61 = vld [vmem:[%s6238_s9 + $0x498] sm:$0xff] }
 0x155   : > { %5508 = vmatprep.subr.bf16.mxu1 %v8573_v50 }
 0x156   : > { %1442 = vmatmul.mubr.f32.gmra.mrb[14].mxu1 %v4503_v59  ;;  %v5037_v59 = vld [vmem:[%s6238_s9 + $0x480] sm:$0xff] }
 0x157   : > { %3190 = vmatmul.mubr.f32.gmra.mrb[78].mxu0 %v7116_v22  ;;  %4645 = vmatprep.mubr.msk.f32.mxu1 %vm355_vm0, %v4506_v60  ;;  %v7376_v22 = vld [vmem:[%s6238_s9 + $0x100] sm:$0xff]  ;;  %v7598_v60 = vld [vmem:[%s6238_s9 + $0x218] sm:$0xff] }
 0x158   : > { %5105 = vmatprep.mubr.msk.f32.mxu0 %vm355_vm0, %v7121_v23  ;;  %5518 = vmatpush1.bf16.msra.mxu1 %v8579_v1  ;;  %v7381_v23 = vld [vmem:[%s6238_s9 + $0x118] sm:$0xff]  ;;  %v7610_v1 = vld [vmem:[%s6238_s9 + $0x228] sm:$0xff] }
 0x159   : > { %5509 = vmatprep.subr.bf16.mxu1 %v8573_v50 }
 0x15a   : > { %1447 = vmatmul.mubr.f32.gmra.mrb[16].mxu1 %v4505_v63  ;;  %v7605_v63 = vld [vmem:[%s6238_s9 + $0x210] sm:$0xff] }
 0x15b   : > { %3195 = vmatmul.mubr.f32.gmra.mrb[80].mxu0 %v7128_v25  ;;  %4646 = vmatprep.mubr.msk.f32.mxu1 %vm355_vm0, %v4508_v0  ;;  %v7388_v25 = vld [vmem:[%s6238_s9 + $0x110] sm:$0xff] }
 0x15c   : > { %5106 = vmatprep.mubr.msk.f32.mxu0 %vm355_vm0, %v7133_v26  ;;  %5519 = vmatpush1.bf16.msra.mxu1 %v8580_v5  ;;  %v7393_v26 = vld [vmem:[%s6238_s9 + $0x128] sm:$0xff]  ;;  %v5039_v0 = vld [vmem:[%s6238_s9 + $0x490] sm:$0xff]  ;;  %v5041_v5 = vld [vmem:[%s6238_s9 + $0x4a0] sm:$0xff] }
 0x15d   : > { %5510 = vmatprep.subr.bf16.mxu1 %v8573_v50  ;;  %v4511_v50 = vld [vmem:[%s6238_s9 + $0xf0] sm:$0xff] }
 0x15e   : > { %1452 = vmatmul.mubr.f32.gmra.mrb[18].mxu1 %v4507_v44  ;;  %v5042_v44 = vld [vmem:[%s6238_s9 + $0x4a8] sm:$0xff] }
 0x15f   : > { %3200 = vmatmul.mubr.f32.gmra.mrb[82].mxu0 %v7140_v27  ;;  %4647 = vmatprep.mubr.msk.f32.mxu1 %vm355_vm0, %v4510_v4  ;;  %v7400_v27 = vld [vmem:[%s6238_s9 + $0x120] sm:$0xff] }
 0x160   : > { %5107 = vmatprep.mubr.msk.f32.mxu0 %vm355_vm0, %v7151_v24  ;;  %5520 = vmatpush1.bf16.msra.mxu1 %v8581_v11  ;;  %v7417_v24 = vld [vmem:[%s6238_s9 + $0x148] sm:$0xff]  ;;  %v7617_v4 = vld [vmem:[%s6238_s9 + $0x220] sm:$0xff]  ;;  %v7629_v11 = vld [vmem:[%s6238_s9 + $0x230] sm:$0xff] }
 0x162   : > { %1457 = vmatmul.mubr.f32.gmra.mrb[20].mxu1 %v4509_v10  ;;  %v7622_v10 = vld [vmem:[%s6238_s9 + $0x238] sm:$0xff] }
 0x163   : > { %3205 = vmatmul.mubr.f32.gmra.mrb[84].mxu0 %v7158_v32  ;;  %4648 = vmatprep.mubr.msk.f32.mxu1 %vm355_vm0, %v4512_v46  ;;  %v7429_v32 = vld [vmem:[%s6238_s9 + $0x158] sm:$0xff] }
 0x164   : > { %5108 = vmatprep.mubr.msk.f32.mxu0 %vm355_vm0, %v7163_v37  ;;  %v7436_v37 = vld [vmem:[%s6238_s9 + $0x150] sm:$0xff]  ;;  %v5044_v46 = vld [vmem:[%s6238_s9 + $0x4b8] sm:$0xff] }
 0x166   : > { %1462 = vmatmul.mubr.f32.gmra.mrb[22].mxu1 %v4511_v50  ;;  %v5043_v50 = vld [vmem:[%s6238_s9 + $0x4b0] sm:$0xff] }
 0x167   : > { %3210 = vmatmul.mubr.f32.gmra.mrb[86].mxu0 %v7171_v41  ;;  %4649 = vmatprep.mubr.msk.f32.mxu1 %vm355_vm0, %v7370_v16  ;;  %v7441_v41 = vld [vmem:[%s6238_s9 + $0x168] sm:$0xff] }
 0x168   : > { %5109 = vmatprep.mubr.msk.f32.mxu0 %vm355_vm0, %v7176_v38  ;;  %v7448_v38 = vld [vmem:[%s6238_s9 + $0x160] sm:$0xff] }
 0x16a   : > { %1467 = vmatmul.mubr.f32.gmra.mrb[24].mxu1 %v7376_v22 }
 0x16b   : > { %3215 = vmatmul.mubr.f32.gmra.mrb[88].mxu0 %v7183_v30  ;;  %4650 = vmatprep.mubr.msk.f32.mxu1 %vm355_vm0, %v7381_v23  ;;  %v7453_v30 = vld [vmem:[%s6238_s9 + $0x178] sm:$0xff] }
 0x16c   : > { %5110 = vmatprep.mubr.msk.f32.mxu0 %vm355_vm0, %v7188_v43  ;;  %v7460_v43 = vld [vmem:[%s6238_s9 + $0x170] sm:$0xff] }
 0x16e   : > { %1472 = vmatmul.mubr.f32.gmra.mrb[26].mxu1 %v7388_v25 }
 0x16f   : > { %3220 = vmatmul.mubr.f32.gmra.mrb[90].mxu0 %v7195_v47  ;;  %4651 = vmatprep.mubr.msk.f32.mxu1 %vm355_vm0, %v7393_v26  ;;  %v7465_v47 = vld [vmem:[%s6238_s9 + $0x188] sm:$0xff] }
 0x170   : > { %5111 = vmatprep.mubr.msk.f32.mxu0 %vm355_vm0, %v7200_v13  ;;  %v7468_v13 = vld [vmem:[%s6238_s9 + $0x408] sm:$0xff] }
 0x172   : > { %1477 = vmatmul.mubr.f32.gmra.mrb[28].mxu1 %v7400_v27 }
 0x173   : > { %3225 = vmatmul.mubr.f32.gmra.mrb[92].mxu0 %v7207_v14  ;;  %4652 = vmatprep.mubr.msk.f32.mxu1 %vm355_vm0, %v7405_v31  ;;  %v7475_v14 = vld [vmem:[%s6238_s9 + $0x180] sm:$0xff] }
 0x174   : > { %5112 = vmatprep.mubr.msk.f32.mxu0 %vm355_vm0, %v7212_v20  ;;  %v7480_v20 = vld [vmem:[%s6238_s9 + $0x400] sm:$0xff] }
 0x176   : > { %1482 = vmatmul.mubr.f32.gmra.mrb[30].mxu1 %v7412_v35 }
 0x177   : > { %3230 = vmatmul.mubr.f32.gmra.mrb[94].mxu0 %v7219_v51  ;;  %4653 = vmatprep.mubr.msk.f32.mxu1 %vm355_vm0, %v7417_v24  ;;  %v7483_v51 = vld [vmem:[%s6238_s9 + $0x198] sm:$0xff] }
 0x178   : > { %5113 = vmatprep.mubr.msk.f32.mxu0 %vm355_vm0, %v7230_v18  ;;  %v7498_v18 = vld [vmem:[%s6238_s9 + $0x410] sm:$0xff] }
 0x17a   : > { %1487 = vmatmul.mubr.f32.gmra.mrb[32].mxu1 %v7424_v36 }
 0x17b   : > { %3235 = vmatmul.mubr.f32.gmra.mrb[96].mxu0 %v7237_v54  ;;  %4654 = vmatprep.mubr.msk.f32.mxu1 %vm355_vm0, %v7429_v32  ;;  %v7504_v54 = vld [vmem:[%s6238_s9 + $0x428] sm:$0xff] }
 0x17c   : > { %5114 = vmatprep.mubr.msk.f32.mxu0 %vm355_vm0, %v7242_v58  ;;  %v7511_v58 = vld [vmem:[%s6238_s9 + $0x1a0] sm:$0xff] }
 0x17e   : > { %1492 = vmatmul.mubr.f32.gmra.mrb[34].mxu1 %v7436_v37 }
 0x17f   : > { %3240 = vmatmul.mubr.f32.gmra.mrb[98].mxu0 %v7249_v56  ;;  %4655 = vmatprep.mubr.msk.f32.mxu1 %vm355_vm0, %v7441_v41  ;;  %v7516_v56 = vld [vmem:[%s6238_s9 + $0x420] sm:$0xff] }
 0x180   : > { %5115 = vmatprep.mubr.msk.f32.mxu0 %vm355_vm0, %v7254_v62  ;;  %v7519_v62 = vld [vmem:[%s6238_s9 + $0x1b8] sm:$0xff] }
 0x182   : > { %1497 = vmatmul.mubr.f32.gmra.mrb[36].mxu1 %v7448_v38 }
 0x183   : > { %3245 = vmatmul.mubr.f32.gmra.mrb[100].mxu0 %v7261_v2  ;;  %4656 = vmatprep.mubr.msk.f32.mxu1 %vm355_vm0, %v7453_v30  ;;  %v7522_v2 = vld [vmem:[%s6238_s9 + $0x438] sm:$0xff] }
 0x184   : > { %5116 = vmatprep.mubr.msk.f32.mxu0 %vm355_vm0, %v7266_v7  ;;  %v7529_v7 = vld [vmem:[%s6238_s9 + $0x1b0] sm:$0xff] }
 0x186   : > { %1502 = vmatmul.mubr.f32.gmra.mrb[38].mxu1 %v7460_v43 }
 0x187   : > { %3250 = vmatmul.mubr.f32.gmra.mrb[102].mxu0 %v7273_v15  ;;  %4657 = vmatprep.mubr.msk.f32.mxu1 %vm355_vm0, %v7465_v47  ;;  %v7534_v15 = vld [vmem:[%s6238_s9 + $0x430] sm:$0xff] }
 0x188   : > { %5117 = vmatprep.mubr.msk.f32.mxu0 %vm355_vm0, %v7468_v13 }
 0x18a   : > { %1507 = vmatmul.mubr.f32.gmra.mrb[40].mxu1 %v7475_v14 }
 0x18b   : > { %3255 = vmatmul.mubr.f32.gmra.mrb[104].mxu0 %v7480_v20  ;;  %4658 = vmatprep.mubr.msk.f32.mxu1 %vm355_vm0, %v7483_v51 }
 0x18c   : > { %5118 = vmatprep.mubr.msk.f32.mxu0 %vm355_vm0, %v7486_v52 }
 0x18e   : > { %1512 = vmatmul.mubr.f32.gmra.mrb[42].mxu1 %v7493_v55 }
 0x18f   : > { %3260 = vmatmul.mubr.f32.gmra.mrb[106].mxu0 %v7498_v18  ;;  %4659 = vmatprep.mubr.msk.f32.mxu1 %vm355_vm0, %v7501_v3 }
 0x190   : > { %5119 = vmatprep.mubr.msk.f32.mxu0 %vm355_vm0, %v7504_v54 }
 0x192   : > { %1517 = vmatmul.mubr.f32.gmra.mrb[44].mxu1 %v7511_v58 }
 0x193   : > { %3265 = vmatmul.mubr.f32.gmra.mrb[108].mxu0 %v7516_v56  ;;  %4660 = vmatprep.mubr.msk.f32.mxu1 %vm355_vm0, %v7519_v62 }
 0x194   : > { %5120 = vmatprep.mubr.msk.f32.mxu0 %vm355_vm0, %v7522_v2 }
 0x196   : > { %1522 = vmatmul.mubr.f32.gmra.mrb[46].mxu1 %v7529_v7 }
 0x197   : > { %3270 = vmatmul.mubr.f32.gmra.mrb[110].mxu0 %v7534_v15  ;;  %4661 = vmatprep.mubr.msk.f32.mxu1 %vm355_vm0, %v7537_v19 }
 0x198   : > { %5121 = vmatprep.mubr.msk.f32.mxu0 %vm355_vm0, %v5030_v28  ;;  %v7634_v28 = vld [vmem:[%s6238_s9 + $0x248] sm:$0xff] }
 0x19a   : > { %1527 = vmatmul.mubr.f32.gmra.mrb[48].mxu1 %v7545_v33 }
 0x19b   : > { %3275 = vmatmul.mubr.f32.gmra.mrb[112].mxu0 %v5029_v39  ;;  %4662 = vmatprep.mubr.msk.f32.mxu1 %vm355_vm0, %v7550_v40  ;;  %v7640_v39 = vld [vmem:[%s6238_s9 + $0x240] sm:$0xff] }
 0x19c   : > { %5122 = vmatprep.mubr.msk.f32.mxu0 %vm355_vm0, %v5032_v6  ;;  %v7645_v6 = vld [vmem:[%s6238_s9 + $0x258] sm:$0xff] }
 0x19e   : > { %1532 = vmatmul.mubr.f32.gmra.mrb[50].mxu1 %v7557_v8 }
 0x19f   : > { %3280 = vmatmul.mubr.f32.gmra.mrb[114].mxu0 %v5031_v45  ;;  %4663 = vmatprep.mubr.msk.f32.mxu1 %vm355_vm0, %v7562_v9  ;;  %v7652_v45 = vld [vmem:[%s6238_s9 + $0x250] sm:$0xff] }
 0x1a0   : > { %5123 = vmatprep.mubr.msk.f32.mxu0 %vm355_vm0, %v5034_v48  ;;  %v7657_v48 = vld [vmem:[%s6238_s9 + $0x268] sm:$0xff] }
 0x1a2   : > { %1537 = vmatmul.mubr.f32.gmra.mrb[52].mxu1 %v7569_v12 }
 0x1a3   : > { %3285 = vmatmul.mubr.f32.gmra.mrb[116].mxu0 %v5033_v17  ;;  %4664 = vmatprep.mubr.msk.f32.mxu1 %vm355_vm0, %v7574_v21  ;;  %v7844_v17 = vld [vmem:[%s6238_s9 + $0x350] sm:$0xff] }
 0x1a4   : > { %5124 = vmatprep.mubr.msk.f32.mxu0 %vm355_vm0, %v5036_v29  ;;  %v7856_v29 = vld [vmem:[%s6238_s9 + $0x360] sm:$0xff] }
 0x1a6   : > { %1542 = vmatmul.mubr.f32.gmra.mrb[54].mxu1 %v7581_v34 }
 0x1a7   : > { %3290 = vmatmul.mubr.f32.gmra.mrb[118].mxu0 %v5035_v42  ;;  %4665 = vmatprep.mubr.msk.f32.mxu1 %vm355_vm0, %v7586_v49  ;;  %v7868_v42 = vld [vmem:[%s6238_s9 + $0x370] sm:$0xff] }
 0x1a8   : > { %5125 = vmatprep.mubr.msk.f32.mxu0 %vm355_vm0, %v5038_v53  ;;  %v7880_v53 = vld [vmem:[%s6238_s9 + $0x380] sm:$0xff] }
 0x1aa   : > { %1547 = vmatmul.mubr.f32.gmra.mrb[56].mxu1 %v7593_v57 }
 0x1ab   : > { %3295 = vmatmul.mubr.f32.gmra.mrb[120].mxu0 %v5037_v59  ;;  %4666 = vmatprep.mubr.msk.f32.mxu1 %vm355_vm0, %v7598_v60  ;;  %v7892_v59 = vld [vmem:[%s6238_s9 + $0x390] sm:$0xff] }
 0x1ac   : > { %5126 = vmatprep.mubr.msk.f32.mxu0 %vm355_vm0, %v5040_v61 }
 0x1ae   : > { %1552 = vmatmul.mubr.f32.gmra.mrb[58].mxu1 %v7605_v63 }
 0x1af   : > { %3300 = vmatmul.mubr.f32.gmra.mrb[122].mxu0 %v5039_v0  ;;  %4667 = vmatprep.mubr.msk.f32.mxu1 %vm355_vm0, %v7610_v1  ;;  %v7906_v0 = vld [vmem:[%s6238_s9 + $0x3a0] sm:$0xff] }
 0x1b0   : > { %5127 = vmatprep.mubr.msk.f32.mxu0 %vm355_vm0, %v5042_v44 }
 0x1b2   : > { %1557 = vmatmul.mubr.f32.gmra.mrb[60].mxu1 %v7617_v4 }
 0x1b3   : > { %3305 = vmatmul.mubr.f32.gmra.mrb[124].mxu0 %v5041_v5  ;;  %4668 = vmatprep.mubr.msk.f32.mxu1 %vm355_vm0, %v7622_v10  ;;  %v7920_v5 = vld [vmem:[%s6238_s9 + $0x3b0] sm:$0xff] }
 0x1b4   : > { %5128 = vmatprep.mubr.msk.f32.mxu0 %vm355_vm0, %v5044_v46 }
 0x1b6   : > { %1562 = vmatmul.mubr.f32.gmra.mrb[62].mxu1 %v7629_v11 }
 0x1b7   : > { %3310 = vmatmul.mubr.f32.gmra.mrb[126].mxu0 %v5043_v50  ;;  %4669 = vmatprep.mubr.msk.f32.mxu1 %vm355_vm0, %v7634_v28  ;;  %v7934_v50 = vld [vmem:[%s6238_s9 + $0x3c0] sm:$0xff] }
 0x1b8   : > { %5279 = vmatprep.mubr.msk.f32.mxu0 %vm355_vm0, %v7370_v16  ;;  %v7664_v16 = vld [vmem:[%s6238_s9 + $0x260] sm:$0xff] }
 0x1ba   : > { %1567 = vmatmul.mubr.f32.gmra.mrb[64].mxu1 %v7640_v39 }
 0x1bb   : > { %3789 = vmatmul.mubr.f32.vlgmr.msra.gmra.mrb[0].mxu0 %v7376_v22  ;;  %4670 = vmatprep.mubr.msk.f32.mxu1 %vm355_vm0, %v7645_v6  ;;  %v7669_v22 = vld [vmem:[%s6238_s9 + $0x278] sm:$0xff] }
 0x1bc   : > { %5280 = vmatprep.mubr.msk.f32.mxu0 %vm355_vm0, %v7381_v23  ;;  %v7676_v23 = vld [vmem:[%s6238_s9 + $0x270] sm:$0xff] }
 0x1be   : > { %1572 = vmatmul.mubr.f32.gmra.mrb[66].mxu1 %v7652_v45 }
 0x1bf   : > { %3794 = vmatmul.mubr.f32.gmra.mrb[2].mxu0 %v7388_v25  ;;  %4671 = vmatprep.mubr.msk.f32.mxu1 %vm355_vm0, %v7657_v48  ;;  %v7681_v25 = vld [vmem:[%s6238_s9 + $0x288] sm:$0xff] }
 0x1c0   : > { %5281 = vmatprep.mubr.msk.f32.mxu0 %vm355_vm0, %v7393_v26  ;;  %v7688_v26 = vld [vmem:[%s6238_s9 + $0x280] sm:$0xff] }
 0x1c2   : > { %1577 = vmatmul.mubr.f32.gmra.mrb[68].mxu1 %v7664_v16 }
 0x1c3   : > { %3799 = vmatmul.mubr.f32.gmra.mrb[4].mxu0 %v7400_v27  ;;  %4672 = vmatprep.mubr.msk.f32.mxu1 %vm355_vm0, %v7669_v22  ;;  %v7693_v27 = vld [vmem:[%s6238_s9 + $0x298] sm:$0xff] }
 0x1c4   : > { %5282 = vmatprep.mubr.msk.f32.mxu0 %vm355_vm0, %v7405_v31  ;;  %v7700_v31 = vld [vmem:[%s6238_s9 + $0x290] sm:$0xff] }
 0x1c6   : > { %1582 = vmatmul.mubr.f32.gmra.mrb[70].mxu1 %v7676_v23 }
 0x1c7   : > { %3804 = vmatmul.mubr.f32.gmra.mrb[6].mxu0 %v7412_v35  ;;  %4673 = vmatprep.mubr.msk.f32.mxu1 %vm355_vm0, %v7681_v25  ;;  %v7705_v35 = vld [vmem:[%s6238_s9 + $0x2a8] sm:$0xff] }
 0x1c8   : > { %5283 = vmatprep.mubr.msk.f32.mxu0 %vm355_vm0, %v7417_v24  ;;  %v7712_v24 = vld [vmem:[%s6238_s9 + $0x2a0] sm:$0xff] }
 0x1ca   : > { %1587 = vmatmul.mubr.f32.gmra.mrb[72].mxu1 %v7688_v26 }
 0x1cb   : > { %3809 = vmatmul.mubr.f32.gmra.mrb[8].mxu0 %v7424_v36  ;;  %4674 = vmatprep.mubr.msk.f32.mxu1 %vm355_vm0, %v7693_v27  ;;  %v7717_v36 = vld [vmem:[%s6238_s9 + $0x2b8] sm:$0xff] }
 0x1cc   : > { %5284 = vmatprep.mubr.msk.f32.mxu0 %vm355_vm0, %v7429_v32  ;;  %v7724_v32 = vld [vmem:[%s6238_s9 + $0x2b0] sm:$0xff] }
 0x1ce   : > { %1592 = vmatmul.mubr.f32.gmra.mrb[74].mxu1 %v7700_v31 }
 0x1cf   : > { %3814 = vmatmul.mubr.f32.gmra.mrb[10].mxu0 %v7436_v37  ;;  %4675 = vmatprep.mubr.msk.f32.mxu1 %vm355_vm0, %v7705_v35  ;;  %v7729_v37 = vld [vmem:[%s6238_s9 + $0x2c8] sm:$0xff] }
 0x1d0   : > { %5285 = vmatprep.mubr.msk.f32.mxu0 %vm355_vm0, %v7441_v41  ;;  %v7736_v41 = vld [vmem:[%s6238_s9 + $0x2c0] sm:$0xff] }
 0x1d2   : > { %1597 = vmatmul.mubr.f32.gmra.mrb[76].mxu1 %v7712_v24 }
 0x1d3   : > { %3819 = vmatmul.mubr.f32.gmra.mrb[12].mxu0 %v7448_v38  ;;  %4676 = vmatprep.mubr.msk.f32.mxu1 %vm355_vm0, %v7717_v36  ;;  %v7741_v38 = vld [vmem:[%s6238_s9 + $0x2d8] sm:$0xff] }
 0x1d4   : > { %5286 = vmatprep.mubr.msk.f32.mxu0 %vm355_vm0, %v7453_v30  ;;  %v7748_v30 = vld [vmem:[%s6238_s9 + $0x2d0] sm:$0xff] }
 0x1d6   : > { %1602 = vmatmul.mubr.f32.gmra.mrb[78].mxu1 %v7724_v32 }
 0x1d7   : > { %3824 = vmatmul.mubr.f32.gmra.mrb[14].mxu0 %v7460_v43  ;;  %4677 = vmatprep.mubr.msk.f32.mxu1 %vm355_vm0, %v7729_v37  ;;  %v7753_v43 = vld [vmem:[%s6238_s9 + $0x2e8] sm:$0xff] }
 0x1d8   : > { %5287 = vmatprep.mubr.msk.f32.mxu0 %vm355_vm0, %v7465_v47  ;;  %v7760_v47 = vld [vmem:[%s6238_s9 + $0x2e0] sm:$0xff] }
 0x1da   : > { %1607 = vmatmul.mubr.f32.gmra.mrb[80].mxu1 %v7736_v41 }
 0x1db   : > { %3829 = vmatmul.mubr.f32.gmra.mrb[16].mxu0 %v7475_v14  ;;  %4678 = vmatprep.mubr.msk.f32.mxu1 %vm355_vm0, %v7741_v38  ;;  %v7765_v14 = vld [vmem:[%s6238_s9 + $0x2f8] sm:$0xff] }
 0x1dc   : > { %5288 = vmatprep.mubr.msk.f32.mxu0 %vm355_vm0, %v7483_v51  ;;  %v7772_v51 = vld [vmem:[%s6238_s9 + $0x2f0] sm:$0xff] }
 0x1de   : > { %1612 = vmatmul.mubr.f32.gmra.mrb[82].mxu1 %v7748_v30 }
 0x1df   : > { %3834 = vmatmul.mubr.f32.gmra.mrb[18].mxu0 %v7493_v55  ;;  %4679 = vmatprep.mubr.msk.f32.mxu1 %vm355_vm0, %v7753_v43  ;;  %v7777_v55 = vld [vmem:[%s6238_s9 + $0x308] sm:$0xff] }
 0x1e0   : > { %5289 = vmatprep.mubr.msk.f32.mxu0 %vm355_vm0, %v7501_v3  ;;  %v7784_v3 = vld [vmem:[%s6238_s9 + $0x300] sm:$0xff] }
 0x1e2   : > { %1617 = vmatmul.mubr.f32.gmra.mrb[84].mxu1 %v7760_v47 }
 0x1e3   : > { %3839 = vmatmul.mubr.f32.gmra.mrb[20].mxu0 %v7511_v58  ;;  %4680 = vmatprep.mubr.msk.f32.mxu1 %vm355_vm0, %v7765_v14  ;;  %v7789_v58 = vld [vmem:[%s6238_s9 + $0x318] sm:$0xff] }
 0x1e4   : > { %5290 = vmatprep.mubr.msk.f32.mxu0 %vm355_vm0, %v7519_v62  ;;  %v7796_v62 = vld [vmem:[%s6238_s9 + $0x310] sm:$0xff] }
 0x1e6   : > { %1622 = vmatmul.mubr.f32.gmra.mrb[86].mxu1 %v7772_v51 }
 0x1e7   : > { %3844 = vmatmul.mubr.f32.gmra.mrb[22].mxu0 %v7529_v7  ;;  %4681 = vmatprep.mubr.msk.f32.mxu1 %vm355_vm0, %v7777_v55  ;;  %v7801_v7 = vld [vmem:[%s6238_s9 + $0x328] sm:$0xff] }
 0x1e8   : > { %5291 = vmatprep.mubr.msk.f32.mxu0 %vm355_vm0, %v7537_v19  ;;  %v7808_v19 = vld [vmem:[%s6238_s9 + $0x320] sm:$0xff] }
 0x1ea   : > { %1627 = vmatmul.mubr.f32.gmra.mrb[88].mxu1 %v7784_v3 }
 0x1eb   : > { %3849 = vmatmul.mubr.f32.gmra.mrb[24].mxu0 %v7545_v33  ;;  %4682 = vmatprep.mubr.msk.f32.mxu1 %vm355_vm0, %v7789_v58  ;;  %v7813_v33 = vld [vmem:[%s6238_s9 + $0x338] sm:$0xff] }
 0x1ec   : > { %5292 = vmatprep.mubr.msk.f32.mxu0 %vm355_vm0, %v7550_v40  ;;  %v7820_v40 = vld [vmem:[%s6238_s9 + $0x330] sm:$0xff] }
 0x1ee   : > { %1632 = vmatmul.mubr.f32.gmra.mrb[90].mxu1 %v7796_v62 }
 0x1ef   : > { %3854 = vmatmul.mubr.f32.gmra.mrb[26].mxu0 %v7557_v8  ;;  %4683 = vmatprep.mubr.msk.f32.mxu1 %vm355_vm0, %v7801_v7  ;;  %v7825_v8 = vld [vmem:[%s6238_s9 + $0x348] sm:$0xff] }
 0x1f0   : > { %5293 = vmatprep.mubr.msk.f32.mxu0 %vm355_vm0, %v7562_v9  ;;  %v7832_v9 = vld [vmem:[%s6238_s9 + $0x340] sm:$0xff] }
 0x1f2   : > { %1637 = vmatmul.mubr.f32.gmra.mrb[92].mxu1 %v7808_v19 }
 0x1f3   : > { %3859 = vmatmul.mubr.f32.gmra.mrb[28].mxu0 %v7569_v12  ;;  %4684 = vmatprep.mubr.msk.f32.mxu1 %vm355_vm0, %v7813_v33  ;;  %v7837_v12 = vld [vmem:[%s6238_s9 + $0x358] sm:$0xff] }
 0x1f4   : > { %5294 = vmatprep.mubr.msk.f32.mxu0 %vm355_vm0, %v7574_v21  ;;  %v7849_v21 = vld [vmem:[%s6238_s9 + $0x368] sm:$0xff] }
 0x1f6   : > { %1642 = vmatmul.mubr.f32.gmra.mrb[94].mxu1 %v7820_v40 }
 0x1f7   : > { %3864 = vmatmul.mubr.f32.gmra.mrb[30].mxu0 %v7581_v34  ;;  %4685 = vmatprep.mubr.msk.f32.mxu1 %vm355_vm0, %v7825_v8  ;;  %v7861_v34 = vld [vmem:[%s6238_s9 + $0x378] sm:$0xff] }
 0x1f8   : > { %5295 = vmatprep.mubr.msk.f32.mxu0 %vm355_vm0, %v7586_v49  ;;  %v7873_v49 = vld [vmem:[%s6238_s9 + $0x388] sm:$0xff] }
 0x1fa   : > { %1647 = vmatmul.mubr.f32.gmra.mrb[96].mxu1 %v7832_v9 }
 0x1fb   : > { %3869 = vmatmul.mubr.f32.gmra.mrb[32].mxu0 %v7593_v57  ;;  %4686 = vmatprep.mubr.msk.f32.mxu1 %vm355_vm0, %v7837_v12  ;;  %v7885_v57 = vld [vmem:[%s6238_s9 + $0x398] sm:$0xff] }
 0x1fc   : > { %5296 = vmatprep.mubr.msk.f32.mxu0 %vm355_vm0, %v7598_v60  ;;  %v7897_v60 = vld [vmem:[%s6238_s9 + $0x3a8] sm:$0xff] }
 0x1fe   : > { %1652 = vmatmul.mubr.f32.gmra.mrb[98].mxu1 %v7844_v17 }
 0x1ff   : > { %3874 = vmatmul.mubr.f32.gmra.mrb[34].mxu0 %v7605_v63  ;;  %4687 = vmatprep.mubr.msk.f32.mxu1 %vm355_vm0, %v7849_v21 }
 0x200   : > { %5297 = vmatprep.mubr.msk.f32.mxu0 %vm355_vm0, %v7610_v1  ;;  %v7911_v1 = vld [vmem:[%s6238_s9 + $0x3b8] sm:$0xff] }
 0x202   : > { %1657 = vmatmul.mubr.f32.gmra.mrb[100].mxu1 %v7856_v29 }
 0x203   : > { %3879 = vmatmul.mubr.f32.gmra.mrb[36].mxu0 %v7617_v4  ;;  %4688 = vmatprep.mubr.msk.f32.mxu1 %vm355_vm0, %v7861_v34 }
 0x204   : > { %5298 = vmatprep.mubr.msk.f32.mxu0 %vm355_vm0, %v7622_v10  ;;  %v7925_v10 = vld [vmem:[%s6238_s9 + $0x3c8] sm:$0xff] }
 0x206   : > { %1662 = vmatmul.mubr.f32.gmra.mrb[102].mxu1 %v7868_v42 }
 0x207   : > { %3884 = vmatmul.mubr.f32.gmra.mrb[38].mxu0 %v7629_v11  ;;  %4689 = vmatprep.mubr.msk.f32.mxu1 %vm355_vm0, %v7873_v49 }
 0x208   : > { %5299 = vmatprep.mubr.msk.f32.mxu0 %vm355_vm0, %v7634_v28  ;;  %v7939_v28 = vld [vmem:[%s6238_s9 + $0x3d8] sm:$0xff] }
 0x20a   : > { %1667 = vmatmul.mubr.f32.gmra.mrb[104].mxu1 %v7880_v53 }
 0x20b   : > { %3889 = vmatmul.mubr.f32.gmra.mrb[40].mxu0 %v7640_v39  ;;  %4690 = vmatprep.mubr.msk.f32.mxu1 %vm355_vm0, %v7885_v57 }
 0x20c   : > { %5300 = vmatprep.mubr.msk.f32.mxu0 %vm355_vm0, %v7645_v6 }
 0x20d   : > { %v7899_v61 = vpop.f32.mrb[0].mxu1 }
 0x20e   : > { %v1410_v63 = vpop.f32.mrb[1].mxu1  ;;  %1672 = vmatmul.mubr.f32.gmra.mrb[106].mxu1 %v7892_v59 }
 0x20f   : > { %3894 = vmatmul.mubr.f32.gmra.mrb[42].mxu0 %v7652_v45  ;;  %4691 = vmatprep.mubr.msk.f32.mxu1 %vm355_vm0, %v7897_v60  ;;  %v7948_v45 = vld [vmem:[%s6238_s9 + $0x3d0] sm:$0xff]  ;;  %v7967_v63 = vld [vmem:[%s6238_s9 + $0x3f8] sm:$0xff] }
 0x210   : > { %5301 = vmatprep.mubr.msk.f32.mxu0 %vm355_vm0, %v7657_v48  ;;  %v7953_v48 = vld [vmem:[%s6238_s9 + $0x3e8] sm:$0xff] }
 0x211   : > { %v7913_v44 = vpop.f32.mrb[2].mxu1 }
 0x212   : > { %v1415_v4 = vpop.f32.mrb[3].mxu1  ;;  %1677 = vmatmul.mubr.f32.gmra.mrb[108].mxu1 %v7906_v0 }
 0x213   : > { %3899 = vmatmul.mubr.f32.gmra.mrb[44].mxu0 %v7664_v16  ;;  %4692 = vmatprep.mubr.msk.f32.mxu1 %vm355_vm0, %v7911_v1 }
 0x214   : > { %5302 = vmatprep.mubr.msk.f32.mxu0 %vm355_vm0, %v7669_v22 }
 0x215   : > { %v7927_v46 = vpop.f32.mrb[4].mxu1 }
 0x216   : > { %v1420_v11 = vpop.f32.mrb[5].mxu1  ;;  %1682 = vmatmul.mubr.f32.gmra.mrb[110].mxu1 %v7920_v5 }
 0x217   : > { %3904 = vmatmul.mubr.f32.gmra.mrb[46].mxu0 %v7676_v23  ;;  %4693 = vmatprep.mubr.msk.f32.mxu1 %vm355_vm0, %v7925_v10  ;;  %v7962_v23 = vld [vmem:[%s6238_s9 + $0x3e0] sm:$0xff] }
 0x218   : > { %5303 = vmatprep.mubr.msk.f32.mxu0 %vm355_vm0, %v7681_v25 }
 0x219   : > { %v7941_v39 = vpop.f32.mrb[6].mxu1 }
 0x21a   : > { %v1425_v6 = vpop.f32.mrb[7].mxu1  ;;  %1687 = vmatmul.mubr.f32.gmra.mrb[112].mxu1 %v7934_v50 }
 0x21b   : > { %3909 = vmatmul.mubr.f32.gmra.mrb[48].mxu0 %v7688_v26  ;;  %4694 = vmatprep.mubr.msk.f32.mxu1 %vm355_vm0, %v7939_v28  ;;  %v7976_v6 = vld [vmem:[%s6238_s9 + $0x3f0] sm:$0xff] }
 0x21c   : > { %5304 = vmatprep.mubr.msk.f32.mxu0 %vm355_vm0, %v7693_v27 }
 0x21d   : > { %v7955_v16 = vpop.f32.mrb[8].mxu1 }
 0x21e   : > { %8582 = vst [vmem:[#allocation2_spill] sm:$0xff] %v7955_v16  ;;  %v1430_v22 = vpop.f32.mrb[9].mxu1  ;;  %1692 = vmatmul.mubr.f32.gmra.mrb[114].mxu1 %v7948_v45 }
 0x21f   : > { %3914 = vmatmul.mubr.f32.gmra.mrb[50].mxu0 %v7700_v31  ;;  %4695 = vmatprep.mubr.msk.f32.mxu1 %vm355_vm0, %v7953_v48 }
 0x220   : > { %5305 = vmatprep.mubr.msk.f32.mxu0 %vm355_vm0, %v7705_v35 }
 0x221   : > { %v7969_v4 = vpop.f32.mrb[10].mxu1 }
 0x222   : > { %8583 = vst [vmem:[#allocation3_spill] sm:$0xff] %v7969_v4  ;;  %v1435_v11 = vpop.f32.mrb[11].mxu1  ;;  %1697 = vmatmul.mubr.f32.gmra.mrb[116].mxu1 %v7962_v23 }
 0x223   : > { %3919 = vmatmul.mubr.f32.gmra.mrb[52].mxu0 %v7712_v24  ;;  %4696 = vmatprep.mubr.msk.f32.mxu1 %vm355_vm0, %v7967_v63 }
 0x224   : > { %5306 = vmatprep.mubr.msk.f32.mxu0 %vm355_vm0, %v7717_v36 }
 0x225   : > { %v7980_v22 = vpop.f32.mrb[12].mxu1 }
 0x226   : > { %8584 = vst [vmem:[#allocation4_spill] sm:$0xff] %v7980_v22  ;;  %v1440_v16 = vpop.f32.mrb[13].mxu1  ;;  %1702 = vmatmul.mubr.f32.gmra.mrb[118].mxu1 %v7976_v6 }
 0x227   : > { %3924 = vmatmul.mubr.f32.gmra.mrb[54].mxu0 %v7724_v32  ;;  %4697 = vmatprep.mubr.msk.f32.mxu1 %vm355_vm0, %v7468_v13 }
 0x228   : > { %5307 = vmatprep.mubr.msk.f32.mxu0 %vm355_vm0, %v7729_v37 }
 0x229   : > { %v7988_v11 = vpop.f32.mrb[14].mxu1 }
 0x22a   : > { %v1445_v4 = vpop.f32.mrb[15].mxu1  ;;  %1707 = vmatmul.mubr.f32.gmra.mrb[120].mxu1 %v7480_v20 }
 0x22b   : > { %3929 = vmatmul.mubr.f32.gmra.mrb[56].mxu0 %v7736_v41  ;;  %4698 = vmatprep.mubr.msk.f32.mxu1 %vm355_vm0, %v7486_v52  ;;  %v8157_v4 = vld [vmem:[%s6238_s9 + $0x418] sm:$0xff] }
 0x22c   : > { %5308 = vmatprep.mubr.msk.f32.mxu0 %vm355_vm0, %v7741_v38 }
 0x22d   : > { %v7996_v16 = vpop.f32.mrb[16].mxu1 }
 0x22e   : > { %v1450_v22 = vpop.f32.mrb[17].mxu1  ;;  %1712 = vmatmul.mubr.f32.gmra.mrb[122].mxu1 %v7498_v18 }
 0x22f   : > { %3934 = vmatmul.mubr.f32.gmra.mrb[58].mxu0 %v7748_v30  ;;  %4699 = vmatprep.mubr.msk.f32.mxu1 %vm355_vm0, %v7504_v54 }
 0x230   : > { %5309 = vmatprep.mubr.msk.f32.mxu0 %vm355_vm0, %v7753_v43 }
 0x231   : > { %v8004_v13 = vpop.f32.mrb[18].mxu1 }
 0x232   : > { %v1455_v20 = vpop.f32.mrb[19].mxu1  ;;  %1717 = vmatmul.mubr.f32.gmra.mrb[124].mxu1 %v7516_v56 }
 0x233   : > { %3939 = vmatmul.mubr.f32.gmra.mrb[60].mxu0 %v7760_v47  ;;  %4700 = vmatprep.mubr.msk.f32.mxu1 %vm355_vm0, %v7522_v2  ;;  %v8172_v20 = vld [vmem:[%s6238_s9 + $0x428] sm:$0xff] }
 0x234   : > { %5310 = vmatprep.mubr.msk.f32.mxu0 %vm355_vm0, %v7765_v14 }
 0x235   : > { %v8012_v52 = vpop.f32.mrb[20].mxu1 }
 0x236   : > { %v1460_v18 = vpop.f32.mrb[21].mxu1  ;;  %1722 = vmatmul.mubr.f32.gmra.mrb[126].mxu1 %v7534_v15 }
 0x237   : > { %3944 = vmatmul.mubr.f32.gmra.mrb[62].mxu0 %v7772_v51  ;;  %4883 = vmatprep.mubr.msk.f32.mxu1 %vm355_vm0, %v7681_v25 }
 0x238   : > { %5311 = vmatprep.mubr.msk.f32.mxu0 %vm355_vm0, %v7777_v55 }
 0x239   : > { %v8020_v54 = vpop.f32.mrb[22].mxu1 }
 0x23a   : > { %v1465_v56 = vpop.f32.mrb[23].mxu1  ;;  %2361 = vmatmul.mubr.f32.vlgmr.msra.gmra.mrb[64].mxu1 %v7688_v26 }
 0x23b   : > { %3949 = vmatmul.mubr.f32.gmra.mrb[64].mxu0 %v7784_v3  ;;  %4884 = vmatprep.mubr.msk.f32.mxu1 %vm355_vm0, %v7693_v27  ;;  %v8186_v56 = vld [vmem:[%s6238_s9 + $0x438] sm:$0xff] }
 0x23c   : > { %5312 = vmatprep.mubr.msk.f32.mxu0 %vm355_vm0, %v7789_v58 }
 0x23d   : > { %v8028_v2 = vpop.f32.mrb[24].mxu1 }
 0x23e   : > { %v1470_v15 = vpop.f32.mrb[25].mxu1  ;;  %2366 = vmatmul.mubr.f32.gmra.mrb[66].mxu1 %v7700_v31 }
 0x23f   : > { %3954 = vmatmul.mubr.f32.gmra.mrb[66].mxu0 %v7796_v62  ;;  %4885 = vmatprep.mubr.msk.f32.mxu1 %vm355_vm0, %v7705_v35 }
 0x240   : > { %5313 = vmatprep.mubr.msk.f32.mxu0 %vm355_vm0, %v7801_v7 }
 0x241   : > { %v8036_v25 = vpop.f32.mrb[26].mxu1 }
 0x242   : > { %v1475_v26 = vpop.f32.mrb[27].mxu1  ;;  %2371 = vmatmul.mubr.f32.gmra.mrb[68].mxu1 %v7712_v24 }
 0x243   : > { %3959 = vmatmul.mubr.f32.gmra.mrb[68].mxu0 %v7808_v19  ;;  %4886 = vmatprep.mubr.msk.f32.mxu1 %vm355_vm0, %v7717_v36  ;;  %v8200_v26 = vld [vmem:[%s6238_s9 + $0x448] sm:$0xff] }
 0x244   : > { %5314 = vmatprep.mubr.msk.f32.mxu0 %vm355_vm0, %v7813_v33 }
 0x245   : > { %v8044_v27 = vpop.f32.mrb[28].mxu1 }
 0x246   : > { %v1480_v31 = vpop.f32.mrb[29].mxu1  ;;  %2376 = vmatmul.mubr.f32.gmra.mrb[70].mxu1 %v7724_v32 }
 0x247   : > { %3964 = vmatmul.mubr.f32.gmra.mrb[70].mxu0 %v7820_v40  ;;  %4887 = vmatprep.mubr.msk.f32.mxu1 %vm355_vm0, %v7729_v37 }
 0x248   : > { %5315 = vmatprep.mubr.msk.f32.mxu0 %vm355_vm0, %v7825_v8 }
 0x249   : > { %v8052_v35 = vpop.f32.mrb[30].mxu1 }
 0x24a   : > { %v1485_v24 = vpop.f32.mrb[31].mxu1  ;;  %2381 = vmatmul.mubr.f32.gmra.mrb[72].mxu1 %v7736_v41 }
 0x24b   : > { %3969 = vmatmul.mubr.f32.gmra.mrb[72].mxu0 %v7832_v9  ;;  %4888 = vmatprep.mubr.msk.f32.mxu1 %vm355_vm0, %v7741_v38  ;;  %v8215_v24 = vld [vmem:[%s6238_s9 + $0x458] sm:$0xff] }
 0x24c   : > { %5316 = vmatprep.mubr.msk.f32.mxu0 %vm355_vm0, %v7837_v12 }
 0x24d   : > { %v8060_v36 = vpop.f32.mrb[32].mxu1 }
 0x24e   : > { %v1490_v32 = vpop.f32.mrb[33].mxu1  ;;  %2386 = vmatmul.mubr.f32.gmra.mrb[74].mxu1 %v7748_v30 }
 0x24f   : > { %3974 = vmatmul.mubr.f32.gmra.mrb[74].mxu0 %v7844_v17  ;;  %4889 = vmatprep.mubr.msk.f32.mxu1 %vm355_vm0, %v7753_v43 }
 0x250   : > { %5317 = vmatprep.mubr.msk.f32.mxu0 %vm355_vm0, %v7849_v21 }
 0x251   : > { %v8068_v37 = vpop.f32.mrb[34].mxu1 }
 0x252   : > { %v1495_v41 = vpop.f32.mrb[35].mxu1  ;;  %2391 = vmatmul.mubr.f32.gmra.mrb[76].mxu1 %v7760_v47 }
 0x253   : > { %3979 = vmatmul.mubr.f32.gmra.mrb[76].mxu0 %v7856_v29  ;;  %4890 = vmatprep.mubr.msk.f32.mxu1 %vm355_vm0, %v7765_v14 }
 0x254   : > { %5318 = vmatprep.mubr.msk.f32.mxu0 %vm355_vm0, %v7861_v34 }
 0x255   : > { %v8076_v38 = vpop.f32.mrb[36].mxu1 }
 0x256   : > { %v1500_v30 = vpop.f32.mrb[37].mxu1  ;;  %2396 = vmatmul.mubr.f32.gmra.mrb[78].mxu1 %v7772_v51 }
 0x257   : > { %3984 = vmatmul.mubr.f32.gmra.mrb[78].mxu0 %v7868_v42  ;;  %4891 = vmatprep.mubr.msk.f32.mxu1 %vm355_vm0, %v7777_v55  ;;  %v8234_v30 = vld [vmem:[%s6238_s9 + $0x468] sm:$0xff] }
 0x258   : > { %5319 = vmatprep.mubr.msk.f32.mxu0 %vm355_vm0, %v7873_v49 }
 0x259   : > { %v8084_v43 = vpop.f32.mrb[38].mxu1 }
 0x25a   : > { %v1505_v47 = vpop.f32.mrb[39].mxu1  ;;  %2401 = vmatmul.mubr.f32.gmra.mrb[80].mxu1 %v7784_v3 }
 0x25b   : > { %3989 = vmatmul.mubr.f32.gmra.mrb[80].mxu0 %v7880_v53  ;;  %4892 = vmatprep.mubr.msk.f32.mxu1 %vm355_vm0, %v7789_v58 }
 0x25c   : > { %5320 = vmatprep.mubr.msk.f32.mxu0 %vm355_vm0, %v7885_v57 }
 0x25d   : > { %v8092_v14 = vpop.f32.mrb[40].mxu1 }
 0x25e   : > { %v1510_v51 = vpop.f32.mrb[41].mxu1  ;;  %2406 = vmatmul.mubr.f32.gmra.mrb[82].mxu1 %v7796_v62 }
 0x25f   : > { %3994 = vmatmul.mubr.f32.gmra.mrb[82].mxu0 %v7892_v59  ;;  %4893 = vmatprep.mubr.msk.f32.mxu1 %vm355_vm0, %v7801_v7 }
 0x260   : > { %5321 = vmatprep.mubr.msk.f32.mxu0 %vm355_vm0, %v7897_v60 }
 0x261   : > { %v8100_v55 = vpop.f32.mrb[42].mxu1 }
 0x262   : > { %v1515_v3 = vpop.f32.mrb[43].mxu1  ;;  %2411 = vmatmul.mubr.f32.gmra.mrb[84].mxu1 %v7808_v19 }
 0x263   : > { %3999 = vmatmul.mubr.f32.gmra.mrb[84].mxu0 %v7906_v0  ;;  %4894 = vmatprep.mubr.msk.f32.mxu1 %vm355_vm0, %v7813_v33  ;;  %v8253_v3 = vld [vmem:[%s6238_s9 + $0x478] sm:$0xff] }
 0x264   : > { %5322 = vmatprep.mubr.msk.f32.mxu0 %vm355_vm0, %v7911_v1 }
 0x265   : > { %v8108_v58 = vpop.f32.mrb[44].mxu1 }
 0x266   : > { %v1520_v62 = vpop.f32.mrb[45].mxu1  ;;  %2416 = vmatmul.mubr.f32.gmra.mrb[86].mxu1 %v7820_v40 }
 0x267   : > { %4004 = vmatmul.mubr.f32.gmra.mrb[86].mxu0 %v7920_v5  ;;  %4895 = vmatprep.mubr.msk.f32.mxu1 %vm355_vm0, %v7825_v8 }
 0x268   : > { %5323 = vmatprep.mubr.msk.f32.mxu0 %vm355_vm0, %v7925_v10 }
 0x269   : > { %v8116_v7 = vpop.f32.mrb[46].mxu1 }
 0x26a   : > { %v1525_v19 = vpop.f32.mrb[47].mxu1  ;;  %2421 = vmatmul.mubr.f32.gmra.mrb[88].mxu1 %v7832_v9 }
 0x26b   : > { %4009 = vmatmul.mubr.f32.gmra.mrb[88].mxu0 %v7934_v50  ;;  %4896 = vmatprep.mubr.msk.f32.mxu1 %vm355_vm0, %v7837_v12 }
 0x26c   : > { %5324 = vmatprep.mubr.msk.f32.mxu0 %vm355_vm0, %v7939_v28 }
 0x26d   : > { %v8124_v33 = vpop.f32.mrb[48].mxu1 }
 0x26e   : > { %v1530_v40 = vpop.f32.mrb[49].mxu1  ;;  %2426 = vmatmul.mubr.f32.gmra.mrb[90].mxu1 %v7844_v17  ;;  %v8143_v17 = vld [vmem:[%s6238_s9 + $0x408] sm:$0xff] }
 0x26f   : > { %4014 = vmatmul.mubr.f32.gmra.mrb[90].mxu0 %v7948_v45  ;;  %4897 = vmatprep.mubr.msk.f32.mxu1 %vm355_vm0, %v7849_v21 }
 0x270   : > { %5325 = vmatprep.mubr.msk.f32.mxu0 %vm355_vm0, %v7953_v48 }
 0x271   : > { %v8132_v8 = vpop.f32.mrb[50].mxu1 }
 0x272   : > { %v1535_v9 = vpop.f32.mrb[51].mxu1  ;;  %2431 = vmatmul.mubr.f32.gmra.mrb[92].mxu1 %v7856_v29  ;;  %v8152_v29 = vld [vmem:[%s6238_s9 + $0x400] sm:$0xff] }
 0x273   : > { %4019 = vmatmul.mubr.f32.gmra.mrb[92].mxu0 %v7962_v23  ;;  %4898 = vmatprep.mubr.msk.f32.mxu1 %vm355_vm0, %v7861_v34  ;;  %v5244_v9 = vld [vmem:[%s6238_s9 + $0x488] sm:$0xff] }
 0x274   : > { %5326 = vmatprep.mubr.msk.f32.mxu0 %vm355_vm0, %v7967_v63 }
 0x275   : > { %v8140_v12 = vpop.f32.mrb[52].mxu1 }
 0x276   : > { %v1540_v21 = vpop.f32.mrb[53].mxu1  ;;  %2436 = vmatmul.mubr.f32.gmra.mrb[94].mxu1 %v7868_v42  ;;  %v8166_v42 = vld [vmem:[%s6238_s9 + $0x410] sm:$0xff] }
 0x277   : > { %4024 = vmatmul.mubr.f32.gmra.mrb[94].mxu0 %v7976_v6  ;;  %4899 = vmatprep.mubr.msk.f32.mxu1 %vm355_vm0, %v7873_v49 }
 0x278   : > { %5327 = vmatprep.mubr.msk.f32.mxu0 %vm355_vm0, %v8143_v17 }
 0x279   : > { %v8154_v34 = vpop.f32.mrb[54].mxu1 }
 0x27a   : > { %v1545_v22 = vpop.f32.mrb[55].mxu1  ;;  %2441 = vmatmul.mubr.f32.gmra.mrb[96].mxu1 %v7880_v53  ;;  %v8181_v53 = vld [vmem:[%s6238_s9 + $0x420] sm:$0xff] }
 0x27b   : > { %4029 = vmatmul.mubr.f32.gmra.mrb[96].mxu0 %v8152_v29  ;;  %4900 = vmatprep.mubr.msk.f32.mxu1 %vm355_vm0, %v7885_v57 }
 0x27c   : > { %5328 = vmatprep.mubr.msk.f32.mxu0 %vm355_vm0, %v8157_v4 }
 0x27d   : > { %v8169_v49 = vpop.f32.mrb[56].mxu1 }
 0x27e   : > { %v1550_v18 = vpop.f32.mrb[57].mxu1  ;;  %2446 = vmatmul.mubr.f32.gmra.mrb[98].mxu1 %v7892_v59  ;;  %v8195_v59 = vld [vmem:[%s6238_s9 + $0x430] sm:$0xff] }
 0x27f   : > { %4034 = vmatmul.mubr.f32.gmra.mrb[98].mxu0 %v8166_v42  ;;  %4901 = vmatprep.mubr.msk.f32.mxu1 %vm355_vm0, %v7897_v60 }
 0x280   : > { %5329 = vmatprep.mubr.msk.f32.mxu0 %vm355_vm0, %v8172_v20 }
 0x281   : > { %v8183_v57 = vpop.f32.mrb[58].mxu1 }
 0x282   : > { %v1555_v15 = vpop.f32.mrb[59].mxu1  ;;  %2451 = vmatmul.mubr.f32.gmra.mrb[100].mxu1 %v7906_v0  ;;  %v8210_v0 = vld [vmem:[%s6238_s9 + $0x440] sm:$0xff] }
 0x283   : > { %4039 = vmatmul.mubr.f32.gmra.mrb[100].mxu0 %v8181_v53  ;;  %4902 = vmatprep.mubr.msk.f32.mxu1 %vm355_vm0, %v7911_v1 }
 0x284   : > { %5330 = vmatprep.mubr.msk.f32.mxu0 %vm355_vm0, %v8186_v56 }
 0x285   : > { %v8197_v60 = vpop.f32.mrb[60].mxu1 }
 0x286   : > { %v1560_v31 = vpop.f32.mrb[61].mxu1  ;;  %2456 = vmatmul.mubr.f32.gmra.mrb[102].mxu1 %v7920_v5  ;;  %v8220_v5 = vld [vmem:[%s8553_s2] ss:$0 sm:$0xff] }
 0x287   : > { %4044 = vmatmul.mubr.f32.gmra.mrb[102].mxu0 %v8195_v59  ;;  %4903 = vmatprep.mubr.msk.f32.mxu1 %vm355_vm0, %v7925_v10  ;;  %v8229_v10 = vld [vmem:[%s6238_s9 + $0x450] sm:$0xff]  ;;  %v5521_v41 = vadd.f32 %v8220_v5, %v7899_v61  ;;  %v8248_v61 = vld [vmem:[%s6238_s9 + $0x460] sm:$0xff]  ;;  %v5525_v40 = vadd.f32 %v8220_v5, %v7927_v46 }
 0x288   : > { %5331 = vmatprep.mubr.msk.f32.mxu0 %vm355_vm0, %v8200_v26  ;;  %v5243_v46 = vld [vmem:[%s6238_s9 + $0x480] sm:$0xff] }
 0x289   : > { %v8212_v1 = vpop.f32.mrb[62].mxu1 }
 0x28a   : > { %v1565_v32 = vpop.f32.mrb[63].mxu1  ;;  %2461 = vmatmul.mubr.f32.gmra.mrb[104].mxu1 %v7934_v50 }
 0x28b   : > { %4049 = vmatmul.mubr.f32.gmra.mrb[104].mxu0 %v8210_v0  ;;  %4904 = vmatprep.mubr.msk.f32.mxu1 %vm355_vm0, %v7939_v28  ;;  %v5523_v28 = vadd.f32 %v8220_v5, %v7913_v44  ;;  %v8264_v44 = vld [vmem:[%s6238_s9 + $0x470] sm:$0xff] }
 0x28c   : > { %5332 = vmatprep.mubr.msk.f32.mxu0 %vm355_vm0, %v8215_v24 }
 0x28e   : > { %v3790_v50 = vpop.f32.mrb[0].mxu0  ;;  %2466 = vmatmul.mubr.f32.gmra.mrb[106].mxu1 %v7948_v45 }
 0x28f   : > { %v5522_v47 = vadd.f32 %v5521_v41, %v3790_v50  ;;  %v3792_v51 = vpop.f32.mrb[1].mxu0  ;;  %4054 = vmatmul.mubr.f32.gmra.mrb[106].mxu0 %v8229_v10  ;;  %4905 = vmatprep.mubr.msk.f32.mxu1 %vm355_vm0, %v7953_v48 }
 0x290   : > { %5333 = vmatprep.mubr.msk.f32.mxu0 %vm355_vm0, %v8234_v30  ;;  %v5248_v51 = vld [vmem:[%s6238_s9 + $0x4a8] sm:$0xff] }
 0x291   : > { %v4173_v45 = vmax.f32 %v5522_v47, 0.0 }
 0x292   : > { %v3795_v48 = vpop.f32.mrb[2].mxu0  ;;  %2471 = vmatmul.mubr.f32.gmra.mrb[108].mxu1 %v7962_v23 }
 0x293   : > { %4237 = vst.msk [vmem:[%s8243_s21] sm:$0xff] %vm355_vm0, %v4173_v45  ;;  %v5524_v62 = vadd.f32 %v5523_v28, %v3795_v48  ;;  %v3797_v19 = vpop.f32.mrb[3].mxu0  ;;  %4059 = vmatmul.mubr.f32.gmra.mrb[108].mxu0 %v8248_v61  ;;  %4906 = vmatprep.mubr.msk.f32.mxu1 %vm355_vm0, %v7967_v63  ;;  %v5527_v63 = vadd.f32 %v8220_v5, %v7941_v39  ;;  %v8585_v39 = vld [vmem:[#allocation2_spill] sm:$0xff]  ;;  %v8586_v48 = vld [vmem:[#allocation3_spill] sm:$0xff] }
 0x294   : > { %5334 = vmatprep.mubr.msk.f32.mxu0 %vm355_vm0, %v8253_v3  ;;  %v5529_v50 = vadd.f32 %v8220_v5, %v8585_v39 }
 0x295   : > { %v4174_v23 = vmax.f32 %v5524_v62, 0.0  ;;  %v5531_v62 = vadd.f32 %v8220_v5, %v8586_v48 }
 0x296   : > { %v3800_v21 = vpop.f32.mrb[4].mxu0  ;;  %2476 = vmatmul.mubr.f32.gmra.mrb[110].mxu1 %v7976_v6  ;;  %v5246_v6 = vld [vmem:[%s6238_s9 + $0x498] sm:$0xff] }
 0x297   : > { %4238 = vst.msk [vmem:[%s8243_s21 + $0x8] sm:$0xff] %vm355_vm0, %v4174_v23  ;;  %v5526_v22 = vadd.f32 %v5525_v40, %v3800_v21  ;;  %v3802_v18 = vpop.f32.mrb[5].mxu0  ;;  %4064 = vmatmul.mubr.f32.gmra.mrb[110].mxu0 %v8264_v44  ;;  %4907 = vmatprep.mubr.msk.f32.mxu1 %vm355_vm0, %v8143_v17  ;;  %v5245_v17 = vld [vmem:[%s6238_s9 + $0x490] sm:$0xff]  ;;  %v5250_v40 = vld [vmem:[%s6238_s9 + $0x4b8] sm:$0xff] }
 0x298   : > { %5335 = vmatprep.mubr.msk.f32.mxu0 %vm355_vm0, %v5244_v9  ;;  %v8587_v21 = vld [vmem:[#allocation4_spill] sm:$0xff] }
 0x299   : > { %v4175_v15 = vmax.f32 %v5526_v22, 0.0  ;;  %v5533_v22 = vadd.f32 %v8220_v5, %v8587_v21 }
 0x29a   : > { %v3805_v31 = vpop.f32.mrb[6].mxu0  ;;  %2481 = vmatmul.mubr.f32.gmra.mrb[112].mxu1 %v8152_v29 }
 0x29b   : > { %4239 = vst.msk [vmem:[%s8243_s21 + $0x10] sm:$0xff] %vm355_vm0, %v4175_v15  ;;  %v5528_v32 = vadd.f32 %v5527_v63, %v3805_v31  ;;  %v3807_v41 = vpop.f32.mrb[7].mxu0  ;;  %4069 = vmatmul.mubr.f32.gmra.mrb[112].mxu0 %v5243_v46  ;;  %4908 = vmatprep.mubr.msk.f32.mxu1 %vm355_vm0, %v8157_v4  ;;  %v5247_v4 = vld [vmem:[%s6238_s9 + $0x4a0] sm:$0xff]  ;;  %v5252_v46 = vld [vmem:[%s6238_s9 + $0x4c8] sm:$0xff] }
 0x29c   : > { %5336 = vmatprep.mubr.msk.f32.mxu0 %vm355_vm0, %v5246_v6  ;;  %v5535_v6 = vadd.f32 %v8220_v5, %v7988_v11  ;;  %v5537_v11 = vadd.f32 %v8220_v5, %v7996_v16  ;;  %v5539_v16 = vadd.f32 %v8220_v5, %v8004_v13  ;;  %v5541_v13 = vadd.f32 %v8220_v5, %v8012_v52 }
 0x29d   : > { %v4176_v47 = vmax.f32 %v5528_v32, 0.0  ;;  %v5254_v32 = vld [vmem:[%s6238_s9 + $0x4d8] sm:$0xff] }
 0x29e   : > { %v3810_v29 = vpop.f32.mrb[8].mxu0  ;;  %2486 = vmatmul.mubr.f32.gmra.mrb[114].mxu1 %v8166_v42 }
 0x29f   : > { %4240 = vst.msk [vmem:[%s8243_s21 + $0x18] sm:$0xff] %vm355_vm0, %v4176_v47  ;;  %v5530_v28 = vadd.f32 %v5529_v50, %v3810_v29  ;;  %v3812_v45 = vpop.f32.mrb[9].mxu0  ;;  %4074 = vmatmul.mubr.f32.gmra.mrb[114].mxu0 %v5245_v17  ;;  %4909 = vmatprep.mubr.msk.f32.mxu1 %vm355_vm0, %v8172_v20  ;;  %v5249_v20 = vld [vmem:[%s6238_s9 + $0x4b0] sm:$0xff]  ;;  %v5256_v50 = vld [vmem:[%s6238_s9 + $0x4e8] sm:$0xff] }
 0x2a0   : > { %5337 = vmatprep.mubr.msk.f32.mxu0 %vm355_vm0, %v5248_v51 }
 0x2a1   : > { %v4177_v19 = vmax.f32 %v5530_v28, 0.0  ;;  %v5258_v28 = vld [vmem:[%s6238_s9 + $0x4f8] sm:$0xff] }
 0x2a2   : > { %v3815_v42 = vpop.f32.mrb[10].mxu0  ;;  %2491 = vmatmul.mubr.f32.gmra.mrb[116].mxu1 %v8181_v53 }
 0x2a3   : > { %4241 = vst.msk [vmem:[%s8243_s21 + $0x20] sm:$0xff] %vm355_vm0, %v4177_v19  ;;  %v5532_v23 = vadd.f32 %v5531_v62, %v3815_v42  ;;  %v3817_v9 = vpop.f32.mrb[11].mxu0  ;;  %4079 = vmatmul.mubr.f32.gmra.mrb[116].mxu0 %v5247_v4  ;;  %4910 = vmatprep.mubr.msk.f32.mxu1 %vm355_vm0, %v8186_v56  ;;  %v5251_v56 = vld [vmem:[%s6238_s9 + $0x4c0] sm:$0xff] }
 0x2a4   : > { %5338 = vmatprep.mubr.msk.f32.mxu0 %vm355_vm0, %v5250_v40  ;;  %v5545_v9 = vadd.f32 %v8220_v5, %v8028_v2  ;;  %v5549_v2 = vadd.f32 %v8220_v5, %v8044_v27  ;;  %v5553_v27 = vadd.f32 %v8220_v5, %v8060_v36  ;;  %v5557_v36 = vadd.f32 %v8220_v5, %v8076_v38 }
 0x2a5   : > { %v4178_v18 = vmax.f32 %v5532_v23, 0.0  ;;  %v5561_v38 = vadd.f32 %v8220_v5, %v8092_v14  ;;  %v5565_v14 = vadd.f32 %v8220_v5, %v8108_v58  ;;  %v5569_v58 = vadd.f32 %v8220_v5, %v8124_v33 }
 0x2a6   : > { %v3820_v53 = vpop.f32.mrb[12].mxu0  ;;  %2496 = vmatmul.mubr.f32.gmra.mrb[118].mxu1 %v8195_v59  ;;  %v5573_v33 = vadd.f32 %v8220_v5, %v8140_v12  ;;  %v5577_v12 = vadd.f32 %v8220_v5, %v8169_v49 }
 0x2a7   : > { %4242 = vst.msk [vmem:[%s8243_s21 + $0x28] sm:$0xff] %vm355_vm0, %v4178_v18  ;;  %v5534_v63 = vadd.f32 %v5533_v22, %v3820_v53  ;;  %v3822_v15 = vpop.f32.mrb[13].mxu0  ;;  %4084 = vmatmul.mubr.f32.gmra.mrb[118].mxu0 %v5249_v20  ;;  %4911 = vmatprep.mubr.msk.f32.mxu1 %vm355_vm0, %v8200_v26  ;;  %v5253_v26 = vld [vmem:[%s6238_s9 + $0x4d0] sm:$0xff] }
 0x2a8   : > { %5339 = vmatprep.mubr.msk.f32.mxu0 %vm355_vm0, %v5252_v46 }
 0x2a9   : > { %v4179_v31 = vmax.f32 %v5534_v63, 0.0 }
 0x2aa   : > { %v3825_v59 = vpop.f32.mrb[14].mxu0  ;;  %2501 = vmatmul.mubr.f32.gmra.mrb[120].mxu1 %v8210_v0 }
 0x2ab   : > { %4243 = vst.msk [vmem:[%s8243_s21 + $0x30] sm:$0xff] %vm355_vm0, %v4179_v31  ;;  %v5536_v41 = vadd.f32 %v5535_v6, %v3825_v59  ;;  %v3827_v17 = vpop.f32.mrb[15].mxu0  ;;  %4089 = vmatmul.mubr.f32.gmra.mrb[120].mxu0 %v5251_v56  ;;  %4912 = vmatprep.mubr.msk.f32.mxu1 %vm355_vm0, %v8215_v24  ;;  %v5255_v24 = vld [vmem:[%s6238_s9 + $0x4e0] sm:$0xff] }
 0x2ac   : > { %5340 = vmatprep.mubr.msk.f32.mxu0 %vm355_vm0, %v5254_v32 }
 0x2ad   : > { %v4180_v39 = vmax.f32 %v5536_v41, 0.0 }
 0x2ae   : > { %v3830_v0 = vpop.f32.mrb[16].mxu0  ;;  %2506 = vmatmul.mubr.f32.gmra.mrb[122].mxu1 %v8229_v10 }
 0x2af   : > { %4244 = vst.msk [vmem:[%s8243_s21 + $0x38] sm:$0xff] %vm355_vm0, %v4180_v39  ;;  %v5538_v47 = vadd.f32 %v5537_v11, %v3830_v0  ;;  %v3832_v51 = vpop.f32.mrb[17].mxu0  ;;  %4094 = vmatmul.mubr.f32.gmra.mrb[122].mxu0 %v5253_v26  ;;  %4913 = vmatprep.mubr.msk.f32.mxu1 %vm355_vm0, %v8234_v30  ;;  %v5257_v30 = vld [vmem:[%s6238_s9 + $0x4f0] sm:$0xff] }
 0x2b0   : > { %5341 = vmatprep.mubr.msk.f32.mxu0 %vm355_vm0, %v5256_v50 }
 0x2b1   : > { %v4181_v29 = vmax.f32 %v5538_v47, 0.0 }
 0x2b2   : > { %v3835_v45 = vpop.f32.mrb[18].mxu0  ;;  %2511 = vmatmul.mubr.f32.gmra.mrb[124].mxu1 %v8248_v61 }
 0x2b3   : > { %4245 = vst.msk [vmem:[%s8243_s21 + $0x40] sm:$0xff] %vm355_vm0, %v4181_v29  ;;  %v5540_v10 = vadd.f32 %v5539_v16, %v3835_v45  ;;  %v3837_v4 = vpop.f32.mrb[19].mxu0  ;;  %4099 = vmatmul.mubr.f32.gmra.mrb[124].mxu0 %v5255_v24  ;;  %4914 = vmatprep.mubr.msk.f32.mxu1 %vm355_vm0, %v8253_v3  ;;  %v5543_v3 = vadd.f32 %v8220_v5, %v8020_v54 }
 0x2b4   : > { %5342 = vmatprep.mubr.msk.f32.mxu0 %vm355_vm0, %v5258_v28  ;;  %v5547_v54 = vadd.f32 %v8220_v5, %v8036_v25  ;;  %v5551_v25 = vadd.f32 %v8220_v5, %v8052_v35  ;;  %v5555_v35 = vadd.f32 %v8220_v5, %v8068_v37  ;;  %v5559_v37 = vadd.f32 %v8220_v5, %v8084_v43 }
 0x2b5   : > { %v4182_v48 = vmax.f32 %v5540_v10, 0.0  ;;  %v5563_v43 = vadd.f32 %v8220_v5, %v8100_v55  ;;  %v5567_v55 = vadd.f32 %v8220_v5, %v8116_v7  ;;  %v5571_v7 = vadd.f32 %v8220_v5, %v8132_v8 }
 0x2b6   : > { %v3840_v62 = vpop.f32.mrb[20].mxu0  ;;  %2516 = vmatmul.mubr.f32.gmra.mrb[126].mxu1 %v8264_v44  ;;  %v5575_v8 = vadd.f32 %v8220_v5, %v8154_v34  ;;  %v5579_v34 = vadd.f32 %v8220_v5, %v8183_v57 }
 0x2b7   : > { %4246 = vst.msk [vmem:[%s8243_s21 + $0x48] sm:$0xff] %vm355_vm0, %v4182_v48  ;;  %v5542_v61 = vadd.f32 %v5541_v13, %v3840_v62  ;;  %v3842_v19 = vpop.f32.mrb[21].mxu0  ;;  %4104 = vmatmul.mubr.f32.gmra.mrb[126].mxu0 %v5257_v30 }
 0x2b9   : > { %v4183_v40 = vmax.f32 %v5542_v61, 0.0 }
 0x2ba   : > { %v3845_v42 = vpop.f32.mrb[22].mxu0 }
 0x2bb   : > { %4247 = vst.msk [vmem:[%s8243_s21 + $0x50] sm:$0xff] %vm355_vm0, %v4183_v40  ;;  %v5544_v23 = vadd.f32 %v5543_v3, %v3845_v42  ;;  %v3847_v52 = vpop.f32.mrb[23].mxu0 }
 0x2bd   : > { %v4184_v44 = vmax.f32 %v5544_v23, 0.0 }
 0x2be   : > { %v3850_v20 = vpop.f32.mrb[24].mxu0 }
 0x2bf   : > { %4248 = vst.msk [vmem:[%s8243_s21 + $0x58] sm:$0xff] %vm355_vm0, %v4184_v44  ;;  %v5546_v21 = vadd.f32 %v5545_v9, %v3850_v20  ;;  %v3852_v22 = vpop.f32.mrb[25].mxu0 }
 0x2c1   : > { %v4185_v18 = vmax.f32 %v5546_v21, 0.0 }
 0x2c2   : > { %v3855_v46 = vpop.f32.mrb[26].mxu0 }
 0x2c3   : > { %4249 = vst.msk [vmem:[%s8243_s21 + $0x60] sm:$0xff] %vm355_vm0, %v4185_v18  ;;  %v5548_v53 = vadd.f32 %v5547_v54, %v3855_v46  ;;  %v3857_v63 = vpop.f32.mrb[27].mxu0 }
 0x2c5   : > { %v4186_v15 = vmax.f32 %v5548_v53, 0.0 }
 0x2c6   : > { %v3860_v56 = vpop.f32.mrb[28].mxu0 }
 0x2c7   : > { %4250 = vst.msk [vmem:[%s8243_s21 + $0x68] sm:$0xff] %vm355_vm0, %v4186_v15  ;;  %v5550_v6 = vadd.f32 %v5549_v2, %v3860_v56  ;;  %v3862_v31 = vpop.f32.mrb[29].mxu0 }
 0x2c9   : > { %v4187_v32 = vmax.f32 %v5550_v6, 0.0 }
 0x2ca   : > { %v3865_v59 = vpop.f32.mrb[30].mxu0 }
 0x2cb   : > { %4251 = vst.msk [vmem:[%s8243_s21 + $0x70] sm:$0xff] %vm355_vm0, %v4187_v32  ;;  %v5552_v41 = vadd.f32 %v5551_v25, %v3865_v59  ;;  %v3867_v17 = vpop.f32.mrb[31].mxu0 }
 0x2cd   : > { %v4188_v26 = vmax.f32 %v5552_v41, 0.0 }
 0x2ce   : > { %v3870_v11 = vpop.f32.mrb[32].mxu0 }
 0x2cf   : > { %4252 = vst.msk [vmem:[%s8243_s21 + $0x78] sm:$0xff] %vm355_vm0, %v4188_v26  ;;  %v5554_v39 = vadd.f32 %v5553_v27, %v3870_v11  ;;  %v3872_v50 = vpop.f32.mrb[33].mxu0 }
 0x2d1   : > { %v4189_v0 = vmax.f32 %v5554_v39, 0.0 }
 0x2d2   : > { %v3875_v47 = vpop.f32.mrb[34].mxu0 }
 0x2d3   : > { %4253 = vst.msk [vmem:[%s8243_s21 + $0x80] sm:$0xff] %vm355_vm0, %v4189_v0  ;;  %v5556_v51 = vadd.f32 %v5555_v35, %v3875_v47  ;;  %v3877_v24 = vpop.f32.mrb[35].mxu0 }
 0x2d5   : > { %v4190_v16 = vmax.f32 %v5556_v51, 0.0 }
 0x2d6   : > { %v3880_v29 = vpop.f32.mrb[36].mxu0 }
 0x2d7   : > { %4254 = vst.msk [vmem:[%s8243_s21 + $0x88] sm:$0xff] %vm355_vm0, %v4190_v16  ;;  %v5558_v28 = vadd.f32 %v5557_v36, %v3880_v29  ;;  %v3882_v45 = vpop.f32.mrb[37].mxu0  ;;  %v5581_v16 = vadd.f32 %v8220_v5, %v8197_v60 }
 0x2d9   : > { %v4191_v10 = vmax.f32 %v5558_v28, 0.0 }
 0x2da   : > { %v3885_v4 = vpop.f32.mrb[38].mxu0 }
 0x2db   : > { %4255 = vst.msk [vmem:[%s8243_s21 + $0x90] sm:$0xff] %vm355_vm0, %v4191_v10  ;;  %v5560_v30 = vadd.f32 %v5559_v37, %v3885_v4  ;;  %v3887_v13 = vpop.f32.mrb[39].mxu0  ;;  %v5583_v37 = vadd.f32 %v8220_v5, %v8212_v1 }
 0x2dd   : > { %v4192_v48 = vmax.f32 %v5560_v30, 0.0 }
 0x2de   : > { %v3890_v62 = vpop.f32.mrb[40].mxu0 }
 0x2df   : > { %4256 = vst.msk [vmem:[%s8243_s21 + $0x98] sm:$0xff] %vm355_vm0, %v4192_v48  ;;  %v5562_v61 = vadd.f32 %v5561_v38, %v3890_v62  ;;  %v3892_v19 = vpop.f32.mrb[41].mxu0 }
 0x2e1   : > { %v4193_v3 = vmax.f32 %v5562_v61, 0.0 }
 0x2e2   : > { %v3895_v40 = vpop.f32.mrb[42].mxu0 }
 0x2e3   : > { %4257 = vst.msk [vmem:[%s8243_s21 + $0xa0] sm:$0xff] %vm355_vm0, %v4193_v3  ;;  %v5564_v42 = vadd.f32 %v5563_v43, %v3895_v40  ;;  %v3897_v23 = vpop.f32.mrb[43].mxu0 }
 0x2e5   : > { %v4194_v52 = vmax.f32 %v5564_v42, 0.0 }
 0x2e6   : > { %v3900_v9 = vpop.f32.mrb[44].mxu0 }
 0x2e7   : > { %4258 = vst.msk [vmem:[%s8243_s21 + $0xa8] sm:$0xff] %vm355_vm0, %v4194_v52  ;;  %v5566_v44 = vadd.f32 %v5565_v14, %v3900_v9  ;;  %v3902_v20 = vpop.f32.mrb[45].mxu0 }
 0x2e9   : > { %v4195_v21 = vmax.f32 %v5566_v44, 0.0 }
 0x2ea   : > { %v3905_v22 = vpop.f32.mrb[46].mxu0 }
 0x2eb   : > { %4259 = vst.msk [vmem:[%s8243_s21 + $0xb0] sm:$0xff] %vm355_vm0, %v4195_v21  ;;  %v5568_v54 = vadd.f32 %v5567_v55, %v3905_v22  ;;  %v3907_v18 = vpop.f32.mrb[47].mxu0 }
 0x2ed   : > { %v4196_v46 = vmax.f32 %v5568_v54, 0.0 }
 0x2ee   : > { %v3910_v53 = vpop.f32.mrb[48].mxu0 }
 0x2ef   : > { %4260 = vst.msk [vmem:[%s8243_s21 + $0xb8] sm:$0xff] %vm355_vm0, %v4196_v46  ;;  %v5570_v63 = vadd.f32 %v5569_v58, %v3910_v53  ;;  %v3912_v2 = vpop.f32.mrb[49].mxu0 }
 0x2f1   : > { %v4197_v15 = vmax.f32 %v5570_v63, 0.0 }
 0x2f2   : > { %v3915_v56 = vpop.f32.mrb[50].mxu0 }
 0x2f3   : > { %4261 = vst.msk [vmem:[%s8243_s21 + $0xc0] sm:$0xff] %vm355_vm0, %v4197_v15  ;;  %v5572_v6 = vadd.f32 %v5571_v7, %v3915_v56  ;;  %v3917_v31 = vpop.f32.mrb[51].mxu0 }
 0x2f5   : > { %v4198_v25 = vmax.f32 %v5572_v6, 0.0 }
 0x2f6   : > { %v3920_v32 = vpop.f32.mrb[52].mxu0 }
 0x2f7   : > { %4262 = vst.msk [vmem:[%s8243_s21 + $0xc8] sm:$0xff] %vm355_vm0, %v4198_v25  ;;  %v5574_v59 = vadd.f32 %v5573_v33, %v3920_v32  ;;  %v3922_v41 = vpop.f32.mrb[53].mxu0 }
 0x2f9   : > { %v4199_v17 = vmax.f32 %v5574_v59, 0.0 }
 0x2fa   : > { %v3925_v27 = vpop.f32.mrb[54].mxu0 }
 0x2fb   : > { %4263 = vst.msk [vmem:[%s8243_s21 + $0xd0] sm:$0xff] %vm355_vm0, %v4199_v17  ;;  %v5576_v26 = vadd.f32 %v5575_v8, %v3925_v27  ;;  %v3927_v11 = vpop.f32.mrb[55].mxu0 }
 0x2fd   : > { %v4200_v39 = vmax.f32 %v5576_v26, 0.0 }
 0x2fe   : > { %v3930_v50 = vpop.f32.mrb[56].mxu0 }
 0x2ff   : > { %4264 = vst.msk [vmem:[%s8243_s21 + $0xd8] sm:$0xff] %vm355_vm0, %v4200_v39  ;;  %v5578_v35 = vadd.f32 %v5577_v12, %v3930_v50  ;;  %v3932_v0 = vpop.f32.mrb[57].mxu0 }
 0x301   : > { %v4201_v47 = vmax.f32 %v5578_v35, 0.0 }
 0x302   : > { %v3935_v51 = vpop.f32.mrb[58].mxu0 }
 0x303   : > { %4265 = vst.msk [vmem:[%s8243_s21 + $0xe0] sm:$0xff] %vm355_vm0, %v4201_v47  ;;  %v5580_v24 = vadd.f32 %v5579_v34, %v3935_v51  ;;  %v3937_v36 = vpop.f32.mrb[59].mxu0 }
 0x305   : > { %v4202_v49 = vmax.f32 %v5580_v24, 0.0 }
 0x306   : > { %v3940_v29 = vpop.f32.mrb[60].mxu0 }
 0x307   : > { %4266 = vst.msk [vmem:[%s8243_s21 + $0xe8] sm:$0xff] %vm355_vm0, %v4202_v49  ;;  %v5582_v28 = vadd.f32 %v5581_v16, %v3940_v29  ;;  %v3942_v45 = vpop.f32.mrb[61].mxu0 }
 0x309   : > { %v4203_v57 = vmax.f32 %v5582_v28, 0.0 }
 0x30a   : > { %v3945_v10 = vpop.f32.mrb[62].mxu0 }
 0x30b   : > { %4267 = vst.msk [vmem:[%s8243_s21 + $0xf0] sm:$0xff] %vm355_vm0, %v4203_v57  ;;  %v5584_v4 = vadd.f32 %v5583_v37, %v3945_v10  ;;  %v3947_v30 = vpop.f32.mrb[63].mxu0 }
 0x30d   : > { %v4204_v13 = vmax.f32 %v5584_v4, 0.0  ;;  %v2362_v38 = vpop.f32.mrb[64].mxu1 }
 0x30e   : > { %v5585_v60 = vadd.f32 %v8220_v5, %v2362_v38  ;;  %v3950_v48 = vpop.f32.mrb[64].mxu0  ;;  %v2364_v62 = vpop.f32.mrb[65].mxu1 }
 0x30f   : > { %4268 = vst.msk [vmem:[%s8243_s21 + $0xf8] sm:$0xff] %vm355_vm0, %v4204_v13  ;;  %v3952_v61 = vpop.f32.mrb[65].mxu0 }
 0x310   : > { %v5586_v19 = vadd.f32 %v5585_v60, %v3950_v48 }
 0x311   : > { %v2367_v43 = vpop.f32.mrb[66].mxu1 }
 0x312   : > { %v4205_v1 = vmax.f32 %v5586_v19, 0.0  ;;  %v5587_v3 = vadd.f32 %v8220_v5, %v2367_v43  ;;  %v3955_v40 = vpop.f32.mrb[66].mxu0  ;;  %v2369_v42 = vpop.f32.mrb[67].mxu1 }
 0x313   : > { %v3957_v23 = vpop.f32.mrb[67].mxu0 }
 0x314   : > { %4269 = vst.msk [vmem:[%s8243_s21 + $0x100] sm:$0xff] %vm355_vm0, %v4205_v1  ;;  %v5588_v14 = vadd.f32 %v5587_v3, %v3955_v40 }
 0x315   : > { %v2372_v52 = vpop.f32.mrb[68].mxu1 }
 0x316   : > { %v4206_v9 = vmax.f32 %v5588_v14, 0.0  ;;  %v5589_v44 = vadd.f32 %v8220_v5, %v2372_v52  ;;  %v3960_v20 = vpop.f32.mrb[68].mxu0  ;;  %v2374_v55 = vpop.f32.mrb[69].mxu1 }
 0x317   : > { %v3962_v21 = vpop.f32.mrb[69].mxu0 }
 0x318   : > { %4270 = vst.msk [vmem:[%s8243_s21 + $0x108] sm:$0xff] %vm355_vm0, %v4206_v9  ;;  %v5590_v22 = vadd.f32 %v5589_v44, %v3960_v20 }
 0x319   : > { %v2377_v54 = vpop.f32.mrb[70].mxu1 }
 0x31a   : > { %v4207_v18 = vmax.f32 %v5590_v22, 0.0  ;;  %v5591_v58 = vadd.f32 %v8220_v5, %v2377_v54  ;;  %v3965_v46 = vpop.f32.mrb[70].mxu0  ;;  %v2379_v53 = vpop.f32.mrb[71].mxu1 }
 0x31b   : > { %v3967_v63 = vpop.f32.mrb[71].mxu0 }
 0x31c   : > { %4271 = vst.msk [vmem:[%s8243_s21 + $0x110] sm:$0xff] %vm355_vm0, %v4207_v18  ;;  %v5592_v2 = vadd.f32 %v5591_v58, %v3965_v46 }
 0x31d   : > { %v2382_v7 = vpop.f32.mrb[72].mxu1 }
 0x31e   : > { %v4208_v15 = vmax.f32 %v5592_v2, 0.0  ;;  %v5593_v56 = vadd.f32 %v8220_v5, %v2382_v7  ;;  %v3970_v6 = vpop.f32.mrb[72].mxu0  ;;  %v2384_v31 = vpop.f32.mrb[73].mxu1 }
 0x31f   : > { %v3972_v33 = vpop.f32.mrb[73].mxu0 }
 0x320   : > { %4272 = vst.msk [vmem:[%s8243_s21 + $0x118] sm:$0xff] %vm355_vm0, %v4208_v15  ;;  %v5594_v25 = vadd.f32 %v5593_v56, %v3970_v6 }
 0x321   : > { %v2387_v32 = vpop.f32.mrb[74].mxu1 }
 0x322   : > { %v4209_v59 = vmax.f32 %v5594_v25, 0.0  ;;  %v5595_v41 = vadd.f32 %v8220_v5, %v2387_v32  ;;  %v3975_v8 = vpop.f32.mrb[74].mxu0  ;;  %v2389_v17 = vpop.f32.mrb[75].mxu1 }
 0x323   : > { %v3977_v27 = vpop.f32.mrb[75].mxu0 }
 0x324   : > { %4273 = vst.msk [vmem:[%s8243_s21 + $0x120] sm:$0xff] %vm355_vm0, %v4209_v59  ;;  %v5596_v26 = vadd.f32 %v5595_v41, %v3975_v8 }
 0x325   : > { %v2392_v11 = vpop.f32.mrb[76].mxu1 }
 0x326   : > { %v4210_v12 = vmax.f32 %v5596_v26, 0.0  ;;  %v5597_v39 = vadd.f32 %v8220_v5, %v2392_v11  ;;  %v3980_v50 = vpop.f32.mrb[76].mxu0  ;;  %v2394_v35 = vpop.f32.mrb[77].mxu1 }
 0x327   : > { %v3982_v0 = vpop.f32.mrb[77].mxu0 }
 0x328   : > { %4274 = vst.msk [vmem:[%s8243_s21 + $0x128] sm:$0xff] %vm355_vm0, %v4210_v12  ;;  %v5598_v34 = vadd.f32 %v5597_v39, %v3980_v50 }
 0x329   : > { %v2397_v47 = vpop.f32.mrb[78].mxu1 }
 0x32a   : > { %v4211_v51 = vmax.f32 %v5598_v34, 0.0  ;;  %v5599_v24 = vadd.f32 %v8220_v5, %v2397_v47  ;;  %v3985_v36 = vpop.f32.mrb[78].mxu0  ;;  %v2399_v16 = vpop.f32.mrb[79].mxu1 }
 0x32b   : > { %v3987_v49 = vpop.f32.mrb[79].mxu0 }
 0x32c   : > { %4275 = vst.msk [vmem:[%s8243_s21 + $0x130] sm:$0xff] %vm355_vm0, %v4211_v51  ;;  %v5600_v29 = vadd.f32 %v5599_v24, %v3985_v36 }
 0x32d   : > { %v2402_v28 = vpop.f32.mrb[80].mxu1 }
 0x32e   : > { %v4212_v45 = vmax.f32 %v5600_v29, 0.0  ;;  %v5601_v37 = vadd.f32 %v8220_v5, %v2402_v28  ;;  %v3990_v57 = vpop.f32.mrb[80].mxu0  ;;  %v2404_v10 = vpop.f32.mrb[81].mxu1 }
 0x32f   : > { %v3992_v4 = vpop.f32.mrb[81].mxu0 }
 0x330   : > { %4276 = vst.msk [vmem:[%s8243_s21 + $0x138] sm:$0xff] %vm355_vm0, %v4212_v45  ;;  %v5602_v30 = vadd.f32 %v5601_v37, %v3990_v57 }
 0x331   : > { %v2407_v13 = vpop.f32.mrb[82].mxu1 }
 0x332   : > { %v4213_v38 = vmax.f32 %v5602_v30, 0.0  ;;  %v5603_v60 = vadd.f32 %v8220_v5, %v2407_v13  ;;  %v3995_v48 = vpop.f32.mrb[82].mxu0  ;;  %v2409_v62 = vpop.f32.mrb[83].mxu1 }
 0x333   : > { %v3997_v61 = vpop.f32.mrb[83].mxu0 }
 0x334   : > { %4277 = vst.msk [vmem:[%s8243_s21 + $0x140] sm:$0xff] %vm355_vm0, %v4213_v38  ;;  %v5604_v19 = vadd.f32 %v5603_v60, %v3995_v48 }
 0x335   : > { %v2412_v43 = vpop.f32.mrb[84].mxu1 }
 0x336   : > { %v4214_v1 = vmax.f32 %v5604_v19, 0.0  ;;  %v5605_v3 = vadd.f32 %v8220_v5, %v2412_v43  ;;  %v4000_v40 = vpop.f32.mrb[84].mxu0  ;;  %v2414_v42 = vpop.f32.mrb[85].mxu1 }
 0x337   : > { %v4002_v23 = vpop.f32.mrb[85].mxu0 }
 0x338   : > { %4278 = vst.msk [vmem:[%s8243_s21 + $0x148] sm:$0xff] %vm355_vm0, %v4214_v1  ;;  %v5606_v14 = vadd.f32 %v5605_v3, %v4000_v40 }
 0x339   : > { %v2417_v52 = vpop.f32.mrb[86].mxu1 }
 0x33a   : > { %v4215_v9 = vmax.f32 %v5606_v14, 0.0  ;;  %v5607_v44 = vadd.f32 %v8220_v5, %v2417_v52  ;;  %v4005_v20 = vpop.f32.mrb[86].mxu0  ;;  %v2419_v55 = vpop.f32.mrb[87].mxu1 }
 0x33b   : > { %v4007_v21 = vpop.f32.mrb[87].mxu0 }
 0x33c   : > { %4279 = vst.msk [vmem:[%s8243_s21 + $0x150] sm:$0xff] %vm355_vm0, %v4215_v9  ;;  %v5608_v22 = vadd.f32 %v5607_v44, %v4005_v20 }
 0x33d   : > { %v2422_v54 = vpop.f32.mrb[88].mxu1 }
 0x33e   : > { %v4216_v18 = vmax.f32 %v5608_v22, 0.0  ;;  %v5609_v58 = vadd.f32 %v8220_v5, %v2422_v54  ;;  %v4010_v46 = vpop.f32.mrb[88].mxu0  ;;  %v2424_v53 = vpop.f32.mrb[89].mxu1 }
 0x33f   : > { %v4012_v63 = vpop.f32.mrb[89].mxu0 }
 0x340   : > { %4280 = vst.msk [vmem:[%s8243_s21 + $0x158] sm:$0xff] %vm355_vm0, %v4216_v18  ;;  %v5610_v2 = vadd.f32 %v5609_v58, %v4010_v46 }
 0x341   : > { %v2427_v7 = vpop.f32.mrb[90].mxu1 }
 0x342   : > { %v4217_v15 = vmax.f32 %v5610_v2, 0.0  ;;  %v5611_v56 = vadd.f32 %v8220_v5, %v2427_v7  ;;  %v4015_v6 = vpop.f32.mrb[90].mxu0  ;;  %v2429_v31 = vpop.f32.mrb[91].mxu1 }
 0x343   : > { %v4017_v33 = vpop.f32.mrb[91].mxu0 }
 0x344   : > { %4281 = vst.msk [vmem:[%s8243_s21 + $0x160] sm:$0xff] %vm355_vm0, %v4217_v15  ;;  %v5612_v25 = vadd.f32 %v5611_v56, %v4015_v6 }
 0x345   : > { %v2432_v32 = vpop.f32.mrb[92].mxu1 }
 0x346   : > { %v4218_v59 = vmax.f32 %v5612_v25, 0.0  ;;  %v5613_v41 = vadd.f32 %v8220_v5, %v2432_v32  ;;  %v4020_v8 = vpop.f32.mrb[92].mxu0  ;;  %v2434_v17 = vpop.f32.mrb[93].mxu1 }
 0x347   : > { %v4022_v27 = vpop.f32.mrb[93].mxu0 }
 0x348   : > { %4282 = vst.msk [vmem:[%s8243_s21 + $0x168] sm:$0xff] %vm355_vm0, %v4218_v59  ;;  %v5614_v26 = vadd.f32 %v5613_v41, %v4020_v8 }
 0x349   : > { %v2437_v11 = vpop.f32.mrb[94].mxu1 }
 0x34a   : > { %v4219_v12 = vmax.f32 %v5614_v26, 0.0  ;;  %v5615_v39 = vadd.f32 %v8220_v5, %v2437_v11  ;;  %v4025_v50 = vpop.f32.mrb[94].mxu0  ;;  %v2439_v35 = vpop.f32.mrb[95].mxu1 }
 0x34b   : > { %v4027_v0 = vpop.f32.mrb[95].mxu0 }
 0x34c   : > { %4283 = vst.msk [vmem:[%s8243_s21 + $0x170] sm:$0xff] %vm355_vm0, %v4219_v12  ;;  %v5616_v34 = vadd.f32 %v5615_v39, %v4025_v50 }
 0x34d   : > { %v2442_v47 = vpop.f32.mrb[96].mxu1 }
 0x34e   : > { %v4220_v51 = vmax.f32 %v5616_v34, 0.0  ;;  %v5617_v24 = vadd.f32 %v8220_v5, %v2442_v47  ;;  %v4030_v36 = vpop.f32.mrb[96].mxu0  ;;  %v2444_v16 = vpop.f32.mrb[97].mxu1 }
 0x34f   : > { %v4032_v49 = vpop.f32.mrb[97].mxu0 }
 0x350   : > { %4284 = vst.msk [vmem:[%s8243_s21 + $0x178] sm:$0xff] %vm355_vm0, %v4220_v51  ;;  %v5618_v29 = vadd.f32 %v5617_v24, %v4030_v36 }
 0x351   : > { %v2447_v28 = vpop.f32.mrb[98].mxu1 }
 0x352   : > { %v4221_v45 = vmax.f32 %v5618_v29, 0.0  ;;  %v5619_v37 = vadd.f32 %v8220_v5, %v2447_v28  ;;  %v4035_v57 = vpop.f32.mrb[98].mxu0  ;;  %v2449_v10 = vpop.f32.mrb[99].mxu1 }
 0x353   : > { %v4037_v4 = vpop.f32.mrb[99].mxu0 }
 0x354   : > { %4285 = vst.msk [vmem:[%s8243_s21 + $0x180] sm:$0xff] %vm355_vm0, %v4221_v45  ;;  %v5620_v30 = vadd.f32 %v5619_v37, %v4035_v57 }
 0x355   : > { %v2452_v13 = vpop.f32.mrb[100].mxu1 }
 0x356   : > { %v4222_v38 = vmax.f32 %v5620_v30, 0.0  ;;  %v5621_v60 = vadd.f32 %v8220_v5, %v2452_v13  ;;  %v4040_v48 = vpop.f32.mrb[100].mxu0  ;;  %v2454_v62 = vpop.f32.mrb[101].mxu1 }
 0x357   : > { %v4042_v61 = vpop.f32.mrb[101].mxu0 }
 0x358   : > { %4286 = vst.msk [vmem:[%s8243_s21 + $0x188] sm:$0xff] %vm355_vm0, %v4222_v38  ;;  %v5622_v19 = vadd.f32 %v5621_v60, %v4040_v48 }
 0x359   : > { %v2457_v43 = vpop.f32.mrb[102].mxu1 }
 0x35a   : > { %v4223_v1 = vmax.f32 %v5622_v19, 0.0  ;;  %v5623_v3 = vadd.f32 %v8220_v5, %v2457_v43  ;;  %v4045_v40 = vpop.f32.mrb[102].mxu0  ;;  %v2459_v42 = vpop.f32.mrb[103].mxu1 }
 0x35b   : > { %v4047_v23 = vpop.f32.mrb[103].mxu0 }
 0x35c   : > { %4287 = vst.msk [vmem:[%s8243_s21 + $0x190] sm:$0xff] %vm355_vm0, %v4223_v1  ;;  %v5624_v14 = vadd.f32 %v5623_v3, %v4045_v40 }
 0x35d   : > { %v2462_v52 = vpop.f32.mrb[104].mxu1 }
 0x35e   : > { %v4224_v9 = vmax.f32 %v5624_v14, 0.0  ;;  %v5625_v44 = vadd.f32 %v8220_v5, %v2462_v52  ;;  %v4050_v20 = vpop.f32.mrb[104].mxu0  ;;  %v2464_v55 = vpop.f32.mrb[105].mxu1 }
 0x35f   : > { %v4052_v21 = vpop.f32.mrb[105].mxu0 }
 0x360   : > { %4288 = vst.msk [vmem:[%s8243_s21 + $0x198] sm:$0xff] %vm355_vm0, %v4224_v9  ;;  %v5626_v22 = vadd.f32 %v5625_v44, %v4050_v20 }
 0x361   : > { %v2467_v54 = vpop.f32.mrb[106].mxu1 }
 0x362   : > { %v4225_v18 = vmax.f32 %v5626_v22, 0.0  ;;  %v5627_v58 = vadd.f32 %v8220_v5, %v2467_v54  ;;  %v4055_v46 = vpop.f32.mrb[106].mxu0  ;;  %v2469_v53 = vpop.f32.mrb[107].mxu1 }
 0x363   : > { %v4057_v63 = vpop.f32.mrb[107].mxu0 }
 0x364   : > { %4289 = vst.msk [vmem:[%s8243_s21 + $0x1a0] sm:$0xff] %vm355_vm0, %v4225_v18  ;;  %v5628_v2 = vadd.f32 %v5627_v58, %v4055_v46 }
 0x365   : > { %v2472_v7 = vpop.f32.mrb[108].mxu1 }
 0x366   : > { %v4226_v15 = vmax.f32 %v5628_v2, 0.0  ;;  %v5629_v56 = vadd.f32 %v8220_v5, %v2472_v7  ;;  %v4060_v6 = vpop.f32.mrb[108].mxu0  ;;  %v2474_v31 = vpop.f32.mrb[109].mxu1 }
 0x367   : > { %v4062_v33 = vpop.f32.mrb[109].mxu0 }
 0x368   : > { %4290 = vst.msk [vmem:[%s8243_s21 + $0x1a8] sm:$0xff] %vm355_vm0, %v4226_v15  ;;  %v5630_v25 = vadd.f32 %v5629_v56, %v4060_v6  ;;  %v6075_v56 = vld [vmem:[%s8553_s2] ss:$0 sm:$0xff] }
 0x369   : > { %v2477_v32 = vpop.f32.mrb[110].mxu1 }
 0x36a   : > { %v4227_v59 = vmax.f32 %v5630_v25, 0.0  ;;  %v5631_v41 = vadd.f32 %v8220_v5, %v2477_v32  ;;  %v4065_v8 = vpop.f32.mrb[110].mxu0  ;;  %v2479_v17 = vpop.f32.mrb[111].mxu1 }
 0x36b   : > { %v4067_v27 = vpop.f32.mrb[111].mxu0 }
 0x36c   : > { %4291 = vst.msk [vmem:[%s8243_s21 + $0x1b0] sm:$0xff] %vm355_vm0, %v4227_v59  ;;  %v5632_v26 = vadd.f32 %v5631_v41, %v4065_v8 }
 0x36d   : > { %v2482_v11 = vpop.f32.mrb[112].mxu1 }
 0x36e   : > { %v4228_v12 = vmax.f32 %v5632_v26, 0.0  ;;  %v5633_v39 = vadd.f32 %v8220_v5, %v2482_v11  ;;  %v4070_v50 = vpop.f32.mrb[112].mxu0  ;;  %v2484_v35 = vpop.f32.mrb[113].mxu1 }
 0x36f   : > { %v4072_v0 = vpop.f32.mrb[113].mxu0 }
 0x370   : > { %4292 = vst.msk [vmem:[%s8243_s21 + $0x1b8] sm:$0xff] %vm355_vm0, %v4228_v12  ;;  %v5634_v34 = vadd.f32 %v5633_v39, %v4070_v50 }
 0x371   : > { %v2487_v47 = vpop.f32.mrb[114].mxu1 }
 0x372   : > { %v4229_v51 = vmax.f32 %v5634_v34, 0.0  ;;  %v5635_v24 = vadd.f32 %v8220_v5, %v2487_v47  ;;  %v4075_v36 = vpop.f32.mrb[114].mxu0  ;;  %v2489_v16 = vpop.f32.mrb[115].mxu1 }
 0x373   : > { %v4077_v49 = vpop.f32.mrb[115].mxu0 }
 0x374   : > { %4293 = vst.msk [vmem:[%s8243_s21 + $0x1c0] sm:$0xff] %vm355_vm0, %v4229_v51  ;;  %v5636_v29 = vadd.f32 %v5635_v24, %v4075_v36 }
 0x375   : > { %v2492_v28 = vpop.f32.mrb[116].mxu1 }
 0x376   : > { %v4230_v45 = vmax.f32 %v5636_v29, 0.0  ;;  %v5637_v37 = vadd.f32 %v8220_v5, %v2492_v28  ;;  %v4080_v57 = vpop.f32.mrb[116].mxu0  ;;  %v2494_v10 = vpop.f32.mrb[117].mxu1 }
 0x377   : > { %v4082_v4 = vpop.f32.mrb[117].mxu0 }
 0x378   : > { %4294 = vst.msk [vmem:[%s8243_s21 + $0x1c8] sm:$0xff] %vm355_vm0, %v4230_v45  ;;  %v5638_v30 = vadd.f32 %v5637_v37, %v4080_v57 }
 0x379   : > { %v2497_v13 = vpop.f32.mrb[118].mxu1 }
 0x37a   : > { %v4231_v38 = vmax.f32 %v5638_v30, 0.0  ;;  %v5639_v60 = vadd.f32 %v8220_v5, %v2497_v13  ;;  %v4085_v48 = vpop.f32.mrb[118].mxu0  ;;  %v2499_v62 = vpop.f32.mrb[119].mxu1 }
 0x37b   : > { %v4087_v61 = vpop.f32.mrb[119].mxu0 }
 0x37c   : > { %4295 = vst.msk [vmem:[%s8243_s21 + $0x1d0] sm:$0xff] %vm355_vm0, %v4231_v38  ;;  %v5640_v19 = vadd.f32 %v5639_v60, %v4085_v48 }
 0x37d   : > { %v2502_v43 = vpop.f32.mrb[120].mxu1 }
 0x37e   : > { %v4232_v1 = vmax.f32 %v5640_v19, 0.0  ;;  %v5641_v3 = vadd.f32 %v8220_v5, %v2502_v43  ;;  %v4090_v40 = vpop.f32.mrb[120].mxu0  ;;  %v2504_v42 = vpop.f32.mrb[121].mxu1 }
 0x37f   : > { %v4092_v23 = vpop.f32.mrb[121].mxu0 }
 0x380   : > { %4296 = vst.msk [vmem:[%s8243_s21 + $0x1d8] sm:$0xff] %vm355_vm0, %v4232_v1  ;;  %v5642_v14 = vadd.f32 %v5641_v3, %v4090_v40 }
 0x381   : > { %v2507_v52 = vpop.f32.mrb[122].mxu1 }
 0x382   : > { %v4233_v9 = vmax.f32 %v5642_v14, 0.0  ;;  %v5643_v44 = vadd.f32 %v8220_v5, %v2507_v52  ;;  %v4095_v20 = vpop.f32.mrb[122].mxu0  ;;  %v2509_v55 = vpop.f32.mrb[123].mxu1 }
 0x383   : > { %v4097_v21 = vpop.f32.mrb[123].mxu0 }
 0x384   : > { %4297 = vst.msk [vmem:[%s8243_s21 + $0x1e0] sm:$0xff] %vm355_vm0, %v4233_v9  ;;  %v5644_v22 = vadd.f32 %v5643_v44, %v4095_v20 }
 0x385   : > { %v2512_v54 = vpop.f32.mrb[124].mxu1 }
 0x386   : > { %v4234_v18 = vmax.f32 %v5644_v22, 0.0  ;;  %v5645_v58 = vadd.f32 %v8220_v5, %v2512_v54  ;;  %v4100_v46 = vpop.f32.mrb[124].mxu0  ;;  %v2514_v53 = vpop.f32.mrb[125].mxu1 }
 0x387   : > { %v4102_v63 = vpop.f32.mrb[125].mxu0 }
 0x388   : > { %4298 = vst.msk [vmem:[%s8243_s21 + $0x1e8] sm:$0xff] %vm355_vm0, %v4234_v18  ;;  %v5646_v2 = vadd.f32 %v5645_v58, %v4100_v46 }
 0x389   : > { %v2517_v7 = vpop.f32.mrb[126].mxu1 }
 0x38a   : > { %v4235_v15 = vmax.f32 %v5646_v2, 0.0  ;;  %v5647_v6 = vadd.f32 %v6075_v56, %v2517_v7  ;;  %v4105_v31 = vpop.f32.mrb[126].mxu0  ;;  %v2519_v33 = vpop.f32.mrb[127].mxu1 }
 0x38b   : > { %v4107_v25 = vpop.f32.mrb[127].mxu0 }
 0x38c   : > { %4299 = vst.msk [vmem:[%s8243_s21 + $0x1f0] sm:$0xff] %vm355_vm0, %v4235_v15  ;;  %v5648_v5 = vadd.f32 %v5647_v6, %v4105_v31 }
 0x38e   : > { %v4236_v32 = vmax.f32 %v5648_v5, 0.0 }
 0x390   : > { %4300 = vst.msk [vmem:[%s8243_s21 + $0x1f8] sm:$0xff] %vm355_vm0, %v4236_v32 }
 0x391 PF: > { %s13_s16 = sadd.s32 1, %s6114_s16   ;;  %s8588_s12 = smov %s6106_s14 }
 0x392   : > { %p10_p7 = scmp.ge.s32.totalorder %s13_s16, 6   ;;  %s8589_s13 = smov %s6110_s15 }
 0x393   : > { %s8590_s14 = smov %s8593_s17  ;;  %s8591_s15 = smov %s8597_s18 }
 0x394   :  { %12 = sbr.rel (!%p10_p7) target bundleno = 3 (0x3), region = 71 }

// kernel: srcnn_forward.5
= control target key start
LH: loop header
LB: loop body
LE: loop exit
PB: predicated region body
PF: predicated region fallthrough
CT: control target
= control target key end

     0   :  { %s6073_s12 = smov 0   ;;  %s6075_s13 = smov 0   ;;  %s8485_s0 = inlined_call_operand.vmem [shape: f32[2,36,32,160], index: 0, kind: input, shape index: {}]   ;;  %s8486_s1 = inlined_call_operand.vmem [shape: f32[5,160,3], index: 1, kind: input, shape index: {}]   ;;  %s8487_s2 = inlined_call_operand.vmem [shape: f32[1,3], index: 2, kind: input, shape index: {}]   ;;  %s8488_s3 = inlined_call_operand.vmem [shape: f32[2,32,32,3], index: 3, kind: output, shape index: {}]  }
   0x1   :  { %s6077_s14 = smov 0   ;;  %s6079_s15 = smov 0  }
   0x2   :  { %s6081_s16 = smov 0  }
   0x3 LB: > { %s22_s17 = sadd.s32 1, %s6042_s14  ;;  %s25_s18 = sadd.s32 1, %s6046_s15  ;;  %s6050_s16 = sphi %s6081_s16, %s13_s16   ;;  %s6046_s15 = sphi %s6079_s15, %s8525_s15   ;;  %s6042_s14 = sphi %s6077_s14, %s8524_s14   ;;  %s6038_s13 = sphi %s6075_s13, %s8523_s13   ;;  %s6034_s12 = sphi %s6073_s12, %s8522_s12  }
   0x4   : > { %p23_p0 = scmp.ge.s32.totalorder %s22_s17, 2  ;;  %p4350_p1 = scmp.ge.s32.totalorder %s6050_s16, 1 }
   0x5   : > { %p151_p2 = scmp.lt.s32.totalorder %s6050_s16, 5 }
   0x6   : > { %s8527_s17 = smov (%p23_p0, %s22_s17), 0  ;;  %s8529_s18 = smov (!%p23_p0, %s25_s18), %s6046_s15 }
   0x7   : > { %p152_p3 = pnand %p4350_p1, %p151_p2  ;;  %p27_p4 = scmp.ge.s32.totalorder %s8529_s18, 2 }
   0x9   : > { %s8531_s18 = smov (%p27_p4, %s8529_s18), 0  ;;  %155 = sbr.rel (%p152_p3) target bundleno = 911 (0x38f), region = 32 }
  0x10   : > { %v335_v0 = vld [vmem:[%s8486_s1] sm:$0xff]  ;;  %v336_v1 = vld [vmem:[%s8486_s1 + $0x8] sm:$0xff]  ;;  %p180_p5 = scmp.lt.s32.totalorder %s6038_s13, 1  ;;  %v8489_v3 = vmov 0.0|0.0   ;;  %v337_v6 = vld [vmem:[%s8486_s1 + $0x10] sm:$0xff]  ;;  %s5283_s27 = sshll.u32 %s6034_s12, 10 }
  0x11   : > { %v4768_v2 = vld [vmem:[%s8486_s1 + $0x140] sm:$0xff]  ;;  %5288 = vmatprep.subr.bf16.mxu1 %v8489_v3  ;;  %5348 = vmatprep.subr.bf16.mxu0 %v8489_v3  ;;  %v5289_v4 = vpack.c.bf16 %v336_v1, %v335_v0  ;;  %v4769_v5 = vld [vmem:[%s8486_s1 + $0x148] sm:$0xff]  ;;  %v338_v7 = vld [vmem:[%s8486_s1 + $0x18] sm:$0xff]  ;;  %vm355_vm0 = vcmask 261120   ;;  %s4352_s6 = sshll.u32 %s6034_s12, 4  ;;  %vm4173_vm1 = vcmask 23552  }
  0x12   : > { %v6125_v8 = vpack.c.bf16 %v4769_v5, %v4768_v2  ;;  %v4770_v9 = vld [vmem:[%s8486_s1 + $0x150] sm:$0xff]  ;;  %v4771_v10 = vld [vmem:[%s8486_s1 + $0x158] sm:$0xff]  ;;  %s8533_s13 = smov (!%p180_p5, %s6038_s13), 1  ;;  %v5292_v11 = vpack.c.bf16 %v338_v7, %v337_v6  ;;  %v339_v13 = vld [vmem:[%s8486_s1 + $0x20] sm:$0xff]  ;;  %p188_p6 = scmp.lt.s32.totalorder %s4352_s6, 31 }
  0x13   : > { %5290 = vmatpush1.bf16.msra.mxu1 %v5289_v4  ;;  %v6137_v12 = vpack.c.bf16 %v4771_v10, %v4770_v9  ;;  %v340_v14 = vld [vmem:[%s8486_s1 + $0x28] sm:$0xff]  ;;  %s5970_s19 = smul.u32 2304, %s8533_s13  ;;  %v4772_v15 = vld [vmem:[%s8486_s1 + $0x160] sm:$0xff]  ;;  %v341_v19 = vld [vmem:[%s8486_s1 + $0x30] sm:$0xff]  ;;  %s4354_s7 = sshll.u32 %s8533_s13, 7 }
  0x14   : > { %5350 = vmatpush1.bf16.msra.mxu0 %v6125_v8  ;;  %5291 = vmatprep.subr.bf16.mxu1 %v8489_v3  ;;  %v4773_v16 = vld [vmem:[%s8486_s1 + $0x168] sm:$0xff]  ;;  %v5295_v17 = vpack.c.bf16 %v340_v14, %v339_v13  ;;  %v342_v20 = vld [vmem:[%s8486_s1 + $0x38] sm:$0xff]  ;;  %v4774_v21 = vld [vmem:[%s8486_s1 + $0x170] sm:$0xff]  ;;  %s8535_s6 = smov (!%p188_p6, %s4352_s6), 31 }
  0x15   : > { %5351 = vmatprep.subr.bf16.mxu0 %v8489_v3  ;;  %s184_s26 = scalar_lea.vmem %s8485_s0, %s5970_s19  ;;  %v6159_v18 = vpack.c.bf16 %v4773_v16, %v4772_v15  ;;  %v4775_v22 = vld [vmem:[%s8486_s1 + $0x178] sm:$0xff]  ;;  %v5298_v23 = vpack.c.bf16 %v342_v20, %v341_v19  ;;  %v343_v25 = vld [vmem:[%s8486_s1 + $0x40] sm:$0xff]  ;;  %v344_v26 = vld [vmem:[%s8486_s1 + $0x48] sm:$0xff]  ;;  %s4353_s12 = sshll.u32 %s8535_s6, 2 }
  0x16   : > { %s6174_s9 = scalar_lea.vmem %s184_s26, %s5283_s27  ;;  %v6178_v24 = vpack.c.bf16 %v4775_v22, %v4774_v21  ;;  %v4776_v27 = vld [vmem:[%s8486_s1 + $0x180] sm:$0xff]  ;;  %v4777_v28 = vld [vmem:[%s8486_s1 + $0x188] sm:$0xff]  ;;  %v5301_v31 = vpack.c.bf16 %v344_v26, %v343_v25  ;;  %v345_v33 = vld [vmem:[%s8486_s1 + $0x50] sm:$0xff]  ;;  %s192_s8 = sadd.s32 %s4354_s7, %s4353_s12 }
  0x17   : > { %5293 = vmatpush1.bf16.msra.mxu1 %v5292_v11  ;;  %8499 = vst [vmem:[#allocation2_spill] sm:$0xff] %v6159_v18  ;;  %v208_v29 = vld [vmem:[%s6174_s9 + $0x8] sm:$0xff]  ;;  %v6202_v32 = vpack.c.bf16 %v4777_v28, %v4776_v27  ;;  %v346_v34 = vld [vmem:[%s8486_s1 + $0x58] sm:$0xff]  ;;  %v4778_v35 = vld [vmem:[%s8486_s1 + $0x190] sm:$0xff]  ;;  %s4355_s11 = sshll.u32 %s192_s8, 3 }
  0x18   : > { %5353 = vmatpush1.bf16.msra.mxu0 %v6137_v12  ;;  %5294 = vmatprep.subr.bf16.mxu1 %v8489_v3  ;;  %8500 = vst [vmem:[#allocation3_spill] sm:$0xff] %v6178_v24  ;;  %v6195_v30 = vld [vmem:[%s6174_s9 + $0x88] sm:$0xff]  ;;  %v4779_v36 = vld [vmem:[%s8486_s1 + $0x198] sm:$0xff]  ;;  %v5304_v37 = vpack.c.bf16 %v346_v34, %v345_v33  ;;  %v347_v39 = vld [vmem:[%s8486_s1 + $0x60] sm:$0xff]  ;;  %s8175_s21 = scalar_lea.vmem %s8488_s3, %s4355_s11 }
  0x19   : > { %5354 = vmatprep.subr.bf16.mxu0 %v8489_v3  ;;  %4360 = vmatprep.mubr.msk.f32.mxu1 %vm355_vm0, %v208_v29  ;;  %8501 = vst [vmem:[#allocation4_spill] sm:$0xff] %v6202_v32  ;;  %v6219_v38 = vpack.c.bf16 %v4779_v36, %v4778_v35  ;;  %v348_v40 = vld [vmem:[%s8486_s1 + $0x68] sm:$0xff]  ;;  %v4780_v41 = vld [vmem:[%s8486_s1 + $0x1a0] sm:$0xff]  ;;  %v349_v45 = vld [vmem:[%s8486_s1 + $0x70] sm:$0xff] }
  0x1a   : > { %4788 = vmatprep.mubr.msk.f32.mxu0 %vm355_vm0, %v6195_v30  ;;  %v4781_v42 = vld [vmem:[%s8486_s1 + $0x1a8] sm:$0xff]  ;;  %v5307_v43 = vpack.c.bf16 %v348_v40, %v347_v39  ;;  %v350_v46 = vld [vmem:[%s8486_s1 + $0x78] sm:$0xff]  ;;  %v4782_v47 = vld [vmem:[%s8486_s1 + $0x1b0] sm:$0xff] }
  0x1b   : > { %5296 = vmatpush1.bf16.msra.mxu1 %v5295_v17  ;;  %8502 = vst [vmem:[#allocation5_spill] sm:$0xff] %v6219_v38  ;;  %v6236_v44 = vpack.c.bf16 %v4781_v42, %v4780_v41  ;;  %v4783_v48 = vld [vmem:[%s8486_s1 + $0x1b8] sm:$0xff]  ;;  %v5310_v49 = vpack.c.bf16 %v350_v46, %v349_v45  ;;  %v351_v51 = vld [vmem:[%s8486_s1 + $0x80] sm:$0xff]  ;;  %v352_v52 = vld [vmem:[%s8486_s1 + $0x88] sm:$0xff] }
  0x1c   : > { %5356 = vmatpush1.bf16.msra.mxu0 %v6159_v18  ;;  %5297 = vmatprep.subr.bf16.mxu1 %v8489_v3  ;;  %v6253_v50 = vpack.c.bf16 %v4783_v48, %v4782_v47  ;;  %v4784_v53 = vld [vmem:[%s8486_s1 + $0x1c0] sm:$0xff]  ;;  %v4785_v54 = vld [vmem:[%s8486_s1 + $0x1c8] sm:$0xff]  ;;  %v5313_v55 = vpack.c.bf16 %v352_v52, %v351_v51  ;;  %v353_v57 = vld [vmem:[%s8486_s1 + $0x90] sm:$0xff] }
  0x1d   : > { %5357 = vmatprep.subr.bf16.mxu0 %v8489_v3  ;;  %8503 = vst [vmem:[#allocation6_spill] sm:$0xff] %v6236_v44  ;;  %v6270_v56 = vpack.c.bf16 %v4785_v54, %v4784_v53  ;;  %v354_v58 = vld [vmem:[%s8486_s1 + $0x98] sm:$0xff]  ;;  %v4786_v59 = vld [vmem:[%s8486_s1 + $0x1d0] sm:$0xff]  ;;  %v4554_v63 = vld [vmem:[%s8486_s1 + $0xa0] sm:$0xff] }
  0x1e   : > { %8504 = vst [vmem:[#allocation7_spill] sm:$0xff] %v6253_v50  ;;  %v4787_v60 = vld [vmem:[%s8486_s1 + $0x1d8] sm:$0xff]  ;;  %v5316_v61 = vpack.c.bf16 %v354_v58, %v353_v57  ;;  %v4555_v0 = vld [vmem:[%s8486_s1 + $0xa8] sm:$0xff]  ;;  %v4982_v1 = vld [vmem:[%s8486_s1 + $0x1e0] sm:$0xff] }
  0x1f   : > { %5299 = vmatpush1.bf16.msra.mxu1 %v5298_v23  ;;  %8505 = vst [vmem:[#allocation8_spill] sm:$0xff] %v6270_v56  ;;  %v6287_v62 = vpack.c.bf16 %v4787_v60, %v4786_v59  ;;  %v4983_v2 = vld [vmem:[%s8486_s1 + $0x1e8] sm:$0xff]  ;;  %v207_v4 = vld [vmem:[%s6174_s9] sm:$0xff]  ;;  %v5319_v5 = vpack.c.bf16 %v4555_v0, %v4554_v63  ;;  %v210_v7 = vld [vmem:[%s6174_s9 + $0x18] sm:$0xff] }
  0x20   : > { %5359 = vmatpush1.bf16.msra.mxu0 %v6178_v24  ;;  %5300 = vmatprep.subr.bf16.mxu1 %v8489_v3  ;;  %v6306_v6 = vld [vmem:[%s6174_s9 + $0x80] sm:$0xff]  ;;  %v6311_v9 = vld [vmem:[%s6174_s9 + $0x98] sm:$0xff]  ;;  %v5379_v10 = vpack.c.bf16 %v4983_v2, %v4982_v1  ;;  %v4556_v11 = vld [vmem:[%s8486_s1 + $0xb0] sm:$0xff] }
  0x21   : > { %5360 = vmatprep.subr.bf16.mxu0 %v8489_v3  ;;  %8506 = vst [vmem:[#allocation9_spill] sm:$0xff] %v6287_v62  ;;  %v4557_v13 = vld [vmem:[%s8486_s1 + $0xb8] sm:$0xff]  ;;  %v4984_v14 = vld [vmem:[%s8486_s1 + $0x1f0] sm:$0xff]  ;;  %v212_v19 = vld [vmem:[%s6174_s9 + $0x28] sm:$0xff] }
  0x22   : > { %v4985_v15 = vld [vmem:[%s8486_s1 + $0x1f8] sm:$0xff]  ;;  %v209_v16 = vld [vmem:[%s6174_s9 + $0x10] sm:$0xff]  ;;  %v5322_v20 = vpack.c.bf16 %v4557_v13, %v4556_v11  ;;  %v6335_v21 = vld [vmem:[%s6174_s9 + $0xa8] sm:$0xff] }
  0x23   : > { %5302 = vmatpush1.bf16.msra.mxu1 %v5301_v31  ;;  %v6331_v17 = vld [vmem:[%s6174_s9 + $0x90] sm:$0xff]  ;;  %v5382_v22 = vpack.c.bf16 %v4985_v15, %v4984_v14  ;;  %v4558_v23 = vld [vmem:[%s8486_s1 + $0xc0] sm:$0xff]  ;;  %v4559_v25 = vld [vmem:[%s8486_s1 + $0xc8] sm:$0xff] }
  0x24   : > { %5362 = vmatpush1.bf16.msra.mxu0 %v6202_v32  ;;  %5303 = vmatprep.subr.bf16.mxu1 %v8489_v3  ;;  %v4986_v26 = vld [vmem:[%s8486_s1 + $0x200] sm:$0xff]  ;;  %v4987_v27 = vld [vmem:[%s8486_s1 + $0x208] sm:$0xff]  ;;  %v214_v31 = vld [vmem:[%s6174_s9 + $0x38] sm:$0xff]  ;;  %v5325_v33 = vpack.c.bf16 %v4559_v25, %v4558_v23 }
  0x25   : > { %5363 = vmatprep.subr.bf16.mxu0 %v8489_v3  ;;  %v211_v28 = vld [vmem:[%s6174_s9 + $0x20] sm:$0xff]  ;;  %v6361_v34 = vld [vmem:[%s6174_s9 + $0xb8] sm:$0xff]  ;;  %v5385_v35 = vpack.c.bf16 %v4987_v27, %v4986_v26  ;;  %v4560_v36 = vld [vmem:[%s8486_s1 + $0xd0] sm:$0xff] }
  0x26   : > { %v6357_v29 = vld [vmem:[%s6174_s9 + $0xa0] sm:$0xff]  ;;  %v4988_v39 = vld [vmem:[%s8486_s1 + $0x210] sm:$0xff]  ;;  %v4989_v40 = vld [vmem:[%s8486_s1 + $0x218] sm:$0xff] }
  0x27   : > { %5305 = vmatpush1.bf16.msra.mxu1 %v5304_v37  ;;  %v4561_v37 = vld [vmem:[%s8486_s1 + $0xd8] sm:$0xff]  ;;  %v213_v41 = vld [vmem:[%s6174_s9 + $0x30] sm:$0xff]  ;;  %v6387_v46 = vld [vmem:[%s6174_s9 + $0xc8] sm:$0xff]  ;;  %v5388_v47 = vpack.c.bf16 %v4989_v40, %v4988_v39 }
  0x28   : > { %5365 = vmatpush1.bf16.msra.mxu0 %v6219_v38  ;;  %5306 = vmatprep.subr.bf16.mxu1 %v8489_v3  ;;  %v6383_v42 = vld [vmem:[%s6174_s9 + $0xb0] sm:$0xff]  ;;  %v5328_v45 = vpack.c.bf16 %v4561_v37, %v4560_v36  ;;  %v4562_v48 = vld [vmem:[%s8486_s1 + $0xe0] sm:$0xff]  ;;  %v4991_v52 = vld [vmem:[%s8486_s1 + $0x228] sm:$0xff] }
  0x29   : > { %5366 = vmatprep.subr.bf16.mxu0 %v8489_v3  ;;  %v4990_v51 = vld [vmem:[%s8486_s1 + $0x220] sm:$0xff]  ;;  %v6413_v58 = vld [vmem:[%s6174_s9 + $0xd8] sm:$0xff]  ;;  %v4564_v60 = vld [vmem:[%s8486_s1 + $0xf0] sm:$0xff] }
  0x2a   : > { %v215_v53 = vld [vmem:[%s6174_s9 + $0x40] sm:$0xff]  ;;  %v5391_v59 = vpack.c.bf16 %v4991_v52, %v4990_v51  ;;  %v4992_v63 = vld [vmem:[%s8486_s1 + $0x230] sm:$0xff]  ;;  %v4993_v0 = vld [vmem:[%s8486_s1 + $0x238] sm:$0xff] }
  0x2b   : > { %5308 = vmatpush1.bf16.msra.mxu1 %v5307_v43  ;;  %v216_v43 = vld [vmem:[%s6174_s9 + $0x48] sm:$0xff]  ;;  %v6409_v54 = vld [vmem:[%s6174_s9 + $0xc0] sm:$0xff]  ;;  %v217_v1 = vld [vmem:[%s6174_s9 + $0x50] sm:$0xff] }
  0x2c   : > { %5368 = vmatpush1.bf16.msra.mxu0 %v6236_v44  ;;  %5309 = vmatprep.subr.bf16.mxu1 %v8489_v3  ;;  %v6435_v2 = vld [vmem:[%s6174_s9 + $0xd0] sm:$0xff]  ;;  %v4994_v11 = vld [vmem:[%s8486_s1 + $0x240] sm:$0xff]  ;;  %v4995_v13 = vld [vmem:[%s8486_s1 + $0x248] sm:$0xff] }
  0x2d   : > { %5369 = vmatprep.subr.bf16.mxu0 %v8489_v3  ;;  %v219_v14 = vld [vmem:[%s6174_s9 + $0x60] sm:$0xff]  ;;  %v4997_v23 = vld [vmem:[%s8486_s1 + $0x258] sm:$0xff]  ;;  %v221_v25 = vld [vmem:[%s6174_s9 + $0x70] sm:$0xff] }
  0x2e   : > { %v6455_v15 = vld [vmem:[%s6174_s9 + $0xe0] sm:$0xff]  ;;  %v4567_v27 = vld [vmem:[%s8486_s1 + $0x108] sm:$0xff]  ;;  %v6502_v40 = vld [vmem:[%s6174_s9 + $0x118] sm:$0xff] }
  0x2f   : > { %5311 = vmatpush1.bf16.msra.mxu1 %v5310_v49  ;;  %v4563_v49 = vld [vmem:[%s8486_s1 + $0xe8] sm:$0xff]  ;;  %v4566_v26 = vld [vmem:[%s8486_s1 + $0x100] sm:$0xff]  ;;  %v4568_v51 = vld [vmem:[%s8486_s1 + $0x110] sm:$0xff] }
  0x30   : > { %5371 = vmatpush1.bf16.msra.mxu0 %v6253_v50  ;;  %5312 = vmatprep.subr.bf16.mxu1 %v8489_v3  ;;  %v5331_v57 = vpack.c.bf16 %v4563_v49, %v4562_v48  ;;  %v4998_v36 = vld [vmem:[%s8486_s1 + $0x260] sm:$0xff]  ;;  %v4999_v37 = vld [vmem:[%s8486_s1 + $0x268] sm:$0xff]  ;;  %v6535_v48 = vld [vmem:[%s6174_s9 + $0x138] sm:$0xff] }
  0x31   : > { %5372 = vmatprep.subr.bf16.mxu0 %v8489_v3  ;;  %v6499_v39 = vld [vmem:[%s6174_s9 + $0x100] sm:$0xff]  ;;  %v6572_v49 = vld [vmem:[%s6174_s9 + $0x168] sm:$0xff]  ;;  %v4569_v52 = vld [vmem:[%s8486_s1 + $0x118] sm:$0xff] }
  0x32   : > { %v5196_v50 = vld [vmem:[%s8486_s1 + $0x280] sm:$0xff]  ;;  %v5197_v44 = vld [vmem:[%s8486_s1 + $0x288] sm:$0xff]  ;;  %v5198_v32 = vld [vmem:[%s8486_s1 + $0x290] sm:$0xff] }
  0x33   : > { %5314 = vmatpush1.bf16.msra.mxu1 %v5313_v55  ;;  %v218_v55 = vld [vmem:[%s6174_s9 + $0x58] sm:$0xff]  ;;  %v5409_v38 = vpack.c.bf16 %v5197_v44, %v5196_v50  ;;  %v8507_v50 = vmov 0.0|0.0   ;;  %v5201_v18 = vld [vmem:[%s8486_s1 + $0x2a8] sm:$0xff] }
  0x34   : > { %5374 = vmatpush1.bf16.msra.mxu0 %v6270_v56  ;;  %5315 = vmatprep.subr.bf16.mxu1 %v8489_v3  ;;  %v6806_v56 = vld [vmem:[%s6174_s9 + $0x270] sm:$0xff]  ;;  %v5199_v24 = vld [vmem:[%s8486_s1 + $0x298] sm:$0xff] }
  0x35   : > { %5375 = vmatprep.subr.bf16.mxu0 %v8489_v3  ;;  %v5412_v44 = vpack.c.bf16 %v5199_v24, %v5198_v32  ;;  %v5202_v32 = vld [vmem:[%s8486_s1 + $0x2b0] sm:$0xff] }
  0x37   : > { %5317 = vmatpush1.bf16.msra.mxu1 %v5316_v61  ;;  %v4565_v61 = vld [vmem:[%s8486_s1 + $0xf8] sm:$0xff] }
  0x38   : > { %5377 = vmatpush1.bf16.msra.mxu0 %v6287_v62  ;;  %5318 = vmatprep.subr.bf16.mxu1 %v8489_v3  ;;  %v6797_v62 = vld [vmem:[%s6174_s9 + $0x278] sm:$0xff] }
  0x39   : > { %5378 = vmatprep.subr.bf16.mxu0 %v8489_v3 }
  0x3a   : > { %613 = vmatmul.mubr.f32.vlgmr.msra.gmra.mrb[0].mxu1 %v207_v4  ;;  %v220_v4 = vld [vmem:[%s6174_s9 + $0x68] sm:$0xff] }
  0x3b   : > { %2201 = vmatmul.mubr.f32.vlgmr.msra.gmra.mrb[0].mxu0 %v6306_v6  ;;  %5320 = vmatpush1.bf16.msra.mxu1 %v5319_v5  ;;  %v5334_v5 = vpack.c.bf16 %v4565_v61, %v4564_v60  ;;  %v6602_v60 = vld [vmem:[%s6174_s9 + $0x188] sm:$0xff]  ;;  %v6612_v61 = vld [vmem:[%s6174_s9 + $0x180] sm:$0xff] }
  0x3c   : > { %4361 = vmatprep.mubr.msk.f32.mxu1 %vm355_vm0, %v210_v7  ;;  %4789 = vmatprep.mubr.msk.f32.mxu0 %vm355_vm0, %v6311_v9  ;;  %v6439_v7 = vld [vmem:[%s6174_s9 + $0xe8] sm:$0xff] }
  0x3d   : > { %5380 = vmatpush1.bf16.msra.mxu0 %v5379_v10  ;;  %5321 = vmatprep.subr.bf16.mxu1 %v8489_v3  ;;  %v5394_v10 = vpack.c.bf16 %v4993_v0, %v4992_v63  ;;  %v6615_v63 = vld [vmem:[%s6174_s9 + $0x198] sm:$0xff]  ;;  %v6624_v0 = vld [vmem:[%s6174_s9 + $0x190] sm:$0xff] }
  0x3e   : > { %618 = vmatmul.mubr.f32.gmra.mrb[2].mxu1 %v209_v16  ;;  %5381 = vmatprep.subr.bf16.mxu0 %v8489_v3  ;;  %v222_v16 = vld [vmem:[%s6174_s9 + $0x78] sm:$0xff] }
  0x3f   : > { %2206 = vmatmul.mubr.f32.gmra.mrb[2].mxu0 %v6331_v17  ;;  %4362 = vmatprep.mubr.msk.f32.mxu1 %vm355_vm0, %v212_v19  ;;  %v6459_v19 = vld [vmem:[%s6174_s9 + $0xf8] sm:$0xff] }
  0x40   : > { %4790 = vmatprep.mubr.msk.f32.mxu0 %vm355_vm0, %v6335_v21  ;;  %5323 = vmatpush1.bf16.msra.mxu1 %v5322_v20  ;;  %v5397_v20 = vpack.c.bf16 %v4995_v13, %v4994_v11  ;;  %v6651_v11 = vld [vmem:[%s6174_s9 + $0x1c8] sm:$0xff]  ;;  %v4570_v13 = vld [vmem:[%s8486_s1 + $0x120] sm:$0xff] }
  0x41   : > { %5383 = vmatpush1.bf16.msra.mxu0 %v5382_v22  ;;  %5324 = vmatprep.subr.bf16.mxu1 %v8489_v3  ;;  %v4996_v22 = vld [vmem:[%s8486_s1 + $0x250] sm:$0xff] }
  0x42   : > { %623 = vmatmul.mubr.f32.gmra.mrb[4].mxu1 %v211_v28  ;;  %5384 = vmatprep.subr.bf16.mxu0 %v8489_v3  ;;  %v6481_v28 = vld [vmem:[%s6174_s9 + $0xf0] sm:$0xff] }
  0x43   : > { %2211 = vmatmul.mubr.f32.gmra.mrb[4].mxu0 %v6357_v29  ;;  %4363 = vmatprep.mubr.msk.f32.mxu1 %vm355_vm0, %v214_v31  ;;  %v5337_v31 = vpack.c.bf16 %v4567_v27, %v4566_v26  ;;  %v6691_v26 = vld [vmem:[%s6174_s9 + $0x1e0] sm:$0xff]  ;;  %v6694_v27 = vld [vmem:[%s6174_s9 + $0x1f8] sm:$0xff] }
  0x44   : > { %4791 = vmatprep.mubr.msk.f32.mxu0 %vm355_vm0, %v6361_v34  ;;  %5326 = vmatpush1.bf16.msra.mxu1 %v5325_v33  ;;  %v6484_v33 = vld [vmem:[%s6174_s9 + $0x108] sm:$0xff] }
  0x45   : > { %5386 = vmatpush1.bf16.msra.mxu0 %v5385_v35  ;;  %5327 = vmatprep.subr.bf16.mxu1 %v8489_v3  ;;  %v5400_v35 = vpack.c.bf16 %v4997_v23, %v4996_v22  ;;  %v6669_v22 = vld [vmem:[%s6174_s9 + $0x1d8] sm:$0xff]  ;;  %v6678_v23 = vld [vmem:[%s6174_s9 + $0x1d0] sm:$0xff] }
  0x46   : > { %628 = vmatmul.mubr.f32.gmra.mrb[6].mxu1 %v213_v41  ;;  %5387 = vmatprep.subr.bf16.mxu0 %v8489_v3  ;;  %v5403_v41 = vpack.c.bf16 %v4999_v37, %v4998_v36  ;;  %v6715_v36 = vld [vmem:[%s6174_s9 + $0x200] sm:$0xff]  ;;  %v6718_v37 = vld [vmem:[%s6174_s9 + $0x218] sm:$0xff] }
  0x47   : > { %2216 = vmatmul.mubr.f32.gmra.mrb[6].mxu0 %v6383_v42  ;;  %4364 = vmatprep.mubr.msk.f32.mxu1 %vm355_vm0, %v216_v43  ;;  %v5001_v43 = vld [vmem:[%s8486_s1 + $0x278] sm:$0xff] }
  0x48   : > { %4792 = vmatprep.mubr.msk.f32.mxu0 %vm355_vm0, %v6387_v46  ;;  %5329 = vmatpush1.bf16.msra.mxu1 %v5328_v45  ;;  %v6522_v45 = vld [vmem:[%s6174_s9 + $0x128] sm:$0xff] }
  0x49   : > { %5389 = vmatpush1.bf16.msra.mxu0 %v5388_v47  ;;  %5330 = vmatprep.subr.bf16.mxu1 %v8489_v3 }
  0x4a   : > { %633 = vmatmul.mubr.f32.gmra.mrb[8].mxu1 %v215_v53  ;;  %5390 = vmatprep.subr.bf16.mxu0 %v8489_v3  ;;  %v6587_v53 = vld [vmem:[%s6174_s9 + $0x160] sm:$0xff] }
  0x4b   : > { %2221 = vmatmul.mubr.f32.gmra.mrb[8].mxu0 %v6409_v54  ;;  %4365 = vmatprep.mubr.msk.f32.mxu1 %vm355_vm0, %v218_v55  ;;  %v5340_v55 = vpack.c.bf16 %v4569_v52, %v4568_v51  ;;  %v4572_v51 = vld [vmem:[%s8486_s1 + $0x130] sm:$0xff]  ;;  %v4573_v52 = vld [vmem:[%s8486_s1 + $0x138] sm:$0xff] }
  0x4c   : > { %4793 = vmatprep.mubr.msk.f32.mxu0 %vm355_vm0, %v6413_v58  ;;  %5332 = vmatpush1.bf16.msra.mxu1 %v5331_v57  ;;  %v6590_v57 = vld [vmem:[%s6174_s9 + $0x178] sm:$0xff] }
  0x4d   : > { %5392 = vmatpush1.bf16.msra.mxu0 %v5391_v59  ;;  %5333 = vmatprep.subr.bf16.mxu1 %v8489_v3  ;;  %v6599_v59 = vld [vmem:[%s6174_s9 + $0x170] sm:$0xff] }
  0x4e   : > { %638 = vmatmul.mubr.f32.gmra.mrb[10].mxu1 %v217_v1  ;;  %5393 = vmatprep.subr.bf16.mxu0 %v8489_v3  ;;  %v6627_v1 = vld [vmem:[%s6174_s9 + $0x1a8] sm:$0xff] }
  0x4f   : > { %2226 = vmatmul.mubr.f32.gmra.mrb[10].mxu0 %v6435_v2  ;;  %4366 = vmatprep.mubr.msk.f32.mxu1 %vm355_vm0, %v220_v4  ;;  %v6636_v4 = vld [vmem:[%s6174_s9 + $0x1a0] sm:$0xff] }
  0x50   : > { %4794 = vmatprep.mubr.msk.f32.mxu0 %vm355_vm0, %v6439_v7  ;;  %5335 = vmatpush1.bf16.msra.mxu1 %v5334_v5  ;;  %v6639_v5 = vld [vmem:[%s6174_s9 + $0x1b8] sm:$0xff] }
  0x51   : > { %5395 = vmatpush1.bf16.msra.mxu0 %v5394_v10  ;;  %5336 = vmatprep.subr.bf16.mxu1 %v8489_v3  ;;  %v6648_v10 = vld [vmem:[%s6174_s9 + $0x1b0] sm:$0xff] }
  0x52   : > { %643 = vmatmul.mubr.f32.gmra.mrb[12].mxu1 %v219_v14  ;;  %5396 = vmatprep.subr.bf16.mxu0 %v8489_v3  ;;  %v4571_v14 = vld [vmem:[%s8486_s1 + $0x128] sm:$0xff] }
  0x53   : > { %2231 = vmatmul.mubr.f32.gmra.mrb[12].mxu0 %v6455_v15  ;;  %4367 = vmatprep.mubr.msk.f32.mxu1 %vm355_vm0, %v222_v16  ;;  %v6666_v16 = vld [vmem:[%s6174_s9 + $0x1c0] sm:$0xff] }
  0x54   : > { %4795 = vmatprep.mubr.msk.f32.mxu0 %vm355_vm0, %v6459_v19  ;;  %5338 = vmatpush1.bf16.msra.mxu1 %v5337_v31  ;;  %v6703_v31 = vld [vmem:[%s6174_s9 + $0x1f0] sm:$0xff] }
  0x55   : > { %5398 = vmatpush1.bf16.msra.mxu0 %v5397_v20  ;;  %5339 = vmatprep.subr.bf16.mxu1 %v8489_v3  ;;  %v5343_v20 = vpack.c.bf16 %v4571_v14, %v4570_v13  ;;  %v6757_v13 = vld [vmem:[%s6174_s9 + $0x230] sm:$0xff]  ;;  %v6760_v14 = vld [vmem:[%s6174_s9 + $0x248] sm:$0xff] }
  0x56   : > { %648 = vmatmul.mubr.f32.gmra.mrb[14].mxu1 %v221_v25  ;;  %5399 = vmatprep.subr.bf16.mxu0 %v8489_v3  ;;  %v6681_v25 = vld [vmem:[%s6174_s9 + $0x1e8] sm:$0xff] }
  0x57   : > { %2236 = vmatmul.mubr.f32.gmra.mrb[14].mxu0 %v6481_v28  ;;  %4368 = vmatprep.mubr.msk.f32.mxu1 %vm355_vm0, %v6195_v30  ;;  %v5000_v30 = vld [vmem:[%s8486_s1 + $0x270] sm:$0xff] }
  0x58   : > { %4796 = vmatprep.mubr.msk.f32.mxu0 %vm355_vm0, %v6484_v33  ;;  %v5406_v47 = vpack.c.bf16 %v5001_v43, %v5000_v30  ;;  %5341 = vmatpush1.bf16.msra.mxu1 %v5340_v55  ;;  %v6730_v30 = vld [vmem:[%s6174_s9 + $0x228] sm:$0xff]  ;;  %v6739_v43 = vld [vmem:[%s6174_s9 + $0x220] sm:$0xff]  ;;  %v5346_v55 = vpack.c.bf16 %v4573_v52, %v4572_v51  ;;  %v6773_v51 = vld [vmem:[%s6174_s9 + $0x258] sm:$0xff] }
  0x59   : > { %5401 = vmatpush1.bf16.msra.mxu0 %v5400_v35  ;;  %5342 = vmatprep.subr.bf16.mxu1 %v8489_v3  ;;  %v6706_v35 = vld [vmem:[%s6174_s9 + $0x208] sm:$0xff]  ;;  %v6782_v52 = vld [vmem:[%s6174_s9 + $0x250] sm:$0xff] }
  0x5a   : > { %653 = vmatmul.mubr.f32.gmra.mrb[16].mxu1 %v6306_v6  ;;  %5402 = vmatprep.subr.bf16.mxu0 %v8489_v3  ;;  %v6519_v6 = vld [vmem:[%s6174_s9 + $0x110] sm:$0xff] }
  0x5b   : > { %2241 = vmatmul.mubr.f32.gmra.mrb[16].mxu0 %v6499_v39  ;;  %4369 = vmatprep.mubr.msk.f32.mxu1 %vm355_vm0, %v6311_v9  ;;  %v6532_v9 = vld [vmem:[%s6174_s9 + $0x120] sm:$0xff] }
  0x5c   : > { %4797 = vmatprep.mubr.msk.f32.mxu0 %vm355_vm0, %v6502_v40  ;;  %5344 = vmatpush1.bf16.msra.mxu1 %v5343_v20  ;;  %v6770_v20 = vld [vmem:[%s6174_s9 + $0x240] sm:$0xff] }
  0x5d   : > { %5404 = vmatpush1.bf16.msra.mxu0 %v5403_v41  ;;  %5345 = vmatprep.subr.bf16.mxu1 %v8489_v3  ;;  %v6727_v41 = vld [vmem:[%s6174_s9 + $0x210] sm:$0xff] }
  0x5e   : > { %658 = vmatmul.mubr.f32.gmra.mrb[18].mxu1 %v6331_v17  ;;  %5405 = vmatprep.subr.bf16.mxu0 %v8489_v3  ;;  %v6545_v17 = vld [vmem:[%s6174_s9 + $0x130] sm:$0xff] }
  0x5f   : > { %2246 = vmatmul.mubr.f32.gmra.mrb[18].mxu0 %v6519_v6  ;;  %4370 = vmatprep.mubr.msk.f32.mxu1 %vm355_vm0, %v6335_v21  ;;  %v6548_v21 = vld [vmem:[%s6174_s9 + $0x148] sm:$0xff] }
  0x60   : > { %4798 = vmatprep.mubr.msk.f32.mxu0 %vm355_vm0, %v6522_v45  ;;  %5347 = vmatpush1.bf16.msra.mxu1 %v5346_v55  ;;  %v6785_v55 = vld [vmem:[%s6174_s9 + $0x268] sm:$0xff] }
  0x61   : > { %5407 = vmatpush1.bf16.msra.mxu0 %v5406_v47  ;;  %v6742_v47 = vld [vmem:[%s6174_s9 + $0x238] sm:$0xff]  ;;  %5438 = vmatprep.subr.bf16.mxu1 %v8489_v3 }
  0x62   : > { %663 = vmatmul.mubr.f32.gmra.mrb[20].mxu1 %v6357_v29  ;;  %5408 = vmatprep.subr.bf16.mxu0 %v8489_v3  ;;  %v6557_v29 = vld [vmem:[%s6174_s9 + $0x140] sm:$0xff] }
  0x63   : > { %2251 = vmatmul.mubr.f32.gmra.mrb[20].mxu0 %v6532_v9  ;;  %4371 = vmatprep.mubr.msk.f32.mxu1 %vm355_vm0, %v6361_v34  ;;  %v6560_v34 = vld [vmem:[%s6174_s9 + $0x158] sm:$0xff]  ;;  %v6794_v3 = vld [vmem:[%s6174_s9 + $0x260] sm:$0xff] }
  0x64   : > { %4799 = vmatprep.mubr.msk.f32.mxu0 %vm355_vm0, %v6535_v48 }
  0x66   : > { %668 = vmatmul.mubr.f32.gmra.mrb[22].mxu1 %v6383_v42  ;;  %v6569_v42 = vld [vmem:[%s6174_s9 + $0x150] sm:$0xff] }
  0x67   : > { %2256 = vmatmul.mubr.f32.gmra.mrb[22].mxu0 %v6545_v17  ;;  %4372 = vmatprep.mubr.msk.f32.mxu1 %vm355_vm0, %v6387_v46 }
  0x68   : > { %4800 = vmatprep.mubr.msk.f32.mxu0 %vm355_vm0, %v6548_v21 }
  0x6a   : > { %673 = vmatmul.mubr.f32.gmra.mrb[24].mxu1 %v6409_v54 }
  0x6b   : > { %2261 = vmatmul.mubr.f32.gmra.mrb[24].mxu0 %v6557_v29  ;;  %4373 = vmatprep.mubr.msk.f32.mxu1 %vm355_vm0, %v6413_v58 }
  0x6c   : > { %4801 = vmatprep.mubr.msk.f32.mxu0 %vm355_vm0, %v6560_v34 }
  0x6e   : > { %678 = vmatmul.mubr.f32.gmra.mrb[26].mxu1 %v6435_v2 }
  0x6f   : > { %2266 = vmatmul.mubr.f32.gmra.mrb[26].mxu0 %v6569_v42  ;;  %4374 = vmatprep.mubr.msk.f32.mxu1 %vm355_vm0, %v6439_v7 }
  0x70   : > { %4802 = vmatprep.mubr.msk.f32.mxu0 %vm355_vm0, %v6572_v49 }
  0x72   : > { %683 = vmatmul.mubr.f32.gmra.mrb[28].mxu1 %v6455_v15 }
  0x73   : > { %2271 = vmatmul.mubr.f32.gmra.mrb[28].mxu0 %v6587_v53  ;;  %4375 = vmatprep.mubr.msk.f32.mxu1 %vm355_vm0, %v6459_v19 }
  0x74   : > { %4803 = vmatprep.mubr.msk.f32.mxu0 %vm355_vm0, %v6590_v57 }
  0x76   : > { %688 = vmatmul.mubr.f32.gmra.mrb[30].mxu1 %v6481_v28 }
  0x77   : > { %2276 = vmatmul.mubr.f32.gmra.mrb[30].mxu0 %v6599_v59  ;;  %4376 = vmatprep.mubr.msk.f32.mxu1 %vm355_vm0, %v6484_v33 }
  0x78   : > { %4804 = vmatprep.mubr.msk.f32.mxu0 %vm355_vm0, %v6602_v60 }
  0x7a   : > { %693 = vmatmul.mubr.f32.gmra.mrb[32].mxu1 %v6499_v39 }
  0x7b   : > { %2281 = vmatmul.mubr.f32.gmra.mrb[32].mxu0 %v6612_v61  ;;  %4377 = vmatprep.mubr.msk.f32.mxu1 %vm355_vm0, %v6502_v40 }
  0x7c   : > { %4805 = vmatprep.mubr.msk.f32.mxu0 %vm355_vm0, %v6615_v63 }
  0x7e   : > { %698 = vmatmul.mubr.f32.gmra.mrb[34].mxu1 %v6519_v6 }
  0x7f   : > { %2286 = vmatmul.mubr.f32.gmra.mrb[34].mxu0 %v6624_v0  ;;  %4378 = vmatprep.mubr.msk.f32.mxu1 %vm355_vm0, %v6522_v45 }
  0x80   : > { %4806 = vmatprep.mubr.msk.f32.mxu0 %vm355_vm0, %v6627_v1 }
  0x82   : > { %703 = vmatmul.mubr.f32.gmra.mrb[36].mxu1 %v6532_v9 }
  0x83   : > { %2291 = vmatmul.mubr.f32.gmra.mrb[36].mxu0 %v6636_v4  ;;  %4379 = vmatprep.mubr.msk.f32.mxu1 %vm355_vm0, %v6535_v48 }
  0x84   : > { %4807 = vmatprep.mubr.msk.f32.mxu0 %vm355_vm0, %v6639_v5 }
  0x86   : > { %708 = vmatmul.mubr.f32.gmra.mrb[38].mxu1 %v6545_v17 }
  0x87   : > { %2296 = vmatmul.mubr.f32.gmra.mrb[38].mxu0 %v6648_v10  ;;  %4380 = vmatprep.mubr.msk.f32.mxu1 %vm355_vm0, %v6548_v21 }
  0x88   : > { %4808 = vmatprep.mubr.msk.f32.mxu0 %vm355_vm0, %v6651_v11 }
  0x8a   : > { %713 = vmatmul.mubr.f32.gmra.mrb[40].mxu1 %v6557_v29 }
  0x8b   : > { %2301 = vmatmul.mubr.f32.gmra.mrb[40].mxu0 %v6666_v16  ;;  %4381 = vmatprep.mubr.msk.f32.mxu1 %vm355_vm0, %v6560_v34 }
  0x8c   : > { %4809 = vmatprep.mubr.msk.f32.mxu0 %vm355_vm0, %v6669_v22 }
  0x8e   : > { %718 = vmatmul.mubr.f32.gmra.mrb[42].mxu1 %v6569_v42 }
  0x8f   : > { %2306 = vmatmul.mubr.f32.gmra.mrb[42].mxu0 %v6678_v23  ;;  %4382 = vmatprep.mubr.msk.f32.mxu1 %vm355_vm0, %v6572_v49 }
  0x90   : > { %4810 = vmatprep.mubr.msk.f32.mxu0 %vm355_vm0, %v6681_v25 }
  0x92   : > { %723 = vmatmul.mubr.f32.gmra.mrb[44].mxu1 %v6587_v53 }
  0x93   : > { %2311 = vmatmul.mubr.f32.gmra.mrb[44].mxu0 %v6691_v26  ;;  %4383 = vmatprep.mubr.msk.f32.mxu1 %vm355_vm0, %v6590_v57 }
  0x94   : > { %4811 = vmatprep.mubr.msk.f32.mxu0 %vm355_vm0, %v6694_v27 }
  0x96   : > { %728 = vmatmul.mubr.f32.gmra.mrb[46].mxu1 %v6599_v59 }
  0x97   : > { %2316 = vmatmul.mubr.f32.gmra.mrb[46].mxu0 %v6703_v31  ;;  %4384 = vmatprep.mubr.msk.f32.mxu1 %vm355_vm0, %v6602_v60 }
  0x98   : > { %4812 = vmatprep.mubr.msk.f32.mxu0 %vm355_vm0, %v6706_v35 }
  0x9a   : > { %733 = vmatmul.mubr.f32.gmra.mrb[48].mxu1 %v6612_v61 }
  0x9b   : > { %2321 = vmatmul.mubr.f32.gmra.mrb[48].mxu0 %v6715_v36  ;;  %4385 = vmatprep.mubr.msk.f32.mxu1 %vm355_vm0, %v6615_v63 }
  0x9c   : > { %4813 = vmatprep.mubr.msk.f32.mxu0 %vm355_vm0, %v6718_v37 }
  0x9e   : > { %738 = vmatmul.mubr.f32.gmra.mrb[50].mxu1 %v6624_v0 }
  0x9f   : > { %2326 = vmatmul.mubr.f32.gmra.mrb[50].mxu0 %v6727_v41  ;;  %4386 = vmatprep.mubr.msk.f32.mxu1 %vm355_vm0, %v6627_v1 }
  0xa0   : > { %4814 = vmatprep.mubr.msk.f32.mxu0 %vm355_vm0, %v6730_v30 }
  0xa2   : > { %743 = vmatmul.mubr.f32.gmra.mrb[52].mxu1 %v6636_v4 }
  0xa3   : > { %2331 = vmatmul.mubr.f32.gmra.mrb[52].mxu0 %v6739_v43  ;;  %4387 = vmatprep.mubr.msk.f32.mxu1 %vm355_vm0, %v6639_v5 }
  0xa4   : > { %4815 = vmatprep.mubr.msk.f32.mxu0 %vm355_vm0, %v6742_v47 }
  0xa6   : > { %748 = vmatmul.mubr.f32.gmra.mrb[54].mxu1 %v6648_v10 }
  0xa7   : > { %2336 = vmatmul.mubr.f32.gmra.mrb[54].mxu0 %v6757_v13  ;;  %4388 = vmatprep.mubr.msk.f32.mxu1 %vm355_vm0, %v6651_v11 }
  0xa8   : > { %4816 = vmatprep.mubr.msk.f32.mxu0 %vm355_vm0, %v6760_v14 }
  0xaa   : > { %753 = vmatmul.mubr.f32.gmra.mrb[56].mxu1 %v6666_v16 }
  0xab   : > { %2341 = vmatmul.mubr.f32.gmra.mrb[56].mxu0 %v6770_v20  ;;  %4389 = vmatprep.mubr.msk.f32.mxu1 %vm355_vm0, %v6669_v22 }
  0xac   : > { %4817 = vmatprep.mubr.msk.f32.mxu0 %vm355_vm0, %v6773_v51 }
  0xae   : > { %758 = vmatmul.mubr.f32.gmra.mrb[58].mxu1 %v6678_v23 }
  0xaf   : > { %2346 = vmatmul.mubr.f32.gmra.mrb[58].mxu0 %v6782_v52  ;;  %4390 = vmatprep.mubr.msk.f32.mxu1 %vm355_vm0, %v6681_v25 }
  0xb0   : > { %4818 = vmatprep.mubr.msk.f32.mxu0 %vm355_vm0, %v6785_v55 }
  0xb2   : > { %763 = vmatmul.mubr.f32.gmra.mrb[60].mxu1 %v6691_v26 }
  0xb3   : > { %2351 = vmatmul.mubr.f32.gmra.mrb[60].mxu0 %v6794_v3  ;;  %4391 = vmatprep.mubr.msk.f32.mxu1 %vm355_vm0, %v6694_v27 }
  0xb4   : > { %4819 = vmatprep.mubr.msk.f32.mxu0 %vm355_vm0, %v6797_v62 }
  0xb6   : > { %768 = vmatmul.mubr.f32.gmra.mrb[62].mxu1 %v6703_v31 }
  0xb7   : > { %2356 = vmatmul.mubr.f32.gmra.mrb[62].mxu0 %v6806_v56  ;;  %4392 = vmatprep.mubr.msk.f32.mxu1 %vm355_vm0, %v6706_v35 }
  0xb8   : > { %5002 = vmatprep.mubr.msk.f32.mxu0 %vm355_vm0, %v6387_v46  ;;  %v5200_v46 = vld [vmem:[%s8486_s1 + $0x2a0] sm:$0xff] }
  0xb9   : > { %v5415_v24 = vpack.c.bf16 %v5201_v18, %v5200_v46  ;;  %v7033_v46 = vld [vmem:[%s6174_s9 + $0x328] sm:$0xff] }
  0xba   : > { %773 = vmatmul.mubr.f32.gmra.mrb[64].mxu1 %v6715_v36 }
  0xbb   : > { %2995 = vmatmul.mubr.f32.vlgmr.msra.gmra.mrb[0].mxu0 %v6409_v54  ;;  %4393 = vmatprep.mubr.msk.f32.mxu1 %vm355_vm0, %v6718_v37  ;;  %v5204_v54 = vld [vmem:[%s8486_s1 + $0x2c0] sm:$0xff] }
  0xbc   : > { %5003 = vmatprep.mubr.msk.f32.mxu0 %vm355_vm0, %v6413_v58  ;;  %5410 = vmatpush1.bf16.msra.mxu0 %v5409_v38  ;;  %v5203_v38 = vld [vmem:[%s8486_s1 + $0x2b8] sm:$0xff]  ;;  %v5205_v58 = vld [vmem:[%s8486_s1 + $0x2c8] sm:$0xff] }
  0xbd   : > { %5411 = vmatprep.subr.bf16.mxu0 %v8507_v50  ;;  %v5418_v18 = vpack.c.bf16 %v5203_v38, %v5202_v32  ;;  %v7094_v32 = vld [vmem:[%s6174_s9 + $0x360] sm:$0xff]  ;;  %v7112_v38 = vld [vmem:[%s6174_s9 + $0x388] sm:$0xff] }
  0xbe   : > { %778 = vmatmul.mubr.f32.gmra.mrb[66].mxu1 %v6727_v41 }
  0xbf   : > { %3000 = vmatmul.mubr.f32.gmra.mrb[2].mxu0 %v6435_v2  ;;  %4394 = vmatprep.mubr.msk.f32.mxu1 %vm355_vm0, %v6730_v30  ;;  %v5421_v2 = vpack.c.bf16 %v5205_v58, %v5204_v54  ;;  %v7173_v54 = vld [vmem:[%s6174_s9 + $0x3c0] sm:$0xff]  ;;  %v7178_v58 = vld [vmem:[%s6174_s9 + $0x3d8] sm:$0xff] }
  0xc0   : > { %5004 = vmatprep.mubr.msk.f32.mxu0 %vm355_vm0, %v6439_v7  ;;  %5413 = vmatpush1.bf16.msra.mxu0 %v5412_v44  ;;  %v5206_v7 = vld [vmem:[%s8486_s1 + $0x2d0] sm:$0xff]  ;;  %v7008_v44 = vld [vmem:[%s6174_s9 + $0x308] sm:$0xff] }
  0xc1   : > { %5414 = vmatprep.subr.bf16.mxu0 %v8507_v50 }
  0xc2   : > { %783 = vmatmul.mubr.f32.gmra.mrb[68].mxu1 %v6739_v43 }
  0xc3   : > { %3005 = vmatmul.mubr.f32.gmra.mrb[4].mxu0 %v6455_v15  ;;  %4395 = vmatprep.mubr.msk.f32.mxu1 %vm355_vm0, %v6742_v47  ;;  %v5207_v15 = vld [vmem:[%s8486_s1 + $0x2d8] sm:$0xff] }
  0xc4   : > { %5005 = vmatprep.mubr.msk.f32.mxu0 %vm355_vm0, %v6459_v19  ;;  %5416 = vmatpush1.bf16.msra.mxu0 %v5415_v24  ;;  %v5424_v19 = vpack.c.bf16 %v5207_v15, %v5206_v7  ;;  %v7087_v24 = vld [vmem:[%s6174_s9 + $0x368] sm:$0xff]  ;;  %v7202_v7 = vld [vmem:[%s6174_s9 + $0x3f8] sm:$0xff]  ;;  %v7209_v15 = vld [vmem:[%s6174_s9 + $0x3f0] sm:$0xff] }
  0xc5   : > { %5417 = vmatprep.subr.bf16.mxu0 %v8507_v50 }
  0xc6   : > { %788 = vmatmul.mubr.f32.gmra.mrb[70].mxu1 %v6757_v13 }
  0xc7   : > { %3010 = vmatmul.mubr.f32.gmra.mrb[6].mxu0 %v6481_v28  ;;  %4396 = vmatprep.mubr.msk.f32.mxu1 %vm355_vm0, %v6760_v14  ;;  %v6899_v28 = vld [vmem:[%s6174_s9 + $0x288] sm:$0xff] }
  0xc8   : > { %5006 = vmatprep.mubr.msk.f32.mxu0 %vm355_vm0, %v6484_v33  ;;  %5419 = vmatpush1.bf16.msra.mxu0 %v5418_v18  ;;  %v6906_v33 = vld [vmem:[%s6174_s9 + $0x280] sm:$0xff]  ;;  %v7166_v18 = vld [vmem:[%s6174_s9 + $0x3c8] sm:$0xff] }
  0xc9   : > { %5420 = vmatprep.subr.bf16.mxu0 %v8507_v50 }
  0xca   : > { %793 = vmatmul.mubr.f32.gmra.mrb[72].mxu1 %v6770_v20 }
  0xcb   : > { %3015 = vmatmul.mubr.f32.gmra.mrb[8].mxu0 %v6499_v39  ;;  %4397 = vmatprep.mubr.msk.f32.mxu1 %vm355_vm0, %v6773_v51  ;;  %v5208_v39 = vld [vmem:[%s8486_s1 + $0x2e0] sm:$0xff] }
  0xcc   : > { %5007 = vmatprep.mubr.msk.f32.mxu0 %vm355_vm0, %v6502_v40  ;;  %5422 = vmatpush1.bf16.msra.mxu0 %v5421_v2  ;;  %v5209_v40 = vld [vmem:[%s8486_s1 + $0x2e8] sm:$0xff]  ;;  %v7197_v2 = vld [vmem:[%s6174_s9 + $0x3e0] sm:$0xff] }
  0xcd   : > { %5423 = vmatprep.subr.bf16.mxu0 %v8507_v50 }
  0xce   : > { %798 = vmatmul.mubr.f32.gmra.mrb[74].mxu1 %v6782_v52 }
  0xcf   : > { %3020 = vmatmul.mubr.f32.gmra.mrb[10].mxu0 %v6519_v6  ;;  %4398 = vmatprep.mubr.msk.f32.mxu1 %vm355_vm0, %v6785_v55  ;;  %v6917_v6 = vld [vmem:[%s6174_s9 + $0x298] sm:$0xff] }
  0xd0   : > { %5008 = vmatprep.mubr.msk.f32.mxu0 %vm355_vm0, %v6522_v45  ;;  %5425 = vmatpush1.bf16.msra.mxu0 %v5424_v19  ;;  %v5427_v45 = vpack.c.bf16 %v5209_v40, %v5208_v39  ;;  %v4427_v19 = vld [vmem:[%s6174_s9 + $0x48] sm:$0xff]  ;;  %v4428_v39 = vld [vmem:[%s6174_s9 + $0x50] sm:$0xff] }
  0xd1   : > { %5426 = vmatprep.subr.bf16.mxu0 %v8507_v50  ;;  %v4431_v40 = vld [vmem:[%s6174_s9 + $0x68] sm:$0xff] }
  0xd2   : > { %803 = vmatmul.mubr.f32.gmra.mrb[76].mxu1 %v6794_v3 }
  0xd3   : > { %3025 = vmatmul.mubr.f32.gmra.mrb[12].mxu0 %v6532_v9  ;;  %4399 = vmatprep.mubr.msk.f32.mxu1 %vm355_vm0, %v6797_v62  ;;  %v6924_v9 = vld [vmem:[%s6174_s9 + $0x290] sm:$0xff] }
  0xd4   : > { %5009 = vmatprep.mubr.msk.f32.mxu0 %vm355_vm0, %v6535_v48  ;;  %5428 = vmatpush1.bf16.msra.mxu0 %v5427_v45  ;;  %v6929_v48 = vld [vmem:[%s6174_s9 + $0x2a8] sm:$0xff]  ;;  %v4432_v45 = vld [vmem:[%s6174_s9 + $0x70] sm:$0xff] }
  0xd5   : > { %5429 = vmatprep.subr.bf16.mxu0 %v8507_v50 }
  0xd6   : > { %808 = vmatmul.mubr.f32.gmra.mrb[78].mxu1 %v6806_v56 }
  0xd7   : > { %3030 = vmatmul.mubr.f32.gmra.mrb[14].mxu0 %v6545_v17  ;;  %4400 = vmatprep.mubr.msk.f32.mxu1 %vm355_vm0, %v6899_v28  ;;  %v6937_v17 = vld [vmem:[%s6174_s9 + $0x2a0] sm:$0xff] }
  0xd8   : > { %5010 = vmatprep.mubr.msk.f32.mxu0 %vm355_vm0, %v6548_v21  ;;  %v6942_v21 = vld [vmem:[%s6174_s9 + $0x2b8] sm:$0xff] }
  0xda   : > { %813 = vmatmul.mubr.f32.gmra.mrb[80].mxu1 %v6906_v33 }
  0xdb   : > { %3035 = vmatmul.mubr.f32.gmra.mrb[16].mxu0 %v6557_v29  ;;  %4401 = vmatprep.mubr.msk.f32.mxu1 %vm355_vm0, %v6917_v6  ;;  %v6949_v29 = vld [vmem:[%s6174_s9 + $0x2b0] sm:$0xff] }
  0xdc   : > { %5011 = vmatprep.mubr.msk.f32.mxu0 %vm355_vm0, %v6560_v34  ;;  %v6954_v34 = vld [vmem:[%s6174_s9 + $0x2c8] sm:$0xff] }
  0xde   : > { %818 = vmatmul.mubr.f32.gmra.mrb[82].mxu1 %v6924_v9 }
  0xdf   : > { %3040 = vmatmul.mubr.f32.gmra.mrb[18].mxu0 %v6569_v42  ;;  %4402 = vmatprep.mubr.msk.f32.mxu1 %vm355_vm0, %v6929_v48  ;;  %v6961_v42 = vld [vmem:[%s6174_s9 + $0x2c0] sm:$0xff] }
  0xe0   : > { %5012 = vmatprep.mubr.msk.f32.mxu0 %vm355_vm0, %v6572_v49  ;;  %v6966_v49 = vld [vmem:[%s6174_s9 + $0x2d8] sm:$0xff] }
  0xe2   : > { %823 = vmatmul.mubr.f32.gmra.mrb[84].mxu1 %v6937_v17 }
  0xe3   : > { %3045 = vmatmul.mubr.f32.gmra.mrb[20].mxu0 %v6587_v53  ;;  %4403 = vmatprep.mubr.msk.f32.mxu1 %vm355_vm0, %v6942_v21  ;;  %v6973_v53 = vld [vmem:[%s6174_s9 + $0x2d0] sm:$0xff] }
  0xe4   : > { %5013 = vmatprep.mubr.msk.f32.mxu0 %vm355_vm0, %v6590_v57  ;;  %v6978_v57 = vld [vmem:[%s6174_s9 + $0x2e8] sm:$0xff] }
  0xe6   : > { %828 = vmatmul.mubr.f32.gmra.mrb[86].mxu1 %v6949_v29 }
  0xe7   : > { %3050 = vmatmul.mubr.f32.gmra.mrb[22].mxu0 %v6599_v59  ;;  %4404 = vmatprep.mubr.msk.f32.mxu1 %vm355_vm0, %v6954_v34  ;;  %v6985_v59 = vld [vmem:[%s6174_s9 + $0x2e0] sm:$0xff] }
  0xe8   : > { %5014 = vmatprep.mubr.msk.f32.mxu0 %vm355_vm0, %v6602_v60  ;;  %v6990_v60 = vld [vmem:[%s6174_s9 + $0x2f8] sm:$0xff] }
  0xea   : > { %833 = vmatmul.mubr.f32.gmra.mrb[88].mxu1 %v6961_v42 }
  0xeb   : > { %3055 = vmatmul.mubr.f32.gmra.mrb[24].mxu0 %v6612_v61  ;;  %4405 = vmatprep.mubr.msk.f32.mxu1 %vm355_vm0, %v6966_v49  ;;  %v5210_v61 = vld [vmem:[%s8486_s1 + $0x2f0] sm:$0xff] }
  0xec   : > { %5015 = vmatprep.mubr.msk.f32.mxu0 %vm355_vm0, %v6615_v63  ;;  %v5211_v63 = vld [vmem:[%s8486_s1 + $0x2f8] sm:$0xff] }
  0xee   : > { %838 = vmatmul.mubr.f32.gmra.mrb[90].mxu1 %v6973_v53 }
  0xef   : > { %3060 = vmatmul.mubr.f32.gmra.mrb[26].mxu0 %v6624_v0  ;;  %4406 = vmatprep.mubr.msk.f32.mxu1 %vm355_vm0, %v6978_v57  ;;  %v5430_v0 = vpack.c.bf16 %v5211_v63, %v5210_v61  ;;  %v8512_v61 = vld [vmem:[#allocation6_spill] sm:$0xff] }
  0xf0   : > { %5016 = vmatprep.mubr.msk.f32.mxu0 %vm355_vm0, %v6627_v1  ;;  %v7003_v1 = vld [vmem:[%s6174_s9 + $0x2f0] sm:$0xff]  ;;  %v4442_v63 = vld [vmem:[%s6174_s9 + $0xc0] sm:$0xff] }
  0xf1   : > { %5431 = vmatpush1.bf16.msra.mxu0 %v5430_v0  ;;  %v4445_v0 = vld [vmem:[%s6174_s9 + $0xd8] sm:$0xff] }
  0xf2   : > { %843 = vmatmul.mubr.f32.gmra.mrb[92].mxu1 %v6985_v59  ;;  %5432 = vmatprep.subr.bf16.mxu0 %v8507_v50 }
  0xf3   : > { %3065 = vmatmul.mubr.f32.gmra.mrb[28].mxu0 %v6636_v4  ;;  %4407 = vmatprep.mubr.msk.f32.mxu1 %vm355_vm0, %v6990_v60  ;;  %v7016_v4 = vld [vmem:[%s6174_s9 + $0x300] sm:$0xff] }
  0xf4   : > { %5017 = vmatprep.mubr.msk.f32.mxu0 %vm355_vm0, %v6639_v5  ;;  %v7021_v5 = vld [vmem:[%s6174_s9 + $0x318] sm:$0xff] }
  0xf6   : > { %848 = vmatmul.mubr.f32.gmra.mrb[94].mxu1 %v7003_v1 }
  0xf7   : > { %3070 = vmatmul.mubr.f32.gmra.mrb[30].mxu0 %v6648_v10  ;;  %4408 = vmatprep.mubr.msk.f32.mxu1 %vm355_vm0, %v7008_v44  ;;  %v7028_v10 = vld [vmem:[%s6174_s9 + $0x310] sm:$0xff] }
  0xf8   : > { %5018 = vmatprep.mubr.msk.f32.mxu0 %vm355_vm0, %v6651_v11  ;;  %v7040_v11 = vld [vmem:[%s6174_s9 + $0x320] sm:$0xff] }
  0xfa   : > { %853 = vmatmul.mubr.f32.gmra.mrb[96].mxu1 %v7016_v4 }
  0xfb   : > { %3075 = vmatmul.mubr.f32.gmra.mrb[32].mxu0 %v6666_v16  ;;  %4409 = vmatprep.mubr.msk.f32.mxu1 %vm355_vm0, %v7021_v5  ;;  %v7045_v16 = vld [vmem:[%s6174_s9 + $0x338] sm:$0xff] }
  0xfc   : > { %5019 = vmatprep.mubr.msk.f32.mxu0 %vm355_vm0, %v6669_v22  ;;  %v7052_v22 = vld [vmem:[%s6174_s9 + $0x330] sm:$0xff] }
  0xfe   : > { %858 = vmatmul.mubr.f32.gmra.mrb[98].mxu1 %v7028_v10 }
  0xff   : > { %3080 = vmatmul.mubr.f32.gmra.mrb[34].mxu0 %v6678_v23  ;;  %4410 = vmatprep.mubr.msk.f32.mxu1 %vm355_vm0, %v7033_v46  ;;  %v7057_v23 = vld [vmem:[%s6174_s9 + $0x348] sm:$0xff] }
 0x100   : > { %5020 = vmatprep.mubr.msk.f32.mxu0 %vm355_vm0, %v6681_v25  ;;  %v7064_v25 = vld [vmem:[%s6174_s9 + $0x340] sm:$0xff] }
 0x102   : > { %863 = vmatmul.mubr.f32.gmra.mrb[100].mxu1 %v7040_v11 }
 0x103   : > { %3085 = vmatmul.mubr.f32.gmra.mrb[36].mxu0 %v6691_v26  ;;  %4411 = vmatprep.mubr.msk.f32.mxu1 %vm355_vm0, %v7045_v16  ;;  %v7069_v26 = vld [vmem:[%s6174_s9 + $0x358] sm:$0xff] }
 0x104   : > { %5021 = vmatprep.mubr.msk.f32.mxu0 %vm355_vm0, %v6694_v27  ;;  %v7076_v27 = vld [vmem:[%s6174_s9 + $0x350] sm:$0xff] }
 0x106   : > { %868 = vmatmul.mubr.f32.gmra.mrb[102].mxu1 %v7052_v22 }
 0x107   : > { %3090 = vmatmul.mubr.f32.gmra.mrb[38].mxu0 %v6703_v31  ;;  %4412 = vmatprep.mubr.msk.f32.mxu1 %vm355_vm0, %v7057_v23  ;;  %v5212_v31 = vld [vmem:[%s8486_s1 + $0x300] sm:$0xff] }
 0x108   : > { %5022 = vmatprep.mubr.msk.f32.mxu0 %vm355_vm0, %v6706_v35  ;;  %v5213_v35 = vld [vmem:[%s8486_s1 + $0x308] sm:$0xff] }
 0x10a   : > { %873 = vmatmul.mubr.f32.gmra.mrb[104].mxu1 %v7064_v25 }
 0x10b   : > { %3095 = vmatmul.mubr.f32.gmra.mrb[40].mxu0 %v6715_v36  ;;  %4413 = vmatprep.mubr.msk.f32.mxu1 %vm355_vm0, %v7069_v26  ;;  %v5433_v36 = vpack.c.bf16 %v5213_v35, %v5212_v31  ;;  %v7341_v31 = vld [vmem:[%s6174_s9 + $0x138] sm:$0xff]  ;;  %v7348_v35 = vld [vmem:[%s6174_s9 + $0x130] sm:$0xff] }
 0x10c   : > { %5023 = vmatprep.mubr.msk.f32.mxu0 %vm355_vm0, %v6718_v37  ;;  %v7099_v37 = vld [vmem:[%s6174_s9 + $0x378] sm:$0xff] }
 0x10d   : > { %5434 = vmatpush1.bf16.msra.mxu0 %v5433_v36  ;;  %v7360_v36 = vld [vmem:[%s6174_s9 + $0x140] sm:$0xff] }
 0x10e   : > { %878 = vmatmul.mubr.f32.gmra.mrb[106].mxu1 %v7076_v27  ;;  %5435 = vmatprep.subr.bf16.mxu0 %v8507_v50 }
 0x10f   : > { %3100 = vmatmul.mubr.f32.gmra.mrb[42].mxu0 %v6727_v41  ;;  %4414 = vmatprep.mubr.msk.f32.mxu1 %vm355_vm0, %v7087_v24  ;;  %v7107_v41 = vld [vmem:[%s6174_s9 + $0x370] sm:$0xff] }
 0x110   : > { %5024 = vmatprep.mubr.msk.f32.mxu0 %vm355_vm0, %v6730_v30  ;;  %v7119_v30 = vld [vmem:[%s6174_s9 + $0x380] sm:$0xff] }
 0x112   : > { %883 = vmatmul.mubr.f32.gmra.mrb[108].mxu1 %v7094_v32 }
 0x113   : > { %3105 = vmatmul.mubr.f32.gmra.mrb[44].mxu0 %v6739_v43  ;;  %4415 = vmatprep.mubr.msk.f32.mxu1 %vm355_vm0, %v7099_v37  ;;  %v7124_v43 = vld [vmem:[%s6174_s9 + $0x398] sm:$0xff] }
 0x114   : > { %5025 = vmatprep.mubr.msk.f32.mxu0 %vm355_vm0, %v6742_v47  ;;  %v7131_v47 = vld [vmem:[%s6174_s9 + $0x390] sm:$0xff] }
 0x116   : > { %888 = vmatmul.mubr.f32.gmra.mrb[110].mxu1 %v7107_v41 }
 0x117   : > { %3110 = vmatmul.mubr.f32.gmra.mrb[46].mxu0 %v6757_v13  ;;  %4416 = vmatprep.mubr.msk.f32.mxu1 %vm355_vm0, %v7112_v38  ;;  %v7136_v13 = vld [vmem:[%s6174_s9 + $0x3a8] sm:$0xff] }
 0x118   : > { %5026 = vmatprep.mubr.msk.f32.mxu0 %vm355_vm0, %v6760_v14  ;;  %v7143_v14 = vld [vmem:[%s6174_s9 + $0x3a0] sm:$0xff] }
 0x11a   : > { %893 = vmatmul.mubr.f32.gmra.mrb[112].mxu1 %v7119_v30 }
 0x11b   : > { %3115 = vmatmul.mubr.f32.gmra.mrb[48].mxu0 %v6770_v20  ;;  %4417 = vmatprep.mubr.msk.f32.mxu1 %vm355_vm0, %v7124_v43  ;;  %v7148_v20 = vld [vmem:[%s6174_s9 + $0x3b8] sm:$0xff] }
 0x11c   : > { %5027 = vmatprep.mubr.msk.f32.mxu0 %vm355_vm0, %v6773_v51  ;;  %v7155_v51 = vld [vmem:[%s6174_s9 + $0x3b0] sm:$0xff] }
 0x11e   : > { %898 = vmatmul.mubr.f32.gmra.mrb[114].mxu1 %v7131_v47 }
 0x11f   : > { %3120 = vmatmul.mubr.f32.gmra.mrb[50].mxu0 %v6782_v52  ;;  %4418 = vmatprep.mubr.msk.f32.mxu1 %vm355_vm0, %v7136_v13  ;;  %v5214_v52 = vld [vmem:[%s8486_s1 + $0x310] sm:$0xff] }
 0x120   : > { %5028 = vmatprep.mubr.msk.f32.mxu0 %vm355_vm0, %v6785_v55  ;;  %v5215_v55 = vld [vmem:[%s8486_s1 + $0x318] sm:$0xff] }
 0x122   : > { %903 = vmatmul.mubr.f32.gmra.mrb[116].mxu1 %v7143_v14 }
 0x123   : > { %3125 = vmatmul.mubr.f32.gmra.mrb[52].mxu0 %v6794_v3  ;;  %4419 = vmatprep.mubr.msk.f32.mxu1 %vm355_vm0, %v7148_v20  ;;  %v5436_v3 = vpack.c.bf16 %v5215_v55, %v5214_v52  ;;  %v7422_v52 = vld [vmem:[%s6174_s9 + $0x418] sm:$0xff]  ;;  %v7429_v55 = vld [vmem:[%s6174_s9 + $0x190] sm:$0xff] }
 0x124   : > { %5029 = vmatprep.mubr.msk.f32.mxu0 %vm355_vm0, %v6797_v62  ;;  %v7190_v62 = vld [vmem:[%s6174_s9 + $0x3e8] sm:$0xff] }
 0x125   : > { %5437 = vmatpush1.bf16.msra.mxu0 %v5436_v3  ;;  %v7437_v3 = vld [vmem:[%s6174_s9 + $0x1a8] sm:$0xff] }
 0x126   : > { %908 = vmatmul.mubr.f32.gmra.mrb[118].mxu1 %v7155_v51 }
 0x127   : > { %3130 = vmatmul.mubr.f32.gmra.mrb[54].mxu0 %v6806_v56  ;;  %4420 = vmatprep.mubr.msk.f32.mxu1 %vm355_vm0, %v7166_v18  ;;  %v7185_v56 = vld [vmem:[%s6174_s9 + $0x3d0] sm:$0xff] }
 0x128   : > { %5030 = vmatprep.mubr.msk.f32.mxu0 %vm355_vm0, %v6899_v28  ;;  %v4426_v28 = vld [vmem:[%s6174_s9 + $0x40] sm:$0xff] }
 0x12a   : > { %913 = vmatmul.mubr.f32.gmra.mrb[120].mxu1 %v7173_v54 }
 0x12b   : > { %3135 = vmatmul.mubr.f32.gmra.mrb[56].mxu0 %v6906_v33  ;;  %4421 = vmatprep.mubr.msk.f32.mxu1 %vm355_vm0, %v7178_v58  ;;  %v4429_v33 = vld [vmem:[%s6174_s9 + $0x58] sm:$0xff] }
 0x12c   : > { %5031 = vmatprep.mubr.msk.f32.mxu0 %vm355_vm0, %v6917_v6  ;;  %v4430_v6 = vld [vmem:[%s6174_s9 + $0x60] sm:$0xff] }
 0x12e   : > { %918 = vmatmul.mubr.f32.gmra.mrb[122].mxu1 %v7185_v56 }
 0x12f   : > { %3140 = vmatmul.mubr.f32.gmra.mrb[58].mxu0 %v6924_v9  ;;  %4422 = vmatprep.mubr.msk.f32.mxu1 %vm355_vm0, %v7190_v62  ;;  %v4435_v9 = vld [vmem:[%s6174_s9 + $0x88] sm:$0xff] }
 0x130   : > { %5032 = vmatprep.mubr.msk.f32.mxu0 %vm355_vm0, %v6929_v48  ;;  %v8508_v48 = vld [vmem:[#allocation2_spill] sm:$0xff] }
 0x132   : > { %923 = vmatmul.mubr.f32.gmra.mrb[124].mxu1 %v7197_v2 }
 0x133   : > { %3145 = vmatmul.mubr.f32.gmra.mrb[60].mxu0 %v6937_v17  ;;  %4423 = vmatprep.mubr.msk.f32.mxu1 %vm355_vm0, %v7202_v7  ;;  %v4437_v17 = vld [vmem:[%s6174_s9 + $0x98] sm:$0xff] }
 0x134   : > { %5033 = vmatprep.mubr.msk.f32.mxu0 %vm355_vm0, %v6942_v21  ;;  %v8509_v21 = vld [vmem:[#allocation3_spill] sm:$0xff] }
 0x136   : > { %928 = vmatmul.mubr.f32.gmra.mrb[126].mxu1 %v7209_v15 }
 0x137   : > { %3150 = vmatmul.mubr.f32.gmra.mrb[62].mxu0 %v6949_v29  ;;  %4574 = vmatprep.mubr.msk.f32.mxu1 %vm355_vm0, %v4427_v19  ;;  %v4436_v29 = vld [vmem:[%s6174_s9 + $0x90] sm:$0xff]  ;;  %v7473_v19 = vld [vmem:[%s6174_s9 + $0x1c8] sm:$0xff] }
 0x138   : > { %5034 = vmatprep.mubr.msk.f32.mxu0 %vm355_vm0, %v6954_v34  ;;  %v4439_v34 = vld [vmem:[%s6174_s9 + $0xa8] sm:$0xff] }
 0x13a   : > { %1407 = vmatmul.mubr.f32.vlgmr.msra.gmra.mrb[0].mxu1 %v4426_v28  ;;  %v4967_v28 = vld [vmem:[%s6174_s9 + $0x448] sm:$0xff] }
 0x13b   : > { %3155 = vmatmul.mubr.f32.gmra.mrb[64].mxu0 %v6961_v42  ;;  %5448 = vmatpush1.bf16.msra.mxu1 %v6125_v8  ;;  %v4433_v8 = vld [vmem:[%s6174_s9 + $0x78] sm:$0xff]  ;;  %v8510_v42 = vld [vmem:[#allocation4_spill] sm:$0xff] }
 0x13c   : > { %4575 = vmatprep.mubr.msk.f32.mxu1 %vm355_vm0, %v4429_v33  ;;  %5035 = vmatprep.mubr.msk.f32.mxu0 %vm355_vm0, %v6966_v49  ;;  %v4438_v49 = vld [vmem:[%s6174_s9 + $0xa0] sm:$0xff] }
 0x13d   : > { %5439 = vmatprep.subr.bf16.mxu1 %v8507_v50  ;;  %v7481_v33 = vld [vmem:[%s6174_s9 + $0x1c0] sm:$0xff] }
 0x13e   : > { %1412 = vmatmul.mubr.f32.gmra.mrb[2].mxu1 %v4428_v39  ;;  %v4966_v39 = vld [vmem:[%s6174_s9 + $0x440] sm:$0xff] }
 0x13f   : > { %3160 = vmatmul.mubr.f32.gmra.mrb[66].mxu0 %v6973_v53  ;;  %4576 = vmatprep.mubr.msk.f32.mxu1 %vm355_vm0, %v4431_v40  ;;  %v4441_v53 = vld [vmem:[%s6174_s9 + $0xb8] sm:$0xff] }
 0x140   : > { %5036 = vmatprep.mubr.msk.f32.mxu0 %vm355_vm0, %v6978_v57  ;;  %5449 = vmatpush1.bf16.msra.mxu1 %v6137_v12  ;;  %v4434_v12 = vld [vmem:[%s6174_s9 + $0x80] sm:$0xff]  ;;  %v8511_v57 = vld [vmem:[#allocation5_spill] sm:$0xff] }
 0x141   : > { %5440 = vmatprep.subr.bf16.mxu1 %v8507_v50  ;;  %v7486_v40 = vld [vmem:[%s6174_s9 + $0x1d8] sm:$0xff] }
 0x142   : > { %1417 = vmatmul.mubr.f32.gmra.mrb[4].mxu1 %v4430_v6  ;;  %v4969_v6 = vld [vmem:[%s6174_s9 + $0x458] sm:$0xff] }
 0x143   : > { %3165 = vmatmul.mubr.f32.gmra.mrb[68].mxu0 %v6985_v59  ;;  %4577 = vmatprep.mubr.msk.f32.mxu1 %vm355_vm0, %v4433_v8  ;;  %v4440_v59 = vld [vmem:[%s6174_s9 + $0xb0] sm:$0xff] }
 0x144   : > { %5037 = vmatprep.mubr.msk.f32.mxu0 %vm355_vm0, %v6990_v60  ;;  %5450 = vmatpush1.bf16.msra.mxu1 %v8508_v48  ;;  %v4443_v60 = vld [vmem:[%s6174_s9 + $0xc8] sm:$0xff]  ;;  %v7493_v8 = vld [vmem:[%s6174_s9 + $0x1d0] sm:$0xff] }
 0x145   : > { %5441 = vmatprep.subr.bf16.mxu1 %v8507_v50  ;;  %v4971_v48 = vld [vmem:[%s6174_s9 + $0x468] sm:$0xff] }
 0x146   : > { %1422 = vmatmul.mubr.f32.gmra.mrb[6].mxu1 %v4432_v45  ;;  %v4968_v45 = vld [vmem:[%s6174_s9 + $0x450] sm:$0xff] }
 0x147   : > { %3170 = vmatmul.mubr.f32.gmra.mrb[70].mxu0 %v7003_v1  ;;  %4578 = vmatprep.mubr.msk.f32.mxu1 %vm355_vm0, %v4435_v9  ;;  %v8513_v1 = vld [vmem:[#allocation7_spill] sm:$0xff] }
 0x148   : > { %5038 = vmatprep.mubr.msk.f32.mxu0 %vm355_vm0, %v7008_v44  ;;  %5451 = vmatpush1.bf16.msra.mxu1 %v8509_v21  ;;  %v4444_v44 = vld [vmem:[%s6174_s9 + $0xd0] sm:$0xff]  ;;  %v7498_v9 = vld [vmem:[%s6174_s9 + $0x1e8] sm:$0xff]  ;;  %v7510_v21 = vld [vmem:[%s6174_s9 + $0x1f8] sm:$0xff] }
 0x149   : > { %5442 = vmatprep.subr.bf16.mxu1 %v8507_v50 }
 0x14a   : > { %1427 = vmatmul.mubr.f32.gmra.mrb[8].mxu1 %v4434_v12  ;;  %v7505_v12 = vld [vmem:[%s6174_s9 + $0x1e0] sm:$0xff] }
 0x14b   : > { %3175 = vmatmul.mubr.f32.gmra.mrb[72].mxu0 %v7016_v4  ;;  %4579 = vmatprep.mubr.msk.f32.mxu1 %vm355_vm0, %v4437_v17  ;;  %v4447_v4 = vld [vmem:[%s6174_s9 + $0xe8] sm:$0xff]  ;;  %v4970_v17 = vld [vmem:[%s6174_s9 + $0x460] sm:$0xff] }
 0x14c   : > { %5039 = vmatprep.mubr.msk.f32.mxu0 %vm355_vm0, %v7021_v5  ;;  %5452 = vmatpush1.bf16.msra.mxu1 %v8510_v42  ;;  %v8514_v5 = vld [vmem:[#allocation8_spill] sm:$0xff] }
 0x14d   : > { %5443 = vmatprep.subr.bf16.mxu1 %v8507_v50  ;;  %v4972_v42 = vld [vmem:[%s6174_s9 + $0x470] sm:$0xff] }
 0x14e   : > { %1432 = vmatmul.mubr.f32.gmra.mrb[10].mxu1 %v4436_v29  ;;  %v4973_v29 = vld [vmem:[%s6174_s9 + $0x478] sm:$0xff] }
 0x14f   : > { %3180 = vmatmul.mubr.f32.gmra.mrb[74].mxu0 %v7028_v10  ;;  %4580 = vmatprep.mubr.msk.f32.mxu1 %vm355_vm0, %v4439_v34  ;;  %v4446_v10 = vld [vmem:[%s6174_s9 + $0xe0] sm:$0xff]  ;;  %v7517_v34 = vld [vmem:[%s6174_s9 + $0x1f0] sm:$0xff] }
 0x150   : > { %5040 = vmatprep.mubr.msk.f32.mxu0 %vm355_vm0, %v7033_v46  ;;  %5453 = vmatpush1.bf16.msra.mxu1 %v8511_v57  ;;  %v4449_v46 = vld [vmem:[%s6174_s9 + $0xf8] sm:$0xff]  ;;  %v7529_v57 = vld [vmem:[%s6174_s9 + $0x200] sm:$0xff] }
 0x151   : > { %5444 = vmatprep.subr.bf16.mxu1 %v8507_v50 }
 0x152   : > { %1437 = vmatmul.mubr.f32.gmra.mrb[12].mxu1 %v4438_v49  ;;  %v7522_v49 = vld [vmem:[%s6174_s9 + $0x208] sm:$0xff] }
 0x153   : > { %3185 = vmatmul.mubr.f32.gmra.mrb[76].mxu0 %v7040_v11  ;;  %4581 = vmatprep.mubr.msk.f32.mxu1 %vm355_vm0, %v4441_v53  ;;  %v8515_v11 = vld [vmem:[#allocation9_spill] sm:$0xff]  ;;  %v4975_v53 = vld [vmem:[%s6174_s9 + $0x488] sm:$0xff] }
 0x154   : > { %5041 = vmatprep.mubr.msk.f32.mxu0 %vm355_vm0, %v7045_v16  ;;  %5454 = vmatpush1.bf16.msra.mxu1 %v8512_v61  ;;  %v7306_v16 = vld [vmem:[%s6174_s9 + $0x108] sm:$0xff]  ;;  %v4977_v61 = vld [vmem:[%s6174_s9 + $0x498] sm:$0xff] }
 0x155   : > { %5445 = vmatprep.subr.bf16.mxu1 %v8507_v50 }
 0x156   : > { %1442 = vmatmul.mubr.f32.gmra.mrb[14].mxu1 %v4440_v59  ;;  %v4974_v59 = vld [vmem:[%s6174_s9 + $0x480] sm:$0xff] }
 0x157   : > { %3190 = vmatmul.mubr.f32.gmra.mrb[78].mxu0 %v7052_v22  ;;  %4582 = vmatprep.mubr.msk.f32.mxu1 %vm355_vm0, %v4443_v60  ;;  %v7312_v22 = vld [vmem:[%s6174_s9 + $0x100] sm:$0xff]  ;;  %v7534_v60 = vld [vmem:[%s6174_s9 + $0x218] sm:$0xff] }
 0x158   : > { %5042 = vmatprep.mubr.msk.f32.mxu0 %vm355_vm0, %v7057_v23  ;;  %5455 = vmatpush1.bf16.msra.mxu1 %v8513_v1  ;;  %v7317_v23 = vld [vmem:[%s6174_s9 + $0x118] sm:$0xff]  ;;  %v7546_v1 = vld [vmem:[%s6174_s9 + $0x228] sm:$0xff] }
 0x159   : > { %5446 = vmatprep.subr.bf16.mxu1 %v8507_v50 }
 0x15a   : > { %1447 = vmatmul.mubr.f32.gmra.mrb[16].mxu1 %v4442_v63  ;;  %v7541_v63 = vld [vmem:[%s6174_s9 + $0x210] sm:$0xff] }
 0x15b   : > { %3195 = vmatmul.mubr.f32.gmra.mrb[80].mxu0 %v7064_v25  ;;  %4583 = vmatprep.mubr.msk.f32.mxu1 %vm355_vm0, %v4445_v0  ;;  %v7324_v25 = vld [vmem:[%s6174_s9 + $0x110] sm:$0xff] }
 0x15c   : > { %5043 = vmatprep.mubr.msk.f32.mxu0 %vm355_vm0, %v7069_v26  ;;  %5456 = vmatpush1.bf16.msra.mxu1 %v8514_v5  ;;  %v7329_v26 = vld [vmem:[%s6174_s9 + $0x128] sm:$0xff]  ;;  %v4976_v0 = vld [vmem:[%s6174_s9 + $0x490] sm:$0xff]  ;;  %v4978_v5 = vld [vmem:[%s6174_s9 + $0x4a0] sm:$0xff] }
 0x15d   : > { %5447 = vmatprep.subr.bf16.mxu1 %v8507_v50  ;;  %v4448_v50 = vld [vmem:[%s6174_s9 + $0xf0] sm:$0xff] }
 0x15e   : > { %1452 = vmatmul.mubr.f32.gmra.mrb[18].mxu1 %v4444_v44  ;;  %v4979_v44 = vld [vmem:[%s6174_s9 + $0x4a8] sm:$0xff] }
 0x15f   : > { %3200 = vmatmul.mubr.f32.gmra.mrb[82].mxu0 %v7076_v27  ;;  %4584 = vmatprep.mubr.msk.f32.mxu1 %vm355_vm0, %v4447_v4  ;;  %v7336_v27 = vld [vmem:[%s6174_s9 + $0x120] sm:$0xff] }
 0x160   : > { %5044 = vmatprep.mubr.msk.f32.mxu0 %vm355_vm0, %v7087_v24  ;;  %5457 = vmatpush1.bf16.msra.mxu1 %v8515_v11  ;;  %v7353_v24 = vld [vmem:[%s6174_s9 + $0x148] sm:$0xff]  ;;  %v7553_v4 = vld [vmem:[%s6174_s9 + $0x220] sm:$0xff]  ;;  %v7565_v11 = vld [vmem:[%s6174_s9 + $0x230] sm:$0xff] }
 0x162   : > { %1457 = vmatmul.mubr.f32.gmra.mrb[20].mxu1 %v4446_v10  ;;  %v7558_v10 = vld [vmem:[%s6174_s9 + $0x238] sm:$0xff] }
 0x163   : > { %3205 = vmatmul.mubr.f32.gmra.mrb[84].mxu0 %v7094_v32  ;;  %4585 = vmatprep.mubr.msk.f32.mxu1 %vm355_vm0, %v4449_v46  ;;  %v7365_v32 = vld [vmem:[%s6174_s9 + $0x158] sm:$0xff] }
 0x164   : > { %5045 = vmatprep.mubr.msk.f32.mxu0 %vm355_vm0, %v7099_v37  ;;  %v7372_v37 = vld [vmem:[%s6174_s9 + $0x150] sm:$0xff]  ;;  %v4981_v46 = vld [vmem:[%s6174_s9 + $0x4b8] sm:$0xff] }
 0x166   : > { %1462 = vmatmul.mubr.f32.gmra.mrb[22].mxu1 %v4448_v50  ;;  %v4980_v50 = vld [vmem:[%s6174_s9 + $0x4b0] sm:$0xff] }
 0x167   : > { %3210 = vmatmul.mubr.f32.gmra.mrb[86].mxu0 %v7107_v41  ;;  %4586 = vmatprep.mubr.msk.f32.mxu1 %vm355_vm0, %v7306_v16  ;;  %v7377_v41 = vld [vmem:[%s6174_s9 + $0x168] sm:$0xff] }
 0x168   : > { %5046 = vmatprep.mubr.msk.f32.mxu0 %vm355_vm0, %v7112_v38  ;;  %v7384_v38 = vld [vmem:[%s6174_s9 + $0x160] sm:$0xff] }
 0x16a   : > { %1467 = vmatmul.mubr.f32.gmra.mrb[24].mxu1 %v7312_v22 }
 0x16b   : > { %3215 = vmatmul.mubr.f32.gmra.mrb[88].mxu0 %v7119_v30  ;;  %4587 = vmatprep.mubr.msk.f32.mxu1 %vm355_vm0, %v7317_v23  ;;  %v7389_v30 = vld [vmem:[%s6174_s9 + $0x178] sm:$0xff] }
 0x16c   : > { %5047 = vmatprep.mubr.msk.f32.mxu0 %vm355_vm0, %v7124_v43  ;;  %v7396_v43 = vld [vmem:[%s6174_s9 + $0x170] sm:$0xff] }
 0x16e   : > { %1472 = vmatmul.mubr.f32.gmra.mrb[26].mxu1 %v7324_v25 }
 0x16f   : > { %3220 = vmatmul.mubr.f32.gmra.mrb[90].mxu0 %v7131_v47  ;;  %4588 = vmatprep.mubr.msk.f32.mxu1 %vm355_vm0, %v7329_v26  ;;  %v7401_v47 = vld [vmem:[%s6174_s9 + $0x188] sm:$0xff] }
 0x170   : > { %5048 = vmatprep.mubr.msk.f32.mxu0 %vm355_vm0, %v7136_v13  ;;  %v7404_v13 = vld [vmem:[%s6174_s9 + $0x408] sm:$0xff] }
 0x172   : > { %1477 = vmatmul.mubr.f32.gmra.mrb[28].mxu1 %v7336_v27 }
 0x173   : > { %3225 = vmatmul.mubr.f32.gmra.mrb[92].mxu0 %v7143_v14  ;;  %4589 = vmatprep.mubr.msk.f32.mxu1 %vm355_vm0, %v7341_v31  ;;  %v7411_v14 = vld [vmem:[%s6174_s9 + $0x180] sm:$0xff] }
 0x174   : > { %5049 = vmatprep.mubr.msk.f32.mxu0 %vm355_vm0, %v7148_v20  ;;  %v7416_v20 = vld [vmem:[%s6174_s9 + $0x400] sm:$0xff] }
 0x176   : > { %1482 = vmatmul.mubr.f32.gmra.mrb[30].mxu1 %v7348_v35 }
 0x177   : > { %3230 = vmatmul.mubr.f32.gmra.mrb[94].mxu0 %v7155_v51  ;;  %4590 = vmatprep.mubr.msk.f32.mxu1 %vm355_vm0, %v7353_v24  ;;  %v7419_v51 = vld [vmem:[%s6174_s9 + $0x198] sm:$0xff] }
 0x178   : > { %5050 = vmatprep.mubr.msk.f32.mxu0 %vm355_vm0, %v7166_v18  ;;  %v7434_v18 = vld [vmem:[%s6174_s9 + $0x410] sm:$0xff] }
 0x17a   : > { %1487 = vmatmul.mubr.f32.gmra.mrb[32].mxu1 %v7360_v36 }
 0x17b   : > { %3235 = vmatmul.mubr.f32.gmra.mrb[96].mxu0 %v7173_v54  ;;  %4591 = vmatprep.mubr.msk.f32.mxu1 %vm355_vm0, %v7365_v32  ;;  %v7440_v54 = vld [vmem:[%s6174_s9 + $0x428] sm:$0xff] }
 0x17c   : > { %5051 = vmatprep.mubr.msk.f32.mxu0 %vm355_vm0, %v7178_v58  ;;  %v7447_v58 = vld [vmem:[%s6174_s9 + $0x1a0] sm:$0xff] }
 0x17e   : > { %1492 = vmatmul.mubr.f32.gmra.mrb[34].mxu1 %v7372_v37 }
 0x17f   : > { %3240 = vmatmul.mubr.f32.gmra.mrb[98].mxu0 %v7185_v56  ;;  %4592 = vmatprep.mubr.msk.f32.mxu1 %vm355_vm0, %v7377_v41  ;;  %v7452_v56 = vld [vmem:[%s6174_s9 + $0x420] sm:$0xff] }
 0x180   : > { %5052 = vmatprep.mubr.msk.f32.mxu0 %vm355_vm0, %v7190_v62  ;;  %v7455_v62 = vld [vmem:[%s6174_s9 + $0x1b8] sm:$0xff] }
 0x182   : > { %1497 = vmatmul.mubr.f32.gmra.mrb[36].mxu1 %v7384_v38 }
 0x183   : > { %3245 = vmatmul.mubr.f32.gmra.mrb[100].mxu0 %v7197_v2  ;;  %4593 = vmatprep.mubr.msk.f32.mxu1 %vm355_vm0, %v7389_v30  ;;  %v7458_v2 = vld [vmem:[%s6174_s9 + $0x438] sm:$0xff] }
 0x184   : > { %5053 = vmatprep.mubr.msk.f32.mxu0 %vm355_vm0, %v7202_v7  ;;  %v7465_v7 = vld [vmem:[%s6174_s9 + $0x1b0] sm:$0xff] }
 0x186   : > { %1502 = vmatmul.mubr.f32.gmra.mrb[38].mxu1 %v7396_v43 }
 0x187   : > { %3250 = vmatmul.mubr.f32.gmra.mrb[102].mxu0 %v7209_v15  ;;  %4594 = vmatprep.mubr.msk.f32.mxu1 %vm355_vm0, %v7401_v47  ;;  %v7470_v15 = vld [vmem:[%s6174_s9 + $0x430] sm:$0xff] }
 0x188   : > { %5054 = vmatprep.mubr.msk.f32.mxu0 %vm355_vm0, %v7404_v13 }
 0x18a   : > { %1507 = vmatmul.mubr.f32.gmra.mrb[40].mxu1 %v7411_v14 }
 0x18b   : > { %3255 = vmatmul.mubr.f32.gmra.mrb[104].mxu0 %v7416_v20  ;;  %4595 = vmatprep.mubr.msk.f32.mxu1 %vm355_vm0, %v7419_v51 }
 0x18c   : > { %5055 = vmatprep.mubr.msk.f32.mxu0 %vm355_vm0, %v7422_v52 }
 0x18e   : > { %1512 = vmatmul.mubr.f32.gmra.mrb[42].mxu1 %v7429_v55 }
 0x18f   : > { %3260 = vmatmul.mubr.f32.gmra.mrb[106].mxu0 %v7434_v18  ;;  %4596 = vmatprep.mubr.msk.f32.mxu1 %vm355_vm0, %v7437_v3 }
 0x190   : > { %5056 = vmatprep.mubr.msk.f32.mxu0 %vm355_vm0, %v7440_v54 }
 0x192   : > { %1517 = vmatmul.mubr.f32.gmra.mrb[44].mxu1 %v7447_v58 }
 0x193   : > { %3265 = vmatmul.mubr.f32.gmra.mrb[108].mxu0 %v7452_v56  ;;  %4597 = vmatprep.mubr.msk.f32.mxu1 %vm355_vm0, %v7455_v62 }
 0x194   : > { %5057 = vmatprep.mubr.msk.f32.mxu0 %vm355_vm0, %v7458_v2 }
 0x196   : > { %1522 = vmatmul.mubr.f32.gmra.mrb[46].mxu1 %v7465_v7 }
 0x197   : > { %3270 = vmatmul.mubr.f32.gmra.mrb[110].mxu0 %v7470_v15  ;;  %4598 = vmatprep.mubr.msk.f32.mxu1 %vm355_vm0, %v7473_v19 }
 0x198   : > { %5058 = vmatprep.mubr.msk.f32.mxu0 %vm355_vm0, %v4967_v28  ;;  %v7570_v28 = vld [vmem:[%s6174_s9 + $0x248] sm:$0xff] }
 0x19a   : > { %1527 = vmatmul.mubr.f32.gmra.mrb[48].mxu1 %v7481_v33 }
 0x19b   : > { %3275 = vmatmul.mubr.f32.gmra.mrb[112].mxu0 %v4966_v39  ;;  %4599 = vmatprep.mubr.msk.f32.mxu1 %vm355_vm0, %v7486_v40  ;;  %v7576_v39 = vld [vmem:[%s6174_s9 + $0x240] sm:$0xff] }
 0x19c   : > { %5059 = vmatprep.mubr.msk.f32.mxu0 %vm355_vm0, %v4969_v6  ;;  %v7581_v6 = vld [vmem:[%s6174_s9 + $0x258] sm:$0xff] }
 0x19e   : > { %1532 = vmatmul.mubr.f32.gmra.mrb[50].mxu1 %v7493_v8 }
 0x19f   : > { %3280 = vmatmul.mubr.f32.gmra.mrb[114].mxu0 %v4968_v45  ;;  %4600 = vmatprep.mubr.msk.f32.mxu1 %vm355_vm0, %v7498_v9  ;;  %v7588_v45 = vld [vmem:[%s6174_s9 + $0x250] sm:$0xff] }
 0x1a0   : > { %5060 = vmatprep.mubr.msk.f32.mxu0 %vm355_vm0, %v4971_v48  ;;  %v7593_v48 = vld [vmem:[%s6174_s9 + $0x268] sm:$0xff] }
 0x1a2   : > { %1537 = vmatmul.mubr.f32.gmra.mrb[52].mxu1 %v7505_v12 }
 0x1a3   : > { %3285 = vmatmul.mubr.f32.gmra.mrb[116].mxu0 %v4970_v17  ;;  %4601 = vmatprep.mubr.msk.f32.mxu1 %vm355_vm0, %v7510_v21  ;;  %v7780_v17 = vld [vmem:[%s6174_s9 + $0x350] sm:$0xff] }
 0x1a4   : > { %5061 = vmatprep.mubr.msk.f32.mxu0 %vm355_vm0, %v4973_v29  ;;  %v7792_v29 = vld [vmem:[%s6174_s9 + $0x360] sm:$0xff] }
 0x1a6   : > { %1542 = vmatmul.mubr.f32.gmra.mrb[54].mxu1 %v7517_v34 }
 0x1a7   : > { %3290 = vmatmul.mubr.f32.gmra.mrb[118].mxu0 %v4972_v42  ;;  %4602 = vmatprep.mubr.msk.f32.mxu1 %vm355_vm0, %v7522_v49  ;;  %v7804_v42 = vld [vmem:[%s6174_s9 + $0x370] sm:$0xff] }
 0x1a8   : > { %5062 = vmatprep.mubr.msk.f32.mxu0 %vm355_vm0, %v4975_v53  ;;  %v7816_v53 = vld [vmem:[%s6174_s9 + $0x380] sm:$0xff] }
 0x1aa   : > { %1547 = vmatmul.mubr.f32.gmra.mrb[56].mxu1 %v7529_v57 }
 0x1ab   : > { %3295 = vmatmul.mubr.f32.gmra.mrb[120].mxu0 %v4974_v59  ;;  %4603 = vmatprep.mubr.msk.f32.mxu1 %vm355_vm0, %v7534_v60  ;;  %v7828_v59 = vld [vmem:[%s6174_s9 + $0x390] sm:$0xff] }
 0x1ac   : > { %5063 = vmatprep.mubr.msk.f32.mxu0 %vm355_vm0, %v4977_v61 }
 0x1ae   : > { %1552 = vmatmul.mubr.f32.gmra.mrb[58].mxu1 %v7541_v63 }
 0x1af   : > { %3300 = vmatmul.mubr.f32.gmra.mrb[122].mxu0 %v4976_v0  ;;  %4604 = vmatprep.mubr.msk.f32.mxu1 %vm355_vm0, %v7546_v1  ;;  %v7842_v0 = vld [vmem:[%s6174_s9 + $0x3a0] sm:$0xff] }
 0x1b0   : > { %5064 = vmatprep.mubr.msk.f32.mxu0 %vm355_vm0, %v4979_v44 }
 0x1b2   : > { %1557 = vmatmul.mubr.f32.gmra.mrb[60].mxu1 %v7553_v4 }
 0x1b3   : > { %3305 = vmatmul.mubr.f32.gmra.mrb[124].mxu0 %v4978_v5  ;;  %4605 = vmatprep.mubr.msk.f32.mxu1 %vm355_vm0, %v7558_v10  ;;  %v7856_v5 = vld [vmem:[%s6174_s9 + $0x3b0] sm:$0xff] }
 0x1b4   : > { %5065 = vmatprep.mubr.msk.f32.mxu0 %vm355_vm0, %v4981_v46 }
 0x1b6   : > { %1562 = vmatmul.mubr.f32.gmra.mrb[62].mxu1 %v7565_v11 }
 0x1b7   : > { %3310 = vmatmul.mubr.f32.gmra.mrb[126].mxu0 %v4980_v50  ;;  %4606 = vmatprep.mubr.msk.f32.mxu1 %vm355_vm0, %v7570_v28  ;;  %v7870_v50 = vld [vmem:[%s6174_s9 + $0x3c0] sm:$0xff] }
 0x1b8   : > { %5216 = vmatprep.mubr.msk.f32.mxu0 %vm355_vm0, %v7306_v16  ;;  %v7600_v16 = vld [vmem:[%s6174_s9 + $0x260] sm:$0xff] }
 0x1ba   : > { %1567 = vmatmul.mubr.f32.gmra.mrb[64].mxu1 %v7576_v39 }
 0x1bb   : > { %3789 = vmatmul.mubr.f32.vlgmr.msra.gmra.mrb[0].mxu0 %v7312_v22  ;;  %4607 = vmatprep.mubr.msk.f32.mxu1 %vm355_vm0, %v7581_v6  ;;  %v7605_v22 = vld [vmem:[%s6174_s9 + $0x278] sm:$0xff] }
 0x1bc   : > { %5217 = vmatprep.mubr.msk.f32.mxu0 %vm355_vm0, %v7317_v23  ;;  %v7612_v23 = vld [vmem:[%s6174_s9 + $0x270] sm:$0xff] }
 0x1be   : > { %1572 = vmatmul.mubr.f32.gmra.mrb[66].mxu1 %v7588_v45 }
 0x1bf   : > { %3794 = vmatmul.mubr.f32.gmra.mrb[2].mxu0 %v7324_v25  ;;  %4608 = vmatprep.mubr.msk.f32.mxu1 %vm355_vm0, %v7593_v48  ;;  %v7617_v25 = vld [vmem:[%s6174_s9 + $0x288] sm:$0xff] }
 0x1c0   : > { %5218 = vmatprep.mubr.msk.f32.mxu0 %vm355_vm0, %v7329_v26  ;;  %v7624_v26 = vld [vmem:[%s6174_s9 + $0x280] sm:$0xff] }
 0x1c2   : > { %1577 = vmatmul.mubr.f32.gmra.mrb[68].mxu1 %v7600_v16 }
 0x1c3   : > { %3799 = vmatmul.mubr.f32.gmra.mrb[4].mxu0 %v7336_v27  ;;  %4609 = vmatprep.mubr.msk.f32.mxu1 %vm355_vm0, %v7605_v22  ;;  %v7629_v27 = vld [vmem:[%s6174_s9 + $0x298] sm:$0xff] }
 0x1c4   : > { %5219 = vmatprep.mubr.msk.f32.mxu0 %vm355_vm0, %v7341_v31  ;;  %v7636_v31 = vld [vmem:[%s6174_s9 + $0x290] sm:$0xff] }
 0x1c6   : > { %1582 = vmatmul.mubr.f32.gmra.mrb[70].mxu1 %v7612_v23 }
 0x1c7   : > { %3804 = vmatmul.mubr.f32.gmra.mrb[6].mxu0 %v7348_v35  ;;  %4610 = vmatprep.mubr.msk.f32.mxu1 %vm355_vm0, %v7617_v25  ;;  %v7641_v35 = vld [vmem:[%s6174_s9 + $0x2a8] sm:$0xff] }
 0x1c8   : > { %5220 = vmatprep.mubr.msk.f32.mxu0 %vm355_vm0, %v7353_v24  ;;  %v7648_v24 = vld [vmem:[%s6174_s9 + $0x2a0] sm:$0xff] }
 0x1ca   : > { %1587 = vmatmul.mubr.f32.gmra.mrb[72].mxu1 %v7624_v26 }
 0x1cb   : > { %3809 = vmatmul.mubr.f32.gmra.mrb[8].mxu0 %v7360_v36  ;;  %4611 = vmatprep.mubr.msk.f32.mxu1 %vm355_vm0, %v7629_v27  ;;  %v7653_v36 = vld [vmem:[%s6174_s9 + $0x2b8] sm:$0xff] }
 0x1cc   : > { %5221 = vmatprep.mubr.msk.f32.mxu0 %vm355_vm0, %v7365_v32  ;;  %v7660_v32 = vld [vmem:[%s6174_s9 + $0x2b0] sm:$0xff] }
 0x1ce   : > { %1592 = vmatmul.mubr.f32.gmra.mrb[74].mxu1 %v7636_v31 }
 0x1cf   : > { %3814 = vmatmul.mubr.f32.gmra.mrb[10].mxu0 %v7372_v37  ;;  %4612 = vmatprep.mubr.msk.f32.mxu1 %vm355_vm0, %v7641_v35  ;;  %v7665_v37 = vld [vmem:[%s6174_s9 + $0x2c8] sm:$0xff] }
 0x1d0   : > { %5222 = vmatprep.mubr.msk.f32.mxu0 %vm355_vm0, %v7377_v41  ;;  %v7672_v41 = vld [vmem:[%s6174_s9 + $0x2c0] sm:$0xff] }
 0x1d2   : > { %1597 = vmatmul.mubr.f32.gmra.mrb[76].mxu1 %v7648_v24 }
 0x1d3   : > { %3819 = vmatmul.mubr.f32.gmra.mrb[12].mxu0 %v7384_v38  ;;  %4613 = vmatprep.mubr.msk.f32.mxu1 %vm355_vm0, %v7653_v36  ;;  %v7677_v38 = vld [vmem:[%s6174_s9 + $0x2d8] sm:$0xff] }
 0x1d4   : > { %5223 = vmatprep.mubr.msk.f32.mxu0 %vm355_vm0, %v7389_v30  ;;  %v7684_v30 = vld [vmem:[%s6174_s9 + $0x2d0] sm:$0xff] }
 0x1d6   : > { %1602 = vmatmul.mubr.f32.gmra.mrb[78].mxu1 %v7660_v32 }
 0x1d7   : > { %3824 = vmatmul.mubr.f32.gmra.mrb[14].mxu0 %v7396_v43  ;;  %4614 = vmatprep.mubr.msk.f32.mxu1 %vm355_vm0, %v7665_v37  ;;  %v7689_v43 = vld [vmem:[%s6174_s9 + $0x2e8] sm:$0xff] }
 0x1d8   : > { %5224 = vmatprep.mubr.msk.f32.mxu0 %vm355_vm0, %v7401_v47  ;;  %v7696_v47 = vld [vmem:[%s6174_s9 + $0x2e0] sm:$0xff] }
 0x1da   : > { %1607 = vmatmul.mubr.f32.gmra.mrb[80].mxu1 %v7672_v41 }
 0x1db   : > { %3829 = vmatmul.mubr.f32.gmra.mrb[16].mxu0 %v7411_v14  ;;  %4615 = vmatprep.mubr.msk.f32.mxu1 %vm355_vm0, %v7677_v38  ;;  %v7701_v14 = vld [vmem:[%s6174_s9 + $0x2f8] sm:$0xff] }
 0x1dc   : > { %5225 = vmatprep.mubr.msk.f32.mxu0 %vm355_vm0, %v7419_v51  ;;  %v7708_v51 = vld [vmem:[%s6174_s9 + $0x2f0] sm:$0xff] }
 0x1de   : > { %1612 = vmatmul.mubr.f32.gmra.mrb[82].mxu1 %v7684_v30 }
 0x1df   : > { %3834 = vmatmul.mubr.f32.gmra.mrb[18].mxu0 %v7429_v55  ;;  %4616 = vmatprep.mubr.msk.f32.mxu1 %vm355_vm0, %v7689_v43  ;;  %v7713_v55 = vld [vmem:[%s6174_s9 + $0x308] sm:$0xff] }
 0x1e0   : > { %5226 = vmatprep.mubr.msk.f32.mxu0 %vm355_vm0, %v7437_v3  ;;  %v7720_v3 = vld [vmem:[%s6174_s9 + $0x300] sm:$0xff] }
 0x1e2   : > { %1617 = vmatmul.mubr.f32.gmra.mrb[84].mxu1 %v7696_v47 }
 0x1e3   : > { %3839 = vmatmul.mubr.f32.gmra.mrb[20].mxu0 %v7447_v58  ;;  %4617 = vmatprep.mubr.msk.f32.mxu1 %vm355_vm0, %v7701_v14  ;;  %v7725_v58 = vld [vmem:[%s6174_s9 + $0x318] sm:$0xff] }
 0x1e4   : > { %5227 = vmatprep.mubr.msk.f32.mxu0 %vm355_vm0, %v7455_v62  ;;  %v7732_v62 = vld [vmem:[%s6174_s9 + $0x310] sm:$0xff] }
 0x1e6   : > { %1622 = vmatmul.mubr.f32.gmra.mrb[86].mxu1 %v7708_v51 }
 0x1e7   : > { %3844 = vmatmul.mubr.f32.gmra.mrb[22].mxu0 %v7465_v7  ;;  %4618 = vmatprep.mubr.msk.f32.mxu1 %vm355_vm0, %v7713_v55  ;;  %v7737_v7 = vld [vmem:[%s6174_s9 + $0x328] sm:$0xff] }
 0x1e8   : > { %5228 = vmatprep.mubr.msk.f32.mxu0 %vm355_vm0, %v7473_v19  ;;  %v7744_v19 = vld [vmem:[%s6174_s9 + $0x320] sm:$0xff] }
 0x1ea   : > { %1627 = vmatmul.mubr.f32.gmra.mrb[88].mxu1 %v7720_v3 }
 0x1eb   : > { %3849 = vmatmul.mubr.f32.gmra.mrb[24].mxu0 %v7481_v33  ;;  %4619 = vmatprep.mubr.msk.f32.mxu1 %vm355_vm0, %v7725_v58  ;;  %v7749_v33 = vld [vmem:[%s6174_s9 + $0x338] sm:$0xff] }
 0x1ec   : > { %5229 = vmatprep.mubr.msk.f32.mxu0 %vm355_vm0, %v7486_v40  ;;  %v7756_v40 = vld [vmem:[%s6174_s9 + $0x330] sm:$0xff] }
 0x1ee   : > { %1632 = vmatmul.mubr.f32.gmra.mrb[90].mxu1 %v7732_v62 }
 0x1ef   : > { %3854 = vmatmul.mubr.f32.gmra.mrb[26].mxu0 %v7493_v8  ;;  %4620 = vmatprep.mubr.msk.f32.mxu1 %vm355_vm0, %v7737_v7  ;;  %v7761_v8 = vld [vmem:[%s6174_s9 + $0x348] sm:$0xff] }
 0x1f0   : > { %5230 = vmatprep.mubr.msk.f32.mxu0 %vm355_vm0, %v7498_v9  ;;  %v7768_v9 = vld [vmem:[%s6174_s9 + $0x340] sm:$0xff] }
 0x1f2   : > { %1637 = vmatmul.mubr.f32.gmra.mrb[92].mxu1 %v7744_v19 }
 0x1f3   : > { %3859 = vmatmul.mubr.f32.gmra.mrb[28].mxu0 %v7505_v12  ;;  %4621 = vmatprep.mubr.msk.f32.mxu1 %vm355_vm0, %v7749_v33  ;;  %v7773_v12 = vld [vmem:[%s6174_s9 + $0x358] sm:$0xff] }
 0x1f4   : > { %5231 = vmatprep.mubr.msk.f32.mxu0 %vm355_vm0, %v7510_v21  ;;  %v7785_v21 = vld [vmem:[%s6174_s9 + $0x368] sm:$0xff] }
 0x1f6   : > { %1642 = vmatmul.mubr.f32.gmra.mrb[94].mxu1 %v7756_v40 }
 0x1f7   : > { %3864 = vmatmul.mubr.f32.gmra.mrb[30].mxu0 %v7517_v34  ;;  %4622 = vmatprep.mubr.msk.f32.mxu1 %vm355_vm0, %v7761_v8  ;;  %v7797_v34 = vld [vmem:[%s6174_s9 + $0x378] sm:$0xff] }
 0x1f8   : > { %5232 = vmatprep.mubr.msk.f32.mxu0 %vm355_vm0, %v7522_v49  ;;  %v7809_v49 = vld [vmem:[%s6174_s9 + $0x388] sm:$0xff] }
 0x1fa   : > { %1647 = vmatmul.mubr.f32.gmra.mrb[96].mxu1 %v7768_v9 }
 0x1fb   : > { %3869 = vmatmul.mubr.f32.gmra.mrb[32].mxu0 %v7529_v57  ;;  %4623 = vmatprep.mubr.msk.f32.mxu1 %vm355_vm0, %v7773_v12  ;;  %v7821_v57 = vld [vmem:[%s6174_s9 + $0x398] sm:$0xff] }
 0x1fc   : > { %5233 = vmatprep.mubr.msk.f32.mxu0 %vm355_vm0, %v7534_v60  ;;  %v7833_v60 = vld [vmem:[%s6174_s9 + $0x3a8] sm:$0xff] }
 0x1fe   : > { %1652 = vmatmul.mubr.f32.gmra.mrb[98].mxu1 %v7780_v17 }
 0x1ff   : > { %3874 = vmatmul.mubr.f32.gmra.mrb[34].mxu0 %v7541_v63  ;;  %4624 = vmatprep.mubr.msk.f32.mxu1 %vm355_vm0, %v7785_v21 }
 0x200   : > { %5234 = vmatprep.mubr.msk.f32.mxu0 %vm355_vm0, %v7546_v1  ;;  %v7847_v1 = vld [vmem:[%s6174_s9 + $0x3b8] sm:$0xff] }
 0x202   : > { %1657 = vmatmul.mubr.f32.gmra.mrb[100].mxu1 %v7792_v29 }
 0x203   : > { %3879 = vmatmul.mubr.f32.gmra.mrb[36].mxu0 %v7553_v4  ;;  %4625 = vmatprep.mubr.msk.f32.mxu1 %vm355_vm0, %v7797_v34 }
 0x204   : > { %5235 = vmatprep.mubr.msk.f32.mxu0 %vm355_vm0, %v7558_v10  ;;  %v7861_v10 = vld [vmem:[%s6174_s9 + $0x3c8] sm:$0xff] }
 0x206   : > { %1662 = vmatmul.mubr.f32.gmra.mrb[102].mxu1 %v7804_v42 }
 0x207   : > { %3884 = vmatmul.mubr.f32.gmra.mrb[38].mxu0 %v7565_v11  ;;  %4626 = vmatprep.mubr.msk.f32.mxu1 %vm355_vm0, %v7809_v49 }
 0x208   : > { %5236 = vmatprep.mubr.msk.f32.mxu0 %vm355_vm0, %v7570_v28  ;;  %v7875_v28 = vld [vmem:[%s6174_s9 + $0x3d8] sm:$0xff] }
 0x20a   : > { %1667 = vmatmul.mubr.f32.gmra.mrb[104].mxu1 %v7816_v53 }
 0x20b   : > { %3889 = vmatmul.mubr.f32.gmra.mrb[40].mxu0 %v7576_v39  ;;  %4627 = vmatprep.mubr.msk.f32.mxu1 %vm355_vm0, %v7821_v57 }
 0x20c   : > { %5237 = vmatprep.mubr.msk.f32.mxu0 %vm355_vm0, %v7581_v6 }
 0x20d   : > { %v7835_v61 = vpop.f32.mrb[0].mxu1 }
 0x20e   : > { %v1410_v63 = vpop.f32.mrb[1].mxu1  ;;  %1672 = vmatmul.mubr.f32.gmra.mrb[106].mxu1 %v7828_v59 }
 0x20f   : > { %3894 = vmatmul.mubr.f32.gmra.mrb[42].mxu0 %v7588_v45  ;;  %4628 = vmatprep.mubr.msk.f32.mxu1 %vm355_vm0, %v7833_v60  ;;  %v7884_v45 = vld [vmem:[%s6174_s9 + $0x3d0] sm:$0xff]  ;;  %v7903_v63 = vld [vmem:[%s6174_s9 + $0x3f8] sm:$0xff] }
 0x210   : > { %5238 = vmatprep.mubr.msk.f32.mxu0 %vm355_vm0, %v7593_v48  ;;  %v7889_v48 = vld [vmem:[%s6174_s9 + $0x3e8] sm:$0xff] }
 0x211   : > { %v7849_v44 = vpop.f32.mrb[2].mxu1 }
 0x212   : > { %v1415_v4 = vpop.f32.mrb[3].mxu1  ;;  %1677 = vmatmul.mubr.f32.gmra.mrb[108].mxu1 %v7842_v0 }
 0x213   : > { %3899 = vmatmul.mubr.f32.gmra.mrb[44].mxu0 %v7600_v16  ;;  %4629 = vmatprep.mubr.msk.f32.mxu1 %vm355_vm0, %v7847_v1 }
 0x214   : > { %5239 = vmatprep.mubr.msk.f32.mxu0 %vm355_vm0, %v7605_v22 }
 0x215   : > { %v7863_v46 = vpop.f32.mrb[4].mxu1 }
 0x216   : > { %v1420_v11 = vpop.f32.mrb[5].mxu1  ;;  %1682 = vmatmul.mubr.f32.gmra.mrb[110].mxu1 %v7856_v5 }
 0x217   : > { %3904 = vmatmul.mubr.f32.gmra.mrb[46].mxu0 %v7612_v23  ;;  %4630 = vmatprep.mubr.msk.f32.mxu1 %vm355_vm0, %v7861_v10  ;;  %v7898_v23 = vld [vmem:[%s6174_s9 + $0x3e0] sm:$0xff] }
 0x218   : > { %5240 = vmatprep.mubr.msk.f32.mxu0 %vm355_vm0, %v7617_v25 }
 0x219   : > { %v7877_v39 = vpop.f32.mrb[6].mxu1 }
 0x21a   : > { %v1425_v6 = vpop.f32.mrb[7].mxu1  ;;  %1687 = vmatmul.mubr.f32.gmra.mrb[112].mxu1 %v7870_v50 }
 0x21b   : > { %3909 = vmatmul.mubr.f32.gmra.mrb[48].mxu0 %v7624_v26  ;;  %4631 = vmatprep.mubr.msk.f32.mxu1 %vm355_vm0, %v7875_v28  ;;  %v7912_v6 = vld [vmem:[%s6174_s9 + $0x3f0] sm:$0xff] }
 0x21c   : > { %5241 = vmatprep.mubr.msk.f32.mxu0 %vm355_vm0, %v7629_v27 }
 0x21d   : > { %v7891_v16 = vpop.f32.mrb[8].mxu1 }
 0x21e   : > { %8516 = vst [vmem:[#allocation2_spill] sm:$0xff] %v7891_v16  ;;  %v1430_v22 = vpop.f32.mrb[9].mxu1  ;;  %1692 = vmatmul.mubr.f32.gmra.mrb[114].mxu1 %v7884_v45 }
 0x21f   : > { %3914 = vmatmul.mubr.f32.gmra.mrb[50].mxu0 %v7636_v31  ;;  %4632 = vmatprep.mubr.msk.f32.mxu1 %vm355_vm0, %v7889_v48 }
 0x220   : > { %5242 = vmatprep.mubr.msk.f32.mxu0 %vm355_vm0, %v7641_v35 }
 0x221   : > { %v7905_v4 = vpop.f32.mrb[10].mxu1 }
 0x222   : > { %8517 = vst [vmem:[#allocation3_spill] sm:$0xff] %v7905_v4  ;;  %v1435_v11 = vpop.f32.mrb[11].mxu1  ;;  %1697 = vmatmul.mubr.f32.gmra.mrb[116].mxu1 %v7898_v23 }
 0x223   : > { %3919 = vmatmul.mubr.f32.gmra.mrb[52].mxu0 %v7648_v24  ;;  %4633 = vmatprep.mubr.msk.f32.mxu1 %vm355_vm0, %v7903_v63 }
 0x224   : > { %5243 = vmatprep.mubr.msk.f32.mxu0 %vm355_vm0, %v7653_v36 }
 0x225   : > { %v7916_v22 = vpop.f32.mrb[12].mxu1 }
 0x226   : > { %8518 = vst [vmem:[#allocation4_spill] sm:$0xff] %v7916_v22  ;;  %v1440_v16 = vpop.f32.mrb[13].mxu1  ;;  %1702 = vmatmul.mubr.f32.gmra.mrb[118].mxu1 %v7912_v6 }
 0x227   : > { %3924 = vmatmul.mubr.f32.gmra.mrb[54].mxu0 %v7660_v32  ;;  %4634 = vmatprep.mubr.msk.f32.mxu1 %vm355_vm0, %v7404_v13 }
 0x228   : > { %5244 = vmatprep.mubr.msk.f32.mxu0 %vm355_vm0, %v7665_v37 }
 0x229   : > { %v7924_v11 = vpop.f32.mrb[14].mxu1 }
 0x22a   : > { %v1445_v4 = vpop.f32.mrb[15].mxu1  ;;  %1707 = vmatmul.mubr.f32.gmra.mrb[120].mxu1 %v7416_v20 }
 0x22b   : > { %3929 = vmatmul.mubr.f32.gmra.mrb[56].mxu0 %v7672_v41  ;;  %4635 = vmatprep.mubr.msk.f32.mxu1 %vm355_vm0, %v7422_v52  ;;  %v8093_v4 = vld [vmem:[%s6174_s9 + $0x418] sm:$0xff] }
 0x22c   : > { %5245 = vmatprep.mubr.msk.f32.mxu0 %vm355_vm0, %v7677_v38 }
 0x22d   : > { %v7932_v16 = vpop.f32.mrb[16].mxu1 }
 0x22e   : > { %v1450_v22 = vpop.f32.mrb[17].mxu1  ;;  %1712 = vmatmul.mubr.f32.gmra.mrb[122].mxu1 %v7434_v18 }
 0x22f   : > { %3934 = vmatmul.mubr.f32.gmra.mrb[58].mxu0 %v7684_v30  ;;  %4636 = vmatprep.mubr.msk.f32.mxu1 %vm355_vm0, %v7440_v54 }
 0x230   : > { %5246 = vmatprep.mubr.msk.f32.mxu0 %vm355_vm0, %v7689_v43 }
 0x231   : > { %v7940_v13 = vpop.f32.mrb[18].mxu1 }
 0x232   : > { %v1455_v20 = vpop.f32.mrb[19].mxu1  ;;  %1717 = vmatmul.mubr.f32.gmra.mrb[124].mxu1 %v7452_v56 }
 0x233   : > { %3939 = vmatmul.mubr.f32.gmra.mrb[60].mxu0 %v7696_v47  ;;  %4637 = vmatprep.mubr.msk.f32.mxu1 %vm355_vm0, %v7458_v2  ;;  %v8108_v20 = vld [vmem:[%s6174_s9 + $0x428] sm:$0xff] }
 0x234   : > { %5247 = vmatprep.mubr.msk.f32.mxu0 %vm355_vm0, %v7701_v14 }
 0x235   : > { %v7948_v52 = vpop.f32.mrb[20].mxu1 }
 0x236   : > { %v1460_v18 = vpop.f32.mrb[21].mxu1  ;;  %1722 = vmatmul.mubr.f32.gmra.mrb[126].mxu1 %v7470_v15 }
 0x237   : > { %3944 = vmatmul.mubr.f32.gmra.mrb[62].mxu0 %v7708_v51  ;;  %4820 = vmatprep.mubr.msk.f32.mxu1 %vm355_vm0, %v7617_v25 }
 0x238   : > { %5248 = vmatprep.mubr.msk.f32.mxu0 %vm355_vm0, %v7713_v55 }
 0x239   : > { %v7956_v54 = vpop.f32.mrb[22].mxu1 }
 0x23a   : > { %v1465_v56 = vpop.f32.mrb[23].mxu1  ;;  %2361 = vmatmul.mubr.f32.vlgmr.msra.gmra.mrb[64].mxu1 %v7624_v26 }
 0x23b   : > { %3949 = vmatmul.mubr.f32.gmra.mrb[64].mxu0 %v7720_v3  ;;  %4821 = vmatprep.mubr.msk.f32.mxu1 %vm355_vm0, %v7629_v27  ;;  %v8122_v56 = vld [vmem:[%s6174_s9 + $0x438] sm:$0xff] }
 0x23c   : > { %5249 = vmatprep.mubr.msk.f32.mxu0 %vm355_vm0, %v7725_v58 }
 0x23d   : > { %v7964_v2 = vpop.f32.mrb[24].mxu1 }
 0x23e   : > { %v1470_v15 = vpop.f32.mrb[25].mxu1  ;;  %2366 = vmatmul.mubr.f32.gmra.mrb[66].mxu1 %v7636_v31 }
 0x23f   : > { %3954 = vmatmul.mubr.f32.gmra.mrb[66].mxu0 %v7732_v62  ;;  %4822 = vmatprep.mubr.msk.f32.mxu1 %vm355_vm0, %v7641_v35 }
 0x240   : > { %5250 = vmatprep.mubr.msk.f32.mxu0 %vm355_vm0, %v7737_v7 }
 0x241   : > { %v7972_v25 = vpop.f32.mrb[26].mxu1 }
 0x242   : > { %v1475_v26 = vpop.f32.mrb[27].mxu1  ;;  %2371 = vmatmul.mubr.f32.gmra.mrb[68].mxu1 %v7648_v24 }
 0x243   : > { %3959 = vmatmul.mubr.f32.gmra.mrb[68].mxu0 %v7744_v19  ;;  %4823 = vmatprep.mubr.msk.f32.mxu1 %vm355_vm0, %v7653_v36  ;;  %v8136_v26 = vld [vmem:[%s6174_s9 + $0x448] sm:$0xff] }
 0x244   : > { %5251 = vmatprep.mubr.msk.f32.mxu0 %vm355_vm0, %v7749_v33 }
 0x245   : > { %v7980_v27 = vpop.f32.mrb[28].mxu1 }
 0x246   : > { %v1480_v31 = vpop.f32.mrb[29].mxu1  ;;  %2376 = vmatmul.mubr.f32.gmra.mrb[70].mxu1 %v7660_v32 }
 0x247   : > { %3964 = vmatmul.mubr.f32.gmra.mrb[70].mxu0 %v7756_v40  ;;  %4824 = vmatprep.mubr.msk.f32.mxu1 %vm355_vm0, %v7665_v37 }
 0x248   : > { %5252 = vmatprep.mubr.msk.f32.mxu0 %vm355_vm0, %v7761_v8 }
 0x249   : > { %v7988_v35 = vpop.f32.mrb[30].mxu1 }
 0x24a   : > { %v1485_v24 = vpop.f32.mrb[31].mxu1  ;;  %2381 = vmatmul.mubr.f32.gmra.mrb[72].mxu1 %v7672_v41 }
 0x24b   : > { %3969 = vmatmul.mubr.f32.gmra.mrb[72].mxu0 %v7768_v9  ;;  %4825 = vmatprep.mubr.msk.f32.mxu1 %vm355_vm0, %v7677_v38  ;;  %v8151_v24 = vld [vmem:[%s6174_s9 + $0x458] sm:$0xff] }
 0x24c   : > { %5253 = vmatprep.mubr.msk.f32.mxu0 %vm355_vm0, %v7773_v12 }
 0x24d   : > { %v7996_v36 = vpop.f32.mrb[32].mxu1 }
 0x24e   : > { %v1490_v32 = vpop.f32.mrb[33].mxu1  ;;  %2386 = vmatmul.mubr.f32.gmra.mrb[74].mxu1 %v7684_v30 }
 0x24f   : > { %3974 = vmatmul.mubr.f32.gmra.mrb[74].mxu0 %v7780_v17  ;;  %4826 = vmatprep.mubr.msk.f32.mxu1 %vm355_vm0, %v7689_v43 }
 0x250   : > { %5254 = vmatprep.mubr.msk.f32.mxu0 %vm355_vm0, %v7785_v21 }
 0x251   : > { %v8004_v37 = vpop.f32.mrb[34].mxu1 }
 0x252   : > { %v1495_v41 = vpop.f32.mrb[35].mxu1  ;;  %2391 = vmatmul.mubr.f32.gmra.mrb[76].mxu1 %v7696_v47 }
 0x253   : > { %3979 = vmatmul.mubr.f32.gmra.mrb[76].mxu0 %v7792_v29  ;;  %4827 = vmatprep.mubr.msk.f32.mxu1 %vm355_vm0, %v7701_v14 }
 0x254   : > { %5255 = vmatprep.mubr.msk.f32.mxu0 %vm355_vm0, %v7797_v34 }
 0x255   : > { %v8012_v38 = vpop.f32.mrb[36].mxu1 }
 0x256   : > { %v1500_v30 = vpop.f32.mrb[37].mxu1  ;;  %2396 = vmatmul.mubr.f32.gmra.mrb[78].mxu1 %v7708_v51 }
 0x257   : > { %3984 = vmatmul.mubr.f32.gmra.mrb[78].mxu0 %v7804_v42  ;;  %4828 = vmatprep.mubr.msk.f32.mxu1 %vm355_vm0, %v7713_v55  ;;  %v8170_v30 = vld [vmem:[%s6174_s9 + $0x468] sm:$0xff] }
 0x258   : > { %5256 = vmatprep.mubr.msk.f32.mxu0 %vm355_vm0, %v7809_v49 }
 0x259   : > { %v8020_v43 = vpop.f32.mrb[38].mxu1 }
 0x25a   : > { %v1505_v47 = vpop.f32.mrb[39].mxu1  ;;  %2401 = vmatmul.mubr.f32.gmra.mrb[80].mxu1 %v7720_v3 }
 0x25b   : > { %3989 = vmatmul.mubr.f32.gmra.mrb[80].mxu0 %v7816_v53  ;;  %4829 = vmatprep.mubr.msk.f32.mxu1 %vm355_vm0, %v7725_v58 }
 0x25c   : > { %5257 = vmatprep.mubr.msk.f32.mxu0 %vm355_vm0, %v7821_v57 }
 0x25d   : > { %v8028_v14 = vpop.f32.mrb[40].mxu1 }
 0x25e   : > { %v1510_v51 = vpop.f32.mrb[41].mxu1  ;;  %2406 = vmatmul.mubr.f32.gmra.mrb[82].mxu1 %v7732_v62 }
 0x25f   : > { %3994 = vmatmul.mubr.f32.gmra.mrb[82].mxu0 %v7828_v59  ;;  %4830 = vmatprep.mubr.msk.f32.mxu1 %vm355_vm0, %v7737_v7 }
 0x260   : > { %5258 = vmatprep.mubr.msk.f32.mxu0 %vm355_vm0, %v7833_v60 }
 0x261   : > { %v8036_v55 = vpop.f32.mrb[42].mxu1 }
 0x262   : > { %v1515_v3 = vpop.f32.mrb[43].mxu1  ;;  %2411 = vmatmul.mubr.f32.gmra.mrb[84].mxu1 %v7744_v19 }
 0x263   : > { %3999 = vmatmul.mubr.f32.gmra.mrb[84].mxu0 %v7842_v0  ;;  %4831 = vmatprep.mubr.msk.f32.mxu1 %vm355_vm0, %v7749_v33 }
 0x264   : > { %5259 = vmatprep.mubr.msk.f32.mxu0 %vm355_vm0, %v7847_v1 }
 0x265   : > { %v8044_v58 = vpop.f32.mrb[44].mxu1 }
 0x266   : > { %v1520_v62 = vpop.f32.mrb[45].mxu1  ;;  %2416 = vmatmul.mubr.f32.gmra.mrb[86].mxu1 %v7756_v40 }
 0x267   : > { %4004 = vmatmul.mubr.f32.gmra.mrb[86].mxu0 %v7856_v5  ;;  %4832 = vmatprep.mubr.msk.f32.mxu1 %vm355_vm0, %v7761_v8 }
 0x268   : > { %5260 = vmatprep.mubr.msk.f32.mxu0 %vm355_vm0, %v7861_v10 }
 0x269   : > { %v8052_v7 = vpop.f32.mrb[46].mxu1 }
 0x26a   : > { %v1525_v19 = vpop.f32.mrb[47].mxu1  ;;  %2421 = vmatmul.mubr.f32.gmra.mrb[88].mxu1 %v7768_v9 }
 0x26b   : > { %4009 = vmatmul.mubr.f32.gmra.mrb[88].mxu0 %v7870_v50  ;;  %4833 = vmatprep.mubr.msk.f32.mxu1 %vm355_vm0, %v7773_v12 }
 0x26c   : > { %5261 = vmatprep.mubr.msk.f32.mxu0 %vm355_vm0, %v7875_v28 }
 0x26d   : > { %v8060_v33 = vpop.f32.mrb[48].mxu1 }
 0x26e   : > { %v1530_v40 = vpop.f32.mrb[49].mxu1  ;;  %2426 = vmatmul.mubr.f32.gmra.mrb[90].mxu1 %v7780_v17  ;;  %v8079_v17 = vld [vmem:[%s6174_s9 + $0x408] sm:$0xff] }
 0x26f   : > { %4014 = vmatmul.mubr.f32.gmra.mrb[90].mxu0 %v7884_v45  ;;  %4834 = vmatprep.mubr.msk.f32.mxu1 %vm355_vm0, %v7785_v21 }
 0x270   : > { %5262 = vmatprep.mubr.msk.f32.mxu0 %vm355_vm0, %v7889_v48 }
 0x271   : > { %v8068_v8 = vpop.f32.mrb[50].mxu1 }
 0x272   : > { %v1535_v9 = vpop.f32.mrb[51].mxu1  ;;  %2431 = vmatmul.mubr.f32.gmra.mrb[92].mxu1 %v7792_v29  ;;  %v8088_v29 = vld [vmem:[%s6174_s9 + $0x400] sm:$0xff] }
 0x273   : > { %4019 = vmatmul.mubr.f32.gmra.mrb[92].mxu0 %v7898_v23  ;;  %4835 = vmatprep.mubr.msk.f32.mxu1 %vm355_vm0, %v7797_v34 }
 0x274   : > { %5263 = vmatprep.mubr.msk.f32.mxu0 %vm355_vm0, %v7903_v63 }
 0x275   : > { %v8076_v12 = vpop.f32.mrb[52].mxu1 }
 0x276   : > { %v1540_v21 = vpop.f32.mrb[53].mxu1  ;;  %2436 = vmatmul.mubr.f32.gmra.mrb[94].mxu1 %v7804_v42  ;;  %v8103_v42 = vld [vmem:[%s6174_s9 + $0x410] sm:$0xff] }
 0x277   : > { %4024 = vmatmul.mubr.f32.gmra.mrb[94].mxu0 %v7912_v6  ;;  %4836 = vmatprep.mubr.msk.f32.mxu1 %vm355_vm0, %v7809_v49 }
 0x278   : > { %5264 = vmatprep.mubr.msk.f32.mxu0 %vm355_vm0, %v8079_v17 }
 0x279   : > { %v8090_v34 = vpop.f32.mrb[54].mxu1 }
 0x27a   : > { %v1545_v22 = vpop.f32.mrb[55].mxu1  ;;  %2441 = vmatmul.mubr.f32.gmra.mrb[96].mxu1 %v7816_v53  ;;  %v8117_v53 = vld [vmem:[%s6174_s9 + $0x420] sm:$0xff] }
 0x27b   : > { %4029 = vmatmul.mubr.f32.gmra.mrb[96].mxu0 %v8088_v29  ;;  %4837 = vmatprep.mubr.msk.f32.mxu1 %vm355_vm0, %v7821_v57  ;;  %v5183_v22 = vld [vmem:[%s6174_s9 + $0x498] sm:$0xff] }
 0x27c   : > { %5265 = vmatprep.mubr.msk.f32.mxu0 %vm355_vm0, %v8093_v4 }
 0x27d   : > { %v8105_v49 = vpop.f32.mrb[56].mxu1 }
 0x27e   : > { %v1550_v18 = vpop.f32.mrb[57].mxu1  ;;  %2446 = vmatmul.mubr.f32.gmra.mrb[98].mxu1 %v7828_v59  ;;  %v8131_v59 = vld [vmem:[%s6174_s9 + $0x430] sm:$0xff] }
 0x27f   : > { %4034 = vmatmul.mubr.f32.gmra.mrb[98].mxu0 %v8103_v42  ;;  %4838 = vmatprep.mubr.msk.f32.mxu1 %vm355_vm0, %v7833_v60 }
 0x280   : > { %5266 = vmatprep.mubr.msk.f32.mxu0 %vm355_vm0, %v8108_v20 }
 0x281   : > { %v8119_v57 = vpop.f32.mrb[58].mxu1 }
 0x282   : > { %v1555_v15 = vpop.f32.mrb[59].mxu1  ;;  %2451 = vmatmul.mubr.f32.gmra.mrb[100].mxu1 %v7842_v0  ;;  %v8146_v0 = vld [vmem:[%s6174_s9 + $0x440] sm:$0xff] }
 0x283   : > { %4039 = vmatmul.mubr.f32.gmra.mrb[100].mxu0 %v8117_v53  ;;  %4839 = vmatprep.mubr.msk.f32.mxu1 %vm355_vm0, %v7847_v1 }
 0x284   : > { %5267 = vmatprep.mubr.msk.f32.mxu0 %vm355_vm0, %v8122_v56 }
 0x285   : > { %v8133_v60 = vpop.f32.mrb[60].mxu1 }
 0x286   : > { %v1560_v31 = vpop.f32.mrb[61].mxu1  ;;  %2456 = vmatmul.mubr.f32.gmra.mrb[102].mxu1 %v7856_v5  ;;  %v8156_v5 = vld [vmem:[%s8487_s2] ss:$0 sm:$0xff] }
 0x287   : > { %4044 = vmatmul.mubr.f32.gmra.mrb[102].mxu0 %v8131_v59  ;;  %4840 = vmatprep.mubr.msk.f32.mxu1 %vm355_vm0, %v7861_v10  ;;  %v8165_v10 = vld [vmem:[%s6174_s9 + $0x450] sm:$0xff]  ;;  %v5458_v41 = vadd.f32 %v8156_v5, %v7835_v61  ;;  %v8184_v61 = vld [vmem:[%s6174_s9 + $0x460] sm:$0xff]  ;;  %v5460_v51 = vadd.f32 %v8156_v5, %v7849_v44 }
 0x288   : > { %5268 = vmatprep.mubr.msk.f32.mxu0 %vm355_vm0, %v8136_v26  ;;  %v8200_v44 = vld [vmem:[%s6174_s9 + $0x470] sm:$0xff]  ;;  %v8519_v31 = vld [vmem:[#allocation2_spill] sm:$0xff] }
 0x289   : > { %v8148_v1 = vpop.f32.mrb[62].mxu1 }
 0x28a   : > { %v1565_v32 = vpop.f32.mrb[63].mxu1  ;;  %2461 = vmatmul.mubr.f32.gmra.mrb[104].mxu1 %v7870_v50 }
 0x28b   : > { %4049 = vmatmul.mubr.f32.gmra.mrb[104].mxu0 %v8146_v0  ;;  %4841 = vmatprep.mubr.msk.f32.mxu1 %vm355_vm0, %v7875_v28  ;;  %v5185_v32 = vld [vmem:[%s6174_s9 + $0x4a8] sm:$0xff] }
 0x28c   : > { %5269 = vmatprep.mubr.msk.f32.mxu0 %vm355_vm0, %v8151_v24 }
 0x28e   : > { %v3790_v50 = vpop.f32.mrb[0].mxu0  ;;  %2466 = vmatmul.mubr.f32.gmra.mrb[106].mxu1 %v7884_v45  ;;  %v8191_v45 = vld [vmem:[%s6174_s9 + $0x478] sm:$0xff] }
 0x28f   : > { %v5459_v28 = vadd.f32 %v5458_v41, %v3790_v50  ;;  %v3792_v47 = vpop.f32.mrb[1].mxu0  ;;  %4054 = vmatmul.mubr.f32.gmra.mrb[106].mxu0 %v8165_v10  ;;  %4842 = vmatprep.mubr.msk.f32.mxu1 %vm355_vm0, %v7889_v48  ;;  %v5462_v48 = vadd.f32 %v8156_v5, %v7863_v46  ;;  %v5464_v46 = vadd.f32 %v8156_v5, %v7877_v39 }
 0x290   : > { %5270 = vmatprep.mubr.msk.f32.mxu0 %vm355_vm0, %v8170_v30  ;;  %v5466_v39 = vadd.f32 %v8156_v5, %v8519_v31 }
 0x291   : > { %4174 = vst.msk [vmem:[%s8175_s21] sm:$0xff] %vm4173_vm1, %v5459_v28  ;;  %v8520_v28 = vld [vmem:[#allocation3_spill] sm:$0xff] }
 0x292   : > { %v3795_v3 = vpop.f32.mrb[2].mxu0  ;;  %2471 = vmatmul.mubr.f32.gmra.mrb[108].mxu1 %v7898_v23  ;;  %v5181_v23 = vld [vmem:[%s6174_s9 + $0x488] sm:$0xff]  ;;  %v5468_v47 = vadd.f32 %v8156_v5, %v8520_v28 }
 0x293   : > { %v5461_v62 = vadd.f32 %v5460_v51, %v3795_v3  ;;  %v3797_v19 = vpop.f32.mrb[3].mxu0  ;;  %4059 = vmatmul.mubr.f32.gmra.mrb[108].mxu0 %v8184_v61  ;;  %4843 = vmatprep.mubr.msk.f32.mxu1 %vm355_vm0, %v7903_v63  ;;  %v5180_v63 = vld [vmem:[%s6174_s9 + $0x480] sm:$0xff]  ;;  %v5187_v51 = vld [vmem:[%s6174_s9 + $0x4b8] sm:$0xff] }
 0x294   : > { %5271 = vmatprep.mubr.msk.f32.mxu0 %vm355_vm0, %v8191_v45  ;;  %v8521_v19 = vld [vmem:[#allocation4_spill] sm:$0xff] }
 0x295   : > { %4175 = vst.msk [vmem:[%s8175_s21 + $0x8] sm:$0xff] %vm4173_vm1, %v5461_v62 }
 0x296   : > { %v3800_v40 = vpop.f32.mrb[4].mxu0  ;;  %2476 = vmatmul.mubr.f32.gmra.mrb[110].mxu1 %v7912_v6 }
 0x297   : > { %v5463_v9 = vadd.f32 %v5462_v48, %v3800_v40  ;;  %v3802_v21 = vpop.f32.mrb[5].mxu0  ;;  %4064 = vmatmul.mubr.f32.gmra.mrb[110].mxu0 %v8200_v44  ;;  %4844 = vmatprep.mubr.msk.f32.mxu1 %vm355_vm0, %v8079_v17  ;;  %v5182_v17 = vld [vmem:[%s6174_s9 + $0x490] sm:$0xff]  ;;  %v5470_v48 = vadd.f32 %v8156_v5, %v8521_v19 }
 0x298   : > { %5272 = vmatprep.mubr.msk.f32.mxu0 %vm355_vm0, %v5181_v23  ;;  %v5189_v23 = vld [vmem:[%s6174_s9 + $0x4c8] sm:$0xff]  ;;  %v5472_v21 = vadd.f32 %v8156_v5, %v7924_v11  ;;  %v5474_v11 = vadd.f32 %v8156_v5, %v7932_v16  ;;  %v5476_v16 = vadd.f32 %v8156_v5, %v7940_v13  ;;  %v5478_v13 = vadd.f32 %v8156_v5, %v7948_v52 }
 0x299   : > { %4176 = vst.msk [vmem:[%s8175_s21 + $0x10] sm:$0xff] %vm4173_vm1, %v5463_v9  ;;  %v5482_v52 = vadd.f32 %v8156_v5, %v7964_v2 }
 0x29a   : > { %v3805_v6 = vpop.f32.mrb[6].mxu0  ;;  %2481 = vmatmul.mubr.f32.gmra.mrb[112].mxu1 %v8088_v29 }
 0x29b   : > { %v5465_v18 = vadd.f32 %v5464_v46, %v3805_v6  ;;  %v3807_v15 = vpop.f32.mrb[7].mxu0  ;;  %4069 = vmatmul.mubr.f32.gmra.mrb[112].mxu0 %v5180_v63  ;;  %4845 = vmatprep.mubr.msk.f32.mxu1 %vm355_vm0, %v8093_v4  ;;  %v5184_v4 = vld [vmem:[%s6174_s9 + $0x4a0] sm:$0xff]  ;;  %v5191_v63 = vld [vmem:[%s6174_s9 + $0x4d8] sm:$0xff]  ;;  %v5193_v6 = vld [vmem:[%s6174_s9 + $0x4e8] sm:$0xff] }
 0x29c   : > { %5273 = vmatprep.mubr.msk.f32.mxu0 %vm355_vm0, %v5183_v22 }
 0x29d   : > { %4177 = vst.msk [vmem:[%s8175_s21 + $0x18] sm:$0xff] %vm4173_vm1, %v5465_v18 }
 0x29e   : > { %v3810_v41 = vpop.f32.mrb[8].mxu0  ;;  %2486 = vmatmul.mubr.f32.gmra.mrb[114].mxu1 %v8103_v42 }
 0x29f   : > { %v5467_v29 = vadd.f32 %v5466_v39, %v3810_v41  ;;  %v3812_v50 = vpop.f32.mrb[9].mxu0  ;;  %4074 = vmatmul.mubr.f32.gmra.mrb[114].mxu0 %v5182_v17  ;;  %4846 = vmatprep.mubr.msk.f32.mxu1 %vm355_vm0, %v8108_v20  ;;  %v5186_v20 = vld [vmem:[%s6174_s9 + $0x4b0] sm:$0xff]  ;;  %v5195_v17 = vld [vmem:[%s6174_s9 + $0x4f8] sm:$0xff] }
 0x2a0   : > { %5274 = vmatprep.mubr.msk.f32.mxu0 %vm355_vm0, %v5185_v32 }
 0x2a1   : > { %4178 = vst.msk [vmem:[%s8175_s21 + $0x20] sm:$0xff] %vm4173_vm1, %v5467_v29  ;;  %v5480_v29 = vadd.f32 %v8156_v5, %v7956_v54 }
 0x2a2   : > { %v3815_v3 = vpop.f32.mrb[10].mxu0  ;;  %2491 = vmatmul.mubr.f32.gmra.mrb[116].mxu1 %v8117_v53 }
 0x2a3   : > { %v5469_v42 = vadd.f32 %v5468_v47, %v3815_v3  ;;  %v3817_v62 = vpop.f32.mrb[11].mxu0  ;;  %4079 = vmatmul.mubr.f32.gmra.mrb[116].mxu0 %v5184_v4  ;;  %4847 = vmatprep.mubr.msk.f32.mxu1 %vm355_vm0, %v8122_v56  ;;  %v5188_v56 = vld [vmem:[%s6174_s9 + $0x4c0] sm:$0xff] }
 0x2a4   : > { %5275 = vmatprep.mubr.msk.f32.mxu0 %vm355_vm0, %v5187_v51  ;;  %v5484_v51 = vadd.f32 %v8156_v5, %v7972_v25  ;;  %v5486_v62 = vadd.f32 %v8156_v5, %v7980_v27 }
 0x2a5   : > { %4179 = vst.msk [vmem:[%s8175_s21 + $0x28] sm:$0xff] %vm4173_vm1, %v5469_v42 }
 0x2a6   : > { %v3820_v40 = vpop.f32.mrb[12].mxu0  ;;  %2496 = vmatmul.mubr.f32.gmra.mrb[118].mxu1 %v8131_v59 }
 0x2a7   : > { %v5471_v53 = vadd.f32 %v5470_v48, %v3820_v40  ;;  %v3822_v9 = vpop.f32.mrb[13].mxu0  ;;  %4084 = vmatmul.mubr.f32.gmra.mrb[118].mxu0 %v5186_v20  ;;  %4848 = vmatprep.mubr.msk.f32.mxu1 %vm355_vm0, %v8136_v26  ;;  %v5190_v26 = vld [vmem:[%s6174_s9 + $0x4d0] sm:$0xff]  ;;  %v5488_v48 = vadd.f32 %v8156_v5, %v7988_v35 }
 0x2a8   : > { %5276 = vmatprep.mubr.msk.f32.mxu0 %vm355_vm0, %v5189_v23 }
 0x2a9   : > { %4180 = vst.msk [vmem:[%s8175_s21 + $0x30] sm:$0xff] %vm4173_vm1, %v5471_v53  ;;  %v5490_v53 = vadd.f32 %v8156_v5, %v7996_v36 }
 0x2aa   : > { %v3825_v46 = vpop.f32.mrb[14].mxu0  ;;  %2501 = vmatmul.mubr.f32.gmra.mrb[120].mxu1 %v8146_v0 }
 0x2ab   : > { %v5473_v59 = vadd.f32 %v5472_v21, %v3825_v46  ;;  %v3827_v22 = vpop.f32.mrb[15].mxu0  ;;  %4089 = vmatmul.mubr.f32.gmra.mrb[120].mxu0 %v5188_v56  ;;  %4849 = vmatprep.mubr.msk.f32.mxu1 %vm355_vm0, %v8151_v24  ;;  %v5192_v24 = vld [vmem:[%s6174_s9 + $0x4e0] sm:$0xff]  ;;  %v5492_v21 = vadd.f32 %v8156_v5, %v8004_v37 }
 0x2ac   : > { %5277 = vmatprep.mubr.msk.f32.mxu0 %vm355_vm0, %v5191_v63 }
 0x2ad   : > { %4181 = vst.msk [vmem:[%s8175_s21 + $0x38] sm:$0xff] %vm4173_vm1, %v5473_v59  ;;  %v5494_v59 = vadd.f32 %v8156_v5, %v8012_v38 }
 0x2ae   : > { %v3830_v18 = vpop.f32.mrb[16].mxu0  ;;  %2506 = vmatmul.mubr.f32.gmra.mrb[122].mxu1 %v8165_v10 }
 0x2af   : > { %v5475_v0 = vadd.f32 %v5474_v11, %v3830_v18  ;;  %v3832_v15 = vpop.f32.mrb[17].mxu0  ;;  %4094 = vmatmul.mubr.f32.gmra.mrb[122].mxu0 %v5190_v26  ;;  %4850 = vmatprep.mubr.msk.f32.mxu1 %vm355_vm0, %v8170_v30  ;;  %v5194_v30 = vld [vmem:[%s6174_s9 + $0x4f0] sm:$0xff]  ;;  %v5496_v11 = vadd.f32 %v8156_v5, %v8020_v43 }
 0x2b0   : > { %5278 = vmatprep.mubr.msk.f32.mxu0 %vm355_vm0, %v5193_v6 }
 0x2b1   : > { %4182 = vst.msk [vmem:[%s8175_s21 + $0x40] sm:$0xff] %vm4173_vm1, %v5475_v0  ;;  %v5498_v0 = vadd.f32 %v8156_v5, %v8028_v14 }
 0x2b2   : > { %v3835_v31 = vpop.f32.mrb[18].mxu0  ;;  %2511 = vmatmul.mubr.f32.gmra.mrb[124].mxu1 %v8184_v61 }
 0x2b3   : > { %v5477_v10 = vadd.f32 %v5476_v16, %v3835_v31  ;;  %v3837_v39 = vpop.f32.mrb[19].mxu0  ;;  %4099 = vmatmul.mubr.f32.gmra.mrb[124].mxu0 %v5192_v24  ;;  %4851 = vmatprep.mubr.msk.f32.mxu1 %vm355_vm0, %v8191_v45  ;;  %v5500_v16 = vadd.f32 %v8156_v5, %v8036_v55 }
 0x2b4   : > { %5279 = vmatprep.mubr.msk.f32.mxu0 %vm355_vm0, %v5195_v17 }
 0x2b5   : > { %4183 = vst.msk [vmem:[%s8175_s21 + $0x48] sm:$0xff] %vm4173_vm1, %v5477_v10  ;;  %v5502_v10 = vadd.f32 %v8156_v5, %v8044_v58 }
 0x2b6   : > { %v3840_v32 = vpop.f32.mrb[20].mxu0  ;;  %2516 = vmatmul.mubr.f32.gmra.mrb[126].mxu1 %v8200_v44 }
 0x2b7   : > { %v5479_v61 = vadd.f32 %v5478_v13, %v3840_v32  ;;  %v3842_v41 = vpop.f32.mrb[21].mxu0  ;;  %4104 = vmatmul.mubr.f32.gmra.mrb[126].mxu0 %v5194_v30  ;;  %v5504_v13 = vadd.f32 %v8156_v5, %v8052_v7 }
 0x2b8   : > { %v5506_v41 = vadd.f32 %v8156_v5, %v8060_v33 }
 0x2b9   : > { %4184 = vst.msk [vmem:[%s8175_s21 + $0x50] sm:$0xff] %vm4173_vm1, %v5479_v61 }
 0x2ba   : > { %v3845_v45 = vpop.f32.mrb[22].mxu0 }
 0x2bb   : > { %v5481_v50 = vadd.f32 %v5480_v29, %v3845_v45  ;;  %v3847_v4 = vpop.f32.mrb[23].mxu0 }
 0x2bd   : > { %4185 = vst.msk [vmem:[%s8175_s21 + $0x58] sm:$0xff] %vm4173_vm1, %v5481_v50  ;;  %v5508_v50 = vadd.f32 %v8156_v5, %v8068_v8 }
 0x2be   : > { %v3850_v28 = vpop.f32.mrb[24].mxu0 }
 0x2bf   : > { %v5483_v44 = vadd.f32 %v5482_v52, %v3850_v28  ;;  %v3852_v47 = vpop.f32.mrb[25].mxu0  ;;  %v5510_v28 = vadd.f32 %v8156_v5, %v8076_v12 }
 0x2c1   : > { %4186 = vst.msk [vmem:[%s8175_s21 + $0x60] sm:$0xff] %vm4173_vm1, %v5483_v44 }
 0x2c2   : > { %v3855_v54 = vpop.f32.mrb[26].mxu0 }
 0x2c3   : > { %v5485_v3 = vadd.f32 %v5484_v51, %v3855_v54  ;;  %v3857_v42 = vpop.f32.mrb[27].mxu0  ;;  %v5512_v51 = vadd.f32 %v8156_v5, %v8090_v34 }
 0x2c4   : > { %v5514_v42 = vadd.f32 %v8156_v5, %v8105_v49 }
 0x2c5   : > { %4187 = vst.msk [vmem:[%s8175_s21 + $0x68] sm:$0xff] %vm4173_vm1, %v5485_v3 }
 0x2c6   : > { %v3860_v2 = vpop.f32.mrb[28].mxu0 }
 0x2c7   : > { %v5487_v20 = vadd.f32 %v5486_v62, %v3860_v2  ;;  %v3862_v19 = vpop.f32.mrb[29].mxu0 }
 0x2c9   : > { %4188 = vst.msk [vmem:[%s8175_s21 + $0x70] sm:$0xff] %vm4173_vm1, %v5487_v20  ;;  %v5516_v20 = vadd.f32 %v8156_v5, %v8119_v57 }
 0x2ca   : > { %v3865_v25 = vpop.f32.mrb[30].mxu0 }
 0x2cb   : > { %v5489_v23 = vadd.f32 %v5488_v48, %v3865_v25  ;;  %v3867_v40 = vpop.f32.mrb[31].mxu0  ;;  %v5518_v25 = vadd.f32 %v8156_v5, %v8133_v60 }
 0x2cd   : > { %4189 = vst.msk [vmem:[%s8175_s21 + $0x78] sm:$0xff] %vm4173_vm1, %v5489_v23 }
 0x2ce   : > { %v3870_v27 = vpop.f32.mrb[32].mxu0 }
 0x2cf   : > { %v5491_v9 = vadd.f32 %v5490_v53, %v3870_v27  ;;  %v3872_v56 = vpop.f32.mrb[33].mxu0  ;;  %v5520_v53 = vadd.f32 %v8156_v5, %v8148_v1 }
 0x2d1   : > { %4190 = vst.msk [vmem:[%s8175_s21 + $0x80] sm:$0xff] %vm4173_vm1, %v5491_v9 }
 0x2d2   : > { %v3875_v35 = vpop.f32.mrb[34].mxu0 }
 0x2d3   : > { %v5493_v63 = vadd.f32 %v5492_v21, %v3875_v35  ;;  %v3877_v46 = vpop.f32.mrb[35].mxu0 }
 0x2d5   : > { %4191 = vst.msk [vmem:[%s8175_s21 + $0x88] sm:$0xff] %vm4173_vm1, %v5493_v63 }
 0x2d6   : > { %v3880_v36 = vpop.f32.mrb[36].mxu0 }
 0x2d7   : > { %v5495_v22 = vadd.f32 %v5494_v59, %v3880_v36  ;;  %v3882_v26 = vpop.f32.mrb[37].mxu0 }
 0x2d9   : > { %4192 = vst.msk [vmem:[%s8175_s21 + $0x90] sm:$0xff] %vm4173_vm1, %v5495_v22 }
 0x2da   : > { %v3885_v37 = vpop.f32.mrb[38].mxu0 }
 0x2db   : > { %v5497_v6 = vadd.f32 %v5496_v11, %v3885_v37  ;;  %v3887_v18 = vpop.f32.mrb[39].mxu0 }
 0x2dd   : > { %4193 = vst.msk [vmem:[%s8175_s21 + $0x98] sm:$0xff] %vm4173_vm1, %v5497_v6 }
 0x2de   : > { %v3890_v38 = vpop.f32.mrb[40].mxu0 }
 0x2df   : > { %v5499_v15 = vadd.f32 %v5498_v0, %v3890_v38  ;;  %v3892_v24 = vpop.f32.mrb[41].mxu0 }
 0x2e1   : > { %4194 = vst.msk [vmem:[%s8175_s21 + $0xa0] sm:$0xff] %vm4173_vm1, %v5499_v15 }
 0x2e2   : > { %v3895_v43 = vpop.f32.mrb[42].mxu0 }
 0x2e3   : > { %v5501_v17 = vadd.f32 %v5500_v16, %v3895_v43  ;;  %v3897_v31 = vpop.f32.mrb[43].mxu0 }
 0x2e5   : > { %4195 = vst.msk [vmem:[%s8175_s21 + $0xa8] sm:$0xff] %vm4173_vm1, %v5501_v17 }
 0x2e6   : > { %v3900_v14 = vpop.f32.mrb[44].mxu0 }
 0x2e7   : > { %v5503_v39 = vadd.f32 %v5502_v10, %v3900_v14  ;;  %v3902_v30 = vpop.f32.mrb[45].mxu0 }
 0x2e9   : > { %4196 = vst.msk [vmem:[%s8175_s21 + $0xb0] sm:$0xff] %vm4173_vm1, %v5503_v39 }
 0x2ea   : > { %v3905_v55 = vpop.f32.mrb[46].mxu0 }
 0x2eb   : > { %v5505_v32 = vadd.f32 %v5504_v13, %v3905_v55  ;;  %v3907_v61 = vpop.f32.mrb[47].mxu0 }
 0x2ed   : > { %4197 = vst.msk [vmem:[%s8175_s21 + $0xb8] sm:$0xff] %vm4173_vm1, %v5505_v32 }
 0x2ee   : > { %v3910_v58 = vpop.f32.mrb[48].mxu0 }
 0x2ef   : > { %v5507_v29 = vadd.f32 %v5506_v41, %v3910_v58  ;;  %v3912_v45 = vpop.f32.mrb[49].mxu0 }
 0x2f1   : > { %4198 = vst.msk [vmem:[%s8175_s21 + $0xc0] sm:$0xff] %vm4173_vm1, %v5507_v29 }
 0x2f2   : > { %v3915_v7 = vpop.f32.mrb[50].mxu0 }
 0x2f3   : > { %v5509_v4 = vadd.f32 %v5508_v50, %v3915_v7  ;;  %v3917_v52 = vpop.f32.mrb[51].mxu0 }
 0x2f5   : > { %4199 = vst.msk [vmem:[%s8175_s21 + $0xc8] sm:$0xff] %vm4173_vm1, %v5509_v4 }
 0x2f6   : > { %v3920_v33 = vpop.f32.mrb[52].mxu0 }
 0x2f7   : > { %v5511_v44 = vadd.f32 %v5510_v28, %v3920_v33  ;;  %v3922_v47 = vpop.f32.mrb[53].mxu0 }
 0x2f9   : > { %4200 = vst.msk [vmem:[%s8175_s21 + $0xd0] sm:$0xff] %vm4173_vm1, %v5511_v44 }
 0x2fa   : > { %v3925_v8 = vpop.f32.mrb[54].mxu0 }
 0x2fb   : > { %v5513_v54 = vadd.f32 %v5512_v51, %v3925_v8  ;;  %v3927_v3 = vpop.f32.mrb[55].mxu0 }
 0x2fd   : > { %4201 = vst.msk [vmem:[%s8175_s21 + $0xd8] sm:$0xff] %vm4173_vm1, %v5513_v54 }
 0x2fe   : > { %v3930_v12 = vpop.f32.mrb[56].mxu0 }
 0x2ff   : > { %v5515_v62 = vadd.f32 %v5514_v42, %v3930_v12  ;;  %v3932_v2 = vpop.f32.mrb[57].mxu0 }
 0x301   : > { %4202 = vst.msk [vmem:[%s8175_s21 + $0xe0] sm:$0xff] %vm4173_vm1, %v5515_v62 }
 0x302   : > { %v3935_v34 = vpop.f32.mrb[58].mxu0 }
 0x303   : > { %v5517_v19 = vadd.f32 %v5516_v20, %v3935_v34  ;;  %v3937_v48 = vpop.f32.mrb[59].mxu0 }
 0x305   : > { %4203 = vst.msk [vmem:[%s8175_s21 + $0xe8] sm:$0xff] %vm4173_vm1, %v5517_v19 }
 0x306   : > { %v3940_v49 = vpop.f32.mrb[60].mxu0 }
 0x307   : > { %v5519_v23 = vadd.f32 %v5518_v25, %v3940_v49  ;;  %v3942_v40 = vpop.f32.mrb[61].mxu0 }
 0x309   : > { %4204 = vst.msk [vmem:[%s8175_s21 + $0xf0] sm:$0xff] %vm4173_vm1, %v5519_v23 }
 0x30a   : > { %v3945_v57 = vpop.f32.mrb[62].mxu0 }
 0x30b   : > { %v5521_v27 = vadd.f32 %v5520_v53, %v3945_v57  ;;  %v3947_v9 = vpop.f32.mrb[63].mxu0 }
 0x30d   : > { %4205 = vst.msk [vmem:[%s8175_s21 + $0xf8] sm:$0xff] %vm4173_vm1, %v5521_v27  ;;  %v2362_v56 = vpop.f32.mrb[64].mxu1 }
 0x30e   : > { %v5522_v60 = vadd.f32 %v8156_v5, %v2362_v56  ;;  %v3950_v21 = vpop.f32.mrb[64].mxu0  ;;  %v2364_v35 = vpop.f32.mrb[65].mxu1 }
 0x30f   : > { %v3952_v63 = vpop.f32.mrb[65].mxu0 }
 0x310   : > { %v5523_v46 = vadd.f32 %v5522_v60, %v3950_v21 }
 0x311   : > { %v2367_v59 = vpop.f32.mrb[66].mxu1 }
 0x312   : > { %4206 = vst.msk [vmem:[%s8175_s21 + $0x100] sm:$0xff] %vm4173_vm1, %v5523_v46  ;;  %v5524_v1 = vadd.f32 %v8156_v5, %v2367_v59  ;;  %v3955_v36 = vpop.f32.mrb[66].mxu0  ;;  %v2369_v22 = vpop.f32.mrb[67].mxu1 }
 0x313   : > { %v3957_v26 = vpop.f32.mrb[67].mxu0 }
 0x314   : > { %v5525_v11 = vadd.f32 %v5524_v1, %v3955_v36 }
 0x315   : > { %v2372_v37 = vpop.f32.mrb[68].mxu1 }
 0x316   : > { %4207 = vst.msk [vmem:[%s8175_s21 + $0x108] sm:$0xff] %vm4173_vm1, %v5525_v11  ;;  %v5526_v6 = vadd.f32 %v8156_v5, %v2372_v37  ;;  %v3960_v18 = vpop.f32.mrb[68].mxu0  ;;  %v2374_v0 = vpop.f32.mrb[69].mxu1 }
 0x317   : > { %v3962_v38 = vpop.f32.mrb[69].mxu0 }
 0x318   : > { %v5527_v15 = vadd.f32 %v5526_v6, %v3960_v18 }
 0x319   : > { %v2377_v24 = vpop.f32.mrb[70].mxu1 }
 0x31a   : > { %4208 = vst.msk [vmem:[%s8175_s21 + $0x110] sm:$0xff] %vm4173_vm1, %v5527_v15  ;;  %v5528_v16 = vadd.f32 %v8156_v5, %v2377_v24  ;;  %v3965_v43 = vpop.f32.mrb[70].mxu0  ;;  %v2379_v17 = vpop.f32.mrb[71].mxu1 }
 0x31b   : > { %v3967_v31 = vpop.f32.mrb[71].mxu0 }
 0x31c   : > { %v5529_v10 = vadd.f32 %v5528_v16, %v3965_v43 }
 0x31d   : > { %v2382_v14 = vpop.f32.mrb[72].mxu1 }
 0x31e   : > { %4209 = vst.msk [vmem:[%s8175_s21 + $0x118] sm:$0xff] %vm4173_vm1, %v5529_v10  ;;  %v5530_v39 = vadd.f32 %v8156_v5, %v2382_v14  ;;  %v3970_v30 = vpop.f32.mrb[72].mxu0  ;;  %v2384_v13 = vpop.f32.mrb[73].mxu1 }
 0x31f   : > { %v3972_v55 = vpop.f32.mrb[73].mxu0 }
 0x320   : > { %v5531_v32 = vadd.f32 %v5530_v39, %v3970_v30 }
 0x321   : > { %v2387_v61 = vpop.f32.mrb[74].mxu1 }
 0x322   : > { %4210 = vst.msk [vmem:[%s8175_s21 + $0x120] sm:$0xff] %vm4173_vm1, %v5531_v32  ;;  %v5532_v41 = vadd.f32 %v8156_v5, %v2387_v61  ;;  %v3975_v58 = vpop.f32.mrb[74].mxu0  ;;  %v2389_v29 = vpop.f32.mrb[75].mxu1 }
 0x323   : > { %v3977_v45 = vpop.f32.mrb[75].mxu0 }
 0x324   : > { %v5533_v50 = vadd.f32 %v5532_v41, %v3975_v58 }
 0x325   : > { %v2392_v7 = vpop.f32.mrb[76].mxu1 }
 0x326   : > { %4211 = vst.msk [vmem:[%s8175_s21 + $0x128] sm:$0xff] %vm4173_vm1, %v5533_v50  ;;  %v5534_v4 = vadd.f32 %v8156_v5, %v2392_v7  ;;  %v3980_v52 = vpop.f32.mrb[76].mxu0  ;;  %v2394_v28 = vpop.f32.mrb[77].mxu1 }
 0x327   : > { %v3982_v33 = vpop.f32.mrb[77].mxu0 }
 0x328   : > { %v5535_v44 = vadd.f32 %v5534_v4, %v3980_v52 }
 0x329   : > { %v2397_v47 = vpop.f32.mrb[78].mxu1 }
 0x32a   : > { %4212 = vst.msk [vmem:[%s8175_s21 + $0x130] sm:$0xff] %vm4173_vm1, %v5535_v44  ;;  %v5536_v51 = vadd.f32 %v8156_v5, %v2397_v47  ;;  %v3985_v8 = vpop.f32.mrb[78].mxu0  ;;  %v2399_v54 = vpop.f32.mrb[79].mxu1 }
 0x32b   : > { %v3987_v3 = vpop.f32.mrb[79].mxu0 }
 0x32c   : > { %v5537_v42 = vadd.f32 %v5536_v51, %v3985_v8 }
 0x32d   : > { %v2402_v12 = vpop.f32.mrb[80].mxu1 }
 0x32e   : > { %4213 = vst.msk [vmem:[%s8175_s21 + $0x138] sm:$0xff] %vm4173_vm1, %v5537_v42  ;;  %v5538_v62 = vadd.f32 %v8156_v5, %v2402_v12  ;;  %v3990_v2 = vpop.f32.mrb[80].mxu0  ;;  %v2404_v20 = vpop.f32.mrb[81].mxu1 }
 0x32f   : > { %v3992_v34 = vpop.f32.mrb[81].mxu0 }
 0x330   : > { %v5539_v19 = vadd.f32 %v5538_v62, %v3990_v2 }
 0x331   : > { %v2407_v48 = vpop.f32.mrb[82].mxu1 }
 0x332   : > { %4214 = vst.msk [vmem:[%s8175_s21 + $0x140] sm:$0xff] %vm4173_vm1, %v5539_v19  ;;  %v5540_v25 = vadd.f32 %v8156_v5, %v2407_v48  ;;  %v3995_v49 = vpop.f32.mrb[82].mxu0  ;;  %v2409_v23 = vpop.f32.mrb[83].mxu1 }
 0x333   : > { %v3997_v40 = vpop.f32.mrb[83].mxu0 }
 0x334   : > { %v5541_v53 = vadd.f32 %v5540_v25, %v3995_v49 }
 0x335   : > { %v2412_v57 = vpop.f32.mrb[84].mxu1 }
 0x336   : > { %4215 = vst.msk [vmem:[%s8175_s21 + $0x148] sm:$0xff] %vm4173_vm1, %v5541_v53  ;;  %v5542_v27 = vadd.f32 %v8156_v5, %v2412_v57  ;;  %v4000_v9 = vpop.f32.mrb[84].mxu0  ;;  %v2414_v56 = vpop.f32.mrb[85].mxu1 }
 0x337   : > { %v4002_v60 = vpop.f32.mrb[85].mxu0 }
 0x338   : > { %v5543_v21 = vadd.f32 %v5542_v27, %v4000_v9 }
 0x339   : > { %v2417_v35 = vpop.f32.mrb[86].mxu1 }
 0x33a   : > { %4216 = vst.msk [vmem:[%s8175_s21 + $0x150] sm:$0xff] %vm4173_vm1, %v5543_v21  ;;  %v5544_v63 = vadd.f32 %v8156_v5, %v2417_v35  ;;  %v4005_v46 = vpop.f32.mrb[86].mxu0  ;;  %v2419_v59 = vpop.f32.mrb[87].mxu1 }
 0x33b   : > { %v4007_v1 = vpop.f32.mrb[87].mxu0 }
 0x33c   : > { %v5545_v36 = vadd.f32 %v5544_v63, %v4005_v46 }
 0x33d   : > { %v2422_v22 = vpop.f32.mrb[88].mxu1 }
 0x33e   : > { %4217 = vst.msk [vmem:[%s8175_s21 + $0x158] sm:$0xff] %vm4173_vm1, %v5545_v36  ;;  %v5546_v26 = vadd.f32 %v8156_v5, %v2422_v22  ;;  %v4010_v11 = vpop.f32.mrb[88].mxu0  ;;  %v2424_v37 = vpop.f32.mrb[89].mxu1 }
 0x33f   : > { %v4012_v6 = vpop.f32.mrb[89].mxu0 }
 0x340   : > { %v5547_v18 = vadd.f32 %v5546_v26, %v4010_v11 }
 0x341   : > { %v2427_v0 = vpop.f32.mrb[90].mxu1 }
 0x342   : > { %4218 = vst.msk [vmem:[%s8175_s21 + $0x160] sm:$0xff] %vm4173_vm1, %v5547_v18  ;;  %v5548_v38 = vadd.f32 %v8156_v5, %v2427_v0  ;;  %v4015_v15 = vpop.f32.mrb[90].mxu0  ;;  %v2429_v24 = vpop.f32.mrb[91].mxu1 }
 0x343   : > { %v4017_v16 = vpop.f32.mrb[91].mxu0 }
 0x344   : > { %v5549_v43 = vadd.f32 %v5548_v38, %v4015_v15 }
 0x345   : > { %v2432_v17 = vpop.f32.mrb[92].mxu1 }
 0x346   : > { %4219 = vst.msk [vmem:[%s8175_s21 + $0x168] sm:$0xff] %vm4173_vm1, %v5549_v43  ;;  %v5550_v31 = vadd.f32 %v8156_v5, %v2432_v17  ;;  %v4020_v10 = vpop.f32.mrb[92].mxu0  ;;  %v2434_v14 = vpop.f32.mrb[93].mxu1 }
 0x347   : > { %v4022_v39 = vpop.f32.mrb[93].mxu0 }
 0x348   : > { %v5551_v30 = vadd.f32 %v5550_v31, %v4020_v10 }
 0x349   : > { %v2437_v13 = vpop.f32.mrb[94].mxu1 }
 0x34a   : > { %4220 = vst.msk [vmem:[%s8175_s21 + $0x170] sm:$0xff] %vm4173_vm1, %v5551_v30  ;;  %v5552_v55 = vadd.f32 %v8156_v5, %v2437_v13  ;;  %v4025_v32 = vpop.f32.mrb[94].mxu0  ;;  %v2439_v61 = vpop.f32.mrb[95].mxu1 }
 0x34b   : > { %v4027_v41 = vpop.f32.mrb[95].mxu0 }
 0x34c   : > { %v5553_v58 = vadd.f32 %v5552_v55, %v4025_v32 }
 0x34d   : > { %v2442_v29 = vpop.f32.mrb[96].mxu1 }
 0x34e   : > { %4221 = vst.msk [vmem:[%s8175_s21 + $0x178] sm:$0xff] %vm4173_vm1, %v5553_v58  ;;  %v5554_v45 = vadd.f32 %v8156_v5, %v2442_v29  ;;  %v4030_v50 = vpop.f32.mrb[96].mxu0  ;;  %v2444_v7 = vpop.f32.mrb[97].mxu1 }
 0x34f   : > { %v4032_v4 = vpop.f32.mrb[97].mxu0 }
 0x350   : > { %v5555_v52 = vadd.f32 %v5554_v45, %v4030_v50 }
 0x351   : > { %v2447_v28 = vpop.f32.mrb[98].mxu1 }
 0x352   : > { %4222 = vst.msk [vmem:[%s8175_s21 + $0x180] sm:$0xff] %vm4173_vm1, %v5555_v52  ;;  %v5556_v33 = vadd.f32 %v8156_v5, %v2447_v28  ;;  %v4035_v44 = vpop.f32.mrb[98].mxu0  ;;  %v2449_v47 = vpop.f32.mrb[99].mxu1 }
 0x353   : > { %v4037_v51 = vpop.f32.mrb[99].mxu0 }
 0x354   : > { %v5557_v8 = vadd.f32 %v5556_v33, %v4035_v44 }
 0x355   : > { %v2452_v54 = vpop.f32.mrb[100].mxu1 }
 0x356   : > { %4223 = vst.msk [vmem:[%s8175_s21 + $0x188] sm:$0xff] %vm4173_vm1, %v5557_v8  ;;  %v5558_v3 = vadd.f32 %v8156_v5, %v2452_v54  ;;  %v4040_v42 = vpop.f32.mrb[100].mxu0  ;;  %v2454_v12 = vpop.f32.mrb[101].mxu1 }
 0x357   : > { %v4042_v62 = vpop.f32.mrb[101].mxu0 }
 0x358   : > { %v5559_v2 = vadd.f32 %v5558_v3, %v4040_v42 }
 0x359   : > { %v2457_v20 = vpop.f32.mrb[102].mxu1 }
 0x35a   : > { %4224 = vst.msk [vmem:[%s8175_s21 + $0x190] sm:$0xff] %vm4173_vm1, %v5559_v2  ;;  %v5560_v34 = vadd.f32 %v8156_v5, %v2457_v20  ;;  %v4045_v19 = vpop.f32.mrb[102].mxu0  ;;  %v2459_v48 = vpop.f32.mrb[103].mxu1 }
 0x35b   : > { %v4047_v25 = vpop.f32.mrb[103].mxu0 }
 0x35c   : > { %v5561_v49 = vadd.f32 %v5560_v34, %v4045_v19 }
 0x35d   : > { %v2462_v23 = vpop.f32.mrb[104].mxu1 }
 0x35e   : > { %4225 = vst.msk [vmem:[%s8175_s21 + $0x198] sm:$0xff] %vm4173_vm1, %v5561_v49  ;;  %v5562_v40 = vadd.f32 %v8156_v5, %v2462_v23  ;;  %v4050_v53 = vpop.f32.mrb[104].mxu0  ;;  %v2464_v57 = vpop.f32.mrb[105].mxu1 }
 0x35f   : > { %v4052_v27 = vpop.f32.mrb[105].mxu0 }
 0x360   : > { %v5563_v9 = vadd.f32 %v5562_v40, %v4050_v53 }
 0x361   : > { %v2467_v56 = vpop.f32.mrb[106].mxu1 }
 0x362   : > { %4226 = vst.msk [vmem:[%s8175_s21 + $0x1a0] sm:$0xff] %vm4173_vm1, %v5563_v9  ;;  %v5564_v60 = vadd.f32 %v8156_v5, %v2467_v56  ;;  %v4055_v21 = vpop.f32.mrb[106].mxu0  ;;  %v2469_v35 = vpop.f32.mrb[107].mxu1 }
 0x363   : > { %v4057_v63 = vpop.f32.mrb[107].mxu0 }
 0x364   : > { %v5565_v46 = vadd.f32 %v5564_v60, %v4055_v21 }
 0x365   : > { %v2472_v59 = vpop.f32.mrb[108].mxu1 }
 0x366   : > { %4227 = vst.msk [vmem:[%s8175_s21 + $0x1a8] sm:$0xff] %vm4173_vm1, %v5565_v46  ;;  %v5566_v1 = vadd.f32 %v8156_v5, %v2472_v59  ;;  %v4060_v36 = vpop.f32.mrb[108].mxu0  ;;  %v2474_v22 = vpop.f32.mrb[109].mxu1 }
 0x367   : > { %v4062_v26 = vpop.f32.mrb[109].mxu0 }
 0x368   : > { %v5567_v11 = vadd.f32 %v5566_v1, %v4060_v36 }
 0x369   : > { %v2477_v37 = vpop.f32.mrb[110].mxu1 }
 0x36a   : > { %4228 = vst.msk [vmem:[%s8175_s21 + $0x1b0] sm:$0xff] %vm4173_vm1, %v5567_v11  ;;  %v5568_v6 = vadd.f32 %v8156_v5, %v2477_v37  ;;  %v4065_v18 = vpop.f32.mrb[110].mxu0  ;;  %v2479_v0 = vpop.f32.mrb[111].mxu1 }
 0x36b   : > { %v4067_v38 = vpop.f32.mrb[111].mxu0 }
 0x36c   : > { %v5569_v15 = vadd.f32 %v5568_v6, %v4065_v18 }
 0x36d   : > { %v2482_v24 = vpop.f32.mrb[112].mxu1 }
 0x36e   : > { %4229 = vst.msk [vmem:[%s8175_s21 + $0x1b8] sm:$0xff] %vm4173_vm1, %v5569_v15  ;;  %v5570_v16 = vadd.f32 %v8156_v5, %v2482_v24  ;;  %v4070_v43 = vpop.f32.mrb[112].mxu0  ;;  %v2484_v17 = vpop.f32.mrb[113].mxu1 }
 0x36f   : > { %v4072_v31 = vpop.f32.mrb[113].mxu0 }
 0x370   : > { %v5571_v10 = vadd.f32 %v5570_v16, %v4070_v43 }
 0x371   : > { %v2487_v14 = vpop.f32.mrb[114].mxu1 }
 0x372   : > { %4230 = vst.msk [vmem:[%s8175_s21 + $0x1c0] sm:$0xff] %vm4173_vm1, %v5571_v10  ;;  %v5572_v39 = vadd.f32 %v8156_v5, %v2487_v14  ;;  %v4075_v30 = vpop.f32.mrb[114].mxu0  ;;  %v2489_v13 = vpop.f32.mrb[115].mxu1 }
 0x373   : > { %v4077_v55 = vpop.f32.mrb[115].mxu0 }
 0x374   : > { %v5573_v32 = vadd.f32 %v5572_v39, %v4075_v30 }
 0x375   : > { %v2492_v61 = vpop.f32.mrb[116].mxu1 }
 0x376   : > { %4231 = vst.msk [vmem:[%s8175_s21 + $0x1c8] sm:$0xff] %vm4173_vm1, %v5573_v32  ;;  %v5574_v41 = vadd.f32 %v8156_v5, %v2492_v61  ;;  %v4080_v58 = vpop.f32.mrb[116].mxu0  ;;  %v2494_v29 = vpop.f32.mrb[117].mxu1 }
 0x377   : > { %v4082_v45 = vpop.f32.mrb[117].mxu0 }
 0x378   : > { %v5575_v50 = vadd.f32 %v5574_v41, %v4080_v58 }
 0x379   : > { %v2497_v7 = vpop.f32.mrb[118].mxu1 }
 0x37a   : > { %4232 = vst.msk [vmem:[%s8175_s21 + $0x1d0] sm:$0xff] %vm4173_vm1, %v5575_v50  ;;  %v5576_v4 = vadd.f32 %v8156_v5, %v2497_v7  ;;  %v4085_v52 = vpop.f32.mrb[118].mxu0  ;;  %v2499_v28 = vpop.f32.mrb[119].mxu1 }
 0x37b   : > { %v4087_v33 = vpop.f32.mrb[119].mxu0 }
 0x37c   : > { %v5577_v44 = vadd.f32 %v5576_v4, %v4085_v52 }
 0x37d   : > { %v2502_v47 = vpop.f32.mrb[120].mxu1 }
 0x37e   : > { %4233 = vst.msk [vmem:[%s8175_s21 + $0x1d8] sm:$0xff] %vm4173_vm1, %v5577_v44  ;;  %v5578_v51 = vadd.f32 %v8156_v5, %v2502_v47  ;;  %v4090_v8 = vpop.f32.mrb[120].mxu0  ;;  %v2504_v54 = vpop.f32.mrb[121].mxu1 }
 0x37f   : > { %v4092_v3 = vpop.f32.mrb[121].mxu0 }
 0x380   : > { %v5579_v42 = vadd.f32 %v5578_v51, %v4090_v8 }
 0x381   : > { %v2507_v12 = vpop.f32.mrb[122].mxu1 }
 0x382   : > { %4234 = vst.msk [vmem:[%s8175_s21 + $0x1e0] sm:$0xff] %vm4173_vm1, %v5579_v42  ;;  %v5580_v62 = vadd.f32 %v8156_v5, %v2507_v12  ;;  %v4095_v2 = vpop.f32.mrb[122].mxu0  ;;  %v2509_v20 = vpop.f32.mrb[123].mxu1 }
 0x383   : > { %v4097_v34 = vpop.f32.mrb[123].mxu0 }
 0x384   : > { %v5581_v19 = vadd.f32 %v5580_v62, %v4095_v2 }
 0x385   : > { %v2512_v48 = vpop.f32.mrb[124].mxu1 }
 0x386   : > { %4235 = vst.msk [vmem:[%s8175_s21 + $0x1e8] sm:$0xff] %vm4173_vm1, %v5581_v19  ;;  %v5582_v25 = vadd.f32 %v8156_v5, %v2512_v48  ;;  %v4100_v49 = vpop.f32.mrb[124].mxu0  ;;  %v2514_v23 = vpop.f32.mrb[125].mxu1 }
 0x387   : > { %v4102_v40 = vpop.f32.mrb[125].mxu0 }
 0x388   : > { %v5583_v53 = vadd.f32 %v5582_v25, %v4100_v49 }
 0x389   : > { %v2517_v57 = vpop.f32.mrb[126].mxu1 }
 0x38a   : > { %4236 = vst.msk [vmem:[%s8175_s21 + $0x1f0] sm:$0xff] %vm4173_vm1, %v5583_v53  ;;  %v5584_v27 = vadd.f32 %v8156_v5, %v2517_v57  ;;  %v4105_v9 = vpop.f32.mrb[126].mxu0  ;;  %v2519_v56 = vpop.f32.mrb[127].mxu1 }
 0x38b   : > { %v4107_v60 = vpop.f32.mrb[127].mxu0 }
 0x38c   : > { %v5585_v21 = vadd.f32 %v5584_v27, %v4105_v9 }
 0x38e   : > { %4237 = vst.msk [vmem:[%s8175_s21 + $0x1f8] sm:$0xff] %vm4173_vm1, %v5585_v21 }
 0x38f PF: > { %s13_s16 = sadd.s32 1, %s6050_s16   ;;  %s8522_s12 = smov %s6042_s14 }
 0x390   : > { %p10_p7 = scmp.ge.s32.totalorder %s13_s16, 6   ;;  %s8523_s13 = smov %s6046_s15 }
 0x391   : > { %s8524_s14 = smov %s8527_s17  ;;  %s8525_s15 = smov %s8531_s18 }
 0x392   :  { %12 = sbr.rel (!%p10_p7) target bundleno = 3 (0x3), region = 71 }

</bundles_post_ra>
